<compile_context>
chip_gen: v7x
topology: tpu7x:2x2x1
jax: 0.10.0
libtpu: 0.0.40
codegen_flags: <defaults>
</compile_context>

<pallas_src>
import functools

import jax
import jax.numpy as jnp
from jax.experimental import pallas as pl
from jax.experimental.pallas import tpu as pltpu


# ---------------------------------------------------------------------------
# small helpers
# ---------------------------------------------------------------------------
def round_up(x, m):
    return (x + m - 1) // m * m


_VMEM_LIMIT = None


def vmem_limit_bytes():
    """Generation-dependent VMEM limit (<= 3/4 of physical, capped at 100 MiB)."""
    global _VMEM_LIMIT
    if _VMEM_LIMIT is None:
        try:
            cap = int(pltpu.get_tpu_info().vmem_capacity_bytes)
        except Exception:
            cap = 64 * 1024 * 1024
        _VMEM_LIMIT = min(cap * 3 // 4, 100 * 1024 * 1024)
    return _VMEM_LIMIT


def plane_geom(H, W):
    """Geometry of the lane-flattened padded plane for an HxW spatial slice."""
    Hp, Wp = H + 2, W + 2
    pad_l = Wp + 1                                    # lane halo >= max |tap shift|
    L = round_up(pad_l + Hp * Wp + Wp + 1, 128)       # lane-dense total width
    return Hp, Wp, pad_l, L


def to_plane_layout(x, geom, dtype=jnp.bfloat16):
    """x: [B, D, C, H, W] -> [B, D+2, C, L] with zero ring / halo / depth padding."""
    B, D, C, H, W = x.shape
    Hp, Wp, pad_l, L = geom
    xp = jnp.pad(x, ((0, 0), (0, 0), (0, 0), (1, 1), (1, 1)))
    xp = xp.reshape(B, D, C, Hp * Wp)
    xp = jnp.pad(xp, ((0, 0), (0, 0), (0, 0), (pad_l, L - pad_l - Hp * Wp)))
    xp = jnp.pad(xp, ((0, 0), (1, 1), (0, 0), (0, 0)))
    return xp.astype(dtype)


def from_plane_layout(y, geom, H, W, depth_pad):
    """[B, Dp, C, L] -> [B, D, C, H, W] (drop halo, ring and depth padding)."""
    Hp, Wp, pad_l, _ = geom
    if depth_pad:
        y = y[:, 1:y.shape[1] - 1]
    B, Dv, C, _ = y.shape
    y = y[..., pad_l:pad_l + Hp * Wp].reshape(B, Dv, C, Hp, Wp)
    return y[..., 1:1 + H, 1:1 + W]


def ring_mask(geom, H, W):
    """[1, L] float32 mask: 1 at valid interior positions, 0 on ring / halo."""
    Hp, Wp, pad_l, L = geom
    m = jnp.zeros((Hp, Wp), jnp.float32).at[1:1 + H, 1:1 + W].set(1.0)
    return jnp.pad(m.reshape(1, Hp * Wp), ((0, 0), (pad_l, L - pad_l - Hp * Wp)))


# ---------------------------------------------------------------------------
# Pallas kernels
# ---------------------------------------------------------------------------
def _conv_plane_kernel(x0_ref, x1_ref, x2_ref, w_ref, scale_ref, shift_ref,
                       mask_ref, out_ref, *, wp, pad_l, n, lanes, d_lo, d_hi,
                       apply_relu):
    """3x3x3 conv on one padded depth-plane triple, transposed matmul form.

    x*_ref : [Cin, L]   padded-input depth slices kd = 0, 1, 2
    w_ref  : [Cout, 27*Cin] ; scale/shift: [Cout, 1] ; mask: [1, L]
    out_ref: [Cout, L]  (zeros outside the valid interior)
    """
    dp = pl.program_id(1)
    interior = jnp.logical_and(dp >= d_lo, dp <= d_hi)

    @pl.when(interior)
    def _compute():
        slabs = (x0_ref[...], x1_ref[...], x2_ref[...])
        pieces = []
        for kd in range(3):
            for kh in range(3):
                for kw in range(3):
                    off = pad_l + (kh - 1) * wp + (kw - 1)
                    pieces.append(slabs[kd][:, off:off + n])
        patches = jnp.concatenate(pieces, axis=0)                  # [27*Cin, n]
        acc = jnp.dot(w_ref[...], patches,
                      preferred_element_type=jnp.float32)          # [Cout, n]
        y = acc * scale_ref[...] + shift_ref[...]
        if apply_relu:
            y = jnp.maximum(y, 0.0)
        y = y * mask_ref[:, pad_l:pad_l + n]                       # zero the padding ring
        cout = y.shape[0]
        full = jnp.concatenate(
            [jnp.zeros((cout, pad_l), y.dtype), y,
             jnp.zeros((cout, lanes - pad_l - n), y.dtype)], axis=1)
        out_ref[...] = full.astype(out_ref.dtype)

    @pl.when(jnp.logical_not(interior))
    def _zero():
        out_ref[...] = jnp.zeros(out_ref.shape, out_ref.dtype)


def _deconv_fused_kernel(x0_ref, x1_ref, w_ref, shift_ref, out_ref, *,
                         wp2, pad_l2, n2, lanes2):
    """Fused polyphase ConvTranspose3d: one [256, 512] matmul over the 2x2x2
    input neighbourhood produces all 8 phases x Cout per base position."""
    slabs = (x0_ref[...], x1_ref[...])
    pieces = []
    for ad in range(2):
        for ah in range(2):
            for aw in range(2):
                off = pad_l2 + ah * wp2 + aw
                pieces.append(slabs[ad][:, off:off + n2])
    patches = jnp.concatenate(pieces, axis=0)                      # [8*Cin, n2]
    acc = jnp.dot(w_ref[...], patches, preferred_element_type=jnp.float32)
    y = jnp.maximum(acc + shift_ref[...], 0.0)                     # bias + ReLU
    cout8 = y.shape[0]
    full = jnp.concatenate(
        [jnp.zeros((cout8, pad_l2), y.dtype), y,
         jnp.zeros((cout8, lanes2 - pad_l2 - n2), y.dtype)], axis=1)
    out_ref[...] = full.astype(out_ref.dtype)


# ---------------------------------------------------------------------------
# pallas_call wrappers
# ---------------------------------------------------------------------------
def conv3x3_plane(x, wt, scale, shift, mask, *, geom, depth_stride=1,
                  apply_relu=True, out_dtype=jnp.bfloat16):
    """x: [B, Dp_in, Cin, L] -> [B, Dp_in (or Dout), Cout, L]."""
    B, Dp_in, cin, L = x.shape
    Hp, Wp, pad_l, Lg = geom
    assert L == Lg
    n = Hp * Wp
    cout, K = wt.shape
    assert K == 27 * cin

    if depth_stride == 1:                      # depth-padded output, grid over Dp
        Dgrid = Dp_in
        d_lo, d_hi = 1, Dp_in - 2

        def in_idx(kd):
            return lambda b, d: (b, jnp.clip(d - 1 + kd, 0, Dp_in - 1), 0, 0)
    else:                                      # stride 2 in depth, no depth padding
        Dgrid = (Dp_in - 2) // 2
        d_lo, d_hi = 0, Dgrid - 1

        def in_idx(kd):
            return lambda b, d: (b, 2 * d + kd, 0, 0)

    kern = functools.partial(_conv_plane_kernel, wp=Wp, pad_l=pad_l, n=n,
                             lanes=L, d_lo=d_lo, d_hi=d_hi, apply_relu=apply_relu)
    return pl.pallas_call(
        kern,
        out_shape=jax.ShapeDtypeStruct((B, Dgrid, cout, L), out_dtype),
        grid_spec=pltpu.PrefetchScalarGridSpec(
            num_scalar_prefetch=0,
            grid=(B, Dgrid),
            in_specs=[
                pl.BlockSpec((None, None, cin, L), in_idx(0)),
                pl.BlockSpec((None, None, cin, L), in_idx(1)),
                pl.BlockSpec((None, None, cin, L), in_idx(2)),
                pl.BlockSpec((cout, K), lambda b, d: (0, 0)),     # resident weights
                pl.BlockSpec((cout, 1), lambda b, d: (0, 0)),     # scale
                pl.BlockSpec((cout, 1), lambda b, d: (0, 0)),     # shift
                pl.BlockSpec((1, L), lambda b, d: (0, 0)),        # ring mask
            ],
            out_specs=pl.BlockSpec((None, None, cout, L), lambda b, d: (b, d, 0, 0)),
        ),
        compiler_params=pltpu.CompilerParams(
            dimension_semantics=("parallel", "parallel"),
            vmem_limit_bytes=vmem_limit_bytes()),
    )(x, x, x, wt, scale, shift, mask)


def deconv_fused(x, w_fused, shift, *, geom2, out_dtype=jnp.bfloat16):
    """x: [B, Dp2, Cin, L2] -> [B, D2, 8*Cout, L2] (phase-major channels)."""
    B, Dp2, cin, L2 = x.shape
    Hp2, Wp2, pad_l2, L2g = geom2
    assert L2 == L2g
    D2 = Dp2 - 2
    n2 = Hp2 * Wp2
    cout8, K = w_fused.shape
    assert K == 8 * cin

    kern = functools.partial(_deconv_fused_kernel, wp2=Wp2, pad_l2=pad_l2,
                             n2=n2, lanes2=L2)
    return pl.pallas_call(
        kern,
        out_shape=jax.ShapeDtypeStruct((B, D2, cout8, L2), out_dtype),
        grid_spec=pltpu.PrefetchScalarGridSpec(
            num_scalar_prefetch=0,
            grid=(B, D2),
            in_specs=[
                pl.BlockSpec((None, None, cin, L2), lambda b, d: (b, d + 1, 0, 0)),
                pl.BlockSpec((None, None, cin, L2), lambda b, d: (b, d + 2, 0, 0)),
                pl.BlockSpec((cout8, K), lambda b, d: (0, 0)),
                pl.BlockSpec((cout8, 1), lambda b, d: (0, 0)),
            ],
            out_specs=pl.BlockSpec((None, None, cout8, L2), lambda b, d: (b, d, 0, 0)),
        ),
        compiler_params=pltpu.CompilerParams(
            dimension_semantics=("parallel", "parallel"),
            vmem_limit_bytes=vmem_limit_bytes()),
    )(x, x, w_fused, shift)


# ---------------------------------------------------------------------------
# parameters / weight prep
# ---------------------------------------------------------------------------
def bn_fold(bias, gamma, beta, mean, var, eps=1e-5):
    scale = gamma / jnp.sqrt(var + eps)
    shift = beta - mean * scale + bias * scale
    return scale, shift


def build_deconv_weight(w):
    """Fuse the 8 polyphase convs of ConvTranspose3d(k=3, s=2, p=1, op=1) into one
    [8*Cout, 8*Cin] weight over the 2x2x2 input neighbourhood.

    w: [3,3,3,Cin,Cout] in forward-conv channel order.
    # TODO(synk): a real PyTorch ConvTranspose3d state_dict is [Cin,Cout,kD,kH,kW];
    # transpose it to [kD,kH,kW,Cin,Cout] (no spatial flip) before calling this.
    """
    cin, cout = w.shape[3], w.shape[4]
    tap_of = {(0, 0): 1, (1, 0): 2, (1, 1): 0}   # (output phase, neighbour offset) -> tap
    wf = jnp.zeros((2, 2, 2, cout, 2, 2, 2, cin), w.dtype)
    for pd in (0, 1):
        for ph in (0, 1):
            for pw in (0, 1):
                for ad in (0, 1):
                    for ah in (0, 1):
                        for aw in (0, 1):
                            td = tap_of.get((pd, ad))
                            th = tap_of.get((ph, ah))
                            tw = tap_of.get((pw, aw))
                            if td is None or th is None or tw is None:
                                continue
                            wf = wf.at[pd, ph, pw, :, ad, ah, aw, :].set(w[td, th, tw].T)
    return wf.reshape(8 * cout, 8 * cin)


def prepare_params(params, in_channels, H, W):
    """One-time prep (call OUTSIDE jit): bf16 transposed weights, folded BN,
    fused polyphase deconv weight, ring masks."""
    geom = plane_geom(H, W)
    geom2 = plane_geom(H // 2, W // 2)

    def tconv(w):                            # [3,3,3,ci,co] -> [co, 27*ci] bf16
        ka, kb, kc, ci, co = w.shape
        return w.reshape(ka * kb * kc * ci, co).T.astype(jnp.bfloat16)

    def col(v):
        return jnp.asarray(v, jnp.float32).reshape(-1, 1)

    def ones(co):
        return jnp.ones((co, 1), jnp.float32)

    # pad conv1's input channels to a multiple of 16 (bf16 sublane packing)
    cin1 = round_up(2 * in_channels, 16)
    w1 = params["w1"]
    if w1.shape[3] < cin1:
        w1 = jnp.pad(w1, ((0, 0), (0, 0), (0, 0), (0, cin1 - w1.shape[3]), (0, 0)))

    s2, h2 = bn_fold(params["b2"], params["bn1_gamma"], params["bn1_beta"],
                     params["bn1_mean"], params["bn1_var"])
    s4, h4 = bn_fold(params["b4"], params["bn2_gamma"], params["bn2_beta"],
                     params["bn2_mean"], params["bn2_var"])

    cout_d = params["wd1"].shape[-1]                       # 32
    # final 32->1 conv: pad Cout to 8 sublanes (rows 1..7 are zero)
    wft = jnp.pad(tconv(params["wd2"]), ((0, 7), (0, 0)))
    hf = jnp.pad(col(params["bd2"]), ((0, 7), (0, 0)))

    return {
        "w1t": tconv(w1), "s1": ones(params["w1"].shape[-1]), "h1": col(params["b1"]),
        "w2t": tconv(params["w2"]), "s2": col(s2), "h2": col(h2),
        "w3t": tconv(params["w3"]), "s3": ones(params["w3"].shape[-1]), "h3": col(params["b3"]),
        "w4t": tconv(params["w4"]), "s4": col(s4), "h4": col(h4),
        "wdt": build_deconv_weight(params["wd1"]).astype(jnp.bfloat16),
        "hd": col(jnp.broadcast_to(params["bd1"], (8, cout_d)).reshape(8 * cout_d)),
        "wft": wft, "sf": ones(8), "hf": hf,
        "mask_full": ring_mask(geom, H, W),
        "mask_half": ring_mask(geom2, H // 2, W // 2),
    }


def init_params(key, in_channels):
    def conv_w(k, cin, cout, ks=3):
        fan_in = cin * ks * ks * ks
        return jax.random.normal(k, (ks, ks, ks, cin, cout), jnp.float32) / jnp.sqrt(fan_in)

    keys = jax.random.split(key, 16)
    p = {}
    p["w1"] = conv_w(keys[0], 2 * in_channels, 32)
    p["b1"] = 0.01 * jax.random.normal(keys[1], (32,), jnp.float32)
    p["w2"] = conv_w(keys[2], 32, 32)
    p["b2"] = 0.01 * jax.random.normal(keys[3], (32,), jnp.float32)
    p["w3"] = conv_w(keys[4], 32, 64)
    p["b3"] = 0.01 * jax.random.normal(keys[5], (64,), jnp.float32)
    p["w4"] = conv_w(keys[6], 64, 64)
    p["b4"] = 0.01 * jax.random.normal(keys[7], (64,), jnp.float32)
    p["wd1"] = conv_w(keys[8], 64, 32)        # ConvTranspose3d(64 -> 32), fwd-conv layout
    p["bd1"] = 0.01 * jax.random.normal(keys[9], (32,), jnp.float32)
    p["wd2"] = conv_w(keys[10], 32, 1)        # final Conv3d(32 -> 1)
    p["bd2"] = 0.01 * jax.random.normal(keys[11], (1,), jnp.float32)
    # BatchNorm3d parameters / running statistics.
    # TODO(synk): BatchNorm is eval-mode only (running stats folded into scale/shift).
    p["bn1_gamma"] = 1.0 + 0.1 * jax.random.normal(keys[12], (32,), jnp.float32)
    p["bn1_beta"] = 0.1 * jax.random.normal(keys[13], (32,), jnp.float32)
    p["bn1_mean"] = jnp.zeros((32,), jnp.float32)
    p["bn1_var"] = jnp.ones((32,), jnp.float32)
    p["bn2_gamma"] = 1.0 + 0.1 * jax.random.normal(keys[14], (64,), jnp.float32)
    p["bn2_beta"] = 0.1 * jax.random.normal(keys[15], (64,), jnp.float32)
    p["bn2_mean"] = jnp.zeros((64,), jnp.float32)
    p["bn2_var"] = jnp.ones((64,), jnp.float32)
    return p


# ---------------------------------------------------------------------------
# cost volume + forward pass
# ---------------------------------------------------------------------------
def build_cost_volume(left, right, max_disp):
    """left/right: [B, C, H, W] -> [B, D, 2C, H, W].

    Matches the PyTorch reference exactly: channels [:C] = left (unshifted),
    channels [C:] = right shifted left by d with zero fill on the right edge.
    """
    B, C, H, W = left.shape
    slices = []
    for d in range(max_disp):
        if d > 0:
            sr = jnp.concatenate(
                [right[:, :, :, d:], jnp.zeros((B, C, H, d), right.dtype)], axis=3)
        else:
            sr = right
        slices.append(jnp.concatenate([left, sr], axis=1))
    return jnp.stack(slices, axis=1)


def cost_volume_network(prep, left, right, *, max_disp):
    B, C, H, W = left.shape
    D = max_disp
    assert D % 2 == 0 and H % 2 == 0 and W % 2 == 0, "even D/H/W required"
    H2, W2, D2 = H // 2, W // 2, D // 2
    geom = plane_geom(H, W)
    geom2 = plane_geom(H2, W2)
    mask_f, mask_h = prep["mask_full"], prep["mask_half"]

    # cost volume  [B, D, 2C, H, W]  (channel-padded to conv1's prepared Cin)
    # TODO(synk): cost-volume construction is not fused into conv1's gather.
    cv = build_cost_volume(left, right, D)
    cin1 = prep["w1t"].shape[1] // 27
    if cv.shape[2] < cin1:
        cv = jnp.pad(cv, ((0, 0), (0, 0), (0, cin1 - cv.shape[2]), (0, 0), (0, 0)))
    x = to_plane_layout(cv, geom)                                       # [B, D+2, cin1, L]

    # conv3d_1 + ReLU ; conv3d_2 + bn3d_1 + ReLU
    x = conv3x3_plane(x, prep["w1t"], prep["s1"], prep["h1"], mask_f, geom=geom)
    x = conv3x3_plane(x, prep["w2t"], prep["s2"], prep["h2"], mask_f, geom=geom)

    # conv3d_3 (stride 2) + ReLU : depth stride in the grid, spatial subsample in XLA
    y3 = conv3x3_plane(x, prep["w3t"], prep["s3"], prep["h3"], mask_f, geom=geom,
                       depth_stride=2)                                   # [B, D2, 64, L]
    y3 = from_plane_layout(y3, geom, H, W, depth_pad=False)[..., ::2, ::2]
    x = to_plane_layout(y3, geom2)                                       # [B, D2+2, 64, L2]

    # conv3d_4 + bn3d_2 + ReLU
    x = conv3x3_plane(x, prep["w4t"], prep["s4"], prep["h4"], mask_h, geom=geom2)

    # deconv3d_1 (ConvTranspose3d s2 op1) + ReLU : one fused 256-wide matmul,
    # then a single XLA phase de-interleave back to full resolution.
    yd = deconv_fused(x, prep["wdt"], prep["hd"], geom2=geom2)           # [B, D2, 256, L2]
    cout_d = prep["wdt"].shape[0] // 8
    yd = from_plane_layout(yd, geom2, H2, W2, depth_pad=False)           # [B, D2, 256, H2, W2]
    yd = yd.reshape(B, D2, 2, 2, 2, cout_d, H2, W2)
    yd = yd.transpose(0, 1, 2, 5, 6, 3, 7, 4).reshape(B, D, cout_d, H, W)
    x = to_plane_layout(yd, geom)                                        # [B, D+2, 32, L]

    # deconv3d_2 (plain Conv3d 32 -> 1), no activation, f32 output (Cout padded to 8)
    yf = conv3x3_plane(x, prep["wft"], prep["sf"], prep["hf"], mask_f, geom=geom,
                       apply_relu=False, out_dtype=jnp.float32)          # [B, D+2, 8, L]
    out = from_plane_layout(yf, geom, H, W, depth_pad=True)[:, :, 0]     # [B, D, H, W]
    return out[:, None, :, :, :]                                         # [B, 1, D, H, W]


if __name__ == "__main__":
    B, C, H, W = 2, 4, 16, 16
    MAX_DISP = 8

    key = jax.random.PRNGKey(0)
    kp, kl, kr = jax.random.split(key, 3)
    params = init_params(kp, C)
    left = jax.random.normal(kl, (B, C, H, W), jnp.float32)
    right = jax.random.normal(kr, (B, C, H, W), jnp.float32)

    # one-time weight prep (outside jit)
    prep = prepare_params(params, C, H, W)

    fwd = jax.jit(functools.partial(cost_volume_network, max_disp=MAX_DISP))
    out = fwd(prep, left, right)
    jax.block_until_ready(out)

    assert out.shape == (B, 1, MAX_DISP, H, W), out.shape
    assert out.dtype == jnp.float32
    print("KERNEL_OK")
</pallas_src>

<mosaic_0001>
module attributes {stable_mosaic.version = 11 : i64} {
  func.func @_conv_plane_kernel(%arg0: i32, %arg1: i32, %arg2: memref<1x1x16x384xbf16, #tpu.memory_space<vmem>>, %arg3: memref<1x1x16x384xbf16, #tpu.memory_space<vmem>>, %arg4: memref<1x1x16x384xbf16, #tpu.memory_space<vmem>>, %arg5: memref<32x432xbf16, #tpu.memory_space<vmem>>, %arg6: memref<32x1xf32, #tpu.memory_space<vmem>>, %arg7: memref<32x1xf32, #tpu.memory_space<vmem>>, %arg8: memref<1x384xf32, #tpu.memory_space<vmem>>, %arg9: memref<1x1x32x384xbf16, #tpu.memory_space<vmem>>) attributes {dimension_semantics = [#tpu.dimension_semantics<parallel>, #tpu.dimension_semantics<parallel>], iteration_bounds = array<i64: 2, 10>, scalar_prefetch = 0 : i64, scratch_operands = 0 : i64, tpu.core_type = #tpu.core_type<tc>, window_params = [{transform_indices = @transform_0, window_bounds = array<i64: 1, 1, 16, 384>}, {transform_indices = @transform_1, window_bounds = array<i64: 1, 1, 16, 384>}, {transform_indices = @transform_2, window_bounds = array<i64: 1, 1, 16, 384>}, {pipeline_mode = #tpu.pipeline_mode<synchronous>, transform_indices = @transform_3, window_bounds = array<i64: 32, 432>}, {pipeline_mode = #tpu.pipeline_mode<synchronous>, transform_indices = @transform_4, window_bounds = array<i64: 32, 1>}, {pipeline_mode = #tpu.pipeline_mode<synchronous>, transform_indices = @transform_5, window_bounds = array<i64: 32, 1>}, {pipeline_mode = #tpu.pipeline_mode<synchronous>, transform_indices = @transform_6, window_bounds = array<i64: 1, 384>}, {transform_indices = @transform_7, window_bounds = array<i64: 1, 1, 32, 384>}]} {
    %c1_i32 = arith.constant 1 : i32
    %0 = arith.cmpi sge, %arg1, %c1_i32 : i32
    %c8_i32 = arith.constant 8 : i32
    %1 = arith.cmpi sle, %arg1, %c8_i32 : i32
    %2 = arith.andi %0, %1 : i1
    %3 = arith.extui %2 : i1 to i32
    %c0_i32 = arith.constant 0 : i32
    %4 = arith.cmpi ne, %3, %c0_i32 : i32
    scf.if %4 {
      %c0 = arith.constant 0 : index
      %c0_1 = arith.constant 0 : index
      %c0_2 = arith.constant 0 : index
      %c0_3 = arith.constant 0 : index
      %8 = vector.load %arg2[%c0, %c0_1, %c0_2, %c0_3] : memref<1x1x16x384xbf16, #tpu.memory_space<vmem>>, vector<1x1x16x384xbf16>
      %9 = vector.shape_cast %8 : vector<1x1x16x384xbf16> to vector<16x384xbf16>
      %c0_4 = arith.constant 0 : index
      %c0_5 = arith.constant 0 : index
      %c0_6 = arith.constant 0 : index
      %c0_7 = arith.constant 0 : index
      %10 = vector.load %arg3[%c0_4, %c0_5, %c0_6, %c0_7] : memref<1x1x16x384xbf16, #tpu.memory_space<vmem>>, vector<1x1x16x384xbf16>
      %11 = vector.shape_cast %10 : vector<1x1x16x384xbf16> to vector<16x384xbf16>
      %c0_8 = arith.constant 0 : index
      %c0_9 = arith.constant 0 : index
      %c0_10 = arith.constant 0 : index
      %c0_11 = arith.constant 0 : index
      %12 = vector.load %arg4[%c0_8, %c0_9, %c0_10, %c0_11] : memref<1x1x16x384xbf16, #tpu.memory_space<vmem>>, vector<1x1x16x384xbf16>
      %13 = vector.shape_cast %12 : vector<1x1x16x384xbf16> to vector<16x384xbf16>
      %14 = vector.extract_strided_slice %9 {offsets = [0, 0], sizes = [16, 324], strides = [1, 1]} : vector<16x384xbf16> to vector<16x324xbf16>
      %15 = vector.extract_strided_slice %9 {offsets = [0, 1], sizes = [16, 324], strides = [1, 1]} : vector<16x384xbf16> to vector<16x324xbf16>
      %16 = vector.extract_strided_slice %9 {offsets = [0, 2], sizes = [16, 324], strides = [1, 1]} : vector<16x384xbf16> to vector<16x324xbf16>
      %17 = vector.extract_strided_slice %9 {offsets = [0, 18], sizes = [16, 324], strides = [1, 1]} : vector<16x384xbf16> to vector<16x324xbf16>
      %18 = vector.extract_strided_slice %9 {offsets = [0, 19], sizes = [16, 324], strides = [1, 1]} : vector<16x384xbf16> to vector<16x324xbf16>
      %19 = vector.extract_strided_slice %9 {offsets = [0, 20], sizes = [16, 324], strides = [1, 1]} : vector<16x384xbf16> to vector<16x324xbf16>
      %20 = vector.extract_strided_slice %9 {offsets = [0, 36], sizes = [16, 324], strides = [1, 1]} : vector<16x384xbf16> to vector<16x324xbf16>
      %21 = vector.extract_strided_slice %9 {offsets = [0, 37], sizes = [16, 324], strides = [1, 1]} : vector<16x384xbf16> to vector<16x324xbf16>
      %22 = vector.extract_strided_slice %9 {offsets = [0, 38], sizes = [16, 324], strides = [1, 1]} : vector<16x384xbf16> to vector<16x324xbf16>
      %23 = vector.extract_strided_slice %11 {offsets = [0, 0], sizes = [16, 324], strides = [1, 1]} : vector<16x384xbf16> to vector<16x324xbf16>
      %24 = vector.extract_strided_slice %11 {offsets = [0, 1], sizes = [16, 324], strides = [1, 1]} : vector<16x384xbf16> to vector<16x324xbf16>
      %25 = vector.extract_strided_slice %11 {offsets = [0, 2], sizes = [16, 324], strides = [1, 1]} : vector<16x384xbf16> to vector<16x324xbf16>
      %26 = vector.extract_strided_slice %11 {offsets = [0, 18], sizes = [16, 324], strides = [1, 1]} : vector<16x384xbf16> to vector<16x324xbf16>
      %27 = vector.extract_strided_slice %11 {offsets = [0, 19], sizes = [16, 324], strides = [1, 1]} : vector<16x384xbf16> to vector<16x324xbf16>
      %28 = vector.extract_strided_slice %11 {offsets = [0, 20], sizes = [16, 324], strides = [1, 1]} : vector<16x384xbf16> to vector<16x324xbf16>
      %29 = vector.extract_strided_slice %11 {offsets = [0, 36], sizes = [16, 324], strides = [1, 1]} : vector<16x384xbf16> to vector<16x324xbf16>
      %30 = vector.extract_strided_slice %11 {offsets = [0, 37], sizes = [16, 324], strides = [1, 1]} : vector<16x384xbf16> to vector<16x324xbf16>
      %31 = vector.extract_strided_slice %11 {offsets = [0, 38], sizes = [16, 324], strides = [1, 1]} : vector<16x384xbf16> to vector<16x324xbf16>
      %32 = vector.extract_strided_slice %13 {offsets = [0, 0], sizes = [16, 324], strides = [1, 1]} : vector<16x384xbf16> to vector<16x324xbf16>
      %33 = vector.extract_strided_slice %13 {offsets = [0, 1], sizes = [16, 324], strides = [1, 1]} : vector<16x384xbf16> to vector<16x324xbf16>
      %34 = vector.extract_strided_slice %13 {offsets = [0, 2], sizes = [16, 324], strides = [1, 1]} : vector<16x384xbf16> to vector<16x324xbf16>
      %35 = vector.extract_strided_slice %13 {offsets = [0, 18], sizes = [16, 324], strides = [1, 1]} : vector<16x384xbf16> to vector<16x324xbf16>
      %36 = vector.extract_strided_slice %13 {offsets = [0, 19], sizes = [16, 324], strides = [1, 1]} : vector<16x384xbf16> to vector<16x324xbf16>
      %37 = vector.extract_strided_slice %13 {offsets = [0, 20], sizes = [16, 324], strides = [1, 1]} : vector<16x384xbf16> to vector<16x324xbf16>
      %38 = vector.extract_strided_slice %13 {offsets = [0, 36], sizes = [16, 324], strides = [1, 1]} : vector<16x384xbf16> to vector<16x324xbf16>
      %39 = vector.extract_strided_slice %13 {offsets = [0, 37], sizes = [16, 324], strides = [1, 1]} : vector<16x384xbf16> to vector<16x324xbf16>
      %40 = vector.extract_strided_slice %13 {offsets = [0, 38], sizes = [16, 324], strides = [1, 1]} : vector<16x384xbf16> to vector<16x324xbf16>
      %41 = tpu.concatenate %14, %15, %16, %17, %18, %19, %20, %21, %22, %23, %24, %25, %26, %27, %28, %29 in 0 : vector<16x324xbf16>, vector<16x324xbf16>, vector<16x324xbf16>, vector<16x324xbf16>, vector<16x324xbf16>, vector<16x324xbf16>, vector<16x324xbf16>, vector<16x324xbf16>, vector<16x324xbf16>, vector<16x324xbf16>, vector<16x324xbf16>, vector<16x324xbf16>, vector<16x324xbf16>, vector<16x324xbf16>, vector<16x324xbf16>, vector<16x324xbf16> -> vector<256x324xbf16>
      %42 = tpu.concatenate %30, %31, %32, %33, %34, %35, %36, %37, %38, %39, %40 in 0 : vector<16x324xbf16>, vector<16x324xbf16>, vector<16x324xbf16>, vector<16x324xbf16>, vector<16x324xbf16>, vector<16x324xbf16>, vector<16x324xbf16>, vector<16x324xbf16>, vector<16x324xbf16>, vector<16x324xbf16>, vector<16x324xbf16> -> vector<176x324xbf16>
      %43 = tpu.concatenate %41, %42 in 0 : vector<256x324xbf16>, vector<176x324xbf16> -> vector<432x324xbf16>
      %c0_12 = arith.constant 0 : index
      %c0_13 = arith.constant 0 : index
      %44 = vector.load %arg5[%c0_12, %c0_13] : memref<32x432xbf16, #tpu.memory_space<vmem>>, vector<32x432xbf16>
      %cst = arith.constant dense<0.000000e+00> : vector<32x324xf32>
      %45 = tpu.matmul %44, %43, %cst {dimension_numbers = #tpu.dot_dimension_numbers<[1], [0], [0], [1], [0, 0, 1, 1], [], []>} : vector<32x432xbf16>, vector<432x324xbf16>, vector<32x324xf32> -> vector<32x324xf32>
      %c0_14 = arith.constant 0 : index
      %c0_15 = arith.constant 0 : index
      %46 = vector.load %arg6[%c0_14, %c0_15] : memref<32x1xf32, #tpu.memory_space<vmem>>, vector<32x1xf32>
      %47 = vector.broadcast %46 : vector<32x1xf32> to vector<32x324xf32>
      %48 = arith.mulf %45, %47 : vector<32x324xf32>
      %c0_16 = arith.constant 0 : index
      %c0_17 = arith.constant 0 : index
      %49 = vector.load %arg7[%c0_16, %c0_17] : memref<32x1xf32, #tpu.memory_space<vmem>>, vector<32x1xf32>
      %50 = vector.broadcast %49 : vector<32x1xf32> to vector<32x324xf32>
      %51 = arith.addf %48, %50 : vector<32x324xf32>
      %cst_18 = arith.constant 0.000000e+00 : f32
      %52 = vector.broadcast %cst_18 : f32 to vector<32x324xf32>
      %53 = arith.maximumf %51, %52 : vector<32x324xf32>
      %c0_19 = arith.constant 0 : index
      %c19 = arith.constant 19 : index
      %54 = vector.load %arg8[%c0_19, %c19] : memref<1x384xf32, #tpu.memory_space<vmem>>, vector<1x324xf32>
      %55 = vector.broadcast %54 : vector<1x324xf32> to vector<32x324xf32>
      %56 = arith.mulf %53, %55 : vector<32x324xf32>
      %cst_20 = arith.constant 0.000000e+00 : f32
      %57 = vector.broadcast %cst_20 : f32 to vector<32x19xf32>
      %cst_21 = arith.constant 0.000000e+00 : f32
      %58 = vector.broadcast %cst_21 : f32 to vector<32x41xf32>
      %59 = tpu.concatenate %57, %56, %58 in 1 : vector<32x19xf32>, vector<32x324xf32>, vector<32x41xf32> -> vector<32x384xf32>
      %60 = arith.truncf %59 : vector<32x384xf32> to vector<32x384xbf16>
      %c0_22 = arith.constant 0 : index
      %c0_23 = arith.constant 0 : index
      %c0_24 = arith.constant 0 : index
      %c0_25 = arith.constant 0 : index
      %61 = vector.load %arg9[%c0_22, %c0_23, %c0_24, %c0_25] : memref<1x1x32x384xbf16, #tpu.memory_space<vmem>>, vector<1x1x32x384xbf16>
      %62 = vector.shape_cast %61 : vector<1x1x32x384xbf16> to vector<32x384xbf16>
      %63 = vector.shape_cast %60 : vector<32x384xbf16> to vector<1x1x32x384xbf16>
      tpu.vector_store %arg9[%c0_22, %c0_23, %c0_24, %c0_25], %63 {strides = array<i32>} : memref<1x1x32x384xbf16, #tpu.memory_space<vmem>>, vector<1x1x32x384xbf16>,
    } else {
    }
    %true = arith.constant true
    %5 = arith.xori %2, %true : i1
    %6 = arith.extui %5 : i1 to i32
    %c0_i32_0 = arith.constant 0 : i32
    %7 = arith.cmpi ne, %6, %c0_i32_0 : i32
    scf.if %7 {
      %cst = arith.constant 0.000000e+00 : bf16
      %8 = vector.broadcast %cst : bf16 to vector<32x384xbf16>
      %c0 = arith.constant 0 : index
      %c0_1 = arith.constant 0 : index
      %c0_2 = arith.constant 0 : index
      %c0_3 = arith.constant 0 : index
      %9 = vector.load %arg9[%c0, %c0_1, %c0_2, %c0_3] : memref<1x1x32x384xbf16, #tpu.memory_space<vmem>>, vector<1x1x32x384xbf16>
      %10 = vector.shape_cast %9 : vector<1x1x32x384xbf16> to vector<32x384xbf16>
      %11 = vector.shape_cast %8 : vector<32x384xbf16> to vector<1x1x32x384xbf16>
      tpu.vector_store %arg9[%c0, %c0_1, %c0_2, %c0_3], %11 {strides = array<i32>} : memref<1x1x32x384xbf16, #tpu.memory_space<vmem>>, vector<1x1x32x384xbf16>,
    } else {
    }
    return
  }
  func.func @transform_0(%arg0: i32, %arg1: i32) -> (i32, i32, i32, i32) {
    %c1_i32 = arith.constant 1 : i32
    %0 = arith.subi %arg1, %c1_i32 : i32
    %c0_i32 = arith.constant 0 : i32
    %1 = arith.addi %0, %c0_i32 : i32
    %c0_i32_0 = arith.constant 0 : i32
    %c9_i32 = arith.constant 9 : i32
    %2 = arith.maxsi %c0_i32_0, %1 : i32
    %3 = arith.minsi %c9_i32, %2 : i32
    %c0_i32_1 = arith.constant 0 : i32
    %c0_i32_2 = arith.constant 0 : i32
    %c0_i32_3 = arith.constant 0 : i32
    return %arg0, %3, %c0_i32_1, %c0_i32_2 : i32, i32, i32, i32
  }
  func.func @transform_1(%arg0: i32, %arg1: i32) -> (i32, i32, i32, i32) {
    %c1_i32 = arith.constant 1 : i32
    %0 = arith.subi %arg1, %c1_i32 : i32
    %c1_i32_0 = arith.constant 1 : i32
    %1 = arith.addi %0, %c1_i32_0 : i32
    %c0_i32 = arith.constant 0 : i32
    %c9_i32 = arith.constant 9 : i32
    %2 = arith.maxsi %c0_i32, %1 : i32
    %3 = arith.minsi %c9_i32, %2 : i32
    %c0_i32_1 = arith.constant 0 : i32
    %c0_i32_2 = arith.constant 0 : i32
    %c0_i32_3 = arith.constant 0 : i32
    return %arg0, %3, %c0_i32_1, %c0_i32_2 : i32, i32, i32, i32
  }
  func.func @transform_2(%arg0: i32, %arg1: i32) -> (i32, i32, i32, i32) {
    %c1_i32 = arith.constant 1 : i32
    %0 = arith.subi %arg1, %c1_i32 : i32
    %c2_i32 = arith.constant 2 : i32
    %1 = arith.addi %0, %c2_i32 : i32
    %c0_i32 = arith.constant 0 : i32
    %c9_i32 = arith.constant 9 : i32
    %2 = arith.maxsi %c0_i32, %1 : i32
    %3 = arith.minsi %c9_i32, %2 : i32
    %c0_i32_0 = arith.constant 0 : i32
    %c0_i32_1 = arith.constant 0 : i32
    %c0_i32_2 = arith.constant 0 : i32
    return %arg0, %3, %c0_i32_0, %c0_i32_1 : i32, i32, i32, i32
  }
  func.func @transform_3(%arg0: i32, %arg1: i32) -> (i32, i32) {
    %c0_i32 = arith.constant 0 : i32
    %c0_i32_0 = arith.constant 0 : i32
    %c0_i32_1 = arith.constant 0 : i32
    return %c0_i32, %c0_i32_0 : i32, i32
  }
  func.func @transform_4(%arg0: i32, %arg1: i32) -> (i32, i32) {
    %c0_i32 = arith.constant 0 : i32
    %c0_i32_0 = arith.constant 0 : i32
    %c0_i32_1 = arith.constant 0 : i32
    return %c0_i32, %c0_i32_0 : i32, i32
  }
  func.func @transform_5(%arg0: i32, %arg1: i32) -> (i32, i32) {
    %c0_i32 = arith.constant 0 : i32
    %c0_i32_0 = arith.constant 0 : i32
    %c0_i32_1 = arith.constant 0 : i32
    return %c0_i32, %c0_i32_0 : i32, i32
  }
  func.func @transform_6(%arg0: i32, %arg1: i32) -> (i32, i32) {
    %c0_i32 = arith.constant 0 : i32
    %c0_i32_0 = arith.constant 0 : i32
    %c0_i32_1 = arith.constant 0 : i32
    return %c0_i32, %c0_i32_0 : i32, i32
  }
  func.func @transform_7(%arg0: i32, %arg1: i32) -> (i32, i32, i32, i32) {
    %c0_i32 = arith.constant 0 : i32
    %c0_i32_0 = arith.constant 0 : i32
    %c0_i32_1 = arith.constant 0 : i32
    return %arg0, %arg1, %c0_i32, %c0_i32_0 : i32, i32, i32, i32
  }
}

module attributes {stable_mosaic.version = 11 : i64} {
  func.func @_conv_plane_kernel(%arg0: i32, %arg1: i32, %arg2: memref<1x1x32x384xbf16, #tpu.memory_space<vmem>>, %arg3: memref<1x1x32x384xbf16, #tpu.memory_space<vmem>>, %arg4: memref<1x1x32x384xbf16, #tpu.memory_space<vmem>>, %arg5: memref<32x864xbf16, #tpu.memory_space<vmem>>, %arg6: memref<32x1xf32, #tpu.memory_space<vmem>>, %arg7: memref<32x1xf32, #tpu.memory_space<vmem>>, %arg8: memref<1x384xf32, #tpu.memory_space<vmem>>, %arg9: memref<1x1x32x384xbf16, #tpu.memory_space<vmem>>) attributes {dimension_semantics = [#tpu.dimension_semantics<parallel>, #tpu.dimension_semantics<parallel>], iteration_bounds = array<i64: 2, 10>, scalar_prefetch = 0 : i64, scratch_operands = 0 : i64, tpu.core_type = #tpu.core_type<tc>, window_params = [{transform_indices = @transform_0, window_bounds = array<i64: 1, 1, 32, 384>}, {transform_indices = @transform_1, window_bounds = array<i64: 1, 1, 32, 384>}, {transform_indices = @transform_2, window_bounds = array<i64: 1, 1, 32, 384>}, {pipeline_mode = #tpu.pipeline_mode<synchronous>, transform_indices = @transform_3, window_bounds = array<i64: 32, 864>}, {pipeline_mode = #tpu.pipeline_mode<synchronous>, transform_indices = @transform_4, window_bounds = array<i64: 32, 1>}, {pipeline_mode = #tpu.pipeline_mode<synchronous>, transform_indices = @transform_5, window_bounds = array<i64: 32, 1>}, {pipeline_mode = #tpu.pipeline_mode<synchronous>, transform_indices = @transform_6, window_bounds = array<i64: 1, 384>}, {transform_indices = @transform_7, window_bounds = array<i64: 1, 1, 32, 384>}]} {
    %c1_i32 = arith.constant 1 : i32
    %0 = arith.cmpi sge, %arg1, %c1_i32 : i32
    %c8_i32 = arith.constant 8 : i32
    %1 = arith.cmpi sle, %arg1, %c8_i32 : i32
    %2 = arith.andi %0, %1 : i1
    %3 = arith.extui %2 : i1 to i32
    %c0_i32 = arith.constant 0 : i32
    %4 = arith.cmpi ne, %3, %c0_i32 : i32
    scf.if %4 {
      %c0 = arith.constant 0 : index
      %c0_1 = arith.constant 0 : index
      %c0_2 = arith.constant 0 : index
      %c0_3 = arith.constant 0 : index
      %8 = vector.load %arg2[%c0, %c0_1, %c0_2, %c0_3] : memref<1x1x32x384xbf16, #tpu.memory_space<vmem>>, vector<1x1x32x384xbf16>
      %9 = vector.shape_cast %8 : vector<1x1x32x384xbf16> to vector<32x384xbf16>
      %c0_4 = arith.constant 0 : index
      %c0_5 = arith.constant 0 : index
      %c0_6 = arith.constant 0 : index
      %c0_7 = arith.constant 0 : index
      %10 = vector.load %arg3[%c0_4, %c0_5, %c0_6, %c0_7] : memref<1x1x32x384xbf16, #tpu.memory_space<vmem>>, vector<1x1x32x384xbf16>
      %11 = vector.shape_cast %10 : vector<1x1x32x384xbf16> to vector<32x384xbf16>
      %c0_8 = arith.constant 0 : index
      %c0_9 = arith.constant 0 : index
      %c0_10 = arith.constant 0 : index
      %c0_11 = arith.constant 0 : index
      %12 = vector.load %arg4[%c0_8, %c0_9, %c0_10, %c0_11] : memref<1x1x32x384xbf16, #tpu.memory_space<vmem>>, vector<1x1x32x384xbf16>
      %13 = vector.shape_cast %12 : vector<1x1x32x384xbf16> to vector<32x384xbf16>
      %14 = vector.extract_strided_slice %9 {offsets = [0, 0], sizes = [32, 324], strides = [1, 1]} : vector<32x384xbf16> to vector<32x324xbf16>
      %15 = vector.extract_strided_slice %9 {offsets = [0, 1], sizes = [32, 324], strides = [1, 1]} : vector<32x384xbf16> to vector<32x324xbf16>
      %16 = vector.extract_strided_slice %9 {offsets = [0, 2], sizes = [32, 324], strides = [1, 1]} : vector<32x384xbf16> to vector<32x324xbf16>
      %17 = vector.extract_strided_slice %9 {offsets = [0, 18], sizes = [32, 324], strides = [1, 1]} : vector<32x384xbf16> to vector<32x324xbf16>
      %18 = vector.extract_strided_slice %9 {offsets = [0, 19], sizes = [32, 324], strides = [1, 1]} : vector<32x384xbf16> to vector<32x324xbf16>
      %19 = vector.extract_strided_slice %9 {offsets = [0, 20], sizes = [32, 324], strides = [1, 1]} : vector<32x384xbf16> to vector<32x324xbf16>
      %20 = vector.extract_strided_slice %9 {offsets = [0, 36], sizes = [32, 324], strides = [1, 1]} : vector<32x384xbf16> to vector<32x324xbf16>
      %21 = vector.extract_strided_slice %9 {offsets = [0, 37], sizes = [32, 324], strides = [1, 1]} : vector<32x384xbf16> to vector<32x324xbf16>
      %22 = vector.extract_strided_slice %9 {offsets = [0, 38], sizes = [32, 324], strides = [1, 1]} : vector<32x384xbf16> to vector<32x324xbf16>
      %23 = vector.extract_strided_slice %11 {offsets = [0, 0], sizes = [32, 324], strides = [1, 1]} : vector<32x384xbf16> to vector<32x324xbf16>
      %24 = vector.extract_strided_slice %11 {offsets = [0, 1], sizes = [32, 324], strides = [1, 1]} : vector<32x384xbf16> to vector<32x324xbf16>
      %25 = vector.extract_strided_slice %11 {offsets = [0, 2], sizes = [32, 324], strides = [1, 1]} : vector<32x384xbf16> to vector<32x324xbf16>
      %26 = vector.extract_strided_slice %11 {offsets = [0, 18], sizes = [32, 324], strides = [1, 1]} : vector<32x384xbf16> to vector<32x324xbf16>
      %27 = vector.extract_strided_slice %11 {offsets = [0, 19], sizes = [32, 324], strides = [1, 1]} : vector<32x384xbf16> to vector<32x324xbf16>
      %28 = vector.extract_strided_slice %11 {offsets = [0, 20], sizes = [32, 324], strides = [1, 1]} : vector<32x384xbf16> to vector<32x324xbf16>
      %29 = vector.extract_strided_slice %11 {offsets = [0, 36], sizes = [32, 324], strides = [1, 1]} : vector<32x384xbf16> to vector<32x324xbf16>
      %30 = vector.extract_strided_slice %11 {offsets = [0, 37], sizes = [32, 324], strides = [1, 1]} : vector<32x384xbf16> to vector<32x324xbf16>
      %31 = vector.extract_strided_slice %11 {offsets = [0, 38], sizes = [32, 324], strides = [1, 1]} : vector<32x384xbf16> to vector<32x324xbf16>
      %32 = vector.extract_strided_slice %13 {offsets = [0, 0], sizes = [32, 324], strides = [1, 1]} : vector<32x384xbf16> to vector<32x324xbf16>
      %33 = vector.extract_strided_slice %13 {offsets = [0, 1], sizes = [32, 324], strides = [1, 1]} : vector<32x384xbf16> to vector<32x324xbf16>
      %34 = vector.extract_strided_slice %13 {offsets = [0, 2], sizes = [32, 324], strides = [1, 1]} : vector<32x384xbf16> to vector<32x324xbf16>
      %35 = vector.extract_strided_slice %13 {offsets = [0, 18], sizes = [32, 324], strides = [1, 1]} : vector<32x384xbf16> to vector<32x324xbf16>
      %36 = vector.extract_strided_slice %13 {offsets = [0, 19], sizes = [32, 324], strides = [1, 1]} : vector<32x384xbf16> to vector<32x324xbf16>
      %37 = vector.extract_strided_slice %13 {offsets = [0, 20], sizes = [32, 324], strides = [1, 1]} : vector<32x384xbf16> to vector<32x324xbf16>
      %38 = vector.extract_strided_slice %13 {offsets = [0, 36], sizes = [32, 324], strides = [1, 1]} : vector<32x384xbf16> to vector<32x324xbf16>
      %39 = vector.extract_strided_slice %13 {offsets = [0, 37], sizes = [32, 324], strides = [1, 1]} : vector<32x384xbf16> to vector<32x324xbf16>
      %40 = vector.extract_strided_slice %13 {offsets = [0, 38], sizes = [32, 324], strides = [1, 1]} : vector<32x384xbf16> to vector<32x324xbf16>
      %41 = tpu.concatenate %14, %15, %16, %17, %18, %19, %20, %21, %22, %23, %24, %25, %26, %27, %28, %29 in 0 : vector<32x324xbf16>, vector<32x324xbf16>, vector<32x324xbf16>, vector<32x324xbf16>, vector<32x324xbf16>, vector<32x324xbf16>, vector<32x324xbf16>, vector<32x324xbf16>, vector<32x324xbf16>, vector<32x324xbf16>, vector<32x324xbf16>, vector<32x324xbf16>, vector<32x324xbf16>, vector<32x324xbf16>, vector<32x324xbf16>, vector<32x324xbf16> -> vector<512x324xbf16>
      %42 = tpu.concatenate %30, %31, %32, %33, %34, %35, %36, %37, %38, %39, %40 in 0 : vector<32x324xbf16>, vector<32x324xbf16>, vector<32x324xbf16>, vector<32x324xbf16>, vector<32x324xbf16>, vector<32x324xbf16>, vector<32x324xbf16>, vector<32x324xbf16>, vector<32x324xbf16>, vector<32x324xbf16>, vector<32x324xbf16> -> vector<352x324xbf16>
      %43 = tpu.concatenate %41, %42 in 0 : vector<512x324xbf16>, vector<352x324xbf16> -> vector<864x324xbf16>
      %c0_12 = arith.constant 0 : index
      %c0_13 = arith.constant 0 : index
      %44 = vector.load %arg5[%c0_12, %c0_13] : memref<32x864xbf16, #tpu.memory_space<vmem>>, vector<32x864xbf16>
      %cst = arith.constant dense<0.000000e+00> : vector<32x324xf32>
      %45 = tpu.matmul %44, %43, %cst {dimension_numbers = #tpu.dot_dimension_numbers<[1], [0], [0], [1], [0, 0, 1, 1], [], []>} : vector<32x864xbf16>, vector<864x324xbf16>, vector<32x324xf32> -> vector<32x324xf32>
      %c0_14 = arith.constant 0 : index
      %c0_15 = arith.constant 0 : index
      %46 = vector.load %arg6[%c0_14, %c0_15] : memref<32x1xf32, #tpu.memory_space<vmem>>, vector<32x1xf32>
      %47 = vector.broadcast %46 : vector<32x1xf32> to vector<32x324xf32>
      %48 = arith.mulf %45, %47 : vector<32x324xf32>
      %c0_16 = arith.constant 0 : index
      %c0_17 = arith.constant 0 : index
      %49 = vector.load %arg7[%c0_16, %c0_17] : memref<32x1xf32, #tpu.memory_space<vmem>>, vector<32x1xf32>
      %50 = vector.broadcast %49 : vector<32x1xf32> to vector<32x324xf32>
      %51 = arith.addf %48, %50 : vector<32x324xf32>
      %cst_18 = arith.constant 0.000000e+00 : f32
      %52 = vector.broadcast %cst_18 : f32 to vector<32x324xf32>
      %53 = arith.maximumf %51, %52 : vector<32x324xf32>
      %c0_19 = arith.constant 0 : index
      %c19 = arith.constant 19 : index
      %54 = vector.load %arg8[%c0_19, %c19] : memref<1x384xf32, #tpu.memory_space<vmem>>, vector<1x324xf32>
      %55 = vector.broadcast %54 : vector<1x324xf32> to vector<32x324xf32>
      %56 = arith.mulf %53, %55 : vector<32x324xf32>
      %cst_20 = arith.constant 0.000000e+00 : f32
      %57 = vector.broadcast %cst_20 : f32 to vector<32x19xf32>
      %cst_21 = arith.constant 0.000000e+00 : f32
      %58 = vector.broadcast %cst_21 : f32 to vector<32x41xf32>
      %59 = tpu.concatenate %57, %56, %58 in 1 : vector<32x19xf32>, vector<32x324xf32>, vector<32x41xf32> -> vector<32x384xf32>
      %60 = arith.truncf %59 : vector<32x384xf32> to vector<32x384xbf16>
      %c0_22 = arith.constant 0 : index
      %c0_23 = arith.constant 0 : index
      %c0_24 = arith.constant 0 : index
      %c0_25 = arith.constant 0 : index
      %61 = vector.load %arg9[%c0_22, %c0_23, %c0_24, %c0_25] : memref<1x1x32x384xbf16, #tpu.memory_space<vmem>>, vector<1x1x32x384xbf16>
      %62 = vector.shape_cast %61 : vector<1x1x32x384xbf16> to vector<32x384xbf16>
      %63 = vector.shape_cast %60 : vector<32x384xbf16> to vector<1x1x32x384xbf16>
      tpu.vector_store %arg9[%c0_22, %c0_23, %c0_24, %c0_25], %63 {strides = array<i32>} : memref<1x1x32x384xbf16, #tpu.memory_space<vmem>>, vector<1x1x32x384xbf16>,
    } else {
    }
    %true = arith.constant true
    %5 = arith.xori %2, %true : i1
    %6 = arith.extui %5 : i1 to i32
    %c0_i32_0 = arith.constant 0 : i32
    %7 = arith.cmpi ne, %6, %c0_i32_0 : i32
    scf.if %7 {
      %cst = arith.constant 0.000000e+00 : bf16
      %8 = vector.broadcast %cst : bf16 to vector<32x384xbf16>
      %c0 = arith.constant 0 : index
      %c0_1 = arith.constant 0 : index
      %c0_2 = arith.constant 0 : index
      %c0_3 = arith.constant 0 : index
      %9 = vector.load %arg9[%c0, %c0_1, %c0_2, %c0_3] : memref<1x1x32x384xbf16, #tpu.memory_space<vmem>>, vector<1x1x32x384xbf16>
      %10 = vector.shape_cast %9 : vector<1x1x32x384xbf16> to vector<32x384xbf16>
      %11 = vector.shape_cast %8 : vector<32x384xbf16> to vector<1x1x32x384xbf16>
      tpu.vector_store %arg9[%c0, %c0_1, %c0_2, %c0_3], %11 {strides = array<i32>} : memref<1x1x32x384xbf16, #tpu.memory_space<vmem>>, vector<1x1x32x384xbf16>,
    } else {
    }
    return
  }
  func.func @transform_0(%arg0: i32, %arg1: i32) -> (i32, i32, i32, i32) {
    %c1_i32 = arith.constant 1 : i32
    %0 = arith.subi %arg1, %c1_i32 : i32
    %c0_i32 = arith.constant 0 : i32
    %1 = arith.addi %0, %c0_i32 : i32
    %c0_i32_0 = arith.constant 0 : i32
    %c9_i32 = arith.constant 9 : i32
    %2 = arith.maxsi %c0_i32_0, %1 : i32
    %3 = arith.minsi %c9_i32, %2 : i32
    %c0_i32_1 = arith.constant 0 : i32
    %c0_i32_2 = arith.constant 0 : i32
    %c0_i32_3 = arith.constant 0 : i32
    return %arg0, %3, %c0_i32_1, %c0_i32_2 : i32, i32, i32, i32
  }
  func.func @transform_1(%arg0: i32, %arg1: i32) -> (i32, i32, i32, i32) {
    %c1_i32 = arith.constant 1 : i32
    %0 = arith.subi %arg1, %c1_i32 : i32
    %c1_i32_0 = arith.constant 1 : i32
    %1 = arith.addi %0, %c1_i32_0 : i32
    %c0_i32 = arith.constant 0 : i32
    %c9_i32 = arith.constant 9 : i32
    %2 = arith.maxsi %c0_i32, %1 : i32
    %3 = arith.minsi %c9_i32, %2 : i32
    %c0_i32_1 = arith.constant 0 : i32
    %c0_i32_2 = arith.constant 0 : i32
    %c0_i32_3 = arith.constant 0 : i32
    return %arg0, %3, %c0_i32_1, %c0_i32_2 : i32, i32, i32, i32
  }
  func.func @transform_2(%arg0: i32, %arg1: i32) -> (i32, i32, i32, i32) {
    %c1_i32 = arith.constant 1 : i32
    %0 = arith.subi %arg1, %c1_i32 : i32
    %c2_i32 = arith.constant 2 : i32
    %1 = arith.addi %0, %c2_i32 : i32
    %c0_i32 = arith.constant 0 : i32
    %c9_i32 = arith.constant 9 : i32
    %2 = arith.maxsi %c0_i32, %1 : i32
    %3 = arith.minsi %c9_i32, %2 : i32
    %c0_i32_0 = arith.constant 0 : i32
    %c0_i32_1 = arith.constant 0 : i32
    %c0_i32_2 = arith.constant 0 : i32
    return %arg0, %3, %c0_i32_0, %c0_i32_1 : i32, i32, i32, i32
  }
  func.func @transform_3(%arg0: i32, %arg1: i32) -> (i32, i32) {
    %c0_i32 = arith.constant 0 : i32
    %c0_i32_0 = arith.constant 0 : i32
    %c0_i32_1 = arith.constant 0 : i32
    return %c0_i32, %c0_i32_0 : i32, i32
  }
  func.func @transform_4(%arg0: i32, %arg1: i32) -> (i32, i32) {
    %c0_i32 = arith.constant 0 : i32
    %c0_i32_0 = arith.constant 0 : i32
    %c0_i32_1 = arith.constant 0 : i32
    return %c0_i32, %c0_i32_0 : i32, i32
  }
  func.func @transform_5(%arg0: i32, %arg1: i32) -> (i32, i32) {
    %c0_i32 = arith.constant 0 : i32
    %c0_i32_0 = arith.constant 0 : i32
    %c0_i32_1 = arith.constant 0 : i32
    return %c0_i32, %c0_i32_0 : i32, i32
  }
  func.func @transform_6(%arg0: i32, %arg1: i32) -> (i32, i32) {
    %c0_i32 = arith.constant 0 : i32
    %c0_i32_0 = arith.constant 0 : i32
    %c0_i32_1 = arith.constant 0 : i32
    return %c0_i32, %c0_i32_0 : i32, i32
  }
  func.func @transform_7(%arg0: i32, %arg1: i32) -> (i32, i32, i32, i32) {
    %c0_i32 = arith.constant 0 : i32
    %c0_i32_0 = arith.constant 0 : i32
    %c0_i32_1 = arith.constant 0 : i32
    return %arg0, %arg1, %c0_i32, %c0_i32_0 : i32, i32, i32, i32
  }
}

module attributes {stable_mosaic.version = 11 : i64} {
  func.func @_conv_plane_kernel(%arg0: i32, %arg1: i32, %arg2: memref<1x1x32x384xbf16, #tpu.memory_space<vmem>>, %arg3: memref<1x1x32x384xbf16, #tpu.memory_space<vmem>>, %arg4: memref<1x1x32x384xbf16, #tpu.memory_space<vmem>>, %arg5: memref<64x864xbf16, #tpu.memory_space<vmem>>, %arg6: memref<64x1xf32, #tpu.memory_space<vmem>>, %arg7: memref<64x1xf32, #tpu.memory_space<vmem>>, %arg8: memref<1x384xf32, #tpu.memory_space<vmem>>, %arg9: memref<1x1x64x384xbf16, #tpu.memory_space<vmem>>) attributes {dimension_semantics = [#tpu.dimension_semantics<parallel>, #tpu.dimension_semantics<parallel>], iteration_bounds = array<i64: 2, 4>, scalar_prefetch = 0 : i64, scratch_operands = 0 : i64, tpu.core_type = #tpu.core_type<tc>, window_params = [{transform_indices = @transform_0, window_bounds = array<i64: 1, 1, 32, 384>}, {transform_indices = @transform_1, window_bounds = array<i64: 1, 1, 32, 384>}, {transform_indices = @transform_2, window_bounds = array<i64: 1, 1, 32, 384>}, {pipeline_mode = #tpu.pipeline_mode<synchronous>, transform_indices = @transform_3, window_bounds = array<i64: 64, 864>}, {pipeline_mode = #tpu.pipeline_mode<synchronous>, transform_indices = @transform_4, window_bounds = array<i64: 64, 1>}, {pipeline_mode = #tpu.pipeline_mode<synchronous>, transform_indices = @transform_5, window_bounds = array<i64: 64, 1>}, {pipeline_mode = #tpu.pipeline_mode<synchronous>, transform_indices = @transform_6, window_bounds = array<i64: 1, 384>}, {transform_indices = @transform_7, window_bounds = array<i64: 1, 1, 64, 384>}]} {
    %c0_i32 = arith.constant 0 : i32
    %0 = arith.cmpi sge, %arg1, %c0_i32 : i32
    %c3_i32 = arith.constant 3 : i32
    %1 = arith.cmpi sle, %arg1, %c3_i32 : i32
    %2 = arith.andi %0, %1 : i1
    %3 = arith.extui %2 : i1 to i32
    %c0_i32_0 = arith.constant 0 : i32
    %4 = arith.cmpi ne, %3, %c0_i32_0 : i32
    scf.if %4 {
      %c0 = arith.constant 0 : index
      %c0_2 = arith.constant 0 : index
      %c0_3 = arith.constant 0 : index
      %c0_4 = arith.constant 0 : index
      %8 = vector.load %arg2[%c0, %c0_2, %c0_3, %c0_4] : memref<1x1x32x384xbf16, #tpu.memory_space<vmem>>, vector<1x1x32x384xbf16>
      %9 = vector.shape_cast %8 : vector<1x1x32x384xbf16> to vector<32x384xbf16>
      %c0_5 = arith.constant 0 : index
      %c0_6 = arith.constant 0 : index
      %c0_7 = arith.constant 0 : index
      %c0_8 = arith.constant 0 : index
      %10 = vector.load %arg3[%c0_5, %c0_6, %c0_7, %c0_8] : memref<1x1x32x384xbf16, #tpu.memory_space<vmem>>, vector<1x1x32x384xbf16>
      %11 = vector.shape_cast %10 : vector<1x1x32x384xbf16> to vector<32x384xbf16>
      %c0_9 = arith.constant 0 : index
      %c0_10 = arith.constant 0 : index
      %c0_11 = arith.constant 0 : index
      %c0_12 = arith.constant 0 : index
      %12 = vector.load %arg4[%c0_9, %c0_10, %c0_11, %c0_12] : memref<1x1x32x384xbf16, #tpu.memory_space<vmem>>, vector<1x1x32x384xbf16>
      %13 = vector.shape_cast %12 : vector<1x1x32x384xbf16> to vector<32x384xbf16>
      %14 = vector.extract_strided_slice %9 {offsets = [0, 0], sizes = [32, 324], strides = [1, 1]} : vector<32x384xbf16> to vector<32x324xbf16>
      %15 = vector.extract_strided_slice %9 {offsets = [0, 1], sizes = [32, 324], strides = [1, 1]} : vector<32x384xbf16> to vector<32x324xbf16>
      %16 = vector.extract_strided_slice %9 {offsets = [0, 2], sizes = [32, 324], strides = [1, 1]} : vector<32x384xbf16> to vector<32x324xbf16>
      %17 = vector.extract_strided_slice %9 {offsets = [0, 18], sizes = [32, 324], strides = [1, 1]} : vector<32x384xbf16> to vector<32x324xbf16>
      %18 = vector.extract_strided_slice %9 {offsets = [0, 19], sizes = [32, 324], strides = [1, 1]} : vector<32x384xbf16> to vector<32x324xbf16>
      %19 = vector.extract_strided_slice %9 {offsets = [0, 20], sizes = [32, 324], strides = [1, 1]} : vector<32x384xbf16> to vector<32x324xbf16>
      %20 = vector.extract_strided_slice %9 {offsets = [0, 36], sizes = [32, 324], strides = [1, 1]} : vector<32x384xbf16> to vector<32x324xbf16>
      %21 = vector.extract_strided_slice %9 {offsets = [0, 37], sizes = [32, 324], strides = [1, 1]} : vector<32x384xbf16> to vector<32x324xbf16>
      %22 = vector.extract_strided_slice %9 {offsets = [0, 38], sizes = [32, 324], strides = [1, 1]} : vector<32x384xbf16> to vector<32x324xbf16>
      %23 = vector.extract_strided_slice %11 {offsets = [0, 0], sizes = [32, 324], strides = [1, 1]} : vector<32x384xbf16> to vector<32x324xbf16>
      %24 = vector.extract_strided_slice %11 {offsets = [0, 1], sizes = [32, 324], strides = [1, 1]} : vector<32x384xbf16> to vector<32x324xbf16>
      %25 = vector.extract_strided_slice %11 {offsets = [0, 2], sizes = [32, 324], strides = [1, 1]} : vector<32x384xbf16> to vector<32x324xbf16>
      %26 = vector.extract_strided_slice %11 {offsets = [0, 18], sizes = [32, 324], strides = [1, 1]} : vector<32x384xbf16> to vector<32x324xbf16>
      %27 = vector.extract_strided_slice %11 {offsets = [0, 19], sizes = [32, 324], strides = [1, 1]} : vector<32x384xbf16> to vector<32x324xbf16>
      %28 = vector.extract_strided_slice %11 {offsets = [0, 20], sizes = [32, 324], strides = [1, 1]} : vector<32x384xbf16> to vector<32x324xbf16>
      %29 = vector.extract_strided_slice %11 {offsets = [0, 36], sizes = [32, 324], strides = [1, 1]} : vector<32x384xbf16> to vector<32x324xbf16>
      %30 = vector.extract_strided_slice %11 {offsets = [0, 37], sizes = [32, 324], strides = [1, 1]} : vector<32x384xbf16> to vector<32x324xbf16>
      %31 = vector.extract_strided_slice %11 {offsets = [0, 38], sizes = [32, 324], strides = [1, 1]} : vector<32x384xbf16> to vector<32x324xbf16>
      %32 = vector.extract_strided_slice %13 {offsets = [0, 0], sizes = [32, 324], strides = [1, 1]} : vector<32x384xbf16> to vector<32x324xbf16>
      %33 = vector.extract_strided_slice %13 {offsets = [0, 1], sizes = [32, 324], strides = [1, 1]} : vector<32x384xbf16> to vector<32x324xbf16>
      %34 = vector.extract_strided_slice %13 {offsets = [0, 2], sizes = [32, 324], strides = [1, 1]} : vector<32x384xbf16> to vector<32x324xbf16>
      %35 = vector.extract_strided_slice %13 {offsets = [0, 18], sizes = [32, 324], strides = [1, 1]} : vector<32x384xbf16> to vector<32x324xbf16>
      %36 = vector.extract_strided_slice %13 {offsets = [0, 19], sizes = [32, 324], strides = [1, 1]} : vector<32x384xbf16> to vector<32x324xbf16>
      %37 = vector.extract_strided_slice %13 {offsets = [0, 20], sizes = [32, 324], strides = [1, 1]} : vector<32x384xbf16> to vector<32x324xbf16>
      %38 = vector.extract_strided_slice %13 {offsets = [0, 36], sizes = [32, 324], strides = [1, 1]} : vector<32x384xbf16> to vector<32x324xbf16>
      %39 = vector.extract_strided_slice %13 {offsets = [0, 37], sizes = [32, 324], strides = [1, 1]} : vector<32x384xbf16> to vector<32x324xbf16>
      %40 = vector.extract_strided_slice %13 {offsets = [0, 38], sizes = [32, 324], strides = [1, 1]} : vector<32x384xbf16> to vector<32x324xbf16>
      %41 = tpu.concatenate %14, %15, %16, %17, %18, %19, %20, %21, %22, %23, %24, %25, %26, %27, %28, %29 in 0 : vector<32x324xbf16>, vector<32x324xbf16>, vector<32x324xbf16>, vector<32x324xbf16>, vector<32x324xbf16>, vector<32x324xbf16>, vector<32x324xbf16>, vector<32x324xbf16>, vector<32x324xbf16>, vector<32x324xbf16>, vector<32x324xbf16>, vector<32x324xbf16>, vector<32x324xbf16>, vector<32x324xbf16>, vector<32x324xbf16>, vector<32x324xbf16> -> vector<512x324xbf16>
      %42 = tpu.concatenate %30, %31, %32, %33, %34, %35, %36, %37, %38, %39, %40 in 0 : vector<32x324xbf16>, vector<32x324xbf16>, vector<32x324xbf16>, vector<32x324xbf16>, vector<32x324xbf16>, vector<32x324xbf16>, vector<32x324xbf16>, vector<32x324xbf16>, vector<32x324xbf16>, vector<32x324xbf16>, vector<32x324xbf16> -> vector<352x324xbf16>
      %43 = tpu.concatenate %41, %42 in 0 : vector<512x324xbf16>, vector<352x324xbf16> -> vector<864x324xbf16>
      %c0_13 = arith.constant 0 : index
      %c0_14 = arith.constant 0 : index
      %44 = vector.load %arg5[%c0_13, %c0_14] : memref<64x864xbf16, #tpu.memory_space<vmem>>, vector<64x864xbf16>
      %cst = arith.constant dense<0.000000e+00> : vector<64x324xf32>
      %45 = tpu.matmul %44, %43, %cst {dimension_numbers = #tpu.dot_dimension_numbers<[1], [0], [0], [1], [0, 0, 1, 1], [], []>} : vector<64x864xbf16>, vector<864x324xbf16>, vector<64x324xf32> -> vector<64x324xf32>
      %c0_15 = arith.constant 0 : index
      %c0_16 = arith.constant 0 : index
      %46 = vector.load %arg6[%c0_15, %c0_16] : memref<64x1xf32, #tpu.memory_space<vmem>>, vector<64x1xf32>
      %47 = vector.broadcast %46 : vector<64x1xf32> to vector<64x324xf32>
      %48 = arith.mulf %45, %47 : vector<64x324xf32>
      %c0_17 = arith.constant 0 : index
      %c0_18 = arith.constant 0 : index
      %49 = vector.load %arg7[%c0_17, %c0_18] : memref<64x1xf32, #tpu.memory_space<vmem>>, vector<64x1xf32>
      %50 = vector.broadcast %49 : vector<64x1xf32> to vector<64x324xf32>
      %51 = arith.addf %48, %50 : vector<64x324xf32>
      %cst_19 = arith.constant 0.000000e+00 : f32
      %52 = vector.broadcast %cst_19 : f32 to vector<64x324xf32>
      %53 = arith.maximumf %51, %52 : vector<64x324xf32>
      %c0_20 = arith.constant 0 : index
      %c19 = arith.constant 19 : index
      %54 = vector.load %arg8[%c0_20, %c19] : memref<1x384xf32, #tpu.memory_space<vmem>>, vector<1x324xf32>
      %55 = vector.broadcast %54 : vector<1x324xf32> to vector<64x324xf32>
      %56 = arith.mulf %53, %55 : vector<64x324xf32>
      %cst_21 = arith.constant 0.000000e+00 : f32
      %57 = vector.broadcast %cst_21 : f32 to vector<64x19xf32>
      %cst_22 = arith.constant 0.000000e+00 : f32
      %58 = vector.broadcast %cst_22 : f32 to vector<64x41xf32>
      %59 = tpu.concatenate %57, %56, %58 in 1 : vector<64x19xf32>, vector<64x324xf32>, vector<64x41xf32> -> vector<64x384xf32>
      %60 = arith.truncf %59 : vector<64x384xf32> to vector<64x384xbf16>
      %c0_23 = arith.constant 0 : index
      %c0_24 = arith.constant 0 : index
      %c0_25 = arith.constant 0 : index
      %c0_26 = arith.constant 0 : index
      %61 = vector.load %arg9[%c0_23, %c0_24, %c0_25, %c0_26] : memref<1x1x64x384xbf16, #tpu.memory_space<vmem>>, vector<1x1x64x384xbf16>
      %62 = vector.shape_cast %61 : vector<1x1x64x384xbf16> to vector<64x384xbf16>
      %63 = vector.shape_cast %60 : vector<64x384xbf16> to vector<1x1x64x384xbf16>
      tpu.vector_store %arg9[%c0_23, %c0_24, %c0_25, %c0_26], %63 {strides = array<i32>} : memref<1x1x64x384xbf16, #tpu.memory_space<vmem>>, vector<1x1x64x384xbf16>,
    } else {
    }
    %true = arith.constant true
    %5 = arith.xori %2, %true : i1
    %6 = arith.extui %5 : i1 to i32
    %c0_i32_1 = arith.constant 0 : i32
    %7 = arith.cmpi ne, %6, %c0_i32_1 : i32
    scf.if %7 {
      %cst = arith.constant 0.000000e+00 : bf16
      %8 = vector.broadcast %cst : bf16 to vector<64x384xbf16>
      %c0 = arith.constant 0 : index
      %c0_2 = arith.constant 0 : index
      %c0_3 = arith.constant 0 : index
      %c0_4 = arith.constant 0 : index
      %9 = vector.load %arg9[%c0, %c0_2, %c0_3, %c0_4] : memref<1x1x64x384xbf16, #tpu.memory_space<vmem>>, vector<1x1x64x384xbf16>
      %10 = vector.shape_cast %9 : vector<1x1x64x384xbf16> to vector<64x384xbf16>
      %11 = vector.shape_cast %8 : vector<64x384xbf16> to vector<1x1x64x384xbf16>
      tpu.vector_store %arg9[%c0, %c0_2, %c0_3, %c0_4], %11 {strides = array<i32>} : memref<1x1x64x384xbf16, #tpu.memory_space<vmem>>, vector<1x1x64x384xbf16>,
    } else {
    }
    return
  }
  func.func @transform_0(%arg0: i32, %arg1: i32) -> (i32, i32, i32, i32) {
    %c2_i32 = arith.constant 2 : i32
    %0 = arith.muli %c2_i32, %arg1 : i32
    %c0_i32 = arith.constant 0 : i32
    %1 = arith.addi %0, %c0_i32 : i32
    %c0_i32_0 = arith.constant 0 : i32
    %c0_i32_1 = arith.constant 0 : i32
    %c0_i32_2 = arith.constant 0 : i32
    return %arg0, %1, %c0_i32_0, %c0_i32_1 : i32, i32, i32, i32
  }
  func.func @transform_1(%arg0: i32, %arg1: i32) -> (i32, i32, i32, i32) {
    %c2_i32 = arith.constant 2 : i32
    %0 = arith.muli %c2_i32, %arg1 : i32
    %c1_i32 = arith.constant 1 : i32
    %1 = arith.addi %0, %c1_i32 : i32
    %c0_i32 = arith.constant 0 : i32
    %c0_i32_0 = arith.constant 0 : i32
    %c0_i32_1 = arith.constant 0 : i32
    return %arg0, %1, %c0_i32, %c0_i32_0 : i32, i32, i32, i32
  }
  func.func @transform_2(%arg0: i32, %arg1: i32) -> (i32, i32, i32, i32) {
    %c2_i32 = arith.constant 2 : i32
    %0 = arith.muli %c2_i32, %arg1 : i32
    %c2_i32_0 = arith.constant 2 : i32
    %1 = arith.addi %0, %c2_i32_0 : i32
    %c0_i32 = arith.constant 0 : i32
    %c0_i32_1 = arith.constant 0 : i32
    %c0_i32_2 = arith.constant 0 : i32
    return %arg0, %1, %c0_i32, %c0_i32_1 : i32, i32, i32, i32
  }
  func.func @transform_3(%arg0: i32, %arg1: i32) -> (i32, i32) {
    %c0_i32 = arith.constant 0 : i32
    %c0_i32_0 = arith.constant 0 : i32
    %c0_i32_1 = arith.constant 0 : i32
    return %c0_i32, %c0_i32_0 : i32, i32
  }
  func.func @transform_4(%arg0: i32, %arg1: i32) -> (i32, i32) {
    %c0_i32 = arith.constant 0 : i32
    %c0_i32_0 = arith.constant 0 : i32
    %c0_i32_1 = arith.constant 0 : i32
    return %c0_i32, %c0_i32_0 : i32, i32
  }
  func.func @transform_5(%arg0: i32, %arg1: i32) -> (i32, i32) {
    %c0_i32 = arith.constant 0 : i32
    %c0_i32_0 = arith.constant 0 : i32
    %c0_i32_1 = arith.constant 0 : i32
    return %c0_i32, %c0_i32_0 : i32, i32
  }
  func.func @transform_6(%arg0: i32, %arg1: i32) -> (i32, i32) {
    %c0_i32 = arith.constant 0 : i32
    %c0_i32_0 = arith.constant 0 : i32
    %c0_i32_1 = arith.constant 0 : i32
    return %c0_i32, %c0_i32_0 : i32, i32
  }
  func.func @transform_7(%arg0: i32, %arg1: i32) -> (i32, i32, i32, i32) {
    %c0_i32 = arith.constant 0 : i32
    %c0_i32_0 = arith.constant 0 : i32
    %c0_i32_1 = arith.constant 0 : i32
    return %arg0, %arg1, %c0_i32, %c0_i32_0 : i32, i32, i32, i32
  }
}

module attributes {stable_mosaic.version = 11 : i64} {
  func.func @_conv_plane_kernel(%arg0: i32, %arg1: i32, %arg2: memref<1x1x64x128xbf16, #tpu.memory_space<vmem>>, %arg3: memref<1x1x64x128xbf16, #tpu.memory_space<vmem>>, %arg4: memref<1x1x64x128xbf16, #tpu.memory_space<vmem>>, %arg5: memref<64x1728xbf16, #tpu.memory_space<vmem>>, %arg6: memref<64x1xf32, #tpu.memory_space<vmem>>, %arg7: memref<64x1xf32, #tpu.memory_space<vmem>>, %arg8: memref<1x128xf32, #tpu.memory_space<vmem>>, %arg9: memref<1x1x64x128xbf16, #tpu.memory_space<vmem>>) attributes {dimension_semantics = [#tpu.dimension_semantics<parallel>, #tpu.dimension_semantics<parallel>], iteration_bounds = array<i64: 2, 6>, scalar_prefetch = 0 : i64, scratch_operands = 0 : i64, tpu.core_type = #tpu.core_type<tc>, window_params = [{transform_indices = @transform_0, window_bounds = array<i64: 1, 1, 64, 128>}, {transform_indices = @transform_1, window_bounds = array<i64: 1, 1, 64, 128>}, {transform_indices = @transform_2, window_bounds = array<i64: 1, 1, 64, 128>}, {pipeline_mode = #tpu.pipeline_mode<synchronous>, transform_indices = @transform_3, window_bounds = array<i64: 64, 1728>}, {pipeline_mode = #tpu.pipeline_mode<synchronous>, transform_indices = @transform_4, window_bounds = array<i64: 64, 1>}, {pipeline_mode = #tpu.pipeline_mode<synchronous>, transform_indices = @transform_5, window_bounds = array<i64: 64, 1>}, {pipeline_mode = #tpu.pipeline_mode<synchronous>, transform_indices = @transform_6, window_bounds = array<i64: 1, 128>}, {transform_indices = @transform_7, window_bounds = array<i64: 1, 1, 64, 128>}]} {
    %c1_i32 = arith.constant 1 : i32
    %0 = arith.cmpi sge, %arg1, %c1_i32 : i32
    %c4_i32 = arith.constant 4 : i32
    %1 = arith.cmpi sle, %arg1, %c4_i32 : i32
    %2 = arith.andi %0, %1 : i1
    %3 = arith.extui %2 : i1 to i32
    %c0_i32 = arith.constant 0 : i32
    %4 = arith.cmpi ne, %3, %c0_i32 : i32
    scf.if %4 {
      %c0 = arith.constant 0 : index
      %c0_1 = arith.constant 0 : index
      %c0_2 = arith.constant 0 : index
      %c0_3 = arith.constant 0 : index
      %8 = vector.load %arg2[%c0, %c0_1, %c0_2, %c0_3] : memref<1x1x64x128xbf16, #tpu.memory_space<vmem>>, vector<1x1x64x128xbf16>
      %9 = vector.shape_cast %8 : vector<1x1x64x128xbf16> to vector<64x128xbf16>
      %c0_4 = arith.constant 0 : index
      %c0_5 = arith.constant 0 : index
      %c0_6 = arith.constant 0 : index
      %c0_7 = arith.constant 0 : index
      %10 = vector.load %arg3[%c0_4, %c0_5, %c0_6, %c0_7] : memref<1x1x64x128xbf16, #tpu.memory_space<vmem>>, vector<1x1x64x128xbf16>
      %11 = vector.shape_cast %10 : vector<1x1x64x128xbf16> to vector<64x128xbf16>
      %c0_8 = arith.constant 0 : index
      %c0_9 = arith.constant 0 : index
      %c0_10 = arith.constant 0 : index
      %c0_11 = arith.constant 0 : index
      %12 = vector.load %arg4[%c0_8, %c0_9, %c0_10, %c0_11] : memref<1x1x64x128xbf16, #tpu.memory_space<vmem>>, vector<1x1x64x128xbf16>
      %13 = vector.shape_cast %12 : vector<1x1x64x128xbf16> to vector<64x128xbf16>
      %14 = vector.extract_strided_slice %9 {offsets = [0, 0], sizes = [64, 100], strides = [1, 1]} : vector<64x128xbf16> to vector<64x100xbf16>
      %15 = vector.extract_strided_slice %9 {offsets = [0, 1], sizes = [64, 100], strides = [1, 1]} : vector<64x128xbf16> to vector<64x100xbf16>
      %16 = vector.extract_strided_slice %9 {offsets = [0, 2], sizes = [64, 100], strides = [1, 1]} : vector<64x128xbf16> to vector<64x100xbf16>
      %17 = vector.extract_strided_slice %9 {offsets = [0, 10], sizes = [64, 100], strides = [1, 1]} : vector<64x128xbf16> to vector<64x100xbf16>
      %18 = vector.extract_strided_slice %9 {offsets = [0, 11], sizes = [64, 100], strides = [1, 1]} : vector<64x128xbf16> to vector<64x100xbf16>
      %19 = vector.extract_strided_slice %9 {offsets = [0, 12], sizes = [64, 100], strides = [1, 1]} : vector<64x128xbf16> to vector<64x100xbf16>
      %20 = vector.extract_strided_slice %9 {offsets = [0, 20], sizes = [64, 100], strides = [1, 1]} : vector<64x128xbf16> to vector<64x100xbf16>
      %21 = vector.extract_strided_slice %9 {offsets = [0, 21], sizes = [64, 100], strides = [1, 1]} : vector<64x128xbf16> to vector<64x100xbf16>
      %22 = vector.extract_strided_slice %9 {offsets = [0, 22], sizes = [64, 100], strides = [1, 1]} : vector<64x128xbf16> to vector<64x100xbf16>
      %23 = vector.extract_strided_slice %11 {offsets = [0, 0], sizes = [64, 100], strides = [1, 1]} : vector<64x128xbf16> to vector<64x100xbf16>
      %24 = vector.extract_strided_slice %11 {offsets = [0, 1], sizes = [64, 100], strides = [1, 1]} : vector<64x128xbf16> to vector<64x100xbf16>
      %25 = vector.extract_strided_slice %11 {offsets = [0, 2], sizes = [64, 100], strides = [1, 1]} : vector<64x128xbf16> to vector<64x100xbf16>
      %26 = vector.extract_strided_slice %11 {offsets = [0, 10], sizes = [64, 100], strides = [1, 1]} : vector<64x128xbf16> to vector<64x100xbf16>
      %27 = vector.extract_strided_slice %11 {offsets = [0, 11], sizes = [64, 100], strides = [1, 1]} : vector<64x128xbf16> to vector<64x100xbf16>
      %28 = vector.extract_strided_slice %11 {offsets = [0, 12], sizes = [64, 100], strides = [1, 1]} : vector<64x128xbf16> to vector<64x100xbf16>
      %29 = vector.extract_strided_slice %11 {offsets = [0, 20], sizes = [64, 100], strides = [1, 1]} : vector<64x128xbf16> to vector<64x100xbf16>
      %30 = vector.extract_strided_slice %11 {offsets = [0, 21], sizes = [64, 100], strides = [1, 1]} : vector<64x128xbf16> to vector<64x100xbf16>
      %31 = vector.extract_strided_slice %11 {offsets = [0, 22], sizes = [64, 100], strides = [1, 1]} : vector<64x128xbf16> to vector<64x100xbf16>
      %32 = vector.extract_strided_slice %13 {offsets = [0, 0], sizes = [64, 100], strides = [1, 1]} : vector<64x128xbf16> to vector<64x100xbf16>
      %33 = vector.extract_strided_slice %13 {offsets = [0, 1], sizes = [64, 100], strides = [1, 1]} : vector<64x128xbf16> to vector<64x100xbf16>
      %34 = vector.extract_strided_slice %13 {offsets = [0, 2], sizes = [64, 100], strides = [1, 1]} : vector<64x128xbf16> to vector<64x100xbf16>
      %35 = vector.extract_strided_slice %13 {offsets = [0, 10], sizes = [64, 100], strides = [1, 1]} : vector<64x128xbf16> to vector<64x100xbf16>
      %36 = vector.extract_strided_slice %13 {offsets = [0, 11], sizes = [64, 100], strides = [1, 1]} : vector<64x128xbf16> to vector<64x100xbf16>
      %37 = vector.extract_strided_slice %13 {offsets = [0, 12], sizes = [64, 100], strides = [1, 1]} : vector<64x128xbf16> to vector<64x100xbf16>
      %38 = vector.extract_strided_slice %13 {offsets = [0, 20], sizes = [64, 100], strides = [1, 1]} : vector<64x128xbf16> to vector<64x100xbf16>
      %39 = vector.extract_strided_slice %13 {offsets = [0, 21], sizes = [64, 100], strides = [1, 1]} : vector<64x128xbf16> to vector<64x100xbf16>
      %40 = vector.extract_strided_slice %13 {offsets = [0, 22], sizes = [64, 100], strides = [1, 1]} : vector<64x128xbf16> to vector<64x100xbf16>
      %41 = tpu.concatenate %14, %15, %16, %17, %18, %19, %20, %21, %22, %23, %24, %25, %26, %27, %28, %29 in 0 : vector<64x100xbf16>, vector<64x100xbf16>, vector<64x100xbf16>, vector<64x100xbf16>, vector<64x100xbf16>, vector<64x100xbf16>, vector<64x100xbf16>, vector<64x100xbf16>, vector<64x100xbf16>, vector<64x100xbf16>, vector<64x100xbf16>, vector<64x100xbf16>, vector<64x100xbf16>, vector<64x100xbf16>, vector<64x100xbf16>, vector<64x100xbf16> -> vector<1024x100xbf16>
      %42 = tpu.concatenate %30, %31, %32, %33, %34, %35, %36, %37, %38, %39, %40 in 0 : vector<64x100xbf16>, vector<64x100xbf16>, vector<64x100xbf16>, vector<64x100xbf16>, vector<64x100xbf16>, vector<64x100xbf16>, vector<64x100xbf16>, vector<64x100xbf16>, vector<64x100xbf16>, vector<64x100xbf16>, vector<64x100xbf16> -> vector<704x100xbf16>
      %43 = tpu.concatenate %41, %42 in 0 : vector<1024x100xbf16>, vector<704x100xbf16> -> vector<1728x100xbf16>
      %c0_12 = arith.constant 0 : index
      %c0_13 = arith.constant 0 : index
      %44 = vector.load %arg5[%c0_12, %c0_13] : memref<64x1728xbf16, #tpu.memory_space<vmem>>, vector<64x1728xbf16>
      %cst = arith.constant dense<0.000000e+00> : vector<64x100xf32>
      %45 = tpu.matmul %44, %43, %cst {dimension_numbers = #tpu.dot_dimension_numbers<[1], [0], [0], [1], [0, 0, 1, 1], [], []>} : vector<64x1728xbf16>, vector<1728x100xbf16>, vector<64x100xf32> -> vector<64x100xf32>
      %c0_14 = arith.constant 0 : index
      %c0_15 = arith.constant 0 : index
      %46 = vector.load %arg6[%c0_14, %c0_15] : memref<64x1xf32, #tpu.memory_space<vmem>>, vector<64x1xf32>
      %47 = vector.broadcast %46 : vector<64x1xf32> to vector<64x100xf32>
      %48 = arith.mulf %45, %47 : vector<64x100xf32>
      %c0_16 = arith.constant 0 : index
      %c0_17 = arith.constant 0 : index
      %49 = vector.load %arg7[%c0_16, %c0_17] : memref<64x1xf32, #tpu.memory_space<vmem>>, vector<64x1xf32>
      %50 = vector.broadcast %49 : vector<64x1xf32> to vector<64x100xf32>
      %51 = arith.addf %48, %50 : vector<64x100xf32>
      %cst_18 = arith.constant 0.000000e+00 : f32
      %52 = vector.broadcast %cst_18 : f32 to vector<64x100xf32>
      %53 = arith.maximumf %51, %52 : vector<64x100xf32>
      %c0_19 = arith.constant 0 : index
      %c11 = arith.constant 11 : index
      %54 = vector.load %arg8[%c0_19, %c11] : memref<1x128xf32, #tpu.memory_space<vmem>>, vector<1x100xf32>
      %55 = vector.broadcast %54 : vector<1x100xf32> to vector<64x100xf32>
      %56 = arith.mulf %53, %55 : vector<64x100xf32>
      %cst_20 = arith.constant 0.000000e+00 : f32
      %57 = vector.broadcast %cst_20 : f32 to vector<64x11xf32>
      %cst_21 = arith.constant 0.000000e+00 : f32
      %58 = vector.broadcast %cst_21 : f32 to vector<64x17xf32>
      %59 = tpu.concatenate %57, %56, %58 in 1 : vector<64x11xf32>, vector<64x100xf32>, vector<64x17xf32> -> vector<64x128xf32>
      %60 = arith.truncf %59 : vector<64x128xf32> to vector<64x128xbf16>
      %c0_22 = arith.constant 0 : index
      %c0_23 = arith.constant 0 : index
      %c0_24 = arith.constant 0 : index
      %c0_25 = arith.constant 0 : index
      %61 = vector.load %arg9[%c0_22, %c0_23, %c0_24, %c0_25] : memref<1x1x64x128xbf16, #tpu.memory_space<vmem>>, vector<1x1x64x128xbf16>
      %62 = vector.shape_cast %61 : vector<1x1x64x128xbf16> to vector<64x128xbf16>
      %63 = vector.shape_cast %60 : vector<64x128xbf16> to vector<1x1x64x128xbf16>
      tpu.vector_store %arg9[%c0_22, %c0_23, %c0_24, %c0_25], %63 {strides = array<i32>} : memref<1x1x64x128xbf16, #tpu.memory_space<vmem>>, vector<1x1x64x128xbf16>,
    } else {
    }
    %true = arith.constant true
    %5 = arith.xori %2, %true : i1
    %6 = arith.extui %5 : i1 to i32
    %c0_i32_0 = arith.constant 0 : i32
    %7 = arith.cmpi ne, %6, %c0_i32_0 : i32
    scf.if %7 {
      %cst = arith.constant 0.000000e+00 : bf16
      %8 = vector.broadcast %cst : bf16 to vector<64x128xbf16>
      %c0 = arith.constant 0 : index
      %c0_1 = arith.constant 0 : index
      %c0_2 = arith.constant 0 : index
      %c0_3 = arith.constant 0 : index
      %9 = vector.load %arg9[%c0, %c0_1, %c0_2, %c0_3] : memref<1x1x64x128xbf16, #tpu.memory_space<vmem>>, vector<1x1x64x128xbf16>
      %10 = vector.shape_cast %9 : vector<1x1x64x128xbf16> to vector<64x128xbf16>
      %11 = vector.shape_cast %8 : vector<64x128xbf16> to vector<1x1x64x128xbf16>
      tpu.vector_store %arg9[%c0, %c0_1, %c0_2, %c0_3], %11 {strides = array<i32>} : memref<1x1x64x128xbf16, #tpu.memory_space<vmem>>, vector<1x1x64x128xbf16>,
    } else {
    }
    return
  }
  func.func @transform_0(%arg0: i32, %arg1: i32) -> (i32, i32, i32, i32) {
    %c1_i32 = arith.constant 1 : i32
    %0 = arith.subi %arg1, %c1_i32 : i32
    %c0_i32 = arith.constant 0 : i32
    %1 = arith.addi %0, %c0_i32 : i32
    %c0_i32_0 = arith.constant 0 : i32
    %c5_i32 = arith.constant 5 : i32
    %2 = arith.maxsi %c0_i32_0, %1 : i32
    %3 = arith.minsi %c5_i32, %2 : i32
    %c0_i32_1 = arith.constant 0 : i32
    %c0_i32_2 = arith.constant 0 : i32
    %c0_i32_3 = arith.constant 0 : i32
    return %arg0, %3, %c0_i32_1, %c0_i32_2 : i32, i32, i32, i32
  }
  func.func @transform_1(%arg0: i32, %arg1: i32) -> (i32, i32, i32, i32) {
    %c1_i32 = arith.constant 1 : i32
    %0 = arith.subi %arg1, %c1_i32 : i32
    %c1_i32_0 = arith.constant 1 : i32
    %1 = arith.addi %0, %c1_i32_0 : i32
    %c0_i32 = arith.constant 0 : i32
    %c5_i32 = arith.constant 5 : i32
    %2 = arith.maxsi %c0_i32, %1 : i32
    %3 = arith.minsi %c5_i32, %2 : i32
    %c0_i32_1 = arith.constant 0 : i32
    %c0_i32_2 = arith.constant 0 : i32
    %c0_i32_3 = arith.constant 0 : i32
    return %arg0, %3, %c0_i32_1, %c0_i32_2 : i32, i32, i32, i32
  }
  func.func @transform_2(%arg0: i32, %arg1: i32) -> (i32, i32, i32, i32) {
    %c1_i32 = arith.constant 1 : i32
    %0 = arith.subi %arg1, %c1_i32 : i32
    %c2_i32 = arith.constant 2 : i32
    %1 = arith.addi %0, %c2_i32 : i32
    %c0_i32 = arith.constant 0 : i32
    %c5_i32 = arith.constant 5 : i32
    %2 = arith.maxsi %c0_i32, %1 : i32
    %3 = arith.minsi %c5_i32, %2 : i32
    %c0_i32_0 = arith.constant 0 : i32
    %c0_i32_1 = arith.constant 0 : i32
    %c0_i32_2 = arith.constant 0 : i32
    return %arg0, %3, %c0_i32_0, %c0_i32_1 : i32, i32, i32, i32
  }
  func.func @transform_3(%arg0: i32, %arg1: i32) -> (i32, i32) {
    %c0_i32 = arith.constant 0 : i32
    %c0_i32_0 = arith.constant 0 : i32
    %c0_i32_1 = arith.constant 0 : i32
    return %c0_i32, %c0_i32_0 : i32, i32
  }
  func.func @transform_4(%arg0: i32, %arg1: i32) -> (i32, i32) {
    %c0_i32 = arith.constant 0 : i32
    %c0_i32_0 = arith.constant 0 : i32
    %c0_i32_1 = arith.constant 0 : i32
    return %c0_i32, %c0_i32_0 : i32, i32
  }
  func.func @transform_5(%arg0: i32, %arg1: i32) -> (i32, i32) {
    %c0_i32 = arith.constant 0 : i32
    %c0_i32_0 = arith.constant 0 : i32
    %c0_i32_1 = arith.constant 0 : i32
    return %c0_i32, %c0_i32_0 : i32, i32
  }
  func.func @transform_6(%arg0: i32, %arg1: i32) -> (i32, i32) {
    %c0_i32 = arith.constant 0 : i32
    %c0_i32_0 = arith.constant 0 : i32
    %c0_i32_1 = arith.constant 0 : i32
    return %c0_i32, %c0_i32_0 : i32, i32
  }
  func.func @transform_7(%arg0: i32, %arg1: i32) -> (i32, i32, i32, i32) {
    %c0_i32 = arith.constant 0 : i32
    %c0_i32_0 = arith.constant 0 : i32
    %c0_i32_1 = arith.constant 0 : i32
    return %arg0, %arg1, %c0_i32, %c0_i32_0 : i32, i32, i32, i32
  }
}

module attributes {stable_mosaic.version = 11 : i64} {
  func.func @_deconv_fused_kernel(%arg0: i32, %arg1: i32, %arg2: memref<1x1x64x128xbf16, #tpu.memory_space<vmem>>, %arg3: memref<1x1x64x128xbf16, #tpu.memory_space<vmem>>, %arg4: memref<256x512xbf16, #tpu.memory_space<vmem>>, %arg5: memref<256x1xf32, #tpu.memory_space<vmem>>, %arg6: memref<1x1x256x128xbf16, #tpu.memory_space<vmem>>) attributes {dimension_semantics = [#tpu.dimension_semantics<parallel>, #tpu.dimension_semantics<parallel>], iteration_bounds = array<i64: 2, 4>, scalar_prefetch = 0 : i64, scratch_operands = 0 : i64, tpu.core_type = #tpu.core_type<tc>, window_params = [{transform_indices = @transform_0, window_bounds = array<i64: 1, 1, 64, 128>}, {transform_indices = @transform_1, window_bounds = array<i64: 1, 1, 64, 128>}, {pipeline_mode = #tpu.pipeline_mode<synchronous>, transform_indices = @transform_2, window_bounds = array<i64: 256, 512>}, {pipeline_mode = #tpu.pipeline_mode<synchronous>, transform_indices = @transform_3, window_bounds = array<i64: 256, 1>}, {transform_indices = @transform_4, window_bounds = array<i64: 1, 1, 256, 128>}]} {
    %c0 = arith.constant 0 : index
    %c0_0 = arith.constant 0 : index
    %c0_1 = arith.constant 0 : index
    %c0_2 = arith.constant 0 : index
    %0 = vector.load %arg2[%c0, %c0_0, %c0_1, %c0_2] : memref<1x1x64x128xbf16, #tpu.memory_space<vmem>>, vector<1x1x64x128xbf16>
    %1 = vector.shape_cast %0 : vector<1x1x64x128xbf16> to vector<64x128xbf16>
    %c0_3 = arith.constant 0 : index
    %c0_4 = arith.constant 0 : index
    %c0_5 = arith.constant 0 : index
    %c0_6 = arith.constant 0 : index
    %2 = vector.load %arg3[%c0_3, %c0_4, %c0_5, %c0_6] : memref<1x1x64x128xbf16, #tpu.memory_space<vmem>>, vector<1x1x64x128xbf16>
    %3 = vector.shape_cast %2 : vector<1x1x64x128xbf16> to vector<64x128xbf16>
    %4 = vector.extract_strided_slice %1 {offsets = [0, 11], sizes = [64, 100], strides = [1, 1]} : vector<64x128xbf16> to vector<64x100xbf16>
    %5 = vector.extract_strided_slice %1 {offsets = [0, 12], sizes = [64, 100], strides = [1, 1]} : vector<64x128xbf16> to vector<64x100xbf16>
    %6 = vector.extract_strided_slice %1 {offsets = [0, 21], sizes = [64, 100], strides = [1, 1]} : vector<64x128xbf16> to vector<64x100xbf16>
    %7 = vector.extract_strided_slice %1 {offsets = [0, 22], sizes = [64, 100], strides = [1, 1]} : vector<64x128xbf16> to vector<64x100xbf16>
    %8 = vector.extract_strided_slice %3 {offsets = [0, 11], sizes = [64, 100], strides = [1, 1]} : vector<64x128xbf16> to vector<64x100xbf16>
    %9 = vector.extract_strided_slice %3 {offsets = [0, 12], sizes = [64, 100], strides = [1, 1]} : vector<64x128xbf16> to vector<64x100xbf16>
    %10 = vector.extract_strided_slice %3 {offsets = [0, 21], sizes = [64, 100], strides = [1, 1]} : vector<64x128xbf16> to vector<64x100xbf16>
    %11 = vector.extract_strided_slice %3 {offsets = [0, 22], sizes = [64, 100], strides = [1, 1]} : vector<64x128xbf16> to vector<64x100xbf16>
    %12 = tpu.concatenate %4, %5, %6, %7, %8, %9, %10, %11 in 0 : vector<64x100xbf16>, vector<64x100xbf16>, vector<64x100xbf16>, vector<64x100xbf16>, vector<64x100xbf16>, vector<64x100xbf16>, vector<64x100xbf16>, vector<64x100xbf16> -> vector<512x100xbf16>
    %c0_7 = arith.constant 0 : index
    %c0_8 = arith.constant 0 : index
    %13 = vector.load %arg4[%c0_7, %c0_8] : memref<256x512xbf16, #tpu.memory_space<vmem>>, vector<256x512xbf16>
    %cst = arith.constant dense<0.000000e+00> : vector<256x100xf32>
    %14 = tpu.matmul %13, %12, %cst {dimension_numbers = #tpu.dot_dimension_numbers<[1], [0], [0], [1], [0, 0, 1, 1], [], []>} : vector<256x512xbf16>, vector<512x100xbf16>, vector<256x100xf32> -> vector<256x100xf32>
    %c0_9 = arith.constant 0 : index
    %c0_10 = arith.constant 0 : index
    %15 = vector.load %arg5[%c0_9, %c0_10] : memref<256x1xf32, #tpu.memory_space<vmem>>, vector<256x1xf32>
    %16 = vector.broadcast %15 : vector<256x1xf32> to vector<256x100xf32>
    %17 = arith.addf %14, %16 : vector<256x100xf32>
    %cst_11 = arith.constant 0.000000e+00 : f32
    %18 = vector.broadcast %cst_11 : f32 to vector<256x100xf32>
    %19 = arith.maximumf %17, %18 : vector<256x100xf32>
    %cst_12 = arith.constant 0.000000e+00 : f32
    %20 = vector.broadcast %cst_12 : f32 to vector<256x11xf32>
    %cst_13 = arith.constant 0.000000e+00 : f32
    %21 = vector.broadcast %cst_13 : f32 to vector<256x17xf32>
    %22 = tpu.concatenate %20, %19, %21 in 1 : vector<256x11xf32>, vector<256x100xf32>, vector<256x17xf32> -> vector<256x128xf32>
    %23 = arith.truncf %22 : vector<256x128xf32> to vector<256x128xbf16>
    %c0_14 = arith.constant 0 : index
    %c0_15 = arith.constant 0 : index
    %c0_16 = arith.constant 0 : index
    %c0_17 = arith.constant 0 : index
    %24 = vector.load %arg6[%c0_14, %c0_15, %c0_16, %c0_17] : memref<1x1x256x128xbf16, #tpu.memory_space<vmem>>, vector<1x1x256x128xbf16>
    %25 = vector.shape_cast %24 : vector<1x1x256x128xbf16> to vector<256x128xbf16>
    %26 = vector.shape_cast %23 : vector<256x128xbf16> to vector<1x1x256x128xbf16>
    tpu.vector_store %arg6[%c0_14, %c0_15, %c0_16, %c0_17], %26 {strides = array<i32>} : memref<1x1x256x128xbf16, #tpu.memory_space<vmem>>, vector<1x1x256x128xbf16>,
    return
  }
  func.func @transform_0(%arg0: i32, %arg1: i32) -> (i32, i32, i32, i32) {
    %c1_i32 = arith.constant 1 : i32
    %0 = arith.addi %arg1, %c1_i32 : i32
    %c0_i32 = arith.constant 0 : i32
    %c0_i32_0 = arith.constant 0 : i32
    %c0_i32_1 = arith.constant 0 : i32
    return %arg0, %0, %c0_i32, %c0_i32_0 : i32, i32, i32, i32
  }
  func.func @transform_1(%arg0: i32, %arg1: i32) -> (i32, i32, i32, i32) {
    %c2_i32 = arith.constant 2 : i32
    %0 = arith.addi %arg1, %c2_i32 : i32
    %c0_i32 = arith.constant 0 : i32
    %c0_i32_0 = arith.constant 0 : i32
    %c0_i32_1 = arith.constant 0 : i32
    return %arg0, %0, %c0_i32, %c0_i32_0 : i32, i32, i32, i32
  }
  func.func @transform_2(%arg0: i32, %arg1: i32) -> (i32, i32) {
    %c0_i32 = arith.constant 0 : i32
    %c0_i32_0 = arith.constant 0 : i32
    %c0_i32_1 = arith.constant 0 : i32
    return %c0_i32, %c0_i32_0 : i32, i32
  }
  func.func @transform_3(%arg0: i32, %arg1: i32) -> (i32, i32) {
    %c0_i32 = arith.constant 0 : i32
    %c0_i32_0 = arith.constant 0 : i32
    %c0_i32_1 = arith.constant 0 : i32
    return %c0_i32, %c0_i32_0 : i32, i32
  }
  func.func @transform_4(%arg0: i32, %arg1: i32) -> (i32, i32, i32, i32) {
    %c0_i32 = arith.constant 0 : i32
    %c0_i32_0 = arith.constant 0 : i32
    %c0_i32_1 = arith.constant 0 : i32
    return %arg0, %arg1, %c0_i32, %c0_i32_0 : i32, i32, i32, i32
  }
}

module attributes {stable_mosaic.version = 11 : i64} {
  func.func @_conv_plane_kernel(%arg0: i32, %arg1: i32, %arg2: memref<1x1x32x384xbf16, #tpu.memory_space<vmem>>, %arg3: memref<1x1x32x384xbf16, #tpu.memory_space<vmem>>, %arg4: memref<1x1x32x384xbf16, #tpu.memory_space<vmem>>, %arg5: memref<8x864xbf16, #tpu.memory_space<vmem>>, %arg6: memref<8x1xf32, #tpu.memory_space<vmem>>, %arg7: memref<8x1xf32, #tpu.memory_space<vmem>>, %arg8: memref<1x384xf32, #tpu.memory_space<vmem>>, %arg9: memref<1x1x8x384xf32, #tpu.memory_space<vmem>>) attributes {dimension_semantics = [#tpu.dimension_semantics<parallel>, #tpu.dimension_semantics<parallel>], iteration_bounds = array<i64: 2, 10>, scalar_prefetch = 0 : i64, scratch_operands = 0 : i64, tpu.core_type = #tpu.core_type<tc>, window_params = [{transform_indices = @transform_0, window_bounds = array<i64: 1, 1, 32, 384>}, {transform_indices = @transform_1, window_bounds = array<i64: 1, 1, 32, 384>}, {transform_indices = @transform_2, window_bounds = array<i64: 1, 1, 32, 384>}, {pipeline_mode = #tpu.pipeline_mode<synchronous>, transform_indices = @transform_3, window_bounds = array<i64: 8, 864>}, {pipeline_mode = #tpu.pipeline_mode<synchronous>, transform_indices = @transform_4, window_bounds = array<i64: 8, 1>}, {pipeline_mode = #tpu.pipeline_mode<synchronous>, transform_indices = @transform_5, window_bounds = array<i64: 8, 1>}, {pipeline_mode = #tpu.pipeline_mode<synchronous>, transform_indices = @transform_6, window_bounds = array<i64: 1, 384>}, {transform_indices = @transform_7, window_bounds = array<i64: 1, 1, 8, 384>}]} {
    %c1_i32 = arith.constant 1 : i32
    %0 = arith.cmpi sge, %arg1, %c1_i32 : i32
    %c8_i32 = arith.constant 8 : i32
    %1 = arith.cmpi sle, %arg1, %c8_i32 : i32
    %2 = arith.andi %0, %1 : i1
    %3 = arith.extui %2 : i1 to i32
    %c0_i32 = arith.constant 0 : i32
    %4 = arith.cmpi ne, %3, %c0_i32 : i32
    scf.if %4 {
      %c0 = arith.constant 0 : index
      %c0_1 = arith.constant 0 : index
      %c0_2 = arith.constant 0 : index
      %c0_3 = arith.constant 0 : index
      %8 = vector.load %arg2[%c0, %c0_1, %c0_2, %c0_3] : memref<1x1x32x384xbf16, #tpu.memory_space<vmem>>, vector<1x1x32x384xbf16>
      %9 = vector.shape_cast %8 : vector<1x1x32x384xbf16> to vector<32x384xbf16>
      %c0_4 = arith.constant 0 : index
      %c0_5 = arith.constant 0 : index
      %c0_6 = arith.constant 0 : index
      %c0_7 = arith.constant 0 : index
      %10 = vector.load %arg3[%c0_4, %c0_5, %c0_6, %c0_7] : memref<1x1x32x384xbf16, #tpu.memory_space<vmem>>, vector<1x1x32x384xbf16>
      %11 = vector.shape_cast %10 : vector<1x1x32x384xbf16> to vector<32x384xbf16>
      %c0_8 = arith.constant 0 : index
      %c0_9 = arith.constant 0 : index
      %c0_10 = arith.constant 0 : index
      %c0_11 = arith.constant 0 : index
      %12 = vector.load %arg4[%c0_8, %c0_9, %c0_10, %c0_11] : memref<1x1x32x384xbf16, #tpu.memory_space<vmem>>, vector<1x1x32x384xbf16>
      %13 = vector.shape_cast %12 : vector<1x1x32x384xbf16> to vector<32x384xbf16>
      %14 = vector.extract_strided_slice %9 {offsets = [0, 0], sizes = [32, 324], strides = [1, 1]} : vector<32x384xbf16> to vector<32x324xbf16>
      %15 = vector.extract_strided_slice %9 {offsets = [0, 1], sizes = [32, 324], strides = [1, 1]} : vector<32x384xbf16> to vector<32x324xbf16>
      %16 = vector.extract_strided_slice %9 {offsets = [0, 2], sizes = [32, 324], strides = [1, 1]} : vector<32x384xbf16> to vector<32x324xbf16>
      %17 = vector.extract_strided_slice %9 {offsets = [0, 18], sizes = [32, 324], strides = [1, 1]} : vector<32x384xbf16> to vector<32x324xbf16>
      %18 = vector.extract_strided_slice %9 {offsets = [0, 19], sizes = [32, 324], strides = [1, 1]} : vector<32x384xbf16> to vector<32x324xbf16>
      %19 = vector.extract_strided_slice %9 {offsets = [0, 20], sizes = [32, 324], strides = [1, 1]} : vector<32x384xbf16> to vector<32x324xbf16>
      %20 = vector.extract_strided_slice %9 {offsets = [0, 36], sizes = [32, 324], strides = [1, 1]} : vector<32x384xbf16> to vector<32x324xbf16>
      %21 = vector.extract_strided_slice %9 {offsets = [0, 37], sizes = [32, 324], strides = [1, 1]} : vector<32x384xbf16> to vector<32x324xbf16>
      %22 = vector.extract_strided_slice %9 {offsets = [0, 38], sizes = [32, 324], strides = [1, 1]} : vector<32x384xbf16> to vector<32x324xbf16>
      %23 = vector.extract_strided_slice %11 {offsets = [0, 0], sizes = [32, 324], strides = [1, 1]} : vector<32x384xbf16> to vector<32x324xbf16>
      %24 = vector.extract_strided_slice %11 {offsets = [0, 1], sizes = [32, 324], strides = [1, 1]} : vector<32x384xbf16> to vector<32x324xbf16>
      %25 = vector.extract_strided_slice %11 {offsets = [0, 2], sizes = [32, 324], strides = [1, 1]} : vector<32x384xbf16> to vector<32x324xbf16>
      %26 = vector.extract_strided_slice %11 {offsets = [0, 18], sizes = [32, 324], strides = [1, 1]} : vector<32x384xbf16> to vector<32x324xbf16>
      %27 = vector.extract_strided_slice %11 {offsets = [0, 19], sizes = [32, 324], strides = [1, 1]} : vector<32x384xbf16> to vector<32x324xbf16>
      %28 = vector.extract_strided_slice %11 {offsets = [0, 20], sizes = [32, 324], strides = [1, 1]} : vector<32x384xbf16> to vector<32x324xbf16>
      %29 = vector.extract_strided_slice %11 {offsets = [0, 36], sizes = [32, 324], strides = [1, 1]} : vector<32x384xbf16> to vector<32x324xbf16>
      %30 = vector.extract_strided_slice %11 {offsets = [0, 37], sizes = [32, 324], strides = [1, 1]} : vector<32x384xbf16> to vector<32x324xbf16>
      %31 = vector.extract_strided_slice %11 {offsets = [0, 38], sizes = [32, 324], strides = [1, 1]} : vector<32x384xbf16> to vector<32x324xbf16>
      %32 = vector.extract_strided_slice %13 {offsets = [0, 0], sizes = [32, 324], strides = [1, 1]} : vector<32x384xbf16> to vector<32x324xbf16>
      %33 = vector.extract_strided_slice %13 {offsets = [0, 1], sizes = [32, 324], strides = [1, 1]} : vector<32x384xbf16> to vector<32x324xbf16>
      %34 = vector.extract_strided_slice %13 {offsets = [0, 2], sizes = [32, 324], strides = [1, 1]} : vector<32x384xbf16> to vector<32x324xbf16>
      %35 = vector.extract_strided_slice %13 {offsets = [0, 18], sizes = [32, 324], strides = [1, 1]} : vector<32x384xbf16> to vector<32x324xbf16>
      %36 = vector.extract_strided_slice %13 {offsets = [0, 19], sizes = [32, 324], strides = [1, 1]} : vector<32x384xbf16> to vector<32x324xbf16>
      %37 = vector.extract_strided_slice %13 {offsets = [0, 20], sizes = [32, 324], strides = [1, 1]} : vector<32x384xbf16> to vector<32x324xbf16>
      %38 = vector.extract_strided_slice %13 {offsets = [0, 36], sizes = [32, 324], strides = [1, 1]} : vector<32x384xbf16> to vector<32x324xbf16>
      %39 = vector.extract_strided_slice %13 {offsets = [0, 37], sizes = [32, 324], strides = [1, 1]} : vector<32x384xbf16> to vector<32x324xbf16>
      %40 = vector.extract_strided_slice %13 {offsets = [0, 38], sizes = [32, 324], strides = [1, 1]} : vector<32x384xbf16> to vector<32x324xbf16>
      %41 = tpu.concatenate %14, %15, %16, %17, %18, %19, %20, %21, %22, %23, %24, %25, %26, %27, %28, %29 in 0 : vector<32x324xbf16>, vector<32x324xbf16>, vector<32x324xbf16>, vector<32x324xbf16>, vector<32x324xbf16>, vector<32x324xbf16>, vector<32x324xbf16>, vector<32x324xbf16>, vector<32x324xbf16>, vector<32x324xbf16>, vector<32x324xbf16>, vector<32x324xbf16>, vector<32x324xbf16>, vector<32x324xbf16>, vector<32x324xbf16>, vector<32x324xbf16> -> vector<512x324xbf16>
      %42 = tpu.concatenate %30, %31, %32, %33, %34, %35, %36, %37, %38, %39, %40 in 0 : vector<32x324xbf16>, vector<32x324xbf16>, vector<32x324xbf16>, vector<32x324xbf16>, vector<32x324xbf16>, vector<32x324xbf16>, vector<32x324xbf16>, vector<32x324xbf16>, vector<32x324xbf16>, vector<32x324xbf16>, vector<32x324xbf16> -> vector<352x324xbf16>
      %43 = tpu.concatenate %41, %42 in 0 : vector<512x324xbf16>, vector<352x324xbf16> -> vector<864x324xbf16>
      %c0_12 = arith.constant 0 : index
      %c0_13 = arith.constant 0 : index
      %44 = vector.load %arg5[%c0_12, %c0_13] : memref<8x864xbf16, #tpu.memory_space<vmem>>, vector<8x864xbf16>
      %cst = arith.constant dense<0.000000e+00> : vector<8x324xf32>
      %45 = tpu.matmul %44, %43, %cst {dimension_numbers = #tpu.dot_dimension_numbers<[1], [0], [0], [1], [0, 0, 1, 1], [], []>} : vector<8x864xbf16>, vector<864x324xbf16>, vector<8x324xf32> -> vector<8x324xf32>
      %c0_14 = arith.constant 0 : index
      %c0_15 = arith.constant 0 : index
      %46 = vector.load %arg6[%c0_14, %c0_15] : memref<8x1xf32, #tpu.memory_space<vmem>>, vector<8x1xf32>
      %47 = vector.broadcast %46 : vector<8x1xf32> to vector<8x324xf32>
      %48 = arith.mulf %45, %47 : vector<8x324xf32>
      %c0_16 = arith.constant 0 : index
      %c0_17 = arith.constant 0 : index
      %49 = vector.load %arg7[%c0_16, %c0_17] : memref<8x1xf32, #tpu.memory_space<vmem>>, vector<8x1xf32>
      %50 = vector.broadcast %49 : vector<8x1xf32> to vector<8x324xf32>
      %51 = arith.addf %48, %50 : vector<8x324xf32>
      %c0_18 = arith.constant 0 : index
      %c19 = arith.constant 19 : index
      %52 = vector.load %arg8[%c0_18, %c19] : memref<1x384xf32, #tpu.memory_space<vmem>>, vector<1x324xf32>
      %53 = vector.broadcast %52 : vector<1x324xf32> to vector<8x324xf32>
      %54 = arith.mulf %51, %53 : vector<8x324xf32>
      %cst_19 = arith.constant 0.000000e+00 : f32
      %55 = vector.broadcast %cst_19 : f32 to vector<8x19xf32>
      %cst_20 = arith.constant 0.000000e+00 : f32
      %56 = vector.broadcast %cst_20 : f32 to vector<8x41xf32>
      %57 = tpu.concatenate %55, %54, %56 in 1 : vector<8x19xf32>, vector<8x324xf32>, vector<8x41xf32> -> vector<8x384xf32>
      %c0_21 = arith.constant 0 : index
      %c0_22 = arith.constant 0 : index
      %c0_23 = arith.constant 0 : index
      %c0_24 = arith.constant 0 : index
      %58 = vector.load %arg9[%c0_21, %c0_22, %c0_23, %c0_24] : memref<1x1x8x384xf32, #tpu.memory_space<vmem>>, vector<1x1x8x384xf32>
      %59 = vector.shape_cast %58 : vector<1x1x8x384xf32> to vector<8x384xf32>
      %60 = vector.shape_cast %57 : vector<8x384xf32> to vector<1x1x8x384xf32>
      tpu.vector_store %arg9[%c0_21, %c0_22, %c0_23, %c0_24], %60 {strides = array<i32>} : memref<1x1x8x384xf32, #tpu.memory_space<vmem>>, vector<1x1x8x384xf32>,
    } else {
    }
    %true = arith.constant true
    %5 = arith.xori %2, %true : i1
    %6 = arith.extui %5 : i1 to i32
    %c0_i32_0 = arith.constant 0 : i32
    %7 = arith.cmpi ne, %6, %c0_i32_0 : i32
    scf.if %7 {
      %cst = arith.constant 0.000000e+00 : f32
      %8 = vector.broadcast %cst : f32 to vector<8x384xf32>
      %c0 = arith.constant 0 : index
      %c0_1 = arith.constant 0 : index
      %c0_2 = arith.constant 0 : index
      %c0_3 = arith.constant 0 : index
      %9 = vector.load %arg9[%c0, %c0_1, %c0_2, %c0_3] : memref<1x1x8x384xf32, #tpu.memory_space<vmem>>, vector<1x1x8x384xf32>
      %10 = vector.shape_cast %9 : vector<1x1x8x384xf32> to vector<8x384xf32>
      %11 = vector.shape_cast %8 : vector<8x384xf32> to vector<1x1x8x384xf32>
      tpu.vector_store %arg9[%c0, %c0_1, %c0_2, %c0_3], %11 {strides = array<i32>} : memref<1x1x8x384xf32, #tpu.memory_space<vmem>>, vector<1x1x8x384xf32>,
    } else {
    }
    return
  }
  func.func @transform_0(%arg0: i32, %arg1: i32) -> (i32, i32, i32, i32) {
    %c1_i32 = arith.constant 1 : i32
    %0 = arith.subi %arg1, %c1_i32 : i32
    %c0_i32 = arith.constant 0 : i32
    %1 = arith.addi %0, %c0_i32 : i32
    %c0_i32_0 = arith.constant 0 : i32
    %c9_i32 = arith.constant 9 : i32
    %2 = arith.maxsi %c0_i32_0, %1 : i32
    %3 = arith.minsi %c9_i32, %2 : i32
    %c0_i32_1 = arith.constant 0 : i32
    %c0_i32_2 = arith.constant 0 : i32
    %c0_i32_3 = arith.constant 0 : i32
    return %arg0, %3, %c0_i32_1, %c0_i32_2 : i32, i32, i32, i32
  }
  func.func @transform_1(%arg0: i32, %arg1: i32) -> (i32, i32, i32, i32) {
    %c1_i32 = arith.constant 1 : i32
    %0 = arith.subi %arg1, %c1_i32 : i32
    %c1_i32_0 = arith.constant 1 : i32
    %1 = arith.addi %0, %c1_i32_0 : i32
    %c0_i32 = arith.constant 0 : i32
    %c9_i32 = arith.constant 9 : i32
    %2 = arith.maxsi %c0_i32, %1 : i32
    %3 = arith.minsi %c9_i32, %2 : i32
    %c0_i32_1 = arith.constant 0 : i32
    %c0_i32_2 = arith.constant 0 : i32
    %c0_i32_3 = arith.constant 0 : i32
    return %arg0, %3, %c0_i32_1, %c0_i32_2 : i32, i32, i32, i32
  }
  func.func @transform_2(%arg0: i32, %arg1: i32) -> (i32, i32, i32, i32) {
    %c1_i32 = arith.constant 1 : i32
    %0 = arith.subi %arg1, %c1_i32 : i32
    %c2_i32 = arith.constant 2 : i32
    %1 = arith.addi %0, %c2_i32 : i32
    %c0_i32 = arith.constant 0 : i32
    %c9_i32 = arith.constant 9 : i32
    %2 = arith.maxsi %c0_i32, %1 : i32
    %3 = arith.minsi %c9_i32, %2 : i32
    %c0_i32_0 = arith.constant 0 : i32
    %c0_i32_1 = arith.constant 0 : i32
    %c0_i32_2 = arith.constant 0 : i32
    return %arg0, %3, %c0_i32_0, %c0_i32_1 : i32, i32, i32, i32
  }
  func.func @transform_3(%arg0: i32, %arg1: i32) -> (i32, i32) {
    %c0_i32 = arith.constant 0 : i32
    %c0_i32_0 = arith.constant 0 : i32
    %c0_i32_1 = arith.constant 0 : i32
    return %c0_i32, %c0_i32_0 : i32, i32
  }
  func.func @transform_4(%arg0: i32, %arg1: i32) -> (i32, i32) {
    %c0_i32 = arith.constant 0 : i32
    %c0_i32_0 = arith.constant 0 : i32
    %c0_i32_1 = arith.constant 0 : i32
    return %c0_i32, %c0_i32_0 : i32, i32
  }
  func.func @transform_5(%arg0: i32, %arg1: i32) -> (i32, i32) {
    %c0_i32 = arith.constant 0 : i32
    %c0_i32_0 = arith.constant 0 : i32
    %c0_i32_1 = arith.constant 0 : i32
    return %c0_i32, %c0_i32_0 : i32, i32
  }
  func.func @transform_6(%arg0: i32, %arg1: i32) -> (i32, i32) {
    %c0_i32 = arith.constant 0 : i32
    %c0_i32_0 = arith.constant 0 : i32
    %c0_i32_1 = arith.constant 0 : i32
    return %c0_i32, %c0_i32_0 : i32, i32
  }
  func.func @transform_7(%arg0: i32, %arg1: i32) -> (i32, i32, i32, i32) {
    %c0_i32 = arith.constant 0 : i32
    %c0_i32_0 = arith.constant 0 : i32
    %c0_i32_1 = arith.constant 0 : i32
    return %arg0, %arg1, %c0_i32, %c0_i32_0 : i32, i32, i32, i32
  }
}

</mosaic_0001>

<bundles_post_ra>
// kernel: cost_volume_network.6
= control target key start
LH: loop header
LB: loop body
LE: loop exit
PB: predicated region body
PF: predicated region fallthrough
CT: control target
= control target key end

     0   :  { %s1906_s24 = smov 0   ;;  %s1908_s25 = smov 0   ;;  %s2378_s0 = inlined_call_operand.vmem [shape: bf16[2,10,16,384], index: 0, kind: input, shape index: {}, may-alias: {0,1,2}]   ;;  %s2379_s1 = inlined_call_operand.vmem [shape: bf16[2,10,16,384], index: 1, kind: input, shape index: {}, may-alias: {0,1,2}]   ;;  %s2380_s2 = inlined_call_operand.vmem [shape: bf16[2,10,16,384], index: 2, kind: input, shape index: {}, may-alias: {0,1,2}]   ;;  %s2381_s3 = inlined_call_operand.vmem [shape: bf16[32,432], index: 3, kind: input, shape index: {}]   ;;  %s2382_s4 = inlined_call_operand.vmem [shape: f32[32,1], index: 4, kind: input, shape index: {}]   ;;  %s2383_s5 = inlined_call_operand.vmem [shape: f32[32,1], index: 5, kind: input, shape index: {}]   ;;  %s2384_s6 = inlined_call_operand.vmem [shape: f32[1,384], index: 6, kind: input, shape index: {}]   ;;  %s2385_s7 = inlined_call_operand.vmem [shape: bf16[2,10,32,384], index: 7, kind: output, shape index: {}]  }
   0x1   :  { %2387 = sst [smem:[#allocation5_spill]] %s2378_s0  ;;  %s1910_s26 = smov 0  }
   0x2   :  { %s1912_s27 = smov 0   ;;  %s1914_s28 = smov 0  }
   0x3 LB: > { %2388 = sst [smem:[#allocation2_spill]] %s1843_s27  ;;  %s26_s29 = sadd.s32 1, %s1839_s26  ;;  %s1847_s28 = sphi %s1914_s28, %s17_s28   ;;  %s1843_s27 = sphi %s1912_s27, %s2395_s27   ;;  %s1839_s26 = sphi %s1910_s26, %s2397_s26   ;;  %s1835_s25 = sphi %s1908_s25, %s2393_s25   ;;  %s1831_s24 = sphi %s1906_s24, %s2396_s24  }
   0x4   : > { %s29_s30 = sadd.s32 1, %s1843_s27  ;;  %p27_p0 = scmp.ge.s32.totalorder %s26_s29, 10 }
   0x5   : > { %p1576_p1 = scmp.ge.s32.totalorder %s1847_s28, 1  ;;  %p345_p2 = scmp.lt.s32.totalorder %s1847_s28, 21 }
   0x6   : > { %s2399_s29 = smov (%p27_p0, %s26_s29), 0  ;;  %s2401_s30 = smov (!%p27_p0, %s29_s30), %s1843_s27 }
   0x7   : > { %2389 = sst [smem:[#allocation3_spill]] %s2399_s29  ;;  %p346_p3 = pnand %p1576_p1, %p345_p2 }
   0x8   : > { %p31_p4 = scmp.ge.s32.totalorder %s2401_s30, 2  ;;  %s1577_s8 = sadd.s32 (!%p346_p3), 4294967295, %s1831_s24 }
   0x9   : > { %349 = sbr.rel (%p346_p3) target bundleno = 740 (0x2e4), region = 48  ;;  %p422_p5 = scmp.lt.s32.totalorder (!%p346_p3), %s1835_s25, 1 }
   0xa   : > { %s2403_s30 = smov (%p31_p4, %s2401_s30), 0  ;;  %p418_p6 = scmp.gt.s32.totalorder (!%p346_p3), %s1577_s8, 0 }
   0xb   : > { %2390 = sst [smem:[#allocation4_spill]] %s2403_s30  ;;  %p1578_p7 = scmp.lt.s32.totalorder (!%p346_p3), %s1577_s8, 9 }
   0xc   : > { %p436_p8 = scmp.gt.s32.totalorder (!%p346_p3), %s1831_s24, 0  ;;  %p1584_p10 = scmp.lt.s32.totalorder (!%p346_p3), %s1831_s24, 9 }
   0xd   : > { %s453_s11 = sadd.s32 (!%p346_p3), 1, %s1831_s24  ;;  %p482_p13 = scmp.ge.s32.totalorder (!%p346_p3), %s1831_s24, 1 }
   0xe   : > { %p454_p12 = scmp.gt.s32.totalorder (!%p346_p3), %s453_s11, 0  ;;  %p483_p0 = scmp.le.s32.totalorder (!%p346_p3), %s1831_s24, 8 }
   0xf   : > { %s2391_s0 = sld [smem:[#allocation5_spill]] (!%p346_p3)  ;;  %p1590_p1 = scmp.lt.s32.totalorder (!%p346_p3), %s453_s11, 9 }
  0x10   : > { %s2405_s25 = smov (!%p422_p5, %s1835_s25), 1  ;;  %s2407_s8 = smov (!%p418_p6, %s1577_s8), 0 }
  0x11   : > { %s2409_s8 = smov (!%p1578_p7, %s2407_s8), 9  ;;  %s1691_s10 = smul.u32 60, %s2405_s25 }
  0x12   : > { %s437_s9 = scalar_select %p436_p8, %s1831_s24, 0 }
  0x13   : > { %p424_p9 = scmp.lt.s32.totalorder %s2409_s8, 9  ;;  %s2417_s11 = smov (!%p454_p12, %s453_s11), 0 }
  0x14   : > { %s2413_s9 = smov (!%p1584_p10, %s437_s9), 9  ;;  %p1953_p2 = pnand %p483_p0, %p482_p13 }
  0x15   : > { %s2411_s8 = smov (!%p424_p9, %s2409_s8), 9  ;;  %p442_p11 = scmp.lt.s32.totalorder %s2413_s9, 9  ;;  %vm522_vm0 = vcmask (!%p1953_p2), 1039360   ;;  %v1799_v14 = vld [vmem:[%s2381_s3 + $0x4] ss:$16 sps:$4 sm:$0xff] (!%p1953_p2)   ;;  %vm534_vm1 = vcmask (!%p1953_p2), 1031168  }
  0x16   : > { %s1690_s12 = smul.u32 6, %s2411_s8  ;;  %s2419_s11 = smov (!%p1590_p1, %s2417_s11), 9  ;;  %1090 = vmatprep.mubr.bf16.mxu1 (!%p1953_p2), %v1799_v14  ;;  %984 = vmatprep.mubr.bf16.mxu0 (!%p1953_p2), %v1799_v14  ;;  %v1864_v21 = vmov (!%p1953_p2), 0   ;;  %vm546_vm2 = vcmask (!%p1953_p2), 900096   ;;  %vm713_vm3 = vcmask (!%p1953_p2), 302080   ;;  %vm558_vm4 = vcmask (!%p1953_p2), 891904  }
  0x17   : > { %s2415_s9 = smov (!%p442_p11, %s2413_s9), 9  ;;  %p460_p3 = scmp.lt.s32.totalorder %s2419_s11, 9  ;;  %1753 = vset.pattern.permute.xlu1 (!%p1953_p2), %v1864_v21  ;;  %1754 = vset.pattern.permute.xlu0 (!%p1953_p2), %v1864_v21  ;;  %vm722_vm5 = vcmask (!%p1953_p2), 293888   ;;  %vm570_vm6 = vcmask (!%p1953_p2), 883712   ;;  %vm731_vm7 = vcmask (!%p1953_p2), 285696   ;;  %vm582_vm8 = vcmask (!%p1953_p2), 752640  }
  0x18   : > { %s428_s13 = sadd.s32 %s1691_s10, %s1690_s12  ;;  %s1692_s18 = smul.u32 6, %s2415_s9  ;;  %vm740_vm9 = vcmask (!%p1953_p2), 154624   ;;  %vm594_vm10 = vcmask (!%p1953_p2), 744448   ;;  %vm749_vm11 = vcmask (!%p1953_p2), 146432   ;;  %vm606_vm12 = vcmask (!%p1953_p2), 736256  }
  0x19   : > { %s1583_s14 = sshll.u32 %s428_s13, 2  ;;  %s1695_s12 = smul.u32 120, %s2405_s25  ;;  %vm758_vm13 = vcmask (!%p1953_p2), 138240   ;;  %vm767_vm14 = vcmask (!%p1953_p2), 7168   ;;  %vm945_vm15 = vcmask (!%p1953_p2), 392192  }
  0x1a   : > { %s430_s17 = scalar_lea.vmem %s2391_s0, %s1583_s14  ;;  %s446_s20 = sadd.s32 %s1692_s18, %s1691_s10 }
  0x1b   : > { %s1589_s21 = sshll.u32 %s446_s20, 2  ;;  %s2421_s11 = smov (!%p460_p3, %s2419_s11), 9  ;;  %v1785_v0 = vld [vmem:[%s430_s17 + $0x4] ss:$12 sps:$4 sm:$0xff] (!%p1953_p2)   ;;  %v1976_v1 = vld [vmem:[%s430_s17] ss:$12 sps:$4 sm:$0xff] (!%p1953_p2)  }
  0x1c   : > { %s448_s8 = scalar_lea.vmem %s2379_s1, %s1589_s21  ;;  %s2423_s24 = smov (!%p1584_p10, %s1831_s24), 9  ;;  %v1979_v2 = vld [vmem:[%s430_s17 + $0x8] ss:$12 sps:$4 sm:$0xff] (!%p1953_p2)   ;;  %952 = vmatprep.subr.bf16.mxu0 (!%p1953_p2), %v1785_v0 }
  0x1d   : > { %s1693_s13 = smul.u32 6, %s2421_s11  ;;  %953 = vmatpush1.bf16.msra.mxu0 (!%p1953_p2), %v1976_v1  ;;  %s1850_s0 = smov (!%p1953_p2), 126   ;;  %v1989_v3 = vld [vmem:[%s448_s8 + $0x4] ss:$12 sps:$4 sm:$0xff] (!%p1953_p2)   ;;  %v1993_v4 = vld [vmem:[%s448_s8 + $0x8] ss:$12 sps:$4 sm:$0xff] (!%p1953_p2)  }
  0x1e   : > { %s1694_s14 = smul.u32 12, %s2423_s24  ;;  %s1849_s24 = smov (!%p1953_p2), 127   ;;  %v1997_v5 = vld [vmem:[%s448_s8] ss:$12 sps:$4 sm:$0xff] (!%p1953_p2)  }
  0x1f   : > { %s464_s15 = sadd.s32 %s1693_s13, %s1691_s10  ;;  %487 = sbr.rel (%p1953_p2) target bundleno = 733 (0x2dd), region = 52  ;;  %518 = vrot.lane.b32.xlu0 (!%p1953_p2), %v1785_v0, %s1849_s24  ;;  %516 = vrot.lane.b32.xlu1 (!%p1953_p2), %v1976_v1, %s1849_s24 }
  0x20   : > { %s1595_s9 = sshll.u32 %s464_s15, 2  ;;  %s478_s16 = sadd.s32 %s1695_s12, %s1694_s14 }
  0x21   : > { %s1967_s29 = scalar_lea.vmem %s2380_s2, %s1595_s9  ;;  %s1596_s18 = sshll.u32 %s478_s16, 2 }
  0x22   : > { %s1972_s22 = scalar_lea.vmem %s2385_s7, %s1596_s18  ;;  %s1851_s25 = smov (!%p1953_p2), 110   ;;  %v2007_v6 = vld [vmem:[%s1967_s29] ss:$12 sps:$4 sm:$0xff] (!%p1953_p2)   ;;  %v2012_v7 = vld [vmem:[%s1967_s29 + $0x4] ss:$12 sps:$4 sm:$0xff] (!%p1953_p2)  }
  0x23   : > { %520 = vrot.lane.b32.xlu0 (!%p1953_p2), %v1979_v2, %s1849_s24  ;;  %530 = vrot.lane.b32.xlu1 (!%p1953_p2), %v1785_v0, %s1850_s0  ;;  %s1852_s27 = smov (!%p1953_p2), 37   ;;  %v2016_v8 = vld [vmem:[%s1967_s29 + $0x8] ss:$12 sps:$4 sm:$0xff] (!%p1953_p2)   ;;  %s1853_s30 = smov (!%p1953_p2), 109  }
  0x24   : > { %s1854_s10 = smov (!%p1953_p2), 36   ;;  %s1855_s29 = smov (!%p1953_p2), 108  }
  0x25   : > { %s1856_s11 = smov (!%p1953_p2), 35   ;;  %s1857_s17 = smov (!%p1953_p2), 92  }
  0x26   : > { %s1858_s21 = smov 19   ;;  %s1859_s23 = smov 91  }
  0x27   : > { %532 = vrot.lane.b32.xlu0 %v1979_v2, %s1850_s0  ;;  %528 = vrot.lane.b32.xlu1 %v1976_v1, %s1850_s0  ;;  %s1860_s8 = smov 18   ;;  %s1861_s12 = smov 90  }
  0x28   : > { %s1862_s13 = smov 17   ;;  %s1863_s14 = smov 1  }
  0x2b   : > { %630 = vrot.lane.b32.xlu0 %v1989_v3, %s1849_s24  ;;  %632 = vrot.lane.b32.xlu1 %v1993_v4, %s1849_s24 }
  0x2f   : > { %628 = vrot.lane.b32.xlu0 %v1997_v5, %s1849_s24  ;;  %542 = vrot.lane.b32.xlu1 %v1785_v0, %s1851_s25 }
  0x33   : > { %544 = vrot.lane.b32.xlu0 %v1979_v2, %s1851_s25  ;;  %540 = vrot.lane.b32.xlu1 %v1976_v1, %s1851_s25 }
  0x37   : > { %707 = vrot.lane.b32.xlu0 %v2007_v6, %s1852_s27  ;;  %709 = vrot.lane.b32.xlu1 %v2012_v7, %s1852_s27 }
  0x3b   : > { %711 = vrot.lane.b32.xlu0 %v2016_v8, %s1852_s27  ;;  %554 = vrot.lane.b32.xlu1 %v1785_v0, %s1853_s30 }
  0x3f   : > { %556 = vrot.lane.b32.xlu0 %v1979_v2, %s1853_s30  ;;  %552 = vrot.lane.b32.xlu1 %v1976_v1, %s1853_s30 }
  0x43   : > { %716 = vrot.lane.b32.xlu0 %v2007_v6, %s1854_s10  ;;  %718 = vrot.lane.b32.xlu1 %v2012_v7, %s1854_s10 }
  0x47   : > { %720 = vrot.lane.b32.xlu0 %v2016_v8, %s1854_s10  ;;  %566 = vrot.lane.b32.xlu1 %v1785_v0, %s1855_s29 }
  0x4b   : > { %568 = vrot.lane.b32.xlu0 %v1979_v2, %s1855_s29  ;;  %564 = vrot.lane.b32.xlu1 %v1976_v1, %s1855_s29 }
  0x4f   : > { %725 = vrot.lane.b32.xlu0 %v2007_v6, %s1856_s11  ;;  %727 = vrot.lane.b32.xlu1 %v2012_v7, %s1856_s11 }
  0x53   : > { %729 = vrot.lane.b32.xlu0 %v2016_v8, %s1856_s11  ;;  %578 = vrot.lane.b32.xlu1 %v1785_v0, %s1857_s17 }
  0x57   : > { %580 = vrot.lane.b32.xlu0 %v1979_v2, %s1857_s17  ;;  %576 = vrot.lane.b32.xlu1 %v1976_v1, %s1857_s17 }
  0x5b   : > { %734 = vrot.lane.b32.xlu0 %v2007_v6, %s1858_s21  ;;  %736 = vrot.lane.b32.xlu1 %v2012_v7, %s1858_s21 }
  0x5f   : > { %738 = vrot.lane.b32.xlu0 %v2016_v8, %s1858_s21  ;;  %590 = vrot.lane.b32.xlu1 %v1785_v0, %s1859_s23 }
  0x63   : > { %592 = vrot.lane.b32.xlu0 %v1979_v2, %s1859_s23  ;;  %588 = vrot.lane.b32.xlu1 %v1976_v1, %s1859_s23 }
  0x67   : > { %743 = vrot.lane.b32.xlu0 %v2007_v6, %s1860_s8  ;;  %745 = vrot.lane.b32.xlu1 %v2012_v7, %s1860_s8 }
  0x6b   : > { %747 = vrot.lane.b32.xlu0 %v2016_v8, %s1860_s8  ;;  %602 = vrot.lane.b32.xlu1 %v1785_v0, %s1861_s12 }
  0x6f   : > { %604 = vrot.lane.b32.xlu0 %v1979_v2, %s1861_s12  ;;  %600 = vrot.lane.b32.xlu1 %v1976_v1, %s1861_s12 }
  0x73   : > { %752 = vrot.lane.b32.xlu0 %v2007_v6, %s1862_s13  ;;  %754 = vrot.lane.b32.xlu1 %v2012_v7, %s1862_s13 }
  0x77   : > { %756 = vrot.lane.b32.xlu0 %v2016_v8, %s1862_s13  ;;  %761 = vrot.lane.b32.xlu1 %v2007_v6, %s1863_s14 }
  0x7b   : > { %763 = vrot.lane.b32.xlu0 %v2012_v7, %s1863_s14  ;;  %765 = vrot.lane.b32.xlu1 %v2016_v8, %s1863_s14 }
  0x7f   : > { %641 = vrot.lane.b32.xlu0 %v1989_v3, %s1850_s0  ;;  %643 = vrot.lane.b32.xlu1 %v1993_v4, %s1850_s0 }
  0x83   : > { %639 = vrot.lane.b32.xlu0 %v1997_v5, %s1850_s0  ;;  %772 = vrot.lane.b32.xlu1 %v2012_v7, %s1849_s24 }
  0x87   : > { %774 = vrot.lane.b32.xlu0 %v2016_v8, %s1849_s24  ;;  %770 = vrot.lane.b32.xlu1 %v2007_v6, %s1849_s24 }
  0x8b   : > { %652 = vrot.lane.b32.xlu0 %v1989_v3, %s1851_s25  ;;  %654 = vrot.lane.b32.xlu1 %v1993_v4, %s1851_s25 }
  0x8f   : > { %650 = vrot.lane.b32.xlu0 %v1997_v5, %s1851_s25  ;;  %663 = vrot.lane.b32.xlu1 %v1989_v3, %s1853_s30 }
  0x91   : > { %v519_v9 = vpop.permute.xlu0 %518  ;;  %v517_v10 = vpop.permute.xlu1 %516 }
  0x92   : > { %v523_v15 = vsel %vm522_vm0, %v517_v10, %v519_v9 }
  0x93   : > { %665 = vrot.lane.b32.xlu0 %v1993_v4, %s1853_s30  ;;  %661 = vrot.lane.b32.xlu1 %v1997_v5, %s1853_s30 }
  0x95   : > { %v2087_v11 = vpop.permute.xlu0 %520  ;;  %v531_v12 = vpop.permute.xlu1 %530 }
  0x96   : > { %v524_v13 = vsel %vm522_vm0, %v519_v9, %v2087_v11 }
  0x97   : > { %674 = vrot.lane.b32.xlu0 %v1989_v3, %s1855_s29  ;;  %954 = vmatprep.subr.bf16.mxu0 %v524_v13 }
  0x98   : > { %676 = vrot.lane.b32.xlu1 %v1993_v4, %s1855_s29  ;;  %955 = vmatpush1.bf16.msra.mxu0 %v523_v15 }
  0x99   : > { %v2099_v16 = vpop.permute.xlu0 %532  ;;  %v529_v17 = vpop.permute.xlu1 %528 }
  0x9a   : > { %v536_v18 = vsel %vm534_vm1, %v531_v12, %v2099_v16  ;;  %v535_v19 = vsel %vm534_vm1, %v529_v17, %v531_v12 }
  0x9b   : > { %672 = vrot.lane.b32.xlu0 %v1997_v5, %s1855_s29  ;;  %956 = vmatprep.subr.bf16.mxu0 %v536_v18 }
  0x9c   : > { %685 = vrot.lane.b32.xlu1 %v1989_v3, %s1857_s17  ;;  %957 = vmatpush1.bf16.msra.mxu0 %v535_v19 }
  0x9d   : > { %v631_v20 = vpop.permute.xlu0 %630  ;;  %v2110_v22 = vpop.permute.xlu1 %632 }
  0x9e   : > { %v2128_v28 = vsel %vm522_vm0, %v631_v20, %v2110_v22 }
  0x9f   : > { %687 = vrot.lane.b32.xlu0 %v1993_v4, %s1857_s17 }
  0xa0   : > { %683 = vrot.lane.b32.xlu1 %v1997_v5, %s1857_s17 }
  0xa1   : > { %v629_v23 = vpop.permute.xlu0 %628  ;;  %v543_v24 = vpop.permute.xlu1 %542 }
  0xa2   : > { %v2134_v32 = vsel %vm522_vm0, %v629_v23, %v631_v20 }
  0xa3   : > { %780 = vrot.lane.b32.xlu0 %v1989_v3, %s1859_s23 }
  0xa4   : > { %782 = vrot.lane.b32.xlu1 %v1993_v4, %s1859_s23 }
  0xa5   : > { %v2120_v25 = vpop.permute.xlu0 %544  ;;  %v541_v26 = vpop.permute.xlu1 %540 }
  0xa6   : > { %v548_v27 = vsel %vm546_vm2, %v543_v24, %v2120_v25  ;;  %v547_v29 = vsel %vm546_vm2, %v541_v26, %v543_v24 }
  0xa7   : > { %778 = vrot.lane.b32.xlu0 %v1997_v5, %s1859_s23  ;;  %958 = vmatprep.subr.bf16.mxu0 %v548_v27 }
  0xa8   : > { %786 = vrot.lane.b32.xlu1 %v2128_v28, %s1859_s23  ;;  %959 = vmatpush1.bf16.msra.mxu0 %v547_v29 }
  0xa9   : > { %v708_v30 = vpop.permute.xlu0 %707  ;;  %v710_v31 = vpop.permute.xlu1 %709 }
  0xaa   : > { %v714_v36 = vsel %vm713_vm3, %v708_v30, %v710_v31 }
  0xab   : > { %788 = vrot.lane.b32.xlu0 %v2110_v22, %s1859_s23 }
  0xac   : > { %784 = vrot.lane.b32.xlu1 %v2134_v32, %s1859_s23 }
  0xad   : > { %v712_v33 = vpop.permute.xlu0 %711  ;;  %v555_v34 = vpop.permute.xlu1 %554 }
  0xae   : > { %v715_v35 = vsel %vm713_vm3, %v710_v31, %v712_v33 }
  0xaf   : > { %792 = vrot.lane.b32.xlu0 %v714_v36, %s1859_s23 }
  0xb0   : > { %794 = vrot.lane.b32.xlu1 %v715_v35, %s1859_s23 }
  0xb1   : > { %v2142_v37 = vpop.permute.xlu0 %556  ;;  %v553_v38 = vpop.permute.xlu1 %552 }
  0xb2   : > { %v560_v39 = vsel %vm558_vm4, %v555_v34, %v2142_v37  ;;  %v559_v40 = vsel %vm558_vm4, %v553_v38, %v555_v34 }
  0xb3   : > { %790 = vrot.lane.b32.xlu0 %v708_v30, %s1859_s23  ;;  %960 = vmatprep.subr.bf16.mxu0 %v560_v39 }
  0xb4   : > { %961 = vmatpush1.bf16.msra.mxu0 %v559_v40 }
  0xb5   : > { %v717_v41 = vpop.permute.xlu0 %716  ;;  %v719_v42 = vpop.permute.xlu1 %718 }
  0xb6   : > { %v723_v43 = vsel %vm722_vm5, %v717_v41, %v719_v42 }
  0xb7   : > { %798 = vrot.lane.b32.xlu1 %v723_v43, %s1859_s23  ;;  %v1157_v43 = vld [vmem:[%s2382_s4 + $0x8] sm:$0xff] }
  0xb9   : > { %v721_v44 = vpop.permute.xlu0 %720  ;;  %v567_v45 = vpop.permute.xlu1 %566 }
  0xba   : > { %v724_v46 = vsel %vm722_vm5, %v719_v42, %v721_v44 }
  0xbb   : > { %800 = vrot.lane.b32.xlu0 %v724_v46, %s1859_s23  ;;  %796 = vrot.lane.b32.xlu1 %v717_v41, %s1859_s23 }
  0xbd   : > { %v2151_v47 = vpop.permute.xlu0 %568  ;;  %v565_v48 = vpop.permute.xlu1 %564 }
  0xbe   : > { %v572_v49 = vsel %vm570_vm6, %v567_v45, %v2151_v47  ;;  %v571_v50 = vsel %vm570_vm6, %v565_v48, %v567_v45  ;;  %v1242_v45 = vlaneseq }
  0xbf   : > { %962 = vmatprep.subr.bf16.mxu0 %v572_v49  ;;  %v1158_v49 = vld [vmem:[%s2382_s4 + $0x10] sm:$0xff] }
  0xc0   : > { %963 = vmatpush1.bf16.msra.mxu0 %v571_v50 }
  0xc1   : > { %v726_v51 = vpop.permute.xlu0 %725  ;;  %v728_v52 = vpop.permute.xlu1 %727 }
  0xc2   : > { %v732_v53 = vsel %vm731_vm7, %v726_v51, %v728_v52 }
  0xc3   : > { %804 = vrot.lane.b32.xlu0 %v732_v53, %s1859_s23 }
  0xc5   : > { %v730_v54 = vpop.permute.xlu0 %729  ;;  %v579_v55 = vpop.permute.xlu1 %578 }
  0xc6   : > { %v733_v56 = vsel %vm731_vm7, %v728_v52, %v730_v54  ;;  %v1159_v54 = vld [vmem:[%s2382_s4 + $0x18] sm:$0xff] }
  0xc7   : > { %806 = vrot.lane.b32.xlu1 %v733_v56, %s1859_s23  ;;  %802 = vrot.lane.b32.xlu0 %v726_v51, %s1859_s23  ;;  %v1243_v51 = vshrl.u32 %v1242_v45, 7 }
  0xc9   : > { %v2159_v57 = vpop.permute.xlu0 %580  ;;  %v577_v58 = vpop.permute.xlu1 %576 }
  0xca   : > { %v584_v59 = vsel %vm582_vm8, %v579_v55, %v2159_v57  ;;  %v583_v60 = vsel %vm582_vm8, %v577_v58, %v579_v55  ;;  %v1248_v58 = vsub.s32 1, %v1243_v51 }
  0xcb   : > { %964 = vmatprep.subr.bf16.mxu0 %v584_v59 }
  0xcc   : > { %965 = vmatpush1.bf16.msra.mxu0 %v583_v60  ;;  %v1193_v60 = vld [vmem:[%s2383_s5 + $0x8] sm:$0xff] }
  0xcd   : > { %v735_v61 = vpop.permute.xlu0 %734  ;;  %v737_v62 = vpop.permute.xlu1 %736 }
  0xce   : > { %v741_v63 = vsel %vm740_vm9, %v735_v61, %v737_v62 }
  0xcf   : > { %810 = vrot.lane.b32.xlu1 %v741_v63, %s1859_s23 }
  0xd1   : > { %v739_v0 = vpop.permute.xlu0 %738  ;;  %v591_v1 = vpop.permute.xlu1 %590 }
  0xd2   : > { %v742_v9 = vsel %vm740_vm9, %v737_v62, %v739_v0 }
  0xd3   : > { %812 = vrot.lane.b32.xlu0 %v742_v9, %s1859_s23  ;;  %808 = vrot.lane.b32.xlu1 %v735_v61, %s1859_s23  ;;  %v1194_v61 = vld [vmem:[%s2383_s5 + $0x10] sm:$0xff]  ;;  %v1244_v9 = vsub.s32 0, %v1243_v51 }
  0xd5   : > { %v2169_v10 = vpop.permute.xlu0 %592  ;;  %v589_v12 = vpop.permute.xlu1 %588 }
  0xd6   : > { %v596_v13 = vsel %vm594_vm10, %v591_v1, %v2169_v10  ;;  %v595_v14 = vsel %vm594_vm10, %v589_v12, %v591_v1  ;;  %v1252_v1 = vsub.s32 2, %v1243_v51 }
  0xd7   : > { %966 = vmatprep.subr.bf16.mxu0 %v596_v13 }
  0xd8   : > { %967 = vmatpush1.bf16.msra.mxu0 %v595_v14  ;;  %v1195_v14 = vld [vmem:[%s2383_s5 + $0x18] sm:$0xff] }
  0xd9   : > { %v744_v15 = vpop.permute.xlu0 %743  ;;  %v746_v17 = vpop.permute.xlu1 %745 }
  0xda   : > { %v750_v18 = vsel %vm749_vm11, %v744_v15, %v746_v17 }
  0xdb   : > { %816 = vrot.lane.b32.xlu0 %v750_v18, %s1859_s23 }
  0xdd   : > { %v748_v19 = vpop.permute.xlu0 %747  ;;  %v603_v20 = vpop.permute.xlu1 %602 }
  0xde   : > { %v751_v23 = vsel %vm749_vm11, %v746_v17, %v748_v19 }
  0xdf   : > { %818 = vrot.lane.b32.xlu1 %v751_v23, %s1859_s23  ;;  %814 = vrot.lane.b32.xlu0 %v744_v15, %s1859_s23 }
  0xe1   : > { %v605_v24 = vpop.permute.xlu0 %604  ;;  %v601_v26 = vpop.permute.xlu1 %600 }
  0xe2   : > { %1654 = vmatprep.subr.bf16.mxu1 %v605_v24  ;;  %v608_v27 = vsel %vm606_vm12, %v603_v20, %v605_v24  ;;  %v607_v29 = vsel %vm606_vm12, %v601_v26, %v603_v20  ;;  %v1797_v20 = vld [vmem:[%s2381_s3] ss:$16 sps:$4 sm:$0xff]   ;;  %v1800_v26 = vld [vmem:[%s2381_s3 + $0x24] ss:$16 sps:$4 sm:$0xff]  }
  0xe3   : > { %968 = vmatprep.subr.bf16.mxu0 %v608_v27  ;;  %1655 = vmatpush3.bf16.msra.mxu1 %v1979_v2 }
  0xe4   : > { %969 = vmatpush1.bf16.msra.mxu0 %v607_v29  ;;  %1656 = vmatprep.subr.bf16.mxu1 %v1993_v4 }
  0xe5   : > { %v753_v30 = vpop.permute.xlu0 %752  ;;  %970 = vmatprep.subr.bf16.mxu0 %v1989_v3  ;;  %v755_v31 = vpop.permute.xlu1 %754 }
  0xe6   : > { %v759_v33 = vsel %vm758_vm13, %v753_v30, %v755_v31 }
  0xe7   : > { %1657 = vmatpush3.bf16.msra.mxu1 %v2087_v11  ;;  %822 = vrot.lane.b32.xlu1 %v759_v33, %s1859_s23  ;;  %v1802_v33 = vld [vmem:[%s2381_s3 + $0x20] ss:$16 sps:$4 sm:$0xff]  }
  0xe8   : > { %971 = vmatpush1.bf16.msra.mxu0 %v1997_v5  ;;  %1658 = vmatprep.subr.bf16.mxu1 %v2110_v22 }
  0xe9   : > { %v757_v34 = vpop.permute.xlu0 %756  ;;  %972 = vmatprep.subr.bf16.mxu0 %v2128_v28  ;;  %v762_v2 = vpop.permute.xlu1 %761 }
  0xea   : > { %v760_v35 = vsel %vm758_vm13, %v755_v31, %v757_v34 }
  0xeb   : > { %1659 = vmatpush3.bf16.msra.mxu1 %v2099_v16  ;;  %824 = vrot.lane.b32.xlu0 %v760_v35, %s1859_s23 }
  0xec   : > { %820 = vrot.lane.b32.xlu1 %v753_v30, %s1859_s23  ;;  %973 = vmatpush1.bf16.msra.mxu0 %v2134_v32 }
  0xed   : > { %v764_v3 = vpop.permute.xlu0 %763  ;;  %v766_v4 = vpop.permute.xlu1 %765 }
  0xee   : > { %v768_v11 = vsel %vm767_vm14, %v762_v2, %v764_v3  ;;  %v769_v5 = vsel %vm767_vm14, %v764_v3, %v766_v4 }
  0xef   : > { %828 = vrot.lane.b32.xlu0 %v768_v11, %s1859_s23 }
  0xf0   : > { %830 = vrot.lane.b32.xlu1 %v769_v5, %s1859_s23 }
  0xf1   : > { %v642_v22 = vpop.permute.xlu0 %641  ;;  %v644_v28 = vpop.permute.xlu1 %643 }
  0xf2   : > { %1660 = vmatprep.subr.bf16.mxu1 %v644_v28  ;;  %v646_v16 = vsel %vm534_vm1, %v642_v22, %v644_v28 }
  0xf3   : > { %826 = vrot.lane.b32.xlu0 %v762_v2, %s1859_s23  ;;  %974 = vmatprep.subr.bf16.mxu0 %v646_v16  ;;  %v1805_v2 = vld [vmem:[%s2381_s3 + $0xc] ss:$16 sps:$4 sm:$0xff]  }
  0xf4   : > { %834 = vrot.lane.b32.xlu1 %v2012_v7, %s1859_s23  ;;  %1661 = vmatpush3.bf16.msra.mxu1 %v2120_v25 }
  0xf5   : > { %v640_v32 = vpop.permute.xlu0 %639  ;;  %v773_v36 = vpop.permute.xlu1 %772 }
  0xf6   : > { %v645_v38 = vsel %vm534_vm1, %v640_v32, %v642_v22 }
  0xf7   : > { %836 = vrot.lane.b32.xlu0 %v2016_v8, %s1859_s23  ;;  %975 = vmatpush1.bf16.msra.mxu0 %v645_v38  ;;  %v1156_v8 = vld [vmem:[%s2382_s4] sm:$0xff] }
  0xf8   : > { %832 = vrot.lane.b32.xlu1 %v2007_v6, %s1859_s23 }
  0xf9   : > { %v775_v39 = vpop.permute.xlu0 %774  ;;  %v771_v40 = vpop.permute.xlu1 %770 }
  0xfa   : > { %v777_v41 = vsel %vm522_vm0, %v773_v36, %v775_v39  ;;  %v776_v25 = vsel %vm522_vm0, %v771_v40, %v773_v36  ;;  %vm1339_vm0 = vcmask 711680  }
  0xfb   : > { %840 = vrot.lane.b32.xlu0 %v777_v41, %s1859_s23 }
  0xfc   : > { %842 = vrot.lane.b32.xlu1 %v775_v39, %s1859_s23 }
  0xfd   : > { %v653_v7 = vpop.permute.xlu0 %652  ;;  %v655_v42 = vpop.permute.xlu1 %654 }
  0xfe   : > { %1662 = vmatprep.subr.bf16.mxu1 %v655_v42  ;;  %v657_v6 = vsel %vm546_vm2, %v653_v7, %v655_v42 }
  0xff   : > { %838 = vrot.lane.b32.xlu0 %v776_v25, %s1859_s23  ;;  %1663 = vmatpush3.bf16.msra.mxu1 %v2142_v37  ;;  %v1192_v37 = vld [vmem:[%s2383_s5] sm:$0xff] }
 0x100   : > { %976 = vmatprep.subr.bf16.mxu0 %v657_v6  ;;  %1162 = vperm.xlu1 %1753, %v1156_v8  }
 0x101   : > { %v651_v44 = vpop.permute.xlu0 %650  ;;  %v664_v46 = vpop.permute.xlu1 %663 }
 0x102   : > { %v656_v48 = vsel %vm546_vm2, %v651_v44, %v653_v7 }
 0x103   : > { %977 = vmatpush1.bf16.msra.mxu0 %v656_v48  ;;  %1167 = vperm.xlu0 %1754, %v1157_v43  }
 0x104   : > { %1172 = vperm.xlu1 %1753, %v1158_v49  }
 0x105   : > { %v666_v50 = vpop.permute.xlu0 %665  ;;  %v662_v52 = vpop.permute.xlu1 %661 }
 0x106   : > { %1664 = vmatprep.subr.bf16.mxu1 %v666_v50  ;;  %v668_v53 = vsel %vm558_vm4, %v664_v46, %v666_v50  ;;  %v667_v55 = vsel %vm558_vm4, %v662_v52, %v664_v46 }
 0x107   : > { %1665 = vmatpush3.bf16.msra.mxu1 %v2151_v47  ;;  %978 = vmatprep.subr.bf16.mxu0 %v668_v53  ;;  %v1240_v47 = vld [vmem:[%s2384_s6] sm:$0x7] }
 0x108   : > { %979 = vmatpush1.bf16.msra.mxu0 %v667_v55  ;;  %1198 = vperm.xlu0 %1754, %v1192_v37   ;;  %v1249_v0 = vrot.slane %v1240_v47, %v1248_v58  ;;  %v1245_v17 = vrot.slane %v1240_v47, %v1244_v9 }
 0x109   : > { %v675_v56 = vpop.permute.xlu0 %674  ;;  %1177 = vperm.xlu1 %1753, %v1159_v54  }
 0x10a   : > { %v677_v59 = vpop.permute.xlu1 %676 }
 0x10b   : > { %1666 = vmatprep.subr.bf16.mxu1 %v677_v59  ;;  %v679_v62 = vsel %vm570_vm6, %v675_v56, %v677_v59 }
 0x10c   : > { %1667 = vmatpush3.bf16.msra.mxu1 %v2159_v57  ;;  %980 = vmatprep.subr.bf16.mxu0 %v679_v62  ;;  %v1253_v57 = vrot.slane %v1240_v47, %v1252_v1 }
 0x10d   : > { %v673_v63 = vpop.permute.xlu0 %672  ;;  %1203 = vperm.xlu1 %1753, %v1193_v60   ;;  %1208 = vperm.xlu0 %1754, %v1194_v61  }
 0x10e   : > { %v686_v12 = vpop.permute.xlu1 %685  ;;  %v678_v13 = vsel %vm570_vm6, %v673_v63, %v675_v56 }
 0x10f   : > { %981 = vmatpush1.bf16.msra.mxu0 %v678_v13 }
 0x111   : > { %v688_v15 = vpop.permute.xlu0 %687  ;;  %1213 = vperm.xlu1 %1753, %v1195_v14   ;;  %1256 = vrot.lane.b32.xlu0 %v1249_v0, %s1853_s30  ;;  %v1803_v14 = vld [vmem:[%s2381_s3 + $0x8] ss:$16 sps:$4 sm:$0xff]  }
 0x112   : > { %v684_v18 = vpop.permute.xlu1 %683  ;;  %1668 = vmatprep.subr.bf16.mxu1 %v688_v15  ;;  %v690_v19 = vsel %vm582_vm8, %v686_v12, %v688_v15 }
 0x113   : > { %1669 = vmatpush3.bf16.msra.mxu1 %v2169_v10  ;;  %982 = vmatprep.subr.bf16.mxu0 %v690_v19  ;;  %v689_v23 = vsel %vm582_vm8, %v684_v18, %v686_v12 }
 0x114   : > { %983 = vmatpush1.bf16.msra.mxu0 %v689_v23  ;;  %1107 = vmatprep.subr.bf16.mxu1 %v1864_v21 }
 0x115   : > { %v781_v24 = vpop.permute.xlu0 %780  ;;  %1258 = vrot.lane.b32.xlu1 %v1253_v57, %s1853_s30  ;;  %1254 = vrot.lane.b32.xlu0 %v1245_v17, %s1853_s30  ;;  %v1806_v57 = vld [vmem:[%s2381_s3 + $0x2c] ss:$16 sps:$4 sm:$0xff]  }
 0x116   : > { %v783_v27 = vpop.permute.xlu1 %782  ;;  %1091 = vmatmul.mubr.bf16.vlgmr.msra.gmra.mrb[0].mxu1 %v1797_v20 }
 0x117   : > { %1108 = vmatpush1.bf16.msra.mxu1 %v783_v27  ;;  %v845_v10 = vsel %vm594_vm10, %v781_v24, %v783_v27  ;;  %985 = vmatmul.mubr.bf16.vlgmr.msra.gmra.mrb[0].mxu0 %v1797_v20 }
 0x118   : > { %1005 = vmatprep.subr.bf16.mxu0 %v845_v10  ;;  %1109 = vmatprep.subr.bf16.mxu1 %v1864_v21 }
 0x119   : > { %v779_v29 = vpop.permute.xlu0 %778  ;;  %1098 = vmatprep.mubr.bf16.mxu1 %v1800_v26  ;;  %994 = vmatprep.mubr.bf16.mxu0 %v1800_v26 }
 0x11a   : > { %v844_v30 = vsel %vm594_vm10, %v779_v29, %v781_v24  ;;  %v787_v31 = vpop.permute.xlu1 %786 }
 0x11b   : > { %1006 = vmatpush1.bf16.msra.mxu0 %v844_v30 }
 0x11d   : > { %v789_v34 = vpop.permute.xlu0 %788 }
 0x11e   : > { %v785_v35 = vpop.permute.xlu1 %784  ;;  %1110 = vmatpush1.bf16.msra.mxu1 %v789_v34  ;;  %v847_v3 = vsel %vm594_vm10, %v787_v31, %v789_v34 }
 0x11f   : > { %v846_v4 = vsel %vm594_vm10, %v785_v35, %v787_v31  ;;  %1007 = vmatprep.subr.bf16.mxu0 %v847_v3  ;;  %1111 = vmatprep.subr.bf16.mxu1 %v1864_v21 }
 0x120   : > { %1008 = vmatpush1.bf16.msra.mxu0 %v846_v4  ;;  %1099 = vmatmul.mubr.bf16.gmra.mrb[4].mxu1 %v1802_v33 }
 0x121   : > { %v793_v11 = vpop.permute.xlu0 %792  ;;  %995 = vmatmul.mubr.bf16.gmra.mrb[4].mxu0 %v1802_v33  ;;  %1616 = vmatprep.mubr.msk.bf16.mxu1 %vm945_vm15, %v1805_v2 }
 0x122   : > { %v795_v5 = vpop.permute.xlu1 %794  ;;  %1614 = vmatprep.mubr.msk.bf16.mxu0 %vm945_vm15, %v1805_v2 }
 0x123   : > { %1112 = vmatpush1.bf16.msra.mxu1 %v795_v5  ;;  %v849_v22 = vsel %vm594_vm10, %v793_v11, %v795_v5 }
 0x124   : > { %1009 = vmatprep.subr.bf16.mxu0 %v849_v22  ;;  %1113 = vmatprep.subr.bf16.mxu1 %v1864_v21 }
 0x125   : > { %v791_v28 = vpop.permute.xlu0 %790 }
 0x126   : > { %v848_v16 = vsel %vm594_vm10, %v791_v28, %v793_v11 }
 0x127   : > { %1010 = vmatpush1.bf16.msra.mxu0 %v848_v16 }
 0x129   : > { %v799_v32 = vpop.permute.xlu1 %798 }
 0x12d   : > { %v801_v36 = vpop.permute.xlu0 %800  ;;  %v797_v38 = vpop.permute.xlu1 %796 }
 0x12e   : > { %1114 = vmatpush1.bf16.msra.mxu1 %v801_v36  ;;  %v851_v39 = vsel %vm594_vm10, %v799_v32, %v801_v36  ;;  %v850_v40 = vsel %vm594_vm10, %v797_v38, %v799_v32 }
 0x12f   : > { %1011 = vmatprep.subr.bf16.mxu0 %v851_v39  ;;  %1115 = vmatprep.subr.bf16.mxu1 %v1864_v21 }
 0x130   : > { %1012 = vmatpush1.bf16.msra.mxu0 %v850_v40 }
 0x135   : > { %v805_v41 = vpop.permute.xlu0 %804 }
 0x139   : > { %v807_v7 = vpop.permute.xlu1 %806  ;;  %v803_v25 = vpop.permute.xlu0 %802 }
 0x13a   : > { %1116 = vmatpush1.bf16.msra.mxu1 %v807_v7  ;;  %v853_v42 = vsel %vm594_vm10, %v805_v41, %v807_v7  ;;  %v852_v8 = vsel %vm594_vm10, %v803_v25, %v805_v41 }
 0x13b   : > { %1013 = vmatprep.subr.bf16.mxu0 %v853_v42  ;;  %1117 = vmatprep.subr.bf16.mxu1 %v1864_v21 }
 0x13c   : > { %1014 = vmatpush1.bf16.msra.mxu0 %v852_v8 }
 0x141   : > { %v811_v6 = vpop.permute.xlu1 %810 }
 0x145   : > { %v813_v43 = vpop.permute.xlu0 %812  ;;  %v809_v44 = vpop.permute.xlu1 %808 }
 0x146   : > { %1118 = vmatpush1.bf16.msra.mxu1 %v813_v43  ;;  %v855_v45 = vsel %vm594_vm10, %v811_v6, %v813_v43  ;;  %v854_v46 = vsel %vm594_vm10, %v809_v44, %v811_v6 }
 0x147   : > { %1015 = vmatprep.subr.bf16.mxu0 %v855_v45  ;;  %1119 = vmatprep.subr.bf16.mxu1 %v1864_v21 }
 0x148   : > { %1016 = vmatpush1.bf16.msra.mxu0 %v854_v46 }
 0x14d   : > { %v817_v48 = vpop.permute.xlu0 %816 }
 0x151   : > { %v819_v49 = vpop.permute.xlu1 %818  ;;  %v815_v50 = vpop.permute.xlu0 %814 }
 0x152   : > { %1120 = vmatpush1.bf16.msra.mxu1 %v819_v49  ;;  %v857_v37 = vsel %vm594_vm10, %v817_v48, %v819_v49  ;;  %v856_v51 = vsel %vm594_vm10, %v815_v50, %v817_v48 }
 0x153   : > { %1017 = vmatprep.subr.bf16.mxu0 %v857_v37  ;;  %1121 = vmatprep.subr.bf16.mxu1 %v1864_v21 }
 0x154   : > { %1018 = vmatpush1.bf16.msra.mxu0 %v856_v51 }
 0x159   : > { %v823_v52 = vpop.permute.xlu1 %822 }
 0x15d   : > { %v825_v53 = vpop.permute.xlu0 %824 }
 0x15e   : > { %v821_v54 = vpop.permute.xlu1 %820  ;;  %1122 = vmatpush1.bf16.msra.mxu1 %v825_v53  ;;  %v859_v55 = vsel %vm594_vm10, %v823_v52, %v825_v53 }
 0x15f   : > { %v858_v56 = vsel %vm594_vm10, %v821_v54, %v823_v52  ;;  %1019 = vmatprep.subr.bf16.mxu0 %v859_v55  ;;  %1123 = vmatprep.subr.bf16.mxu1 %v1864_v21 }
 0x160   : > { %1020 = vmatpush1.bf16.msra.mxu0 %v858_v56 }
 0x161   : > { %v829_v58 = vpop.permute.xlu0 %828 }
 0x162   : > { %v831_v59 = vpop.permute.xlu1 %830 }
 0x163   : > { %1124 = vmatpush1.bf16.msra.mxu1 %v831_v59  ;;  %v861_v60 = vsel %vm594_vm10, %v829_v58, %v831_v59 }
 0x164   : > { %1021 = vmatprep.subr.bf16.mxu0 %v861_v60  ;;  %1125 = vmatprep.subr.bf16.mxu1 %v1864_v21 }
 0x165   : > { %v827_v61 = vpop.permute.xlu0 %826 }
 0x166   : > { %v860_v47 = vsel %vm594_vm10, %v827_v61, %v829_v58  ;;  %v835_v62 = vpop.permute.xlu1 %834 }
 0x167   : > { %1022 = vmatpush1.bf16.msra.mxu0 %v860_v47 }
 0x169   : > { %v837_v63 = vpop.permute.xlu0 %836 }
 0x16a   : > { %v833_v0 = vpop.permute.xlu1 %832  ;;  %1126 = vmatpush1.bf16.msra.mxu1 %v837_v63  ;;  %v863_v1 = vsel %vm594_vm10, %v835_v62, %v837_v63 }
 0x16b   : > { %v862_v9 = vsel %vm594_vm10, %v833_v0, %v835_v62  ;;  %1023 = vmatprep.subr.bf16.mxu0 %v863_v1  ;;  %1127 = vmatprep.subr.bf16.mxu1 %v1864_v21  ;;  %v1808_v21 = vld [vmem:[%s2381_s3 + $0x28] ss:$16 sps:$4 sm:$0xff]  }
 0x16c   : > { %1024 = vmatpush1.bf16.msra.mxu0 %v862_v9 }
 0x16d   : > { %v841_v12 = vpop.permute.xlu0 %840 }
 0x16e   : > { %v843_v13 = vpop.permute.xlu1 %842 }
 0x16f   : > { %1128 = vmatpush1.bf16.msra.mxu1 %v843_v13  ;;  %v865_v15 = vsel %vm594_vm10, %v841_v12, %v843_v13 }
 0x170   : > { %1025 = vmatprep.subr.bf16.mxu0 %v865_v15 }
 0x171   : > { %v839_v17 = vpop.permute.xlu0 %838 }
 0x172   : > { %v864_v18 = vsel %vm594_vm10, %v839_v17, %v841_v12  ;;  %1140 = vmatmul.mubr.bf16.vlgmr.msra.gmra.mrb[8].mxu1 %v1803_v14 }
 0x173   : > { %1026 = vmatpush1.bf16.msra.mxu0 %v864_v18  ;;  %1617 = vmatprep.mubr.msk.bf16.mxu1 %vm945_vm15, %v1806_v57 }
 0x176   : > { %1038 = vmatmul.mubr.bf16.vlgmr.msra.gmra.mrb[0].mxu0 %v1803_v14 }
 0x177   : > { %1615 = vmatprep.mubr.msk.bf16.mxu0 %vm945_vm15, %v1806_v57 }
 0x17a   : > { %1148 = vmatmul.mubr.bf16.gmra.mrb[12].mxu1 %v1808_v21 }
 0x17e   : > { %1048 = vmatmul.mubr.bf16.gmra.mrb[4].mxu0 %v1808_v21 }
 0x17f   : > { %v1163_v2 = vpop.permute.xlu1 %1162 }
 0x182   : > { %v1168_v35 = vpop.permute.xlu0 %1167 }
 0x183   : > { %v1173_v3 = vpop.permute.xlu1 %1172 }
 0x187   : > { %v1199_v4 = vpop.permute.xlu0 %1198 }
 0x188   : > { %v2306_v11 = vpop.permute.xlu1 %1177 }
 0x18c   : > { %v2308_v5 = vpop.permute.xlu0 %1208  ;;  %v1204_v22 = vpop.permute.xlu1 %1203 }
 0x190   : > { %v1257_v36 = vpop.permute.xlu0 %1256  ;;  %v2310_v38 = vpop.permute.xlu1 %1213 }
 0x194   : > { %v1259_v46 = vpop.permute.xlu1 %1258  ;;  %v1255_v52 = vpop.permute.xlu0 %1254 }
 0x195   : > { %v1262_v55 = vsel %vm558_vm4, %v1257_v36, %v1259_v46  ;;  %v1261_v0 = vsel %vm558_vm4, %v1255_v52, %v1257_v36 }
 0x1e9   : > { %v1670_v19 = vpop.f32.mrb[0].mxu1 }
 0x1ea   : > { %v1671_v20 = vpop.f32.mrb[1].mxu1 }
 0x1eb   : > { %v1672_v23 = vadd.f32 %v1671_v20, %v1670_v19  ;;  %v1673_v24 = vpop.f32.mrb[2].mxu1 }
 0x1ec   : > { %v1674_v26 = vpop.f32.mrb[3].mxu1 }
 0x1ed   : > { %v1675_v27 = vadd.f32 %v1674_v26, %v1673_v24 }
 0x1f3   : > { %v1676_v10 = vpop.f32.mrb[4].mxu1 }
 0x1f4   : > { %v1677_v29 = vpop.f32.mrb[5].mxu1 }
 0x1f5   : > { %v1678_v30 = vadd.f32 %v1677_v29, %v1676_v10  ;;  %v1679_v31 = vpop.f32.mrb[6].mxu1 }
 0x1f6   : > { %v1680_v33 = vpop.f32.mrb[7].mxu1 }
 0x1f7   : > { %v1681_v34 = vadd.f32 %v1680_v33, %v1679_v31 }
 0x245   : > { %v1141_v28 = vpop.f32.mrb[8].mxu1 }
 0x246   : > { %v1142_v16 = vadd.f32 %v1672_v23, %v1141_v28  ;;  %v1143_v32 = vpop.f32.mrb[9].mxu1 }
 0x247   : > { %v1144_v39 = vpop.f32.mrb[10].mxu1 }
 0x248   : > { %v1182_v40 = vmul.f32 %v1163_v2, %v1142_v16  ;;  %v1145_v41 = vadd.f32 %v1675_v27, %v1144_v39  ;;  %v1146_v7 = vpop.f32.mrb[11].mxu1 }
 0x249   : > { %v1039_v25 = vpop.f32.mrb[0].mxu0 }
 0x24a   : > { %v1218_v42 = vadd.f32 %v1199_v4, %v1182_v40  ;;  %v1185_v8 = vmul.f32 %v1168_v35, %v1145_v41  ;;  %v1180_v6 = vmul.f32 %v1163_v2, %v1039_v25  ;;  %v1041_v43 = vpop.f32.mrb[1].mxu0 }
 0x24b   : > { %v1181_v44 = vmul.f32 %v1163_v2, %v1041_v43  ;;  %v1043_v45 = vpop.f32.mrb[2].mxu0 }
 0x24c   : > { %v1230_v48 = vmax.f32 %v1218_v42, 0.0  ;;  %v1221_v49 = vadd.f32 %v1204_v22, %v1185_v8  ;;  %v1216_v50 = vadd.f32 %v1199_v4, %v1180_v6  ;;  %v1183_v37 = vmul.f32 %v1168_v35, %v1043_v45  ;;  %v1045_v51 = vpop.f32.mrb[3].mxu0 }
 0x24d   : > { %v1217_v53 = vadd.f32 %v1199_v4, %v1181_v44  ;;  %v1149_v54 = vpop.f32.mrb[12].mxu1  ;;  %v1184_v56 = vmul.f32 %v1168_v35, %v1045_v51 }
 0x24e   : > { %v1233_v58 = vmax.f32 %v1221_v49, 0.0  ;;  %v1228_v59 = vmax.f32 %v1216_v50, 0.0  ;;  %v1219_v60 = vadd.f32 %v1204_v22, %v1183_v37  ;;  %v1150_v61 = vadd.f32 %v1678_v30, %v1149_v54  ;;  %v1151_v47 = vpop.f32.mrb[13].mxu1 }
 0x24f   : > { %v1229_v62 = vmax.f32 %v1217_v53, 0.0  ;;  %v1220_v63 = vadd.f32 %v1204_v22, %v1184_v56  ;;  %v1152_v1 = vpop.f32.mrb[14].mxu1  ;;  %v1268_v13 = vmul.f32 %v1259_v46, %v1230_v48 }
 0x250   : > { %v1231_v9 = vmax.f32 %v1219_v60, 0.0  ;;  %v1188_v12 = vmul.f32 %v1173_v3, %v1150_v61  ;;  %v1154_v14 = vpop.f32.mrb[15].mxu1  ;;  %v1271_v15 = vmul.f32 %v1259_v46, %v1233_v58  ;;  %v1153_v17 = vadd.f32 %v1681_v34, %v1152_v1 }
 0x251   : > { %v1232_v57 = vmax.f32 %v1220_v63, 0.0  ;;  %v1049_v18 = vpop.f32.mrb[4].mxu0  ;;  %v1267_v21 = vmul.f32 %v1262_v55, %v1229_v62  ;;  %v1266_v20 = vmul.f32 %v1261_v0, %v1228_v59 }
 0x252   : > { %v1224_v19 = vadd.f32 %v2308_v5, %v1188_v12  ;;  %v1269_v23 = vmul.f32 %v1261_v0, %v1231_v9  ;;  %v1186_v24 = vmul.f32 %v1173_v3, %v1049_v18  ;;  %v1051_v26 = vpop.f32.mrb[5].mxu0  ;;  %v1191_v10 = vmul.f32 %v2306_v11, %v1153_v17 }
 0x253   : > { %v1270_v27 = vmul.f32 %v1262_v55, %v1232_v57  ;;  %v1187_v29 = vmul.f32 %v1173_v3, %v1051_v26  ;;  %v1053_v30 = vpop.f32.mrb[6].mxu0  ;;  %v1755_v31 = vpack.i.bf16 %v1268_v13, %v1267_v21 }
 0x254   : > { %v1236_v33 = vmax.f32 %v1224_v19, 0.0  ;;  %v1222_v2 = vadd.f32 %v2308_v5, %v1186_v24  ;;  %v1189_v35 = vmul.f32 %v2306_v11, %v1053_v30  ;;  %v1055_v34 = vpop.f32.mrb[7].mxu0  ;;  %v1775_v4 = vpack.i.bf16 %v1269_v23, %v1266_v20 }
 0x255   : > { %v1760_v22 = vpack.i.bf16 %v1271_v15, %v1270_v27  ;;  %v1227_v28 = vadd.f32 %v2310_v38, %v1191_v10  ;;  %v1223_v16 = vadd.f32 %v2308_v5, %v1187_v29  ;;  %v1190_v32 = vmul.f32 %v2306_v11, %v1055_v34  ;;  %1756 = vrot.lane.b32.xlu1 %v1755_v31, %s1858_s21 }
 0x256   : > { %v1234_v36 = vmax.f32 %v1222_v2, 0.0  ;;  %v1225_v3 = vadd.f32 %v2310_v38, %v1189_v35  ;;  %v1274_v25 = vmul.f32 %v1259_v46, %v1236_v33 }
 0x257   : > { %v1239_v39 = vmax.f32 %v1227_v28, 0.0  ;;  %v1235_v40 = vmax.f32 %v1223_v16, 0.0  ;;  %v1226_v41 = vadd.f32 %v2310_v38, %v1190_v32  ;;  %1761 = vrot.lane.b32.xlu0 %v1760_v22, %s1858_s21 }
 0x258   : > { %v1237_v7 = vmax.f32 %v1225_v3, 0.0  ;;  %v1272_v6 = vmul.f32 %v1261_v0, %v1234_v36 }
 0x259   : > { %v1273_v42 = vmul.f32 %v1262_v55, %v1235_v40  ;;  %v1238_v8 = vmax.f32 %v1226_v41, 0.0  ;;  %v1277_v5 = vmul.f32 %v1259_v46, %v1239_v39 }
 0x25a   : > { %v1275_v43 = vmul.f32 %v1261_v0, %v1237_v7 }
 0x25b   : > { %v1765_v44 = vpack.i.bf16 %v1274_v25, %v1273_v42  ;;  %v1276_v11 = vmul.f32 %v1262_v55, %v1238_v8 }
 0x25c   : > { %v1780_v45 = vpack.i.bf16 %v1275_v43, %v1272_v6 }
 0x25d   : > { %v1770_v48 = vpack.i.bf16 %v1277_v5, %v1276_v11  ;;  %1766 = vrot.lane.b32.xlu1 %v1765_v44, %s1858_s21 }
 0x25f   : > { %1771 = vrot.lane.b32.xlu0 %v1770_v48, %s1858_s21 }
 0x261   : > { %1776 = vrot.lane.b32.xlu1 %v1775_v4, %s1858_s21 }
 0x263   : > { %1781 = vrot.lane.b32.xlu0 %v1780_v45, %s1858_s21 }
 0x2c7   : > { %v1757_v38 = vpop.permute.xlu1 %1756 }
 0x2c8   : > { %v1759_v49 = vunpack.i.h.bf16 %v1757_v38  ;;  %v1758_v50 = vunpack.i.l.bf16 %v1757_v38 }
 0x2c9   : > { %v1762_v37 = vpop.permute.xlu0 %1761 }
 0x2ca   : > { %v1316_v46 = vsel %vm740_vm9, %v1758_v50, %v1759_v49  ;;  %v1764_v51 = vunpack.i.h.bf16 %v1762_v37  ;;  %v1763_v52 = vunpack.i.l.bf16 %v1762_v37 }
 0x2cb   : > { %v1340_v53 = vsel %vm1339_vm0, %v1316_v46, 0.0 }
 0x2cc   : > { %v1647_v54 = vpack.c.bf16 %v1340_v53, %v1340_v53  ;;  %v1318_v55 = vsel %vm740_vm9, %v1763_v52, %v1764_v51 }
 0x2cd   : > { %v1341_v56 = vsel %vm1339_vm0, %v1318_v55, 0.0 }
 0x2ce   : > { %1385 = vst [vmem:[%s1972_s22 + $0x8] sm:$0xf] %v1647_v54  ;;  %v1649_v58 = vpack.c.bf16 %v1341_v56, %v1341_v56 }
 0x2cf   : > { %v1767_v59 = vpop.permute.xlu1 %1766 }
 0x2d0   : > { %1387 = vst [vmem:[%s1972_s22 + $0x14] sm:$0xf] %v1649_v58  ;;  %v1769_v60 = vunpack.i.h.bf16 %v1767_v59  ;;  %v1768_v61 = vunpack.i.l.bf16 %v1767_v59 }
 0x2d1   : > { %v1772_v47 = vpop.permute.xlu0 %1771 }
 0x2d2   : > { %v1320_v62 = vsel %vm740_vm9, %v1768_v61, %v1769_v60  ;;  %v1774_v63 = vunpack.i.h.bf16 %v1772_v47  ;;  %v1773_v0 = vunpack.i.l.bf16 %v1772_v47 }
 0x2d3   : > { %v1342_v1 = vsel %vm1339_vm0, %v1320_v62, 0.0  ;;  %v1777_v9 = vpop.permute.xlu1 %1776 }
 0x2d4   : > { %v1651_v12 = vpack.c.bf16 %v1342_v1, %v1342_v1  ;;  %v1322_v13 = vsel %vm740_vm9, %v1773_v0, %v1774_v63  ;;  %v1779_v14 = vunpack.i.h.bf16 %v1777_v9  ;;  %v1778_v15 = vunpack.i.l.bf16 %v1777_v9 }
 0x2d5   : > { %v1343_v57 = vsel %vm1339_vm0, %v1322_v13, 0.0  ;;  %v1782_v17 = vpop.permute.xlu0 %1781 }
 0x2d6   : > { %1389 = vst [vmem:[%s1972_s22 + $0x20] sm:$0xf] %v1651_v12  ;;  %v1653_v18 = vpack.c.bf16 %v1343_v57, %v1343_v57  ;;  %v1317_v21 = vsel %vm740_vm9, %v1779_v14, %v1763_v52  ;;  %v1336_v19 = vsel %vm740_vm9, 0.0, %v1779_v14  ;;  %v1315_v20 = vsel %vm740_vm9, %v1778_v15, %v1758_v50 }
 0x2d7   : > { %v1648_v23 = vpack.c.bf16 %v1317_v21, %v1336_v19  ;;  %v1335_v24 = vsel %vm740_vm9, 0.0, %v1778_v15  ;;  %v1784_v26 = vunpack.i.h.bf16 %v1782_v17  ;;  %v1783_v27 = vunpack.i.l.bf16 %v1782_v17 }
 0x2d8   : > { %1391 = vst [vmem:[%s1972_s22 + $0x2c] sm:$0xf] %v1653_v18  ;;  %v1646_v10 = vpack.c.bf16 %v1315_v20, %v1335_v24 }
 0x2d9   : > { %1386 = vst [vmem:[%s1972_s22 + $0xc] sm:$0xff] %v1648_v23  ;;  %v1338_v29 = vsel %vm740_vm9, 0.0, %v1784_v26  ;;  %v1319_v30 = vsel %vm740_vm9, %v1783_v27, %v1768_v61  ;;  %v1321_v31 = vsel %vm740_vm9, %v1784_v26, %v1773_v0  ;;  %v1337_v33 = vsel %vm740_vm9, 0.0, %v1783_v27 }
 0x2da   : > { %1384 = vst [vmem:[%s1972_s22] sm:$0xff] %v1646_v10  ;;  %v1650_v2 = vpack.c.bf16 %v1319_v30, %v1337_v33  ;;  %v1652_v35 = vpack.c.bf16 %v1321_v31, %v1338_v29 }
 0x2dc   : > { %1388 = vst [vmem:[%s1972_s22 + $0x18] sm:$0xff] %v1650_v2  ;;  %1390 = vst [vmem:[%s1972_s22 + $0x24] sm:$0xff] %v1652_v35 }
 0x2dd PF: > { %1394 = sbr.rel (!%p1953_p2) target bundleno = 740 (0x2e4), region = 56  ;;  %v1865_v34 = vmov (%p1953_p2), 0  }
 0x2de   : > { %1395 = vst [vmem:[%s1972_s22] sm:$0xff] (%p1953_p2), %v1865_v34  ;;  %1396 = vst [vmem:[%s1972_s22 + $0x8] sm:$0xf] (%p1953_p2), %v1865_v34 }
 0x2df   : > { %1397 = vst [vmem:[%s1972_s22 + $0xc] sm:$0xff] (%p1953_p2), %v1865_v34  ;;  %1398 = vst [vmem:[%s1972_s22 + $0x14] sm:$0xf] (%p1953_p2), %v1865_v34 }
 0x2e0   : > { %1399 = vst [vmem:[%s1972_s22 + $0x18] sm:$0xff] (%p1953_p2), %v1865_v34  ;;  %1400 = vst [vmem:[%s1972_s22 + $0x20] sm:$0xf] (%p1953_p2), %v1865_v34 }
 0x2e1   : > { %1401 = vst [vmem:[%s1972_s22 + $0x24] sm:$0xff] (%p1953_p2), %v1865_v34  ;;  %1402 = vst [vmem:[%s1972_s22 + $0x2c] sm:$0xf] (%p1953_p2), %v1865_v34 }
 0x2e4 PF: > { %s17_s28 = sadd.s32 1, %s1847_s28   ;;  %s2393_s25 = sld [smem:[#allocation2_spill]] }
 0x2e5   : > { %p14_p4 = scmp.ge.s32.totalorder %s17_s28, 22   ;;  %s2394_s19 = sld [smem:[#allocation3_spill]] }
 0x2e6   : > { %s2395_s27 = sld [smem:[#allocation4_spill]]  ;;  %s2396_s24 = smov %s1839_s26 }
 0x2e7   :  { %16 = sbr.rel (!%p14_p4) target bundleno = 3 (0x3), region = 92 }
 0x2eb   : > { %s2397_s26 = smov %s2394_s19 }

// kernel: cost_volume_network.7
= control target key start
LH: loop header
LB: loop body
LE: loop exit
PB: predicated region body
PF: predicated region fallthrough
CT: control target
= control target key end

     0   :  { %s2686_s24 = smov 0   ;;  %s2688_s25 = smov 0   ;;  %s3722_s0 = inlined_call_operand.vmem [shape: bf16[2,10,32,384], index: 0, kind: input, shape index: {}, may-alias: {0,1,2}]   ;;  %s3723_s1 = inlined_call_operand.vmem [shape: bf16[2,10,32,384], index: 1, kind: input, shape index: {}, may-alias: {0,1,2}]   ;;  %s3724_s2 = inlined_call_operand.vmem [shape: bf16[2,10,32,384], index: 2, kind: input, shape index: {}, may-alias: {0,1,2}]   ;;  %s3725_s3 = inlined_call_operand.vmem [shape: bf16[32,864], index: 3, kind: input, shape index: {}]   ;;  %s3726_s4 = inlined_call_operand.vmem [shape: f32[32,1], index: 4, kind: input, shape index: {}]   ;;  %s3727_s5 = inlined_call_operand.vmem [shape: f32[32,1], index: 5, kind: input, shape index: {}]   ;;  %s3728_s6 = inlined_call_operand.vmem [shape: f32[1,384], index: 6, kind: input, shape index: {}]   ;;  %s3729_s7 = inlined_call_operand.vmem [shape: bf16[2,10,32,384], index: 7, kind: output, shape index: {}]  }
   0x1   :  { %3730 = sst [smem:[#allocation3_spill]] %s3722_s0  ;;  %s2690_s26 = smov 0  }
   0x2   :  { %s2692_s27 = smov 0   ;;  %s2694_s28 = smov 0  }
   0x3 LB: > { %s26_s29 = sadd.s32 1, %s2619_s26  ;;  %s29_s30 = sadd.s32 1, %s2623_s27  ;;  %s2627_s28 = sphi %s2694_s28, %s17_s28   ;;  %s2623_s27 = sphi %s2692_s27, %s3738_s27   ;;  %s2619_s26 = sphi %s2690_s26, %s3737_s26   ;;  %s2615_s25 = sphi %s2688_s25, %s3736_s25   ;;  %s2611_s24 = sphi %s2686_s24, %s3735_s24  }
   0x4   : > { %p27_p0 = scmp.ge.s32.totalorder %s26_s29, 10  ;;  %p2216_p1 = scmp.ge.s32.totalorder %s2627_s28, 1 }
   0x5   : > { %p345_p2 = scmp.lt.s32.totalorder %s2627_s28, 21 }
   0x6   : > { %s3740_s29 = smov (%p27_p0, %s26_s29), 0  ;;  %s3742_s30 = smov (!%p27_p0, %s29_s30), %s2623_s27 }
   0x7   : > { %p346_p3 = pnand %p2216_p1, %p345_p2  ;;  %p31_p4 = scmp.ge.s32.totalorder %s3742_s30, 2 }
   0x8   : > { %s2217_s8 = sadd.s32 (!%p346_p3), 4294967295, %s2611_s24  ;;  %p422_p5 = scmp.lt.s32.totalorder (!%p346_p3), %s2615_s25, 1 }
   0x9   : > { %s3744_s30 = smov (%p31_p4, %s3742_s30), 0  ;;  %349 = sbr.rel (%p346_p3) target bundleno = 956 (0x3bc), region = 48 }
   0xa   : > { %3731 = sst [smem:[#allocation2_spill]] %s3744_s30  ;;  %p418_p6 = scmp.gt.s32.totalorder (!%p346_p3), %s2217_s8, 0 }
   0xb   : > { %p2218_p7 = scmp.lt.s32.totalorder (!%p346_p3), %s2217_s8, 9  ;;  %p436_p8 = scmp.gt.s32.totalorder (!%p346_p3), %s2611_s24, 0 }
   0xc   : > { %p2224_p10 = scmp.lt.s32.totalorder (!%p346_p3), %s2611_s24, 9  ;;  %s453_s11 = sadd.s32 (!%p346_p3), 1, %s2611_s24 }
   0xd   : > { %p482_p11 = scmp.ge.s32.totalorder (!%p346_p3), %s2611_s24, 1  ;;  %p454_p13 = scmp.gt.s32.totalorder (!%p346_p3), %s453_s11, 0 }
   0xe   : > { %p483_p0 = scmp.le.s32.totalorder (!%p346_p3), %s2611_s24, 8  ;;  %p2230_p1 = scmp.lt.s32.totalorder (!%p346_p3), %s453_s11, 9 }
   0xf   : > { %s3732_s0 = sld [smem:[#allocation3_spill]] (!%p346_p3) }
  0x10   : > { %s3746_s25 = smov (!%p422_p5, %s2615_s25), 1  ;;  %s3748_s8 = smov (!%p418_p6, %s2217_s8), 0 }
  0x11   : > { %s3750_s8 = smov (!%p2218_p7, %s3748_s8), 9  ;;  %s2442_s10 = smul.u32 120, %s3746_s25 }
  0x12   : > { %s437_s9 = scalar_select %p436_p8, %s2611_s24, 0 }
  0x13   : > { %p424_p9 = scmp.lt.s32.totalorder %s3750_s8, 9  ;;  %p2732_p2 = pnand %p483_p0, %p482_p11 }
  0x14   : > { %s3754_s9 = smov (!%p2224_p10, %s437_s9), 9  ;;  %s3758_s11 = smov (!%p454_p13, %s453_s11), 0 }
  0x15   : > { %s3752_s8 = smov (!%p424_p9, %s3750_s8), 9  ;;  %p442_p12 = scmp.lt.s32.totalorder %s3754_s9, 9  ;;  %vm717_vm0 = vcmask (!%p2732_p2), 736256   ;;  %vm556_vm1 = vcmask (!%p2732_p2), 1039360   ;;  %vm579_vm2 = vcmask (!%p2732_p2), 1031168   ;;  %vm602_vm3 = vcmask (!%p2732_p2), 900096  }
  0x16   : > { %s2441_s12 = smul.u32 12, %s3752_s8  ;;  %s3760_s11 = smov (!%p2230_p1, %s3758_s11), 9  ;;  %vm625_vm4 = vcmask (!%p2732_p2), 891904   ;;  %vm648_vm5 = vcmask (!%p2732_p2), 883712   ;;  %vm930_vm6 = vcmask (!%p2732_p2), 302080   ;;  %vm671_vm7 = vcmask (!%p2732_p2), 752640  }
  0x17   : > { %s3756_s9 = smov (!%p442_p12, %s3754_s9), 9  ;;  %p460_p3 = scmp.lt.s32.totalorder %s3760_s11, 9  ;;  %vm947_vm8 = vcmask (!%p2732_p2), 293888   ;;  %vm964_vm9 = vcmask (!%p2732_p2), 285696   ;;  %vm981_vm10 = vcmask (!%p2732_p2), 154624   ;;  %vm694_vm11 = vcmask (!%p2732_p2), 744448  }
  0x18   : > { %s428_s13 = sadd.s32 %s2442_s10, %s2441_s12  ;;  %s2443_s19 = smul.u32 12, %s3756_s9  ;;  %vm998_vm12 = vcmask (!%p2732_p2), 146432   ;;  %vm1015_vm13 = vcmask (!%p2732_p2), 138240   ;;  %vm1032_vm14 = vcmask (!%p2732_p2), 7168   ;;  %vm1381_vm15 = vcmask (!%p2732_p2), 785408  }
  0x19   : > { %s2223_s14 = sshll.u32 %s428_s13, 2  ;;  %s3762_s11 = smov (!%p460_p3, %s3760_s11), 9 }
  0x1a   : > { %s2730_s17 = scalar_lea.vmem %s3732_s0, %s2223_s14  ;;  %s446_s20 = sadd.s32 %s2443_s19, %s2442_s10 }
  0x1b   : > { %s2229_s21 = sshll.u32 %s446_s20, 2  ;;  %s3764_s24 = smov (!%p2224_p10, %s2611_s24), 9  ;;  %v2757_v0 = vld [vmem:[%s2730_s17 + $0x4] ss:$12 sps:$4 sm:$0xff] (!%p2732_p2)   ;;  %v2760_v1 = vld [vmem:[%s2730_s17] ss:$12 sps:$4 sm:$0xff] (!%p2732_p2)  }
  0x1c   : > { %s2739_s25 = scalar_lea.vmem %s3723_s1, %s2229_s21  ;;  %s2444_s8 = smul.u32 12, %s3762_s11  ;;  %v2764_v2 = vld [vmem:[%s2730_s17 + $0x8] ss:$12 sps:$4 sm:$0xff] (!%p2732_p2)   ;;  %1388 = vmatprep.subr.bf16.mxu1 (!%p2732_p2), %v2757_v0  ;;  %v2773_v4 = vld [vmem:[%s2730_s17 + $0x18] ss:$12 sps:$4 sm:$0xff] (!%p2732_p2)  }
  0x1d   : > { %s2445_s12 = smul.u32 12, %s3764_s24  ;;  %s2629_s0 = smov (!%p2732_p2), 90   ;;  %v2769_v3 = vld [vmem:[%s2730_s17 + $0x1c] ss:$12 sps:$4 sm:$0xff] (!%p2732_p2)   ;;  %1389 = vmatpush1.bf16.msra.mxu1 (!%p2732_p2), %v2760_v1  ;;  %v2778_v5 = vld [vmem:[%s2730_s17 + $0x20] ss:$12 sps:$4 sm:$0xff] (!%p2732_p2)  }
  0x1e   : > { %s464_s13 = sadd.s32 %s2444_s8, %s2442_s10  ;;  %487 = sbr.rel (%p2732_p2) target bundleno = 949 (0x3b5), region = 52  ;;  %707 = vrot.lane.b32.xlu0 (!%p2732_p2), %v2757_v0, %s2629_s0  ;;  %705 = vrot.lane.b32.xlu1 (!%p2732_p2), %v2760_v1, %s2629_s0  ;;  %v2785_v6 = vld [vmem:[%s2739_s25 + $0x4] ss:$12 sps:$4 sm:$0xff] (!%p2732_p2)   ;;  %v2792_v7 = vld [vmem:[%s2739_s25 + $0x8] ss:$12 sps:$4 sm:$0xff] (!%p2732_p2)  }
  0x1f   : > { %s2235_s14 = sshll.u32 %s464_s13, 2  ;;  %s478_s15 = sadd.s32 %s2445_s12, %s2442_s10  ;;  %1390 = vmatprep.subr.bf16.mxu1 (!%p2732_p2), %v2769_v3  ;;  %v2799_v8 = vld [vmem:[%s2739_s25] ss:$12 sps:$4 sm:$0xff] (!%p2732_p2)   ;;  %v2810_v9 = vld [vmem:[%s2739_s25 + $0x1c] ss:$12 sps:$4 sm:$0xff] (!%p2732_p2)  }
  0x20   : > { %s2747_s9 = scalar_lea.vmem %s3724_s2, %s2235_s14  ;;  %s2236_s19 = sshll.u32 %s478_s15, 2  ;;  %v2815_v10 = vld [vmem:[%s2739_s25 + $0x20] ss:$12 sps:$4 sm:$0xff] (!%p2732_p2)   ;;  %v2820_v11 = vld [vmem:[%s2739_s25 + $0x18] ss:$12 sps:$4 sm:$0xff] (!%p2732_p2)  }
  0x21   : > { %s2752_s22 = scalar_lea.vmem %s3729_s7, %s2236_s19  ;;  %1391 = vmatpush1.bf16.msra.mxu1 (!%p2732_p2), %v2773_v4  ;;  %s2630_s24 = smov (!%p2732_p2), 127   ;;  %v2829_v12 = vld [vmem:[%s2747_s9] ss:$12 sps:$4 sm:$0xff] (!%p2732_p2)   ;;  %v2833_v13 = vld [vmem:[%s2747_s9 + $0x4] ss:$12 sps:$4 sm:$0xff] (!%p2732_p2)  }
  0x22   : > { %709 = vrot.lane.b32.xlu0 (!%p2732_p2), %v2764_v2, %s2629_s0  ;;  %713 = vrot.lane.b32.xlu1 (!%p2732_p2), %v2769_v3, %s2629_s0  ;;  %s2631_s30 = smov (!%p2732_p2), 126   ;;  %s2632_s10 = smov (!%p2732_p2), 37   ;;  %v2837_v14 = vld [vmem:[%s2747_s9 + $0x8] ss:$12 sps:$4 sm:$0xff] (!%p2732_p2)   ;;  %v2847_v15 = vld [vmem:[%s2747_s9 + $0x18] ss:$12 sps:$4 sm:$0xff] (!%p2732_p2)  }
  0x23   : > { %v2851_v16 = vld [vmem:[%s2747_s9 + $0x1c] ss:$12 sps:$4 sm:$0xff] (!%p2732_p2)   ;;  %v2855_v17 = vld [vmem:[%s2747_s9 + $0x20] ss:$12 sps:$4 sm:$0xff] (!%p2732_p2)   ;;  %s2633_s11 = smov (!%p2732_p2), 110   ;;  %s2634_s21 = smov (!%p2732_p2), 36  }
  0x24   : > { %s2635_s23 = smov (!%p2732_p2), 109   ;;  %s2636_s8 = smov (!%p2732_p2), 35  }
  0x25   : > { %s2637_s12 = smov 108   ;;  %s2638_s13 = smov 19  }
  0x26   : > { %715 = vrot.lane.b32.xlu0 %v2778_v5, %s2629_s0  ;;  %711 = vrot.lane.b32.xlu1 %v2773_v4, %s2629_s0  ;;  %s2639_s14 = smov 92   ;;  %s2640_s15 = smov 18  }
  0x27   : > { %s2641_s16 = smov 91   ;;  %s2642_s19 = smov 17  }
  0x2a   : > { %546 = vrot.lane.b32.xlu0 %v2757_v0, %s2630_s24  ;;  %548 = vrot.lane.b32.xlu1 %v2764_v2, %s2630_s24 }
  0x2e   : > { %544 = vrot.lane.b32.xlu0 %v2760_v1, %s2630_s24  ;;  %762 = vrot.lane.b32.xlu1 %v2785_v6, %s2630_s24 }
  0x32   : > { %764 = vrot.lane.b32.xlu0 %v2792_v7, %s2630_s24  ;;  %760 = vrot.lane.b32.xlu1 %v2799_v8, %s2630_s24 }
  0x36   : > { %552 = vrot.lane.b32.xlu0 %v2769_v3, %s2630_s24  ;;  %554 = vrot.lane.b32.xlu1 %v2778_v5, %s2630_s24 }
  0x3a   : > { %550 = vrot.lane.b32.xlu0 %v2773_v4, %s2630_s24  ;;  %768 = vrot.lane.b32.xlu1 %v2810_v9, %s2630_s24 }
  0x3e   : > { %770 = vrot.lane.b32.xlu0 %v2815_v10, %s2630_s24  ;;  %766 = vrot.lane.b32.xlu1 %v2820_v11, %s2630_s24 }
  0x42   : > { %569 = vrot.lane.b32.xlu0 %v2757_v0, %s2631_s30  ;;  %571 = vrot.lane.b32.xlu1 %v2764_v2, %s2631_s30 }
  0x46   : > { %567 = vrot.lane.b32.xlu0 %v2760_v1, %s2631_s30  ;;  %918 = vrot.lane.b32.xlu1 %v2829_v12, %s2632_s10 }
  0x4a   : > { %920 = vrot.lane.b32.xlu0 %v2833_v13, %s2632_s10  ;;  %922 = vrot.lane.b32.xlu1 %v2837_v14, %s2632_s10 }
  0x4e   : > { %575 = vrot.lane.b32.xlu0 %v2769_v3, %s2631_s30  ;;  %577 = vrot.lane.b32.xlu1 %v2778_v5, %s2631_s30 }
  0x52   : > { %784 = vrot.lane.b32.xlu0 %v2785_v6, %s2631_s30  ;;  %786 = vrot.lane.b32.xlu1 %v2792_v7, %s2631_s30 }
  0x56   : > { %573 = vrot.lane.b32.xlu0 %v2773_v4, %s2631_s30  ;;  %782 = vrot.lane.b32.xlu1 %v2799_v8, %s2631_s30 }
  0x5a   : > { %924 = vrot.lane.b32.xlu0 %v2847_v15, %s2632_s10  ;;  %926 = vrot.lane.b32.xlu1 %v2851_v16, %s2632_s10 }
  0x5e   : > { %928 = vrot.lane.b32.xlu0 %v2855_v17, %s2632_s10  ;;  %592 = vrot.lane.b32.xlu1 %v2757_v0, %s2633_s11 }
  0x62   : > { %594 = vrot.lane.b32.xlu0 %v2764_v2, %s2633_s11  ;;  %790 = vrot.lane.b32.xlu1 %v2810_v9, %s2631_s30 }
  0x66   : > { %792 = vrot.lane.b32.xlu0 %v2815_v10, %s2631_s30  ;;  %590 = vrot.lane.b32.xlu1 %v2760_v1, %s2633_s11 }
  0x6a   : > { %788 = vrot.lane.b32.xlu0 %v2820_v11, %s2631_s30  ;;  %935 = vrot.lane.b32.xlu1 %v2829_v12, %s2634_s21 }
  0x6e   : > { %937 = vrot.lane.b32.xlu0 %v2833_v13, %s2634_s21  ;;  %939 = vrot.lane.b32.xlu1 %v2837_v14, %s2634_s21 }
  0x72   : > { %598 = vrot.lane.b32.xlu0 %v2769_v3, %s2633_s11  ;;  %600 = vrot.lane.b32.xlu1 %v2778_v5, %s2633_s11 }
  0x76   : > { %806 = vrot.lane.b32.xlu0 %v2785_v6, %s2633_s11  ;;  %808 = vrot.lane.b32.xlu1 %v2792_v7, %s2633_s11 }
  0x7a   : > { %596 = vrot.lane.b32.xlu0 %v2773_v4, %s2633_s11  ;;  %804 = vrot.lane.b32.xlu1 %v2799_v8, %s2633_s11 }
  0x7e   : > { %941 = vrot.lane.b32.xlu0 %v2847_v15, %s2634_s21  ;;  %943 = vrot.lane.b32.xlu1 %v2851_v16, %s2634_s21 }
  0x82   : > { %945 = vrot.lane.b32.xlu0 %v2855_v17, %s2634_s21  ;;  %615 = vrot.lane.b32.xlu1 %v2757_v0, %s2635_s23 }
  0x86   : > { %617 = vrot.lane.b32.xlu0 %v2764_v2, %s2635_s23  ;;  %812 = vrot.lane.b32.xlu1 %v2810_v9, %s2633_s11 }
  0x8a   : > { %814 = vrot.lane.b32.xlu0 %v2815_v10, %s2633_s11  ;;  %613 = vrot.lane.b32.xlu1 %v2760_v1, %s2635_s23 }
  0x8e   : > { %810 = vrot.lane.b32.xlu0 %v2820_v11, %s2633_s11  ;;  %952 = vrot.lane.b32.xlu1 %v2829_v12, %s2636_s8  ;;  %s2643_s11 = smov 1  }
  0x90   : > { %v708_v18 = vpop.permute.xlu0 %707  ;;  %v706_v19 = vpop.permute.xlu1 %705 }
  0x91   : > { %v718_v23 = vsel %vm717_vm0, %v706_v19, %v708_v18 }
  0x92   : > { %954 = vrot.lane.b32.xlu0 %v2833_v13, %s2636_s8  ;;  %956 = vrot.lane.b32.xlu1 %v2837_v14, %s2636_s8 }
  0x94   : > { %v2892_v20 = vpop.permute.xlu0 %709  ;;  %v714_v21 = vpop.permute.xlu1 %713 }
  0x95   : > { %v719_v22 = vsel %vm717_vm0, %v708_v18, %v2892_v20 }
  0x96   : > { %1441 = vmatprep.subr.bf16.mxu0 %v719_v22  ;;  %621 = vrot.lane.b32.xlu0 %v2769_v3, %s2635_s23 }
  0x97   : > { %623 = vrot.lane.b32.xlu1 %v2778_v5, %s2635_s23  ;;  %1442 = vmatpush1.bf16.msra.mxu0 %v718_v23 }
  0x98   : > { %v2899_v24 = vpop.permute.xlu0 %715  ;;  %v712_v25 = vpop.permute.xlu1 %711 }
  0x99   : > { %v721_v26 = vsel %vm717_vm0, %v714_v21, %v2899_v24  ;;  %v720_v27 = vsel %vm717_vm0, %v712_v25, %v714_v21  ;;  %vm1979_vm0 = vcmask 711680  }
  0x9a   : > { %828 = vrot.lane.b32.xlu0 %v2785_v6, %s2635_s23  ;;  %1443 = vmatprep.subr.bf16.mxu0 %v721_v26 }
  0x9b   : > { %830 = vrot.lane.b32.xlu1 %v2792_v7, %s2635_s23  ;;  %1444 = vmatpush1.bf16.msra.mxu0 %v720_v27 }
  0x9c   : > { %v547_v28 = vpop.permute.xlu0 %546  ;;  %1445 = vmatprep.subr.bf16.mxu0 %v2785_v6  ;;  %v2907_v29 = vpop.permute.xlu1 %548 }
  0x9d   : > { %v558_v30 = vsel %vm556_vm1, %v547_v28, %v2907_v29 }
  0x9e   : > { %619 = vrot.lane.b32.xlu0 %v2773_v4, %s2635_s23  ;;  %1392 = vmatprep.subr.bf16.mxu1 %v558_v30 }
  0x9f   : > { %826 = vrot.lane.b32.xlu1 %v2799_v8, %s2635_s23  ;;  %1446 = vmatpush1.bf16.msra.mxu0 %v2799_v8 }
  0xa0   : > { %v545_v31 = vpop.permute.xlu0 %544  ;;  %v763_v32 = vpop.permute.xlu1 %762  ;;  %1447 = vmatprep.subr.bf16.mxu0 %v2810_v9 }
  0xa1   : > { %v557_v33 = vsel %vm556_vm1, %v545_v31, %v547_v28 }
  0xa2   : > { %958 = vrot.lane.b32.xlu0 %v2847_v15, %s2636_s8  ;;  %1393 = vmatpush1.bf16.msra.mxu1 %v557_v33 }
  0xa3   : > { %960 = vrot.lane.b32.xlu1 %v2851_v16, %s2636_s8  ;;  %1448 = vmatpush1.bf16.msra.mxu0 %v2820_v11 }
  0xa4   : > { %v2923_v34 = vpop.permute.xlu0 %764  ;;  %v761_v35 = vpop.permute.xlu1 %760 }
  0xa5   : > { %v2927_v36 = vsel %vm556_vm1, %v763_v32, %v2923_v34  ;;  %v2933_v37 = vsel %vm556_vm1, %v761_v35, %v763_v32 }
  0xa6   : > { %962 = vrot.lane.b32.xlu0 %v2855_v17, %s2636_s8  ;;  %1449 = vmatprep.subr.bf16.mxu0 %v2927_v36 }
  0xa7   : > { %638 = vrot.lane.b32.xlu1 %v2757_v0, %s2637_s12  ;;  %1450 = vmatpush1.bf16.msra.mxu0 %v2933_v37 }
  0xa8   : > { %v553_v38 = vpop.permute.xlu0 %552  ;;  %v2938_v39 = vpop.permute.xlu1 %554 }
  0xa9   : > { %v560_v40 = vsel %vm556_vm1, %v553_v38, %v2938_v39 }
  0xaa   : > { %640 = vrot.lane.b32.xlu0 %v2764_v2, %s2637_s12  ;;  %1394 = vmatprep.subr.bf16.mxu1 %v560_v40 }
  0xab   : > { %834 = vrot.lane.b32.xlu1 %v2810_v9, %s2635_s23 }
  0xac   : > { %v551_v41 = vpop.permute.xlu0 %550  ;;  %v769_v42 = vpop.permute.xlu1 %768 }
  0xad   : > { %v559_v43 = vsel %vm556_vm1, %v551_v41, %v553_v38 }
  0xae   : > { %836 = vrot.lane.b32.xlu0 %v2815_v10, %s2635_s23  ;;  %1395 = vmatpush1.bf16.msra.mxu1 %v559_v43 }
  0xaf   : > { %636 = vrot.lane.b32.xlu1 %v2760_v1, %s2637_s12 }
  0xb0   : > { %v2951_v44 = vpop.permute.xlu0 %770  ;;  %v767_v45 = vpop.permute.xlu1 %766 }
  0xb1   : > { %v2955_v46 = vsel %vm556_vm1, %v769_v42, %v2951_v44  ;;  %v2961_v47 = vsel %vm556_vm1, %v767_v45, %v769_v42 }
  0xb2   : > { %832 = vrot.lane.b32.xlu0 %v2820_v11, %s2635_s23  ;;  %1451 = vmatprep.subr.bf16.mxu0 %v2955_v46 }
  0xb3   : > { %969 = vrot.lane.b32.xlu1 %v2829_v12, %s2638_s13  ;;  %1452 = vmatpush1.bf16.msra.mxu0 %v2961_v47 }
  0xb4   : > { %v570_v48 = vpop.permute.xlu0 %569  ;;  %v2966_v49 = vpop.permute.xlu1 %571 }
  0xb5   : > { %v581_v50 = vsel %vm579_vm2, %v570_v48, %v2966_v49 }
  0xb6   : > { %971 = vrot.lane.b32.xlu0 %v2833_v13, %s2638_s13  ;;  %1396 = vmatprep.subr.bf16.mxu1 %v581_v50 }
  0xb7   : > { %973 = vrot.lane.b32.xlu1 %v2837_v14, %s2638_s13 }
  0xb8   : > { %v568_v51 = vpop.permute.xlu0 %567  ;;  %v2974_v52 = vpop.permute.xlu1 %918 }
  0xb9   : > { %v580_v53 = vsel %vm579_vm2, %v568_v51, %v570_v48 }
  0xba   : > { %644 = vrot.lane.b32.xlu0 %v2769_v3, %s2637_s12  ;;  %1397 = vmatpush1.bf16.msra.mxu1 %v580_v53 }
  0xbb   : > { %646 = vrot.lane.b32.xlu1 %v2778_v5, %s2637_s12 }
  0xbc   : > { %v2981_v54 = vpop.permute.xlu0 %920  ;;  %v2983_v55 = vpop.permute.xlu1 %922 }
  0xbe   : > { %850 = vrot.lane.b32.xlu0 %v2785_v6, %s2637_s12 }
  0xbf   : > { %852 = vrot.lane.b32.xlu1 %v2792_v7, %s2637_s12 }
  0xc0   : > { %v576_v56 = vpop.permute.xlu0 %575  ;;  %v2989_v57 = vpop.permute.xlu1 %577 }
  0xc1   : > { %v583_v58 = vsel %vm579_vm2, %v576_v56, %v2989_v57 }
  0xc2   : > { %642 = vrot.lane.b32.xlu0 %v2773_v4, %s2637_s12  ;;  %1398 = vmatprep.subr.bf16.mxu1 %v583_v58 }
  0xc3   : > { %848 = vrot.lane.b32.xlu1 %v2799_v8, %s2637_s12 }
  0xc4   : > { %v785_v59 = vpop.permute.xlu0 %784  ;;  %v2997_v60 = vpop.permute.xlu1 %786 }
  0xc5   : > { %v795_v61 = vsel %vm579_vm2, %v785_v59, %v2997_v60 }
  0xc6   : > { %975 = vrot.lane.b32.xlu0 %v2847_v15, %s2638_s13  ;;  %1453 = vmatprep.subr.bf16.mxu0 %v795_v61 }
  0xc7   : > { %977 = vrot.lane.b32.xlu1 %v2851_v16, %s2638_s13 }
  0xc8   : > { %v574_v62 = vpop.permute.xlu0 %573  ;;  %v783_v63 = vpop.permute.xlu1 %782 }
  0xc9   : > { %v582_v18 = vsel %vm579_vm2, %v574_v62, %v576_v56  ;;  %v794_v19 = vsel %vm579_vm2, %v783_v63, %v785_v59 }
  0xca   : > { %979 = vrot.lane.b32.xlu0 %v2855_v17, %s2638_s13  ;;  %1399 = vmatpush1.bf16.msra.mxu1 %v582_v18 }
  0xcb   : > { %661 = vrot.lane.b32.xlu1 %v2757_v0, %s2639_s14  ;;  %1454 = vmatpush1.bf16.msra.mxu0 %v794_v19 }
  0xcc   : > { %v3011_v21 = vpop.permute.xlu0 %924  ;;  %v3013_v22 = vpop.permute.xlu1 %926 }
  0xce   : > { %663 = vrot.lane.b32.xlu0 %v2764_v2, %s2639_s14 }
  0xcf   : > { %856 = vrot.lane.b32.xlu1 %v2810_v9, %s2637_s12 }
  0xd0   : > { %v3019_v23 = vpop.permute.xlu0 %928  ;;  %v593_v25 = vpop.permute.xlu1 %592 }
  0xd2   : > { %858 = vrot.lane.b32.xlu0 %v2815_v10, %s2637_s12 }
  0xd3   : > { %659 = vrot.lane.b32.xlu1 %v2760_v1, %s2639_s14 }
  0xd4   : > { %v3025_v26 = vpop.permute.xlu0 %594  ;;  %v791_v27 = vpop.permute.xlu1 %790 }
  0xd5   : > { %v604_v28 = vsel %vm602_vm3, %v593_v25, %v3025_v26 }
  0xd6   : > { %854 = vrot.lane.b32.xlu0 %v2820_v11, %s2637_s12  ;;  %1400 = vmatprep.subr.bf16.mxu1 %v604_v28 }
  0xd7   : > { %986 = vrot.lane.b32.xlu1 %v2829_v12, %s2640_s15 }
  0xd8   : > { %v3033_v30 = vpop.permute.xlu0 %792  ;;  %v591_v31 = vpop.permute.xlu1 %590 }
  0xd9   : > { %v797_v32 = vsel %vm579_vm2, %v791_v27, %v3033_v30  ;;  %v603_v33 = vsel %vm602_vm3, %v591_v31, %v593_v25 }
  0xda   : > { %988 = vrot.lane.b32.xlu0 %v2833_v13, %s2640_s15  ;;  %1455 = vmatprep.subr.bf16.mxu0 %v797_v32 }
  0xdb   : > { %990 = vrot.lane.b32.xlu1 %v2837_v14, %s2640_s15  ;;  %1401 = vmatpush1.bf16.msra.mxu1 %v603_v33  ;;  %v3113_v33 = vld [vmem:[%s3725_s3 + $0x4] ss:$28 sps:$4 sm:$0xff]  }
  0xdc   : > { %v789_v35 = vpop.permute.xlu0 %788  ;;  %v3042_v38 = vpop.permute.xlu1 %935  ;;  %1420 = vmatprep.mubr.bf16.mxu1 %v3113_v33 }
  0xdd   : > { %v796_v40 = vsel %vm579_vm2, %v789_v35, %v791_v27 }
  0xde   : > { %667 = vrot.lane.b32.xlu0 %v2769_v3, %s2639_s14  ;;  %1456 = vmatpush1.bf16.msra.mxu0 %v796_v40 }
  0xdf   : > { %669 = vrot.lane.b32.xlu1 %v2778_v5, %s2639_s14 }
  0xe0   : > { %v3049_v41 = vpop.permute.xlu0 %937  ;;  %v3051_v42 = vpop.permute.xlu1 %939 }
  0xe2   : > { %872 = vrot.lane.b32.xlu0 %v2785_v6, %s2639_s14 }
  0xe3   : > { %874 = vrot.lane.b32.xlu1 %v2792_v7, %s2639_s14 }
  0xe4   : > { %v599_v43 = vpop.permute.xlu0 %598  ;;  %v3057_v45 = vpop.permute.xlu1 %600 }
  0xe5   : > { %v606_v48 = vsel %vm602_vm3, %v599_v43, %v3057_v45 }
  0xe6   : > { %665 = vrot.lane.b32.xlu0 %v2773_v4, %s2639_s14  ;;  %1402 = vmatprep.subr.bf16.mxu1 %v606_v48  ;;  %v3128_v48 = vld [vmem:[%s3725_s3 + $0xc] ss:$28 sps:$4 sm:$0xff]  }
  0xe7   : > { %870 = vrot.lane.b32.xlu1 %v2799_v8, %s2639_s14  ;;  %1473 = vmatprep.mubr.bf16.mxu0 %v3128_v48 }
  0xe8   : > { %v807_v50 = vpop.permute.xlu0 %806  ;;  %v3065_v51 = vpop.permute.xlu1 %808 }
  0xe9   : > { %v817_v53 = vsel %vm602_vm3, %v807_v50, %v3065_v51 }
  0xea   : > { %992 = vrot.lane.b32.xlu0 %v2847_v15, %s2640_s15  ;;  %1457 = vmatprep.subr.bf16.mxu0 %v817_v53 }
  0xeb   : > { %994 = vrot.lane.b32.xlu1 %v2851_v16, %s2640_s15 }
  0xec   : > { %v597_v56 = vpop.permute.xlu0 %596  ;;  %v805_v58 = vpop.permute.xlu1 %804 }
  0xed   : > { %v605_v59 = vsel %vm602_vm3, %v597_v56, %v599_v43  ;;  %v816_v61 = vsel %vm602_vm3, %v805_v58, %v807_v50 }
  0xee   : > { %996 = vrot.lane.b32.xlu0 %v2855_v17, %s2640_s15  ;;  %1403 = vmatpush1.bf16.msra.mxu1 %v605_v59 }
  0xef   : > { %684 = vrot.lane.b32.xlu1 %v2757_v0, %s2641_s16  ;;  %1458 = vmatpush1.bf16.msra.mxu0 %v816_v61 }
  0xf0   : > { %v3079_v62 = vpop.permute.xlu0 %941  ;;  %v3081_v63 = vpop.permute.xlu1 %943 }
  0xf2   : > { %686 = vrot.lane.b32.xlu0 %v2764_v2, %s2641_s16 }
  0xf3   : > { %878 = vrot.lane.b32.xlu1 %v2810_v9, %s2639_s14 }
  0xf4   : > { %v3087_v18 = vpop.permute.xlu0 %945  ;;  %v616_v19 = vpop.permute.xlu1 %615 }
  0xf6   : > { %880 = vrot.lane.b32.xlu0 %v2815_v10, %s2639_s14 }
  0xf7   : > { %682 = vrot.lane.b32.xlu1 %v2760_v1, %s2641_s16 }
  0xf8   : > { %v3093_v0 = vpop.permute.xlu0 %617  ;;  %v813_v25 = vpop.permute.xlu1 %812 }
  0xf9   : > { %v627_v27 = vsel %vm625_vm4, %v616_v19, %v3093_v0 }
  0xfa   : > { %876 = vrot.lane.b32.xlu0 %v2820_v11, %s2639_s14  ;;  %1404 = vmatprep.subr.bf16.mxu1 %v627_v27 }
  0xfb   : > { %1003 = vrot.lane.b32.xlu1 %v2829_v12, %s2642_s19 }
  0xfc   : > { %v3101_v2 = vpop.permute.xlu0 %814  ;;  %v614_v28 = vpop.permute.xlu1 %613 }
  0xfd   : > { %v819_v1 = vsel %vm602_vm3, %v813_v25, %v3101_v2  ;;  %v626_v31 = vsel %vm625_vm4, %v614_v28, %v616_v19 }
  0xfe   : > { %1005 = vrot.lane.b32.xlu0 %v2833_v13, %s2642_s19  ;;  %1459 = vmatprep.subr.bf16.mxu0 %v819_v1 }
  0xff   : > { %1007 = vrot.lane.b32.xlu1 %v2837_v14, %s2642_s19  ;;  %1405 = vmatpush1.bf16.msra.mxu1 %v626_v31 }
 0x100   : > { %v811_v32 = vpop.permute.xlu0 %810  ;;  %v3115_v35 = vpop.permute.xlu1 %952 }
 0x101   : > { %v818_v40 = vsel %vm602_vm3, %v811_v32, %v813_v25 }
 0x102   : > { %690 = vrot.lane.b32.xlu0 %v2769_v3, %s2641_s16  ;;  %1460 = vmatpush1.bf16.msra.mxu0 %v818_v40 }
 0x103   : > { %692 = vrot.lane.b32.xlu1 %v2778_v5, %s2641_s16 }
 0x104   : > { %v3123_v43 = vpop.permute.xlu0 %954  ;;  %v3130_v50 = vpop.permute.xlu1 %956 }
 0x106   : > { %1055 = vrot.lane.b32.xlu0 %v2785_v6, %s2641_s16 }
 0x107   : > { %1057 = vrot.lane.b32.xlu1 %v2792_v7, %s2641_s16 }
 0x108   : > { %v622_v3 = vpop.permute.xlu0 %621 }
 0x109   : > { %v3137_v5 = vpop.permute.xlu1 %623 }
 0x10a   : > { %688 = vrot.lane.b32.xlu0 %v2773_v4, %s2641_s16  ;;  %v629_v53 = vsel %vm625_vm4, %v622_v3, %v3137_v5 }
 0x10b   : > { %1009 = vrot.lane.b32.xlu1 %v2847_v15, %s2642_s19  ;;  %1406 = vmatprep.subr.bf16.mxu1 %v629_v53 }
 0x10c   : > { %v829_v56 = vpop.permute.xlu0 %828 }
 0x10d   : > { %v3145_v6 = vpop.permute.xlu1 %830 }
 0x10e   : > { %1011 = vrot.lane.b32.xlu0 %v2851_v16, %s2642_s19  ;;  %v839_v7 = vsel %vm625_vm4, %v829_v56, %v3145_v6 }
 0x10f   : > { %1013 = vrot.lane.b32.xlu1 %v2855_v17, %s2642_s19  ;;  %1461 = vmatprep.subr.bf16.mxu0 %v839_v7 }
 0x110   : > { %v620_v4 = vpop.permute.xlu0 %619 }
 0x111   : > { %v827_v58 = vpop.permute.xlu1 %826  ;;  %v628_v59 = vsel %vm625_vm4, %v620_v4, %v622_v3 }
 0x112   : > { %1053 = vrot.lane.b32.xlu0 %v2799_v8, %s2641_s16  ;;  %1407 = vmatpush1.bf16.msra.mxu1 %v628_v59  ;;  %v838_v61 = vsel %vm625_vm4, %v827_v58, %v829_v56 }
 0x113   : > { %1061 = vrot.lane.b32.xlu1 %v2810_v9, %s2641_s16  ;;  %1462 = vmatpush1.bf16.msra.mxu0 %v838_v61 }
 0x114   : > { %v3159_v19 = vpop.permute.xlu0 %958 }
 0x115   : > { %v3161_v25 = vpop.permute.xlu1 %960 }
 0x116   : > { %1063 = vrot.lane.b32.xlu0 %v2815_v10, %s2641_s16 }
 0x117   : > { %1020 = vrot.lane.b32.xlu1 %v2829_v12, %s2643_s11 }
 0x118   : > { %v3166_v27 = vpop.permute.xlu0 %962 }
 0x119   : > { %v639_v8 = vpop.permute.xlu1 %638 }
 0x11a   : > { %1022 = vrot.lane.b32.xlu0 %v2833_v13, %s2643_s11 }
 0x11b   : > { %1024 = vrot.lane.b32.xlu1 %v2837_v14, %s2643_s11 }
 0x11c   : > { %v3170_v9 = vpop.permute.xlu0 %640 }
 0x11d   : > { %v835_v28 = vpop.permute.xlu1 %834  ;;  %v650_v1 = vsel %vm648_vm5, %v639_v8, %v3170_v9 }
 0x11e   : > { %1059 = vrot.lane.b32.xlu0 %v2820_v11, %s2641_s16  ;;  %1408 = vmatprep.subr.bf16.mxu1 %v650_v1 }
 0x11f   : > { %1067 = vrot.lane.b32.xlu1 %v2927_v36, %s2641_s16 }
 0x120   : > { %v3178_v10 = vpop.permute.xlu0 %836 }
 0x121   : > { %v637_v31 = vpop.permute.xlu1 %636  ;;  %v841_v32 = vsel %vm625_vm4, %v835_v28, %v3178_v10 }
 0x122   : > { %1069 = vrot.lane.b32.xlu0 %v2923_v34, %s2641_s16  ;;  %v649_v40 = vsel %vm648_vm5, %v637_v31, %v639_v8  ;;  %1463 = vmatprep.subr.bf16.mxu0 %v841_v32  ;;  %v933_v31 = vsel %vm930_vm6, %v3011_v21, %v3013_v22  ;;  %v934_v32 = vsel %vm930_vm6, %v3013_v22, %v3019_v23 }
 0x123   : > { %1026 = vrot.lane.b32.xlu1 %v2847_v15, %s2643_s11  ;;  %1409 = vmatpush1.bf16.msra.mxu1 %v649_v40 }
 0x124   : > { %v833_v11 = vpop.permute.xlu0 %832 }
 0x125   : > { %v3186_v3 = vpop.permute.xlu1 %969  ;;  %v840_v36 = vsel %vm625_vm4, %v833_v11, %v835_v28 }
 0x126   : > { %1028 = vrot.lane.b32.xlu0 %v2851_v16, %s2643_s11  ;;  %1464 = vmatpush1.bf16.msra.mxu0 %v840_v36 }
 0x127   : > { %1030 = vrot.lane.b32.xlu1 %v2855_v17, %s2643_s11 }
 0x128   : > { %v3191_v53 = vpop.permute.xlu0 %971 }
 0x129   : > { %v3193_v56 = vpop.permute.xlu1 %973 }
 0x12a   : > { %1065 = vrot.lane.b32.xlu0 %v2933_v37, %s2641_s16  ;;  %v931_v37 = vsel %vm930_vm6, %v2974_v52, %v2981_v54 }
 0x12b   : > { %1073 = vrot.lane.b32.xlu1 %v2955_v46, %s2641_s16  ;;  %v932_v46 = vsel %vm930_vm6, %v2981_v54, %v2983_v55 }
 0x12c   : > { %v645_v7 = vpop.permute.xlu0 %644 }
 0x12d   : > { %v3199_v4 = vpop.permute.xlu1 %646 }
 0x12e   : > { %1075 = vrot.lane.b32.xlu0 %v2951_v44, %s2641_s16  ;;  %v652_v58 = vsel %vm648_vm5, %v645_v7, %v3199_v4 }
 0x12f   : > { %1071 = vrot.lane.b32.xlu1 %v2961_v47, %s2641_s16  ;;  %1410 = vmatprep.subr.bf16.mxu1 %v652_v58 }
 0x130   : > { %v851_v59 = vpop.permute.xlu0 %850 }
 0x131   : > { %v3207_v61 = vpop.permute.xlu1 %852 }
 0x132   : > { %1079 = vrot.lane.b32.xlu0 %v931_v37, %s2641_s16  ;;  %v861_v8 = vsel %vm648_vm5, %v851_v59, %v3207_v61 }
 0x133   : > { %1081 = vrot.lane.b32.xlu1 %v932_v46, %s2641_s16  ;;  %1465 = vmatprep.subr.bf16.mxu0 %v861_v8 }
 0x134   : > { %v643_v47 = vpop.permute.xlu0 %642 }
 0x135   : > { %v849_v28 = vpop.permute.xlu1 %848  ;;  %v651_v1 = vsel %vm648_vm5, %v643_v47, %v645_v7 }
 0x136   : > { %1077 = vrot.lane.b32.xlu0 %v2974_v52, %s2641_s16  ;;  %1411 = vmatpush1.bf16.msra.mxu1 %v651_v1  ;;  %v860_v54 = vsel %vm648_vm5, %v849_v28, %v851_v59  ;;  %v965_v1 = vsel %vm964_vm9, %v3115_v35, %v3123_v43 }
 0x137   : > { %1085 = vrot.lane.b32.xlu1 %v933_v31, %s2641_s16  ;;  %1466 = vmatpush1.bf16.msra.mxu0 %v860_v54 }
 0x138   : > { %v3227_v55 = vpop.permute.xlu0 %975 }
 0x139   : > { %v3232_v40 = vpop.permute.xlu1 %977 }
 0x13a   : > { %1087 = vrot.lane.b32.xlu0 %v934_v32, %s2641_s16  ;;  %v967_v32 = vsel %vm964_vm9, %v3159_v19, %v3161_v25 }
 0x13b   : > { %1039 = vrot.lane.b32.xlu1 %v2833_v13, %s2630_s24  ;;  %v948_v13 = vsel %vm947_vm8, %v3042_v38, %v3049_v41 }
 0x13c   : > { %v3237_v52 = vpop.permute.xlu0 %979 }
 0x13d   : > { %v662_v11 = vpop.permute.xlu1 %661 }
 0x13e   : > { %1041 = vrot.lane.b32.xlu0 %v2837_v14, %s2630_s24 }
 0x13f   : > { %1083 = vrot.lane.b32.xlu1 %v3011_v21, %s2641_s16  ;;  %v949_v21 = vsel %vm947_vm8, %v3049_v41, %v3051_v42 }
 0x140   : > { %v3243_v36 = vpop.permute.xlu0 %663 }
 0x141   : > { %v857_v22 = vpop.permute.xlu1 %856  ;;  %v673_v23 = vsel %vm671_vm7, %v662_v11, %v3243_v36 }
 0x142   : > { %1037 = vrot.lane.b32.xlu0 %v2829_v12, %s2630_s24  ;;  %1412 = vmatprep.subr.bf16.mxu1 %v673_v23 }
 0x143   : > { %1091 = vrot.lane.b32.xlu1 %v948_v13, %s2641_s16  ;;  %v982_v13 = vsel %vm981_vm10, %v3186_v3, %v3191_v53 }
 0x144   : > { %v3253_v14 = vpop.permute.xlu0 %858 }
 0x145   : > { %v660_v7 = vpop.permute.xlu1 %659  ;;  %v863_v58 = vsel %vm648_vm5, %v857_v22, %v3253_v14 }
 0x146   : > { %1093 = vrot.lane.b32.xlu0 %v949_v21, %s2641_s16  ;;  %v672_v12 = vsel %vm671_vm7, %v660_v7, %v662_v11  ;;  %1467 = vmatprep.subr.bf16.mxu0 %v863_v58  ;;  %v968_v11 = vsel %vm964_vm9, %v3161_v25, %v3166_v27  ;;  %v983_v21 = vsel %vm981_vm10, %v3191_v53, %v3193_v56 }
 0x147   : > { %1045 = vrot.lane.b32.xlu1 %v2851_v16, %s2630_s24  ;;  %1413 = vmatpush1.bf16.msra.mxu1 %v672_v12  ;;  %v950_v16 = vsel %vm947_vm8, %v3079_v62, %v3081_v63  ;;  %v984_v7 = vsel %vm981_vm10, %v3227_v55, %v3232_v40  ;;  %v985_v56 = vsel %vm981_vm10, %v3232_v40, %v3237_v52 }
 0x148   : > { %v855_v59 = vpop.permute.xlu0 %854 }
 0x149   : > { %v3264_v37 = vpop.permute.xlu1 %986  ;;  %v862_v46 = vsel %vm648_vm5, %v855_v59, %v857_v22 }
 0x14a   : > { %1047 = vrot.lane.b32.xlu0 %v2855_v17, %s2630_s24  ;;  %1468 = vmatpush1.bf16.msra.mxu0 %v862_v46  ;;  %v951_v17 = vsel %vm947_vm8, %v3081_v63, %v3087_v18  ;;  %v966_v63 = vsel %vm964_vm9, %v3123_v43, %v3130_v50 }
 0x14b   : > { %1089 = vrot.lane.b32.xlu1 %v3042_v38, %s2641_s16 }
 0x14c   : > { %v3271_v41 = vpop.permute.xlu0 %988 }
 0x14d   : > { %v3273_v42 = vpop.permute.xlu1 %990  ;;  %v999_v40 = vsel %vm998_vm12, %v3264_v37, %v3271_v41 }
 0x14e   : > { %1043 = vrot.lane.b32.xlu0 %v2847_v15, %s2630_s24 }
 0x14f   : > { %1097 = vrot.lane.b32.xlu1 %v950_v16, %s2641_s16  ;;  %v3353_v16 = vld [vmem:[%s3725_s3 + $0x8] ss:$28 sps:$4 sm:$0xff]  }
 0x150   : > { %v668_v8 = vpop.permute.xlu0 %667 }
 0x151   : > { %v3284_v47 = vpop.permute.xlu1 %669 }
 0x152   : > { %1099 = vrot.lane.b32.xlu0 %v951_v17, %s2641_s16  ;;  %v675_v38 = vsel %vm671_vm7, %v668_v8, %v3284_v47 }
 0x153   : > { %1095 = vrot.lane.b32.xlu1 %v3079_v62, %s2641_s16  ;;  %1414 = vmatprep.subr.bf16.mxu1 %v675_v38 }
 0x154   : > { %v873_v15 = vpop.permute.xlu0 %872 }
 0x155   : > { %v3291_v28 = vpop.permute.xlu1 %874 }
 0x156   : > { %1103 = vrot.lane.b32.xlu0 %v965_v1, %s2641_s16  ;;  %v883_v18 = vsel %vm671_vm7, %v873_v15, %v3291_v28 }
 0x157   : > { %1105 = vrot.lane.b32.xlu1 %v966_v63, %s2641_s16  ;;  %1469 = vmatprep.subr.bf16.mxu0 %v883_v18 }
 0x158   : > { %v666_v62 = vpop.permute.xlu0 %665 }
 0x159   : > { %v871_v31 = vpop.permute.xlu1 %870  ;;  %v674_v54 = vsel %vm671_vm7, %v666_v62, %v668_v8  ;;  %v1000_v8 = vsel %vm998_vm12, %v3271_v41, %v3273_v42 }
 0x15a   : > { %1101 = vrot.lane.b32.xlu0 %v3115_v35, %s2641_s16  ;;  %1415 = vmatpush1.bf16.msra.mxu1 %v674_v54  ;;  %v882_v43 = vsel %vm671_vm7, %v871_v31, %v873_v15  ;;  %v3382_v54 = vld [vmem:[%s3725_s3 + $0x44] ss:$28 sps:$4 sm:$0xff]  }
 0x15b   : > { %1109 = vrot.lane.b32.xlu1 %v967_v32, %s2641_s16  ;;  %1470 = vmatpush1.bf16.msra.mxu0 %v882_v43  ;;  %v3388_v32 = vld [vmem:[%s3725_s3 + $0x40] ss:$28 sps:$4 sm:$0xff]  }
 0x15c   : > { %v993_v50 = vpop.permute.xlu0 %992 }
 0x15d   : > { %v995_v22 = vpop.permute.xlu1 %994 }
 0x15e   : > { %1111 = vrot.lane.b32.xlu0 %v968_v11, %s2641_s16  ;;  %v1001_v38 = vsel %vm998_vm12, %v993_v50, %v995_v22 }
 0x15f   : > { %1107 = vrot.lane.b32.xlu1 %v3159_v19, %s2641_s16 }
 0x160   : > { %v997_v35 = vpop.permute.xlu0 %996 }
 0x161   : > { %v685_v23 = vpop.permute.xlu1 %684  ;;  %v1002_v1 = vsel %vm998_vm12, %v995_v22, %v997_v35  ;;  %v3395_v22 = vld [vmem:[%s3725_s3] ss:$28 sps:$4 sm:$0xff]  }
 0x162   : > { %1115 = vrot.lane.b32.xlu0 %v982_v13, %s2641_s16 }
 0x163   : > { %1117 = vrot.lane.b32.xlu1 %v983_v21, %s2641_s16 }
 0x164   : > { %v3325_v25 = vpop.permute.xlu0 %686 }
 0x165   : > { %v879_v27 = vpop.permute.xlu1 %878  ;;  %v696_v19 = vsel %vm694_vm11, %v685_v23, %v3325_v25 }
 0x166   : > { %1113 = vrot.lane.b32.xlu0 %v3186_v3, %s2641_s16  ;;  %1416 = vmatprep.subr.bf16.mxu1 %v696_v19  ;;  %v2579_v19 = vld [vmem:[%s2730_s17 + $0x8] ss:$12 sps:$4 sm:$0xff]  }
 0x167   : > { %1121 = vrot.lane.b32.xlu1 %v984_v7, %s2641_s16 }
 0x168   : > { %v3335_v53 = vpop.permute.xlu0 %880 }
 0x169   : > { %v683_v58 = vpop.permute.xlu1 %682  ;;  %v885_v12 = vsel %vm671_vm7, %v879_v27, %v3335_v53 }
 0x16a   : > { %1123 = vrot.lane.b32.xlu0 %v985_v56, %s2641_s16  ;;  %v695_v3 = vsel %vm694_vm11, %v683_v58, %v685_v23  ;;  %1471 = vmatprep.subr.bf16.mxu0 %v885_v12  ;;  %v3403_v23 = vld [vmem:[%s3725_s3 + $0x3c] ss:$28 sps:$4 sm:$0xff]  }
 0x16b   : > { %1119 = vrot.lane.b32.xlu1 %v3227_v55, %s2641_s16  ;;  %1417 = vmatpush1.bf16.msra.mxu1 %v695_v3  ;;  %v3423_v12 = vld [vmem:[%s3725_s3 + $0x38] ss:$28 sps:$4 sm:$0xff]   ;;  %v2580_v3 = vld [vmem:[%s2730_s17 + $0x20] ss:$12 sps:$4 sm:$0xff]  }
 0x16c   : > { %v877_v59 = vpop.permute.xlu0 %876 }
 0x16d   : > { %v1004_v46 = vpop.permute.xlu1 %1003  ;;  %v884_v52 = vsel %vm671_vm7, %v877_v59, %v879_v27 }
 0x16e   : > { %1127 = vrot.lane.b32.xlu0 %v999_v40, %s2641_s16  ;;  %1472 = vmatpush1.bf16.msra.mxu0 %v884_v52 }
 0x16f   : > { %1129 = vrot.lane.b32.xlu1 %v1000_v8, %s2641_s16 }
 0x170   : > { %v1006_v55 = vpop.permute.xlu0 %1005 }
 0x171   : > { %v1008_v17 = vpop.permute.xlu1 %1007  ;;  %1474 = vmatmul.mubr.bf16.vlgmr.msra.gmra.mrb[0].mxu0 %v3353_v16  ;;  %v1016_v18 = vsel %vm1015_vm13, %v1004_v46, %v1006_v55 }
 0x172   : > { %1125 = vrot.lane.b32.xlu0 %v3264_v37, %s2641_s16  ;;  %v1017_v62 = vsel %vm1015_vm13, %v1006_v55, %v1008_v17  ;;  %1483 = vmatprep.mubr.bf16.mxu0 %v3382_v54 }
 0x173   : > { %1133 = vrot.lane.b32.xlu1 %v1001_v38, %s2641_s16 }
 0x174   : > { %v691_v15 = vpop.permute.xlu0 %690 }
 0x175   : > { %v3366_v41 = vpop.permute.xlu1 %692 }
 0x176   : > { %1135 = vrot.lane.b32.xlu0 %v1002_v1, %s2641_s16  ;;  %v698_v42 = vsel %vm694_vm11, %v691_v15, %v3366_v41 }
 0x177   : > { %1131 = vrot.lane.b32.xlu1 %v993_v50, %s2641_s16  ;;  %1418 = vmatprep.subr.bf16.mxu1 %v698_v42 }
 0x178   : > { %v1056_v63 = vpop.permute.xlu0 %1055 }
 0x179   : > { %v3372_v37 = vpop.permute.xlu1 %1057  ;;  %1484 = vmatmul.mubr.bf16.gmra.mrb[4].mxu0 %v3388_v32 }
 0x17a   : > { %1139 = vrot.lane.b32.xlu0 %v1016_v18, %s2641_s16  ;;  %v1186_v31 = vsel %vm694_vm11, %v1056_v63, %v3372_v37 }
 0x17b   : > { %1141 = vrot.lane.b32.xlu1 %v1017_v62, %s2641_s16  ;;  %1494 = vmatprep.subr.bf16.mxu0 %v1186_v31  ;;  %v2583_v62 = vld [vmem:[%s2747_s9] ss:$12 sps:$4 sm:$0xff]  }
 0x17c   : > { %v689_v43 = vpop.permute.xlu0 %688 }
 0x17d   : > { %v1010_v50 = vpop.permute.xlu1 %1009  ;;  %v697_v11 = vsel %vm694_vm11, %v689_v43, %v691_v15 }
 0x17e   : > { %1137 = vrot.lane.b32.xlu0 %v1004_v46, %s2641_s16  ;;  %1419 = vmatpush1.bf16.msra.mxu1 %v697_v11  ;;  %v2585_v11 = vld [vmem:[%s2747_s9 + $0x20] ss:$12 sps:$4 sm:$0xff]  }
 0x17f   : > { %2309 = vmatprep.subr.bf16.mxu1 %v3093_v0  ;;  %v3413_v0 = vld [vmem:[%s3725_s3 + $0x14] ss:$28 sps:$4 sm:$0xff]  }
 0x180   : > { %v1012_v35 = vpop.permute.xlu0 %1011  ;;  %1526 = vmatprep.mubr.bf16.mxu0 %v3413_v0 }
 0x181   : > { %v1018_v13 = vsel %vm1015_vm13, %v1010_v50, %v1012_v35  ;;  %v1014_v21 = vpop.permute.xlu1 %1013  ;;  %1421 = vmatmul.mubr.bf16.vlgmr.msra.gmra.mrb[0].mxu1 %v3395_v22 }
 0x182   : > { %v1019_v27 = vsel %vm1015_vm13, %v1012_v35, %v1014_v21  ;;  %1145 = vrot.lane.b32.xlu1 %v1018_v13, %s2641_s16  ;;  %2310 = vmatpush3.bf16.msra.mxu1 %v2579_v19  ;;  %v2588_v13 = vld [vmem:[%s2739_s25 + $0x20] ss:$12 sps:$4 sm:$0xff]  }
 0x183   : > { %1147 = vrot.lane.b32.xlu0 %v1019_v27, %s2641_s16  ;;  %2311 = vmatprep.subr.bf16.mxu1 %v3137_v5 }
 0x184   : > { %v1054_v7 = vpop.permute.xlu0 %1053  ;;  %1430 = vmatprep.mubr.bf16.mxu1 %v3403_v23 }
 0x185   : > { %v1185_v56 = vsel %vm694_vm11, %v1054_v7, %v1056_v63  ;;  %v1062_v58 = vpop.permute.xlu1 %1061 }
 0x186   : > { %1495 = vmatpush1.bf16.msra.mxu0 %v1185_v56  ;;  %1143 = vrot.lane.b32.xlu1 %v1010_v50, %s2641_s16 }
 0x187   : > { %2312 = vmatpush3.bf16.msra.mxu1 %v2580_v3 }
 0x188   : > { %2313 = vmatprep.subr.bf16.mxu1 %v3170_v9  ;;  %v3428_v5 = vpop.permute.xlu0 %1063 }
 0x189   : > { %v1021_v59 = vpop.permute.xlu1 %1020  ;;  %v1188_v46 = vsel %vm694_vm11, %v1062_v58, %v3428_v5  ;;  %1431 = vmatmul.mubr.bf16.gmra.mrb[4].mxu1 %v3423_v12 }
 0x18a   : > { %1496 = vmatprep.subr.bf16.mxu0 %v1188_v46  ;;  %1632 = vmatprep.mubr.bf16.mxu1 %v3113_v33 }
 0x18b   : > { %2314 = vmatpush3.bf16.msra.mxu1 %v2907_v29 }
 0x18c   : > { %2315 = vmatprep.subr.bf16.mxu1 %v3199_v4  ;;  %v1023_v40 = vpop.permute.xlu0 %1022 }
 0x18d   : > { %v1033_v52 = vsel %vm1032_vm14, %v1021_v59, %v1023_v40  ;;  %v1025_v9 = vpop.permute.xlu1 %1024 }
 0x18e   : > { %v1034_v8 = vsel %vm1032_vm14, %v1023_v40, %v1025_v9  ;;  %1151 = vrot.lane.b32.xlu0 %v1033_v52, %s2641_s16 }
 0x18f   : > { %1153 = vrot.lane.b32.xlu1 %v1034_v8, %s2641_s16  ;;  %2316 = vmatpush3.bf16.msra.mxu1 %v2938_v39 }
 0x190   : > { %2317 = vmatprep.subr.bf16.mxu1 %v3243_v36  ;;  %v1060_v55 = vpop.permute.xlu0 %1059 }
 0x191   : > { %v1187_v33 = vsel %vm694_vm11, %v1060_v55, %v1062_v58  ;;  %v1068_v29 = vpop.permute.xlu1 %1067  ;;  %v2644_v58 = vmov 0  }
 0x192   : > { %1497 = vmatpush1.bf16.msra.mxu0 %v1187_v33  ;;  %1149 = vrot.lane.b32.xlu0 %v1021_v59, %s2641_s16 }
 0x193   : > { %2318 = vmatpush3.bf16.msra.mxu1 %v2966_v49  ;;  %2504 = vset.pattern.permute.xlu1 %v2644_v58 }
 0x194   : > { %2319 = vmatprep.subr.bf16.mxu1 %v3284_v47  ;;  %v3446_v4 = vpop.permute.xlu0 %1069  ;;  %2503 = vset.pattern.permute.xlu0 %v2644_v58 }
 0x195   : > { %v1027_v17 = vpop.permute.xlu1 %1026  ;;  %v1190_v38 = vsel %vm694_vm11, %v1068_v29, %v3446_v4 }
 0x196   : > { %1498 = vmatprep.subr.bf16.mxu0 %v1190_v38 }
 0x197   : > { %2320 = vmatpush3.bf16.msra.mxu1 %v2989_v57 }
 0x198   : > { %2321 = vmatprep.subr.bf16.mxu1 %v3325_v25  ;;  %v1029_v39 = vpop.permute.xlu0 %1028  ;;  %v2581_v25 = vld [vmem:[%s2747_s9 + $0x4] ss:$12 sps:$4 sm:$0xff]  }
 0x199   : > { %v1035_v36 = vsel %vm1032_vm14, %v1027_v17, %v1029_v39  ;;  %v1031_v15 = vpop.permute.xlu1 %1030 }
 0x19a   : > { %v1036_v49 = vsel %vm1032_vm14, %v1029_v39, %v1031_v15  ;;  %1157 = vrot.lane.b32.xlu1 %v1035_v36, %s2641_s16  ;;  %v1797_v39 = vld [vmem:[%s3726_s4 + $0x8] sm:$0xff]  ;;  %v1882_v36 = vlaneseq }
 0x19b   : > { %1159 = vrot.lane.b32.xlu0 %v1036_v49, %s2641_s16  ;;  %2322 = vmatpush3.bf16.msra.mxu1 %v3025_v26  ;;  %v1798_v49 = vld [vmem:[%s3726_s4 + $0x10] sm:$0xff] }
 0x19c   : > { %2323 = vmatprep.subr.bf16.mxu1 %v3366_v41  ;;  %v1066_v47 = vpop.permute.xlu0 %1065 }
 0x19d   : > { %v1189_v57 = vsel %vm694_vm11, %v1066_v47, %v1068_v29  ;;  %v1074_v1 = vpop.permute.xlu1 %1073  ;;  %v1799_v47 = vld [vmem:[%s3726_s4 + $0x18] sm:$0xff] }
 0x19e   : > { %1499 = vmatpush1.bf16.msra.mxu0 %v1189_v57  ;;  %1155 = vrot.lane.b32.xlu1 %v1027_v17, %s2641_s16 }
 0x19f   : > { %2324 = vmatpush3.bf16.msra.mxu1 %v3057_v45  ;;  %1163 = vrot.lane.b32.xlu0 %v2581_v25, %s2641_s16 }
 0x1a0   : > { %2337 = vmatprep.subr.bf16.mxu1 %v3065_v51  ;;  %v3464_v42 = vpop.permute.xlu0 %1075  ;;  %v2582_v51 = vld [vmem:[%s2747_s9 + $0x8] ss:$12 sps:$4 sm:$0xff]  }
 0x1a1   : > { %v1072_v26 = vpop.permute.xlu1 %1071  ;;  %v1192_v41 = vsel %vm694_vm11, %v1074_v1, %v3464_v42 }
 0x1a2   : > { %v1191_v63 = vsel %vm694_vm11, %v1072_v26, %v1074_v1  ;;  %1500 = vmatprep.subr.bf16.mxu0 %v1192_v41  ;;  %1633 = vmatmul.mubr.bf16.vlgmr.msra.gmra.mrb[8].mxu1 %v3395_v22  ;;  %v2586_v22 = vld [vmem:[%s2739_s25 + $0x8] ss:$12 sps:$4 sm:$0xff]   ;;  %v1883_v1 = vshrl.u32 %v1882_v36, 7  ;;  %v1832_v41 = vld [vmem:[%s3727_s5] sm:$0xff] }
 0x1a3   : > { %2338 = vmatpush3.bf16.msra.mxu1 %v2892_v20  ;;  %1501 = vmatpush1.bf16.msra.mxu0 %v1191_v63  ;;  %v1833_v63 = vld [vmem:[%s3727_s5 + $0x8] sm:$0xff] }
 0x1a4   : > { %2339 = vmatprep.subr.bf16.mxu1 %v3101_v2  ;;  %v1080_v45 = vpop.permute.xlu0 %1079  ;;  %1165 = vrot.lane.b32.xlu1 %v2582_v51, %s2641_s16  ;;  %v2584_v2 = vld [vmem:[%s2747_s9 + $0x1c] ss:$12 sps:$4 sm:$0xff]   ;;  %v1892_v51 = vsub.s32 2, %v1883_v1 }
 0x1a5   : > { %v3474_v18 = vpop.permute.xlu1 %1081  ;;  %1161 = vrot.lane.b32.xlu0 %v2583_v62, %s2641_s16  ;;  %1640 = vmatprep.mubr.bf16.mxu1 %v3403_v23 }
 0x1a6   : > { %v1194_v31 = vsel %vm694_vm11, %v1080_v45, %v3474_v18 }
 0x1a7   : > { %1502 = vmatprep.subr.bf16.mxu0 %v1194_v31  ;;  %2340 = vmatpush3.bf16.msra.mxu1 %v2899_v24 }
 0x1a8   : > { %2341 = vmatprep.subr.bf16.mxu1 %v3145_v6  ;;  %v1078_v20 = vpop.permute.xlu0 %1077  ;;  %1169 = vrot.lane.b32.xlu1 %v2584_v2, %s2641_s16  ;;  %v2587_v6 = vld [vmem:[%s2747_s9 + $0x18] ss:$12 sps:$4 sm:$0xff]  }
 0x1a9   : > { %v1193_v43 = vsel %vm694_vm11, %v1078_v20, %v1080_v45  ;;  %v1086_v50 = vpop.permute.xlu1 %1085  ;;  %1171 = vrot.lane.b32.xlu0 %v2585_v11, %s2641_s16  ;;  %v1834_v20 = vld [vmem:[%s3727_s5 + $0x10] sm:$0xff]  ;;  %v1835_v2 = vld [vmem:[%s3727_s5 + $0x18] sm:$0xff] }
 0x1aa   : > { %1503 = vmatpush1.bf16.msra.mxu0 %v1193_v43  ;;  %1641 = vmatmul.mubr.bf16.gmra.mrb[12].mxu1 %v3423_v12  ;;  %v1880_v43 = vld [vmem:[%s3728_s6] sm:$0x7] }
 0x1ab   : > { %2342 = vmatpush3.bf16.msra.mxu1 %v2586_v22  ;;  %1681 = vmatprep.mubr.bf16.mxu1 %v3128_v48 }
 0x1ac   : > { %2343 = vmatprep.subr.bf16.mxu1 %v3178_v10  ;;  %v3492_v24 = vpop.permute.xlu0 %1087  ;;  %1167 = vrot.lane.b32.xlu1 %v2587_v6, %s2641_s16  ;;  %v1884_v6 = vsub.s32 0, %v1883_v1 }
 0x1ad   : > { %v1040_v35 = vpop.permute.xlu1 %1039  ;;  %v1196_v23 = vsel %vm694_vm11, %v1086_v50, %v3492_v24 }
 0x1ae   : > { %1504 = vmatprep.subr.bf16.mxu0 %v1196_v23 }
 0x1af   : > { %2344 = vmatpush3.bf16.msra.mxu1 %v2588_v13 }
 0x1b0   : > { %2345 = vmatprep.subr.bf16.mxu1 %v3207_v61  ;;  %v1042_v21 = vpop.permute.xlu0 %1041 }
 0x1b1   : > { %v1050_v27 = vsel %vm556_vm1, %v1040_v35, %v1042_v21  ;;  %v1084_v48 = vpop.permute.xlu1 %1083  ;;  %1177 = vrot.lane.b32.xlu1 %v1042_v21, %s2641_s16 }
 0x1b2   : > { %v1195_v10 = vsel %vm694_vm11, %v1084_v48, %v1086_v50  ;;  %1175 = vrot.lane.b32.xlu0 %v1050_v27, %s2641_s16  ;;  %v1885_v27 = vrot.slane %v1880_v43, %v1884_v6 }
 0x1b3   : > { %1505 = vmatpush1.bf16.msra.mxu0 %v1195_v10  ;;  %2346 = vmatpush3.bf16.msra.mxu1 %v2923_v34 }
 0x1b4   : > { %2347 = vmatprep.subr.bf16.mxu1 %v3253_v14  ;;  %v1038_v19 = vpop.permute.xlu0 %1037 }
 0x1b5   : > { %v1049_v7 = vsel %vm556_vm1, %v1038_v19, %v1040_v35  ;;  %v1092_v56 = vpop.permute.xlu1 %1091  ;;  %v1893_v35 = vrot.slane %v1880_v43, %v1892_v51 }
 0x1b6   : > { %1173 = vrot.lane.b32.xlu0 %v1049_v7, %s2641_s16 }
 0x1b7   : > { %2348 = vmatpush3.bf16.msra.mxu1 %v2951_v44 }
 0x1b8   : > { %2349 = vmatprep.subr.bf16.mxu1 %v3291_v28  ;;  %v3510_v61 = vpop.permute.xlu0 %1093 }
 0x1b9   : > { %v1046_v12 = vpop.permute.xlu1 %1045  ;;  %v1198_v34 = vsel %vm694_vm11, %v1092_v56, %v3510_v61 }
 0x1ba   : > { %1506 = vmatprep.subr.bf16.mxu0 %v1198_v34 }
 0x1bb   : > { %2350 = vmatpush3.bf16.msra.mxu1 %v2997_v60 }
 0x1bc   : > { %2351 = vmatprep.subr.bf16.mxu1 %v3335_v53  ;;  %v1048_v14 = vpop.permute.xlu0 %1047 }
 0x1bd   : > { %v1052_v44 = vsel %vm556_vm1, %v1046_v12, %v1048_v14  ;;  %v1090_v28 = vpop.permute.xlu1 %1089  ;;  %1183 = vrot.lane.b32.xlu0 %v1048_v14, %s2641_s16 }
 0x1be   : > { %v1197_v3 = vsel %vm694_vm11, %v1090_v28, %v1092_v56  ;;  %1181 = vrot.lane.b32.xlu1 %v1052_v44, %s2641_s16 }
 0x1bf   : > { %1507 = vmatpush1.bf16.msra.mxu0 %v1197_v3  ;;  %2352 = vmatpush3.bf16.msra.mxu1 %v3033_v30 }
 0x1c0   : > { %v1044_v59 = vpop.permute.xlu0 %1043 }
 0x1c1   : > { %v1051_v46 = vsel %vm556_vm1, %v1044_v59, %v1046_v12  ;;  %v1098_v40 = vpop.permute.xlu1 %1097 }
 0x1c2   : > { %1179 = vrot.lane.b32.xlu1 %v1051_v46, %s2641_s16  ;;  %1682 = vmatmul.mubr.bf16.vlgmr.msra.gmra.mrb[16].mxu1 %v3353_v16 }
 0x1c3   : > { %1689 = vmatprep.mubr.bf16.mxu1 %v3382_v54 }
 0x1c4   : > { %v3527_v60 = vpop.permute.xlu0 %1099 }
 0x1c5   : > { %v1096_v53 = vpop.permute.xlu1 %1095  ;;  %v1200_v52 = vsel %vm694_vm11, %v1098_v40, %v3527_v60 }
 0x1c6   : > { %v1199_v9 = vsel %vm694_vm11, %v1096_v53, %v1098_v40  ;;  %1508 = vmatprep.subr.bf16.mxu0 %v1200_v52  ;;  %1807 = vperm.xlu1 %2504, %v1797_v39   ;;  %v2576_v53 = vld [vmem:[%s3725_s3 + $0x48] ss:$28 sps:$4 sm:$0xff]  }
 0x1c7   : > { %1509 = vmatpush1.bf16.msra.mxu0 %v1199_v9 }
 0x1c8   : > { %v1104_v30 = vpop.permute.xlu0 %1103 }
 0x1c9   : > { %v1106_v8 = vpop.permute.xlu1 %1105 }
 0x1ca   : > { %2365 = vmatprep.subr.bf16.mxu1 %v1106_v8  ;;  %v1202_v55 = vsel %vm694_vm11, %v1104_v30, %v1106_v8  ;;  %1690 = vmatmul.mubr.bf16.gmra.mrb[20].mxu1 %v3388_v32 }
 0x1cb   : > { %1510 = vmatprep.subr.bf16.mxu0 %v1202_v55  ;;  %2366 = vmatpush3.bf16.msra.mxu1 %v3372_v37  ;;  %v1796_v37 = vld [vmem:[%s3726_s4] sm:$0xff] }
 0x1cc   : > { %v1102_v16 = vpop.permute.xlu0 %1101  ;;  %1730 = vmatprep.mubr.bf16.mxu1 %v3413_v0  ;;  %1802 = vperm.xlu0 %2503, %v1796_v37  }
 0x1cd   : > { %v1201_v54 = vsel %vm694_vm11, %v1102_v16, %v1104_v30  ;;  %v1110_v33 = vpop.permute.xlu1 %1109  ;;  %1812 = vperm.xlu1 %2504, %v1798_v49  }
 0x1ce   : > { %1511 = vmatpush1.bf16.msra.mxu0 %v1201_v54 }
 0x1d0   : > { %v1112_v29 = vpop.permute.xlu0 %1111  ;;  %1817 = vperm.xlu0 %2503, %v1799_v47  }
 0x1d1   : > { %v1108_v17 = vpop.permute.xlu1 %1107  ;;  %2367 = vmatprep.subr.bf16.mxu1 %v1112_v29  ;;  %v1204_v38 = vsel %vm694_vm11, %v1110_v33, %v1112_v29  ;;  %1838 = vperm.xlu1 %2504, %v1832_v41  }
 0x1d2   : > { %v1203_v32 = vsel %vm694_vm11, %v1108_v17, %v1110_v33  ;;  %1512 = vmatprep.subr.bf16.mxu0 %v1204_v38  ;;  %2368 = vmatpush3.bf16.msra.mxu1 %v3428_v5 }
 0x1d3   : > { %1513 = vmatpush1.bf16.msra.mxu0 %v1203_v32 }
 0x1d4   : > { %v1116_v0 = vpop.permute.xlu0 %1115  ;;  %1843 = vperm.xlu0 %2503, %v1833_v63  }
 0x1d5   : > { %v1118_v15 = vpop.permute.xlu1 %1117  ;;  %1848 = vperm.xlu1 %2504, %v1834_v20  }
 0x1d6   : > { %2369 = vmatprep.subr.bf16.mxu1 %v1118_v15  ;;  %v1206_v57 = vsel %vm694_vm11, %v1116_v0, %v1118_v15 }
 0x1d7   : > { %1514 = vmatprep.subr.bf16.mxu0 %v1206_v57  ;;  %2370 = vmatpush3.bf16.msra.mxu1 %v3446_v4  ;;  %v1888_v4 = vsub.s32 1, %v1883_v1 }
 0x1d8   : > { %v1114_v5 = vpop.permute.xlu0 %1113  ;;  %1853 = vperm.xlu0 %2503, %v1835_v2  }
 0x1d9   : > { %v1205_v25 = vsel %vm694_vm11, %v1114_v5, %v1116_v0  ;;  %v1122_v26 = vpop.permute.xlu1 %1121  ;;  %v1889_v22 = vrot.slane %v1880_v43, %v1888_v4 }
 0x1da   : > { %1515 = vmatpush1.bf16.msra.mxu0 %v1205_v25 }
 0x1db   : > { %1896 = vrot.lane.b32.xlu1 %v1889_v22, %s2635_s23 }
 0x1dc   : > { %v1124_v45 = vpop.permute.xlu0 %1123  ;;  %1898 = vrot.lane.b32.xlu0 %v1893_v35, %s2635_s23 }
 0x1dd   : > { %v1120_v62 = vpop.permute.xlu1 %1119  ;;  %2371 = vmatprep.subr.bf16.mxu1 %v1124_v45  ;;  %v1208_v31 = vsel %vm694_vm11, %v1122_v26, %v1124_v45 }
 0x1de   : > { %v1207_v50 = vsel %vm694_vm11, %v1120_v62, %v1122_v26  ;;  %1516 = vmatprep.subr.bf16.mxu0 %v1208_v31  ;;  %2372 = vmatpush3.bf16.msra.mxu1 %v3464_v42  ;;  %v2577_v62 = vld [vmem:[%s3725_s3 + $0x18] ss:$28 sps:$4 sm:$0xff]   ;;  %v2578_v31 = vld [vmem:[%s3725_s3 + $0x50] ss:$28 sps:$4 sm:$0xff]  }
 0x1df   : > { %1517 = vmatpush1.bf16.msra.mxu0 %v1207_v50  ;;  %1894 = vrot.lane.b32.xlu1 %v1885_v27, %s2635_s23 }
 0x1e0   : > { %v1128_v11 = vpop.permute.xlu0 %1127 }
 0x1e1   : > { %v1130_v23 = vpop.permute.xlu1 %1129 }
 0x1e2   : > { %2373 = vmatprep.subr.bf16.mxu1 %v1130_v23  ;;  %v1210_v13 = vsel %vm694_vm11, %v1128_v11, %v1130_v23 }
 0x1e3   : > { %1518 = vmatprep.subr.bf16.mxu0 %v1210_v13  ;;  %2374 = vmatpush3.bf16.msra.mxu1 %v3474_v18 }
 0x1e4   : > { %v1126_v21 = vpop.permute.xlu0 %1125 }
 0x1e5   : > { %v1209_v42 = vsel %vm694_vm11, %v1126_v21, %v1128_v11  ;;  %v1134_v48 = vpop.permute.xlu1 %1133 }
 0x1e6   : > { %1519 = vmatpush1.bf16.msra.mxu0 %v1209_v42 }
 0x1e8   : > { %v1136_v10 = vpop.permute.xlu0 %1135 }
 0x1e9   : > { %v1132_v19 = vpop.permute.xlu1 %1131  ;;  %2375 = vmatprep.subr.bf16.mxu1 %v1136_v10  ;;  %v1212_v7 = vsel %vm694_vm11, %v1134_v48, %v1136_v10 }
 0x1ea   : > { %v1211_v56 = vsel %vm694_vm11, %v1132_v19, %v1134_v48  ;;  %1520 = vmatprep.subr.bf16.mxu0 %v1212_v7  ;;  %2376 = vmatpush3.bf16.msra.mxu1 %v3492_v24  ;;  %v2571_v24 = vld [vmem:[%s3725_s3 + $0x10] ss:$28 sps:$4 sm:$0xff]  }
 0x1eb   : > { %1521 = vmatpush1.bf16.msra.mxu0 %v1211_v56 }
 0x1ec   : > { %v1140_v18 = vpop.permute.xlu0 %1139 }
 0x1ed   : > { %v1142_v12 = vpop.permute.xlu1 %1141 }
 0x1ee   : > { %2377 = vmatprep.subr.bf16.mxu1 %v1142_v12  ;;  %v1214_v34 = vsel %vm694_vm11, %v1140_v18, %v1142_v12 }
 0x1ef   : > { %1522 = vmatprep.subr.bf16.mxu0 %v1214_v34  ;;  %2378 = vmatpush3.bf16.msra.mxu1 %v3510_v61  ;;  %v2574_v61 = vld [vmem:[%s3725_s3 + $0x4c] ss:$28 sps:$4 sm:$0xff]  }
 0x1f0   : > { %v1138_v14 = vpop.permute.xlu0 %1137 }
 0x1f1   : > { %v1213_v44 = vsel %vm694_vm11, %v1138_v14, %v1140_v18 }
 0x1f2   : > { %1523 = vmatpush1.bf16.msra.mxu0 %v1213_v44 }
 0x1f4   : > { %v1146_v28 = vpop.permute.xlu1 %1145 }
 0x1f5   : > { %v1148_v3 = vpop.permute.xlu0 %1147 }
 0x1f6   : > { %2379 = vmatprep.subr.bf16.mxu1 %v1148_v3  ;;  %v1216_v59 = vsel %vm694_vm11, %v1146_v28, %v1148_v3 }
 0x1f7   : > { %1524 = vmatprep.subr.bf16.mxu0 %v1216_v59  ;;  %2380 = vmatpush3.bf16.msra.mxu1 %v3527_v60 }
 0x1f8   : > { %v1144_v46 = vpop.permute.xlu1 %1143 }
 0x1f9   : > { %v1215_v40 = vsel %vm694_vm11, %v1144_v46, %v1146_v28 }
 0x1fa   : > { %1525 = vmatpush1.bf16.msra.mxu0 %v1215_v40  ;;  %1731 = vmatmul.mubr.bf16.vlgmr.msra.gmra.mrb[24].mxu1 %v2571_v24 }
 0x1fb   : > { %1738 = vmatprep.mubr.bf16.mxu1 %v2574_v61 }
 0x1fd   : > { %1527 = vmatmul.mubr.bf16.vlgmr.msra.gmra.mrb[0].mxu0 %v2571_v24 }
 0x1fe   : > { %1536 = vmatprep.mubr.bf16.mxu0 %v2574_v61 }
 0x200   : > { %v1152_v52 = vpop.permute.xlu0 %1151 }
 0x201   : > { %v1154_v9 = vpop.permute.xlu1 %1153 }
 0x202   : > { %v1218_v60 = vsel %vm694_vm11, %v1152_v52, %v1154_v9  ;;  %1739 = vmatmul.mubr.bf16.gmra.mrb[28].mxu1 %v2576_v53 }
 0x203   : > { %1547 = vmatprep.subr.bf16.mxu0 %v1218_v60 }
 0x204   : > { %v1150_v30 = vpop.permute.xlu0 %1149 }
 0x205   : > { %v1217_v8 = vsel %vm694_vm11, %v1150_v30, %v1152_v52  ;;  %1537 = vmatmul.mubr.bf16.gmra.mrb[4].mxu0 %v2576_v53 }
 0x206   : > { %1548 = vmatpush1.bf16.msra.mxu0 %v1217_v8  ;;  %1579 = vmatprep.mubr.bf16.mxu0 %v2644_v58 }
 0x20c   : > { %v1158_v55 = vpop.permute.xlu1 %1157 }
 0x20d   : > { %v1160_v16 = vpop.permute.xlu0 %1159 }
 0x20e   : > { %v1220_v54 = vsel %vm694_vm11, %v1158_v55, %v1160_v16 }
 0x20f   : > { %1549 = vmatprep.subr.bf16.mxu0 %v1220_v54 }
 0x210   : > { %v1156_v33 = vpop.permute.xlu1 %1155 }
 0x211   : > { %v1219_v29 = vsel %vm694_vm11, %v1156_v33, %v1158_v55  ;;  %v1164_v17 = vpop.permute.xlu0 %1163 }
 0x212   : > { %1550 = vmatpush1.bf16.msra.mxu0 %v1219_v29 }
 0x216   : > { %v1166_v38 = vpop.permute.xlu1 %1165 }
 0x217   : > { %v1162_v39 = vpop.permute.xlu0 %1161  ;;  %v1222_v37 = vsel %vm694_vm11, %v1164_v17, %v1166_v38 }
 0x218   : > { %v1221_v32 = vsel %vm694_vm11, %v1162_v39, %v1164_v17  ;;  %1551 = vmatprep.subr.bf16.mxu0 %v1222_v37 }
 0x219   : > { %1552 = vmatpush1.bf16.msra.mxu0 %v1221_v32 }
 0x21a   : > { %v1170_v0 = vpop.permute.xlu1 %1169 }
 0x21b   : > { %v1172_v36 = vpop.permute.xlu0 %1171 }
 0x21c   : > { %v1224_v15 = vsel %vm694_vm11, %v1170_v0, %v1172_v36 }
 0x21d   : > { %1553 = vmatprep.subr.bf16.mxu0 %v1224_v15 }
 0x21e   : > { %v1168_v49 = vpop.permute.xlu1 %1167 }
 0x21f   : > { %v1223_v47 = vsel %vm694_vm11, %v1168_v49, %v1170_v0 }
 0x220   : > { %1554 = vmatpush1.bf16.msra.mxu0 %v1223_v47 }
 0x223   : > { %v1178_v57 = vpop.permute.xlu1 %1177 }
 0x224   : > { %v1176_v5 = vpop.permute.xlu0 %1175 }
 0x225   : > { %v1226_v1 = vsel %vm694_vm11, %v1176_v5, %v1178_v57 }
 0x226   : > { %1555 = vmatprep.subr.bf16.mxu0 %v1226_v1 }
 0x228   : > { %v1174_v25 = vpop.permute.xlu0 %1173 }
 0x229   : > { %v1225_v26 = vsel %vm694_vm11, %v1174_v25, %v1176_v5 }
 0x22a   : > { %1556 = vmatpush1.bf16.msra.mxu0 %v1225_v26 }
 0x22f   : > { %v1184_v41 = vpop.permute.xlu0 %1183 }
 0x230   : > { %v1182_v63 = vpop.permute.xlu1 %1181 }
 0x231   : > { %v1228_v45 = vsel %vm694_vm11, %v1182_v63, %v1184_v41 }
 0x232   : > { %1557 = vmatprep.subr.bf16.mxu0 %v1228_v45 }
 0x234   : > { %v1180_v4 = vpop.permute.xlu1 %1179 }
 0x235   : > { %v1227_v51 = vsel %vm694_vm11, %v1180_v4, %v1182_v63 }
 0x236   : > { %1558 = vmatpush1.bf16.msra.mxu0 %v1227_v51 }
 0x237   : > { %2401 = vmatprep.subr.bf16.mxu0 %v1154_v9 }
 0x239   : > { %2269 = vmatmul.mubr.msk.bf16.vlgmr.msra.gmra.mrb[0].mxu0 %vm1381_vm15, %v2577_v62 }
 0x23a   : > { %2402 = vmatpush3.bf16.msra.mxu0 %v1154_v9  ;;  %1589 = vmatprep.mubr.bf16.mxu0 %v2644_v58 }
 0x23b   : > { %2403 = vmatprep.subr.bf16.mxu0 %v1160_v16 }
 0x23e   : > { %2404 = vmatpush3.bf16.msra.mxu0 %v1160_v16 }
 0x23f   : > { %2405 = vmatprep.subr.bf16.mxu0 %v1166_v38 }
 0x241   : > { %2270 = vmatmul.mubr.msk.bf16.gmra.mrb[4].mxu0 %vm1381_vm15, %v2578_v31 }
 0x242   : > { %2406 = vmatpush3.bf16.msra.mxu0 %v1166_v38  ;;  %2413 = vmatprep.mubr.msk.bf16.mxu0 %vm1381_vm15, %v2577_v62 }
 0x243   : > { %2407 = vmatprep.subr.bf16.mxu0 %v1172_v36 }
 0x246   : > { %2408 = vmatpush3.bf16.msra.mxu0 %v1172_v36 }
 0x247   : > { %2409 = vmatprep.subr.bf16.mxu0 %v1178_v57 }
 0x24a   : > { %2410 = vmatpush3.bf16.msra.mxu0 %v1178_v57  ;;  %v3637_v57 = vpop.permute.xlu1 %1807 }
 0x24b   : > { %2411 = vmatprep.subr.bf16.mxu0 %v1184_v41  ;;  %v1803_v26 = vpop.permute.xlu0 %1802 }
 0x24e   : > { %2412 = vmatpush3.bf16.msra.mxu0 %v1184_v41  ;;  %v1813_v5 = vpop.permute.xlu1 %1812 }
 0x24f   : > { %v1818_v63 = vpop.permute.xlu0 %1817 }
 0x251   : > { %2414 = vmatmul.mubr.msk.bf16.vlgmr.msra.gmra.mrb[8].mxu0 %vm1381_vm15, %v2578_v31 }
 0x252   : > { %v3639_v1 = vpop.permute.xlu1 %1838 }
 0x254   : > { %v1422_v58 = vpop.f32.mrb[0].mxu1 }
 0x255   : > { %v1424_v20 = vpop.f32.mrb[1].mxu1 }
 0x256   : > { %v3621_v2 = vpop.f32.mrb[2].mxu1  ;;  %v1849_v25 = vpop.permute.xlu1 %1848 }
 0x257   : > { %v3623_v43 = vpop.f32.mrb[3].mxu1 }
 0x25a   : > { %v3641_v41 = vpop.permute.xlu1 %1896 }
 0x25c   : > { %v3625_v50 = vpop.f32.mrb[4].mxu1 }
 0x25d   : > { %v3627_v11 = vpop.f32.mrb[5].mxu1 }
 0x25e   : > { %v3629_v22 = vpop.f32.mrb[6].mxu1 }
 0x25f   : > { %v3631_v6 = vpop.f32.mrb[7].mxu1 }
 0x275   : > { %v2325_v35 = vpop.f32.mrb[8].mxu1 }
 0x276   : > { %v2326_v23 = vpop.f32.mrb[9].mxu1 }
 0x277   : > { %v2327_v13 = vadd.f32 %v2326_v23, %v2325_v35  ;;  %v2328_v21 = vpop.f32.mrb[10].mxu1 }
 0x278   : > { %v2329_v27 = vpop.f32.mrb[11].mxu1 }
 0x279   : > { %v2330_v42 = vadd.f32 %v2329_v27, %v2328_v21 }
 0x27d   : > { %v2331_v48 = vpop.f32.mrb[12].mxu1 }
 0x27e   : > { %v2332_v10 = vpop.f32.mrb[13].mxu1 }
 0x27f   : > { %v2333_v19 = vadd.f32 %v2332_v10, %v2331_v48  ;;  %v2334_v7 = vpop.f32.mrb[14].mxu1  ;;  %v1895_v48 = vpop.permute.xlu1 %1894 }
 0x280   : > { %v2335_v56 = vpop.f32.mrb[15].mxu1  ;;  %v1844_v10 = vpop.permute.xlu0 %1843 }
 0x281   : > { %v2336_v18 = vadd.f32 %v2335_v56, %v2334_v7 }
 0x295   : > { %v2353_v12 = vpop.f32.mrb[16].mxu1 }
 0x296   : > { %v2354_v34 = vpop.f32.mrb[17].mxu1 }
 0x297   : > { %v2355_v14 = vadd.f32 %v2354_v34, %v2353_v12  ;;  %v2356_v44 = vpop.f32.mrb[18].mxu1 }
 0x298   : > { %v2357_v28 = vpop.f32.mrb[19].mxu1 }
 0x299   : > { %v1684_v3 = vadd.f32 %v2355_v14, %v2327_v13  ;;  %v2358_v59 = vadd.f32 %v2357_v28, %v2356_v44 }
 0x29b   : > { %v1687_v24 = vadd.f32 %v2358_v59, %v2330_v42 }
 0x29d   : > { %v2359_v61 = vpop.f32.mrb[20].mxu1 }
 0x29e   : > { %v2360_v46 = vpop.f32.mrb[21].mxu1 }
 0x29f   : > { %v2361_v40 = vadd.f32 %v2360_v46, %v2359_v61  ;;  %v2362_v53 = vpop.f32.mrb[22].mxu1 }
 0x2a0   : > { %v2363_v52 = vpop.f32.mrb[23].mxu1 }
 0x2a1   : > { %v1692_v9 = vadd.f32 %v2361_v40, %v2333_v19  ;;  %v2364_v60 = vadd.f32 %v2363_v52, %v2362_v53 }
 0x2a3   : > { %v1695_v30 = vadd.f32 %v2364_v60, %v2336_v18 }
 0x2cd   : > { %v2381_v8 = vpop.f32.mrb[24].mxu1 }
 0x2ce   : > { %v2382_v55 = vpop.f32.mrb[25].mxu1 }
 0x2cf   : > { %v2383_v16 = vadd.f32 %v2382_v55, %v2381_v8  ;;  %v2384_v54 = vpop.f32.mrb[26].mxu1 }
 0x2d0   : > { %v2385_v33 = vpop.f32.mrb[27].mxu1 }
 0x2d1   : > { %v2386_v29 = vadd.f32 %v2385_v33, %v2384_v54  ;;  %v3633_v17 = vadd.f32 %v2383_v16, %v1684_v3 }
 0x2d3   : > { %v3635_v38 = vadd.f32 %v2386_v29, %v1687_v24 }
 0x2d5   : > { %v2387_v39 = vpop.f32.mrb[28].mxu1 }
 0x2d6   : > { %v2388_v37 = vpop.f32.mrb[29].mxu1 }
 0x2d7   : > { %v2389_v32 = vadd.f32 %v2388_v37, %v2387_v39  ;;  %v2390_v0 = vpop.f32.mrb[30].mxu1 }
 0x2d8   : > { %v2391_v36 = vpop.f32.mrb[31].mxu1 }
 0x2d9   : > { %v2392_v15 = vadd.f32 %v2391_v36, %v2390_v0  ;;  %v1741_v49 = vadd.f32 %v2389_v32, %v1692_v9 }
 0x2db   : > { %v1744_v47 = vadd.f32 %v2392_v15, %v1695_v30 }
 0x30c   : > { %v1581_v45 = vpop.f32.mrb[0].mxu0 }
 0x30d   : > { %v2417_v4 = vadd.f32 %v1581_v45, %v1422_v58  ;;  %v1583_v51 = vpop.f32.mrb[1].mxu0  ;;  %v1901_v58 = vsel %vm625_vm4, %v1895_v48, %v3641_v41 }
 0x30e   : > { %v2418_v62 = vadd.f32 %v1583_v51, %v1424_v20  ;;  %v1585_v31 = vpop.f32.mrb[2].mxu0 }
 0x30f   : > { %v1820_v35 = vmul.f32 %v2417_v4, %v1803_v26  ;;  %v2419_v23 = vadd.f32 %v1585_v31, %v3621_v2  ;;  %v1587_v13 = vpop.f32.mrb[3].mxu0 }
 0x310   : > { %v2420_v21 = vadd.f32 %v1587_v13, %v3623_v43  ;;  %v1821_v8 = vmul.f32 %v2418_v62, %v1803_v26 }
 0x311   : > { %v1856_v27 = vadd.f32 %v3639_v1, %v1820_v35  ;;  %v1823_v42 = vmul.f32 %v2419_v23, %v3637_v57 }
 0x312   : > { %v1857_v29 = vadd.f32 %v3639_v1, %v1821_v8 }
 0x313   : > { %v1868_v19 = vmax.f32 %v1856_v27, 0.0  ;;  %v1859_v7 = vadd.f32 %v1844_v10, %v1823_v42 }
 0x314   : > { %v1591_v56 = vpop.f32.mrb[4].mxu0  ;;  %v1869_v13 = vmax.f32 %v1857_v29, 0.0 }
 0x315   : > { %v1871_v20 = vmax.f32 %v1859_v7, 0.0  ;;  %v2421_v18 = vadd.f32 %v1591_v56, %v3625_v50  ;;  %v1593_v12 = vpop.f32.mrb[5].mxu0  ;;  %v3651_v43 = vmul.f32 %v1901_v58, %v1868_v19  ;;  %v1854_v50 = vpop.permute.xlu0 %1853 }
 0x316   : > { %v2422_v2 = vadd.f32 %v1593_v12, %v3627_v11  ;;  %v1595_v34 = vpop.f32.mrb[6].mxu0 }
 0x317   : > { %v3653_v14 = vmul.f32 %v1901_v58, %v1871_v20  ;;  %v1826_v44 = vmul.f32 %v2421_v18, %v1813_v5  ;;  %v2423_v28 = vadd.f32 %v1595_v34, %v3629_v22  ;;  %v1597_v3 = vpop.f32.mrb[7].mxu0  ;;  %v1824_v22 = vmul.f32 %v2420_v21, %v3637_v57 }
 0x318   : > { %v2424_v59 = vadd.f32 %v1597_v3, %v3631_v6  ;;  %v1827_v60 = vmul.f32 %v2422_v2, %v1813_v5 }
 0x319   : > { %v1862_v24 = vadd.f32 %v1849_v25, %v1826_v44  ;;  %v1829_v61 = vmul.f32 %v2423_v28, %v1818_v63  ;;  %v2525_v46 = vpack.i.bf16 %v3653_v14, %v3651_v43  ;;  %v1860_v45 = vadd.f32 %v1844_v10, %v1824_v22  ;;  %v1899_v4 = vpop.permute.xlu0 %1898 }
 0x31a   : > { %v1830_v55 = vmul.f32 %v2424_v59, %v1818_v63  ;;  %v1863_v54 = vadd.f32 %v1849_v25, %v1827_v60 }
 0x31b   : > { %v1874_v40 = vmax.f32 %v1862_v24, 0.0  ;;  %v1865_v53 = vadd.f32 %v1854_v50, %v1829_v61  ;;  %v1872_v42 = vmax.f32 %v1860_v45, 0.0 }
 0x31c   : > { %v1866_v32 = vadd.f32 %v1854_v50, %v1830_v55  ;;  %v1875_v31 = vmax.f32 %v1863_v54, 0.0 }
 0x31d   : > { %v1877_v11 = vmax.f32 %v1865_v53, 0.0  ;;  %v1912_v52 = vmul.f32 %v1901_v58, %v1874_v40 }
 0x31e   : > { %v1878_v27 = vmax.f32 %v1866_v32, 0.0 }
 0x31f   : > { %v1915_v9 = vmul.f32 %v1901_v58, %v1877_v11 }
 0x321   : > { %v2530_v30 = vpack.i.bf16 %v1915_v9, %v1912_v52 }
 0x324   : > { %v2415_v16 = vpop.f32.mrb[8].mxu0 }
 0x325   : > { %v1790_v6 = vadd.f32 %v2415_v16, %v1741_v49  ;;  %v1781_v33 = vpop.f32.mrb[9].mxu0 }
 0x326   : > { %v1782_v39 = vadd.f32 %v1781_v33, %v3633_v17  ;;  %v2416_v37 = vpop.f32.mrb[10].mxu0  ;;  %v1902_v17 = vsel %vm625_vm4, %v3641_v41, %v1899_v4 }
 0x327   : > { %v1828_v0 = vmul.f32 %v1813_v5, %v1790_v6  ;;  %v1793_v36 = vadd.f32 %v2416_v37, %v1744_v47  ;;  %v1784_v15 = vpop.f32.mrb[11].mxu0  ;;  %v1916_v56 = vmul.f32 %v1902_v17, %v1878_v27  ;;  %v1910_v12 = vmul.f32 %v1902_v17, %v1872_v42 }
 0x328   : > { %v1822_v51 = vmul.f32 %v1803_v26, %v1782_v39  ;;  %v1785_v62 = vadd.f32 %v1784_v15, %v3635_v38  ;;  %v1913_v26 = vmul.f32 %v1902_v17, %v1875_v31 }
 0x329   : > { %v1864_v35 = vadd.f32 %v1849_v25, %v1828_v0  ;;  %v1831_v23 = vmul.f32 %v1818_v63, %v1793_v36  ;;  %v1907_v63 = vmul.f32 %v1902_v17, %v1869_v13 }
 0x32a   : > { %v1858_v49 = vadd.f32 %v3639_v1, %v1822_v51  ;;  %v1825_v21 = vmul.f32 %v3637_v57, %v1785_v62 }
 0x32b   : > { %v1876_v5 = vmax.f32 %v1864_v35, 0.0  ;;  %v1867_v47 = vadd.f32 %v1854_v50, %v1831_v23 }
 0x32c   : > { %v1870_v48 = vmax.f32 %v1858_v49, 0.0  ;;  %v1861_v19 = vadd.f32 %v1844_v10, %v1825_v21 }
 0x32d   : > { %v1914_v7 = vmul.f32 %v1899_v4, %v1876_v5  ;;  %v1879_v38 = vmax.f32 %v1867_v47, 0.0 }
 0x32e   : > { %v1908_v58 = vmul.f32 %v1899_v4, %v1870_v48  ;;  %v1873_v25 = vmax.f32 %v1861_v19, 0.0 }
 0x32f   : > { %v1917_v20 = vmul.f32 %v1899_v4, %v1879_v38  ;;  %v2505_v1 = vpack.i.bf16 %v1914_v7, %v1913_v26 }
 0x330   : > { %v1911_v18 = vmul.f32 %v1899_v4, %v1873_v25  ;;  %v2510_v57 = vpack.i.bf16 %v1908_v58, %v1907_v63 }
 0x331   : > { %2506 = vrot.lane.b32.xlu0 %v2505_v1, %s2638_s13  ;;  %v2515_v41 = vpack.i.bf16 %v1917_v20, %v1916_v56 }
 0x332   : > { %v2520_v2 = vpack.i.bf16 %v1911_v18, %v1910_v12 }
 0x333   : > { %2516 = vrot.lane.b32.xlu1 %v2515_v41, %s2638_s13 }
 0x335   : > { %2511 = vrot.lane.b32.xlu0 %v2510_v57, %s2638_s13 }
 0x337   : > { %2521 = vrot.lane.b32.xlu1 %v2520_v2, %s2638_s13 }
 0x339   : > { %2526 = vrot.lane.b32.xlu0 %v2525_v46, %s2638_s13 }
 0x33b   : > { %2531 = vrot.lane.b32.xlu1 %v2530_v30, %s2638_s13 }
 0x3a3   : > { %v2507_v10 = vpop.permute.xlu0 %2506 }
 0x3a4   : > { %v2509_v34 = vunpack.i.h.bf16 %v2507_v10  ;;  %v2508_v43 = vunpack.i.l.bf16 %v2507_v10 }
 0x3a5   : > { %v2517_v14 = vpop.permute.xlu1 %2516 }
 0x3a6   : > { %v1960_v44 = vsel %vm981_vm10, %v2508_v43, %v2509_v34  ;;  %v2519_v28 = vunpack.i.h.bf16 %v2517_v14  ;;  %v2518_v3 = vunpack.i.l.bf16 %v2517_v14 }
 0x3a7   : > { %v1982_v59 = vsel %vm1979_vm0, %v1960_v44, 0.0  ;;  %v2512_v24 = vpop.permute.xlu0 %2511 }
 0x3a8   : > { %v2306_v61 = vpack.c.bf16 %v1982_v59, %v1982_v59  ;;  %v1962_v50 = vsel %vm981_vm10, %v2518_v3, %v2519_v28  ;;  %v2514_v46 = vunpack.i.h.bf16 %v2512_v24  ;;  %v2513_v40 = vunpack.i.l.bf16 %v2512_v24 }
 0x3a9   : > { %v1983_v53 = vsel %vm1979_vm0, %v1962_v50, 0.0  ;;  %v2522_v11 = vpop.permute.xlu1 %2521 }
 0x3aa   : > { %2029 = vst [vmem:[%s2752_s22 + $0x20] sm:$0xf] %v2306_v61  ;;  %v2308_v52 = vpack.c.bf16 %v1983_v53, %v1983_v53  ;;  %v1956_v9 = vsel %vm981_vm10, %v2513_v40, %v2514_v46  ;;  %v2524_v60 = vunpack.i.h.bf16 %v2522_v11  ;;  %v2523_v30 = vunpack.i.l.bf16 %v2522_v11 }
 0x3ab   : > { %v1980_v8 = vsel %vm1979_vm0, %v1956_v9, 0.0  ;;  %v2527_v55 = vpop.permute.xlu0 %2526 }
 0x3ac   : > { %2031 = vst [vmem:[%s2752_s22 + $0x2c] sm:$0xf] %v2308_v52  ;;  %v2302_v22 = vpack.c.bf16 %v1980_v8, %v1980_v8  ;;  %v1958_v16 = vsel %vm981_vm10, %v2523_v30, %v2524_v60  ;;  %v2529_v54 = vunpack.i.h.bf16 %v2527_v55  ;;  %v2528_v6 = vunpack.i.l.bf16 %v2527_v55 }
 0x3ad   : > { %v1981_v33 = vsel %vm1979_vm0, %v1958_v16, 0.0  ;;  %v2532_v29 = vpop.permute.xlu1 %2531 }
 0x3ae   : > { %2025 = vst [vmem:[%s2752_s22 + $0x8] sm:$0xf] %v2302_v22  ;;  %v2304_v39 = vpack.c.bf16 %v1981_v33, %v1981_v33  ;;  %v1976_v37 = vsel %vm981_vm10, 0.0, %v2529_v54  ;;  %v1955_v32 = vsel %vm981_vm10, %v2528_v6, %v2513_v40  ;;  %v1957_v0 = vsel %vm981_vm10, %v2529_v54, %v2523_v30 }
 0x3af   : > { %v1975_v36 = vsel %vm981_vm10, 0.0, %v2528_v6  ;;  %v2303_v15 = vpack.c.bf16 %v1957_v0, %v1976_v37  ;;  %v2534_v45 = vunpack.i.h.bf16 %v2532_v29  ;;  %v2533_v4 = vunpack.i.l.bf16 %v2532_v29 }
 0x3b0   : > { %2027 = vst [vmem:[%s2752_s22 + $0x14] sm:$0xf] %v2304_v39  ;;  %v2301_v51 = vpack.c.bf16 %v1955_v32, %v1975_v36 }
 0x3b1   : > { %2026 = vst [vmem:[%s2752_s22 + $0xc] sm:$0xff] %v2303_v15  ;;  %v1978_v62 = vsel %vm981_vm10, 0.0, %v2534_v45  ;;  %v1959_v31 = vsel %vm981_vm10, %v2533_v4, %v2508_v43  ;;  %v1961_v35 = vsel %vm981_vm10, %v2534_v45, %v2518_v3  ;;  %v1977_v23 = vsel %vm981_vm10, 0.0, %v2533_v4 }
 0x3b2   : > { %2024 = vst [vmem:[%s2752_s22] sm:$0xff] %v2301_v51  ;;  %v2305_v13 = vpack.c.bf16 %v1959_v31, %v1977_v23  ;;  %v2307_v49 = vpack.c.bf16 %v1961_v35, %v1978_v62 }
 0x3b4   : > { %2028 = vst [vmem:[%s2752_s22 + $0x18] sm:$0xff] %v2305_v13  ;;  %2030 = vst [vmem:[%s2752_s22 + $0x24] sm:$0xff] %v2307_v49 }
 0x3b5 PF: > { %2034 = sbr.rel (!%p2732_p2) target bundleno = 956 (0x3bc), region = 56  ;;  %v2645_v21 = vmov (%p2732_p2), 0  }
 0x3b6   : > { %2035 = vst [vmem:[%s2752_s22] sm:$0xff] (%p2732_p2), %v2645_v21  ;;  %2036 = vst [vmem:[%s2752_s22 + $0x8] sm:$0xf] (%p2732_p2), %v2645_v21 }
 0x3b7   : > { %2037 = vst [vmem:[%s2752_s22 + $0xc] sm:$0xff] (%p2732_p2), %v2645_v21  ;;  %2038 = vst [vmem:[%s2752_s22 + $0x14] sm:$0xf] (%p2732_p2), %v2645_v21 }
 0x3b8   : > { %2039 = vst [vmem:[%s2752_s22 + $0x18] sm:$0xff] (%p2732_p2), %v2645_v21  ;;  %2040 = vst [vmem:[%s2752_s22 + $0x20] sm:$0xf] (%p2732_p2), %v2645_v21 }
 0x3b9   : > { %2041 = vst [vmem:[%s2752_s22 + $0x24] sm:$0xff] (%p2732_p2), %v2645_v21  ;;  %2042 = vst [vmem:[%s2752_s22 + $0x2c] sm:$0xf] (%p2732_p2), %v2645_v21 }
 0x3bc PF: > { %s17_s28 = sadd.s32 1, %s2627_s28   ;;  %s3734_s18 = sld [smem:[#allocation2_spill]] }
 0x3bd   : > { %p14_p4 = scmp.ge.s32.totalorder %s17_s28, 22   ;;  %s3735_s24 = smov %s2619_s26 }
 0x3be   : > { %s3736_s25 = smov %s2623_s27  ;;  %s3737_s26 = smov %s3740_s29 }
 0x3bf   :  { %16 = sbr.rel (!%p14_p4) target bundleno = 3 (0x3), region = 92 }
 0x3c2   : > { %s3738_s27 = smov %s3734_s18 }

// kernel: cost_volume_network.8
= control target key start
LH: loop header
LB: loop body
LE: loop exit
PB: predicated region body
PF: predicated region fallthrough
CT: control target
= control target key end

     0   :  { %s3185_s24 = smov 0   ;;  %s3187_s25 = smov 0   ;;  %s4555_s0 = inlined_call_operand.vmem [shape: bf16[2,10,32,384], index: 0, kind: input, shape index: {}, may-alias: {0,1,2}]   ;;  %s4556_s1 = inlined_call_operand.vmem [shape: bf16[2,10,32,384], index: 1, kind: input, shape index: {}, may-alias: {0,1,2}]   ;;  %s4557_s2 = inlined_call_operand.vmem [shape: bf16[2,10,32,384], index: 2, kind: input, shape index: {}, may-alias: {0,1,2}]   ;;  %s4558_s3 = inlined_call_operand.vmem [shape: bf16[64,864], index: 3, kind: input, shape index: {}]   ;;  %s4559_s4 = inlined_call_operand.vmem [shape: f32[64,1], index: 4, kind: input, shape index: {}]   ;;  %s4560_s5 = inlined_call_operand.vmem [shape: f32[64,1], index: 5, kind: input, shape index: {}]   ;;  %s4561_s6 = inlined_call_operand.vmem [shape: f32[1,384], index: 6, kind: input, shape index: {}]   ;;  %s4562_s7 = inlined_call_operand.vmem [shape: bf16[2,4,64,384], index: 7, kind: output, shape index: {}]  }
   0x1   :  { %s3189_s26 = smov 0   ;;  %s3191_s27 = smov 0  }
   0x2   :  { %s3193_s28 = smov 0  }
   0x3 LB: > { %s26_s29 = sadd.s32 1, %s3118_s26  ;;  %s29_s30 = sadd.s32 1, %s3122_s27  ;;  %s3126_s28 = sphi %s3193_s28, %s17_s28   ;;  %s3122_s27 = sphi %s3191_s27, %s4569_s27   ;;  %s3118_s26 = sphi %s3189_s26, %s4568_s26   ;;  %s3114_s25 = sphi %s3187_s25, %s4567_s25   ;;  %s3110_s24 = sphi %s3185_s24, %s4566_s24  }
   0x4   : > { %p27_p0 = scmp.ge.s32.totalorder %s26_s29, 4  ;;  %p2579_p1 = scmp.ge.s32.totalorder %s3126_s28, 1 }
   0x5   : > { %p309_p2 = scmp.lt.s32.totalorder %s3126_s28, 9 }
   0x6   : > { %s4571_s29 = smov (%p27_p0, %s26_s29), 0  ;;  %s4573_s30 = smov (!%p27_p0, %s29_s30), %s3122_s27 }
   0x7   : > { %p310_p3 = pnand %p2579_p1, %p309_p2  ;;  %p31_p4 = scmp.ge.s32.totalorder %s4573_s30, 2 }
   0x8   : > { %s2580_s8 = sshll.u32 (!%p310_p3), %s3110_s24, 1  ;;  %p373_p5 = scmp.lt.s32.totalorder (!%p310_p3), %s3114_s25, 1 }
   0x9   : > { %s4575_s30 = smov (%p31_p4, %s4573_s30), 0  ;;  %313 = sbr.rel (%p310_p3) target bundleno = 975 (0x3cf), region = 48 }
   0xa   : > { %4563 = sst [smem:[#allocation2_spill]] %s4575_s30  ;;  %p375_p6 = scmp.lt.s32.totalorder (!%p310_p3), %s2580_s8, 9 }
   0xb   : > { %s384_s9 = sadd.s32 (!%p310_p3), 1, %s2580_s8  ;;  %s397_s13 = sadd.s32 (!%p310_p3), 2, %s2580_s8 }
   0xc   : > { %p387_p7 = scmp.lt.s32.totalorder (!%p310_p3), %s384_s9, 9  ;;  %p400_p8 = scmp.lt.s32.totalorder (!%p310_p3), %s397_s13, 9 }
   0xd   : > { %p411_p9 = scmp.lt.s32.totalorder (!%p310_p3), %s3110_s24, 3  ;;  %p419_p10 = scmp.ge.s32.totalorder (!%p310_p3), %s3110_s24, 0 }
   0xe   : > { %p420_p11 = scmp.le.s32.totalorder (!%p310_p3), %s3110_s24, 3 }
  0x10   : > { %s4577_s25 = smov (!%p373_p5, %s3114_s25), 1  ;;  %s4579_s9 = smov (!%p387_p7, %s384_s9), 9 }
  0x11   : > { %s376_s10 = scalar_select %p375_p6, %s2580_s8, 9 }
  0x12   : > { %s2890_s11 = smul.u32 120, %s4577_s25  ;;  %s4581_s13 = smov (!%p400_p8, %s397_s13), 9 }
  0x13   : > { %s2889_s12 = smul.u32 12, %s376_s10  ;;  %s4583_s24 = smov (!%p411_p9, %s3110_s24), 3 }
  0x14   : > { %s2891_s16 = smul.u32 12, %s4579_s9  ;;  %p3232_p12 = pnand %p420_p11, %p419_p10 }
  0x15   : > { %s379_s14 = sadd.s32 %s2890_s11, %s2889_s12  ;;  %s2894_s21 = smul.u32 96, %s4577_s25  ;;  %vm654_vm0 = vcmask (!%p3232_p12), 736256   ;;  %vm493_vm1 = vcmask (!%p3232_p12), 1039360   ;;  %vm516_vm2 = vcmask (!%p3232_p12), 1031168   ;;  %vm539_vm3 = vcmask (!%p3232_p12), 900096  }
  0x16   : > { %s2581_s15 = sshll.u32 %s379_s14, 2  ;;  %s391_s20 = sadd.s32 %s2891_s16, %s2890_s11  ;;  %vm562_vm4 = vcmask (!%p3232_p12), 891904   ;;  %vm585_vm5 = vcmask (!%p3232_p12), 883712   ;;  %vm867_vm6 = vcmask (!%p3232_p12), 302080   ;;  %vm884_vm7 = vcmask (!%p3232_p12), 293888  }
  0x17   : > { %s3221_s19 = scalar_lea.vmem %s4555_s0, %s2581_s15  ;;  %s2583_s22 = sshll.u32 %s391_s20, 2  ;;  %vm608_vm8 = vcmask (!%p3232_p12), 752640   ;;  %vm901_vm9 = vcmask (!%p3232_p12), 285696   ;;  %vm918_vm10 = vcmask (!%p3232_p12), 154624   ;;  %vm631_vm11 = vcmask (!%p3232_p12), 744448  }
  0x18   : > { %s3228_s10 = scalar_lea.vmem %s4556_s1, %s2583_s22  ;;  %s2892_s8 = smul.u32 12, %s4581_s13  ;;  %v3249_v0 = vld [vmem:[%s3221_s19 + $0x4] ss:$12 sps:$4 sm:$0xff] (!%p3232_p12)   ;;  %v3252_v1 = vld [vmem:[%s3221_s19] ss:$12 sps:$4 sm:$0xff] (!%p3232_p12)   ;;  %vm935_vm12 = vcmask (!%p3232_p12), 146432  }
  0x19   : > { %s2893_s12 = smul.u32 24, %s4583_s24  ;;  %s3128_s24 = smov (!%p3232_p12), 90   ;;  %v3256_v2 = vld [vmem:[%s3221_s19 + $0x8] ss:$12 sps:$4 sm:$0xff] (!%p3232_p12)   ;;  %1417 = vmatprep.subr.bf16.mxu1 (!%p3232_p12), %v3249_v0  ;;  %v3265_v4 = vld [vmem:[%s3221_s19 + $0x18] ss:$12 sps:$4 sm:$0xff] (!%p3232_p12)  }
  0x1a   : > { %s404_s14 = sadd.s32 %s2892_s8, %s2890_s11  ;;  %424 = sbr.rel (%p3232_p12) target bundleno = 966 (0x3c6), region = 52  ;;  %644 = vrot.lane.b32.xlu0 (!%p3232_p12), %v3249_v0, %s3128_s24  ;;  %642 = vrot.lane.b32.xlu1 (!%p3232_p12), %v3252_v1, %s3128_s24  ;;  %v3261_v3 = vld [vmem:[%s3221_s19 + $0x1c] ss:$12 sps:$4 sm:$0xff] (!%p3232_p12)   ;;  %v3270_v5 = vld [vmem:[%s3221_s19 + $0x20] ss:$12 sps:$4 sm:$0xff] (!%p3232_p12)   ;;  %vm952_vm13 = vcmask (!%p3232_p12), 138240  }
  0x1b   : > { %s2585_s15 = sshll.u32 %s404_s14, 2  ;;  %s415_s16 = sadd.s32 %s2894_s21, %s2893_s12  ;;  %1418 = vmatpush1.bf16.msra.mxu1 (!%p3232_p12), %v3252_v1  ;;  %v3277_v6 = vld [vmem:[%s3228_s10 + $0x4] ss:$12 sps:$4 sm:$0xff] (!%p3232_p12)   ;;  %v3284_v7 = vld [vmem:[%s3228_s10 + $0x8] ss:$12 sps:$4 sm:$0xff] (!%p3232_p12)   ;;  %vm969_vm14 = vcmask (!%p3232_p12), 7168  }
  0x1c   : > { %s3239_s18 = scalar_lea.vmem %s4557_s2, %s2585_s15  ;;  %s2586_s30 = sshll.u32 %s415_s16, 2  ;;  %1419 = vmatprep.subr.bf16.mxu1 (!%p3232_p12), %v3261_v3  ;;  %v3287_v8 = vld [vmem:[%s3228_s10] ss:$12 sps:$4 sm:$0xff] (!%p3232_p12)   ;;  %v3302_v9 = vld [vmem:[%s3228_s10 + $0x1c] ss:$12 sps:$4 sm:$0xff] (!%p3232_p12)   ;;  %vm1404_vm15 = vcmask (!%p3232_p12), 785408  }
  0x1d   : > { %s3244_s23 = scalar_lea.vmem %s4562_s7, %s2586_s30  ;;  %s3129_s11 = smov (!%p3232_p12), 127   ;;  %v3307_v10 = vld [vmem:[%s3228_s10 + $0x20] ss:$12 sps:$4 sm:$0xff] (!%p3232_p12)   ;;  %v3312_v11 = vld [vmem:[%s3228_s10 + $0x18] ss:$12 sps:$4 sm:$0xff] (!%p3232_p12)  }
  0x1e   : > { %646 = vrot.lane.b32.xlu0 (!%p3232_p12), %v3256_v2, %s3128_s24  ;;  %650 = vrot.lane.b32.xlu1 (!%p3232_p12), %v3261_v3, %s3128_s24  ;;  %s3130_s13 = smov (!%p3232_p12), 126   ;;  %v3321_v12 = vld [vmem:[%s3239_s18] ss:$12 sps:$4 sm:$0xff] (!%p3232_p12)   ;;  %v3325_v13 = vld [vmem:[%s3239_s18 + $0x4] ss:$12 sps:$4 sm:$0xff] (!%p3232_p12)   ;;  %s3131_s21 = smov (!%p3232_p12), 37  }
  0x1f   : > { %1420 = vmatpush1.bf16.msra.mxu1 (!%p3232_p12), %v3265_v4  ;;  %v3329_v14 = vld [vmem:[%s3239_s18 + $0x8] ss:$12 sps:$4 sm:$0xff] (!%p3232_p12)   ;;  %v3339_v15 = vld [vmem:[%s3239_s18 + $0x18] ss:$12 sps:$4 sm:$0xff] (!%p3232_p12)   ;;  %v3347_v17 = vld [vmem:[%s3239_s18 + $0x20] ss:$12 sps:$4 sm:$0xff] (!%p3232_p12)  }
  0x20   : > { %v3343_v16 = vld [vmem:[%s3239_s18 + $0x1c] ss:$12 sps:$4 sm:$0xff] (!%p3232_p12)   ;;  %s3132_s8 = smov (!%p3232_p12), 110   ;;  %s3133_s12 = smov (!%p3232_p12), 36  }
  0x21   : > { %s3134_s14 = smov 109   ;;  %s3135_s15 = smov 35  }
  0x22   : > { %652 = vrot.lane.b32.xlu0 %v3270_v5, %s3128_s24  ;;  %648 = vrot.lane.b32.xlu1 %v3265_v4, %s3128_s24  ;;  %s3136_s16 = smov 108   ;;  %s3137_s25 = smov 19  }
  0x23   : > { %s3138_s17 = smov 92   ;;  %s3139_s30 = smov 18  }
  0x24   : > { %s3140_s20 = smov 91   ;;  %s3141_s22 = smov 17  }
  0x26   : > { %483 = vrot.lane.b32.xlu0 %v3249_v0, %s3129_s11  ;;  %485 = vrot.lane.b32.xlu1 %v3256_v2, %s3129_s11 }
  0x2a   : > { %481 = vrot.lane.b32.xlu0 %v3252_v1, %s3129_s11  ;;  %699 = vrot.lane.b32.xlu1 %v3277_v6, %s3129_s11 }
  0x2e   : > { %701 = vrot.lane.b32.xlu0 %v3284_v7, %s3129_s11  ;;  %697 = vrot.lane.b32.xlu1 %v3287_v8, %s3129_s11 }
  0x32   : > { %489 = vrot.lane.b32.xlu0 %v3261_v3, %s3129_s11  ;;  %491 = vrot.lane.b32.xlu1 %v3270_v5, %s3129_s11 }
  0x36   : > { %487 = vrot.lane.b32.xlu0 %v3265_v4, %s3129_s11  ;;  %705 = vrot.lane.b32.xlu1 %v3302_v9, %s3129_s11 }
  0x3a   : > { %707 = vrot.lane.b32.xlu0 %v3307_v10, %s3129_s11  ;;  %703 = vrot.lane.b32.xlu1 %v3312_v11, %s3129_s11 }
  0x3e   : > { %506 = vrot.lane.b32.xlu0 %v3249_v0, %s3130_s13  ;;  %508 = vrot.lane.b32.xlu1 %v3256_v2, %s3130_s13 }
  0x42   : > { %504 = vrot.lane.b32.xlu0 %v3252_v1, %s3130_s13  ;;  %855 = vrot.lane.b32.xlu1 %v3321_v12, %s3131_s21 }
  0x46   : > { %857 = vrot.lane.b32.xlu0 %v3325_v13, %s3131_s21  ;;  %859 = vrot.lane.b32.xlu1 %v3329_v14, %s3131_s21 }
  0x4a   : > { %512 = vrot.lane.b32.xlu0 %v3261_v3, %s3130_s13  ;;  %514 = vrot.lane.b32.xlu1 %v3270_v5, %s3130_s13 }
  0x4e   : > { %721 = vrot.lane.b32.xlu0 %v3277_v6, %s3130_s13  ;;  %723 = vrot.lane.b32.xlu1 %v3284_v7, %s3130_s13 }
  0x52   : > { %510 = vrot.lane.b32.xlu0 %v3265_v4, %s3130_s13  ;;  %719 = vrot.lane.b32.xlu1 %v3287_v8, %s3130_s13 }
  0x56   : > { %861 = vrot.lane.b32.xlu0 %v3339_v15, %s3131_s21  ;;  %863 = vrot.lane.b32.xlu1 %v3343_v16, %s3131_s21 }
  0x5a   : > { %865 = vrot.lane.b32.xlu0 %v3347_v17, %s3131_s21  ;;  %529 = vrot.lane.b32.xlu1 %v3249_v0, %s3132_s8 }
  0x5e   : > { %531 = vrot.lane.b32.xlu0 %v3256_v2, %s3132_s8  ;;  %727 = vrot.lane.b32.xlu1 %v3302_v9, %s3130_s13 }
  0x62   : > { %729 = vrot.lane.b32.xlu0 %v3307_v10, %s3130_s13  ;;  %527 = vrot.lane.b32.xlu1 %v3252_v1, %s3132_s8 }
  0x66   : > { %725 = vrot.lane.b32.xlu0 %v3312_v11, %s3130_s13  ;;  %872 = vrot.lane.b32.xlu1 %v3321_v12, %s3133_s12 }
  0x6a   : > { %874 = vrot.lane.b32.xlu0 %v3325_v13, %s3133_s12  ;;  %876 = vrot.lane.b32.xlu1 %v3329_v14, %s3133_s12 }
  0x6e   : > { %535 = vrot.lane.b32.xlu0 %v3261_v3, %s3132_s8  ;;  %537 = vrot.lane.b32.xlu1 %v3270_v5, %s3132_s8 }
  0x72   : > { %743 = vrot.lane.b32.xlu0 %v3277_v6, %s3132_s8  ;;  %745 = vrot.lane.b32.xlu1 %v3284_v7, %s3132_s8 }
  0x76   : > { %533 = vrot.lane.b32.xlu0 %v3265_v4, %s3132_s8  ;;  %741 = vrot.lane.b32.xlu1 %v3287_v8, %s3132_s8 }
  0x7a   : > { %878 = vrot.lane.b32.xlu0 %v3339_v15, %s3133_s12  ;;  %880 = vrot.lane.b32.xlu1 %v3343_v16, %s3133_s12 }
  0x7e   : > { %882 = vrot.lane.b32.xlu0 %v3347_v17, %s3133_s12  ;;  %552 = vrot.lane.b32.xlu1 %v3249_v0, %s3134_s14  ;;  %s3142_s12 = smov 1  }
  0x82   : > { %554 = vrot.lane.b32.xlu0 %v3256_v2, %s3134_s14  ;;  %749 = vrot.lane.b32.xlu1 %v3302_v9, %s3132_s8 }
  0x86   : > { %751 = vrot.lane.b32.xlu0 %v3307_v10, %s3132_s8  ;;  %550 = vrot.lane.b32.xlu1 %v3252_v1, %s3134_s14 }
  0x8a   : > { %747 = vrot.lane.b32.xlu0 %v3312_v11, %s3132_s8  ;;  %889 = vrot.lane.b32.xlu1 %v3321_v12, %s3135_s15 }
  0x8c   : > { %v645_v18 = vpop.permute.xlu0 %644  ;;  %v643_v19 = vpop.permute.xlu1 %642 }
  0x8d   : > { %v655_v23 = vsel %vm654_vm0, %v643_v19, %v645_v18 }
  0x8e   : > { %891 = vrot.lane.b32.xlu0 %v3325_v13, %s3135_s15  ;;  %893 = vrot.lane.b32.xlu1 %v3329_v14, %s3135_s15 }
  0x90   : > { %v3384_v20 = vpop.permute.xlu0 %646  ;;  %v651_v21 = vpop.permute.xlu1 %650 }
  0x91   : > { %v656_v22 = vsel %vm654_vm0, %v645_v18, %v3384_v20 }
  0x92   : > { %1490 = vmatprep.subr.bf16.mxu0 %v656_v22  ;;  %558 = vrot.lane.b32.xlu0 %v3261_v3, %s3134_s14 }
  0x93   : > { %560 = vrot.lane.b32.xlu1 %v3270_v5, %s3134_s14  ;;  %1491 = vmatpush1.bf16.msra.mxu0 %v655_v23 }
  0x94   : > { %v3391_v24 = vpop.permute.xlu0 %652  ;;  %v649_v25 = vpop.permute.xlu1 %648 }
  0x95   : > { %v658_v26 = vsel %vm654_vm0, %v651_v21, %v3391_v24  ;;  %v657_v27 = vsel %vm654_vm0, %v649_v25, %v651_v21  ;;  %vm2308_vm0 = vcmask 711680  }
  0x96   : > { %765 = vrot.lane.b32.xlu0 %v3277_v6, %s3134_s14  ;;  %1492 = vmatprep.subr.bf16.mxu0 %v658_v26 }
  0x97   : > { %767 = vrot.lane.b32.xlu1 %v3284_v7, %s3134_s14  ;;  %1493 = vmatpush1.bf16.msra.mxu0 %v657_v27 }
  0x98   : > { %v484_v28 = vpop.permute.xlu0 %483  ;;  %1494 = vmatprep.subr.bf16.mxu0 %v3277_v6  ;;  %v3399_v29 = vpop.permute.xlu1 %485 }
  0x99   : > { %v495_v30 = vsel %vm493_vm1, %v484_v28, %v3399_v29 }
  0x9a   : > { %556 = vrot.lane.b32.xlu0 %v3265_v4, %s3134_s14  ;;  %1421 = vmatprep.subr.bf16.mxu1 %v495_v30 }
  0x9b   : > { %763 = vrot.lane.b32.xlu1 %v3287_v8, %s3134_s14  ;;  %1495 = vmatpush1.bf16.msra.mxu0 %v3287_v8 }
  0x9c   : > { %v482_v31 = vpop.permute.xlu0 %481  ;;  %v700_v32 = vpop.permute.xlu1 %699  ;;  %1496 = vmatprep.subr.bf16.mxu0 %v3302_v9 }
  0x9d   : > { %v494_v33 = vsel %vm493_vm1, %v482_v31, %v484_v28 }
  0x9e   : > { %895 = vrot.lane.b32.xlu0 %v3339_v15, %s3135_s15  ;;  %1422 = vmatpush1.bf16.msra.mxu1 %v494_v33 }
  0x9f   : > { %897 = vrot.lane.b32.xlu1 %v3343_v16, %s3135_s15  ;;  %1497 = vmatpush1.bf16.msra.mxu0 %v3312_v11 }
  0xa0   : > { %v3415_v34 = vpop.permute.xlu0 %701  ;;  %v698_v35 = vpop.permute.xlu1 %697 }
  0xa1   : > { %v3419_v36 = vsel %vm493_vm1, %v700_v32, %v3415_v34  ;;  %v3425_v37 = vsel %vm493_vm1, %v698_v35, %v700_v32 }
  0xa2   : > { %899 = vrot.lane.b32.xlu0 %v3347_v17, %s3135_s15  ;;  %1498 = vmatprep.subr.bf16.mxu0 %v3419_v36 }
  0xa3   : > { %575 = vrot.lane.b32.xlu1 %v3249_v0, %s3136_s16  ;;  %1499 = vmatpush1.bf16.msra.mxu0 %v3425_v37 }
  0xa4   : > { %v490_v38 = vpop.permute.xlu0 %489  ;;  %v3430_v39 = vpop.permute.xlu1 %491 }
  0xa5   : > { %v497_v40 = vsel %vm493_vm1, %v490_v38, %v3430_v39 }
  0xa6   : > { %577 = vrot.lane.b32.xlu0 %v3256_v2, %s3136_s16  ;;  %1423 = vmatprep.subr.bf16.mxu1 %v497_v40 }
  0xa7   : > { %771 = vrot.lane.b32.xlu1 %v3302_v9, %s3134_s14 }
  0xa8   : > { %v488_v41 = vpop.permute.xlu0 %487  ;;  %v706_v42 = vpop.permute.xlu1 %705 }
  0xa9   : > { %v496_v43 = vsel %vm493_vm1, %v488_v41, %v490_v38 }
  0xaa   : > { %773 = vrot.lane.b32.xlu0 %v3307_v10, %s3134_s14  ;;  %1424 = vmatpush1.bf16.msra.mxu1 %v496_v43 }
  0xab   : > { %573 = vrot.lane.b32.xlu1 %v3252_v1, %s3136_s16 }
  0xac   : > { %v3443_v44 = vpop.permute.xlu0 %707  ;;  %v704_v45 = vpop.permute.xlu1 %703 }
  0xad   : > { %v3447_v46 = vsel %vm493_vm1, %v706_v42, %v3443_v44  ;;  %v3453_v47 = vsel %vm493_vm1, %v704_v45, %v706_v42 }
  0xae   : > { %769 = vrot.lane.b32.xlu0 %v3312_v11, %s3134_s14  ;;  %1500 = vmatprep.subr.bf16.mxu0 %v3447_v46 }
  0xaf   : > { %906 = vrot.lane.b32.xlu1 %v3321_v12, %s3137_s25  ;;  %1501 = vmatpush1.bf16.msra.mxu0 %v3453_v47 }
  0xb0   : > { %v507_v48 = vpop.permute.xlu0 %506  ;;  %v3458_v49 = vpop.permute.xlu1 %508 }
  0xb1   : > { %v518_v50 = vsel %vm516_vm2, %v507_v48, %v3458_v49 }
  0xb2   : > { %908 = vrot.lane.b32.xlu0 %v3325_v13, %s3137_s25  ;;  %1425 = vmatprep.subr.bf16.mxu1 %v518_v50 }
  0xb3   : > { %910 = vrot.lane.b32.xlu1 %v3329_v14, %s3137_s25 }
  0xb4   : > { %v505_v51 = vpop.permute.xlu0 %504  ;;  %v3466_v52 = vpop.permute.xlu1 %855 }
  0xb5   : > { %v517_v53 = vsel %vm516_vm2, %v505_v51, %v507_v48 }
  0xb6   : > { %581 = vrot.lane.b32.xlu0 %v3261_v3, %s3136_s16  ;;  %1426 = vmatpush1.bf16.msra.mxu1 %v517_v53 }
  0xb7   : > { %583 = vrot.lane.b32.xlu1 %v3270_v5, %s3136_s16 }
  0xb8   : > { %v3473_v54 = vpop.permute.xlu0 %857  ;;  %v3475_v55 = vpop.permute.xlu1 %859 }
  0xba   : > { %787 = vrot.lane.b32.xlu0 %v3277_v6, %s3136_s16 }
  0xbb   : > { %789 = vrot.lane.b32.xlu1 %v3284_v7, %s3136_s16 }
  0xbc   : > { %v513_v56 = vpop.permute.xlu0 %512  ;;  %v3481_v57 = vpop.permute.xlu1 %514 }
  0xbd   : > { %v520_v58 = vsel %vm516_vm2, %v513_v56, %v3481_v57 }
  0xbe   : > { %579 = vrot.lane.b32.xlu0 %v3265_v4, %s3136_s16  ;;  %1427 = vmatprep.subr.bf16.mxu1 %v520_v58 }
  0xbf   : > { %785 = vrot.lane.b32.xlu1 %v3287_v8, %s3136_s16 }
  0xc0   : > { %v722_v59 = vpop.permute.xlu0 %721  ;;  %v3489_v60 = vpop.permute.xlu1 %723 }
  0xc1   : > { %v732_v61 = vsel %vm516_vm2, %v722_v59, %v3489_v60 }
  0xc2   : > { %912 = vrot.lane.b32.xlu0 %v3339_v15, %s3137_s25  ;;  %1502 = vmatprep.subr.bf16.mxu0 %v732_v61 }
  0xc3   : > { %914 = vrot.lane.b32.xlu1 %v3343_v16, %s3137_s25 }
  0xc4   : > { %v511_v62 = vpop.permute.xlu0 %510  ;;  %v720_v63 = vpop.permute.xlu1 %719 }
  0xc5   : > { %v519_v18 = vsel %vm516_vm2, %v511_v62, %v513_v56  ;;  %v731_v19 = vsel %vm516_vm2, %v720_v63, %v722_v59 }
  0xc6   : > { %916 = vrot.lane.b32.xlu0 %v3347_v17, %s3137_s25  ;;  %1428 = vmatpush1.bf16.msra.mxu1 %v519_v18 }
  0xc7   : > { %598 = vrot.lane.b32.xlu1 %v3249_v0, %s3138_s17  ;;  %1503 = vmatpush1.bf16.msra.mxu0 %v731_v19 }
  0xc8   : > { %v3503_v21 = vpop.permute.xlu0 %861  ;;  %v3505_v22 = vpop.permute.xlu1 %863 }
  0xca   : > { %600 = vrot.lane.b32.xlu0 %v3256_v2, %s3138_s17 }
  0xcb   : > { %793 = vrot.lane.b32.xlu1 %v3302_v9, %s3136_s16 }
  0xcc   : > { %v3511_v23 = vpop.permute.xlu0 %865  ;;  %v530_v25 = vpop.permute.xlu1 %529 }
  0xce   : > { %795 = vrot.lane.b32.xlu0 %v3307_v10, %s3136_s16 }
  0xcf   : > { %596 = vrot.lane.b32.xlu1 %v3252_v1, %s3138_s17 }
  0xd0   : > { %v3517_v26 = vpop.permute.xlu0 %531  ;;  %v728_v27 = vpop.permute.xlu1 %727 }
  0xd1   : > { %v541_v28 = vsel %vm539_vm3, %v530_v25, %v3517_v26 }
  0xd2   : > { %791 = vrot.lane.b32.xlu0 %v3312_v11, %s3136_s16  ;;  %1429 = vmatprep.subr.bf16.mxu1 %v541_v28 }
  0xd3   : > { %923 = vrot.lane.b32.xlu1 %v3321_v12, %s3139_s30 }
  0xd4   : > { %v3525_v30 = vpop.permute.xlu0 %729  ;;  %v528_v31 = vpop.permute.xlu1 %527 }
  0xd5   : > { %v734_v32 = vsel %vm516_vm2, %v728_v27, %v3525_v30  ;;  %v540_v33 = vsel %vm539_vm3, %v528_v31, %v530_v25 }
  0xd6   : > { %925 = vrot.lane.b32.xlu0 %v3325_v13, %s3139_s30  ;;  %1504 = vmatprep.subr.bf16.mxu0 %v734_v32 }
  0xd7   : > { %927 = vrot.lane.b32.xlu1 %v3329_v14, %s3139_s30  ;;  %1430 = vmatpush1.bf16.msra.mxu1 %v540_v33  ;;  %v3605_v33 = vld [vmem:[%s4558_s3 + $0x4] ss:$28 sps:$4 sm:$0xff]  }
  0xd8   : > { %v726_v35 = vpop.permute.xlu0 %725  ;;  %v3534_v38 = vpop.permute.xlu1 %872  ;;  %1449 = vmatprep.mubr.bf16.mxu1 %v3605_v33 }
  0xd9   : > { %v733_v40 = vsel %vm516_vm2, %v726_v35, %v728_v27 }
  0xda   : > { %604 = vrot.lane.b32.xlu0 %v3261_v3, %s3138_s17  ;;  %1505 = vmatpush1.bf16.msra.mxu0 %v733_v40 }
  0xdb   : > { %606 = vrot.lane.b32.xlu1 %v3270_v5, %s3138_s17 }
  0xdc   : > { %v3541_v41 = vpop.permute.xlu0 %874  ;;  %v3543_v42 = vpop.permute.xlu1 %876 }
  0xde   : > { %809 = vrot.lane.b32.xlu0 %v3277_v6, %s3138_s17 }
  0xdf   : > { %811 = vrot.lane.b32.xlu1 %v3284_v7, %s3138_s17 }
  0xe0   : > { %v536_v43 = vpop.permute.xlu0 %535  ;;  %v3549_v45 = vpop.permute.xlu1 %537 }
  0xe1   : > { %v543_v48 = vsel %vm539_vm3, %v536_v43, %v3549_v45 }
  0xe2   : > { %602 = vrot.lane.b32.xlu0 %v3265_v4, %s3138_s17  ;;  %1431 = vmatprep.subr.bf16.mxu1 %v543_v48  ;;  %v3620_v48 = vld [vmem:[%s4558_s3 + $0xc] ss:$28 sps:$4 sm:$0xff]  }
  0xe3   : > { %807 = vrot.lane.b32.xlu1 %v3287_v8, %s3138_s17  ;;  %1522 = vmatprep.mubr.bf16.mxu0 %v3620_v48 }
  0xe4   : > { %v744_v50 = vpop.permute.xlu0 %743  ;;  %v3557_v51 = vpop.permute.xlu1 %745 }
  0xe5   : > { %v754_v53 = vsel %vm539_vm3, %v744_v50, %v3557_v51 }
  0xe6   : > { %929 = vrot.lane.b32.xlu0 %v3339_v15, %s3139_s30  ;;  %1506 = vmatprep.subr.bf16.mxu0 %v754_v53 }
  0xe7   : > { %931 = vrot.lane.b32.xlu1 %v3343_v16, %s3139_s30 }
  0xe8   : > { %v534_v56 = vpop.permute.xlu0 %533  ;;  %v742_v58 = vpop.permute.xlu1 %741 }
  0xe9   : > { %v542_v59 = vsel %vm539_vm3, %v534_v56, %v536_v43  ;;  %v753_v61 = vsel %vm539_vm3, %v742_v58, %v744_v50 }
  0xea   : > { %933 = vrot.lane.b32.xlu0 %v3347_v17, %s3139_s30  ;;  %1432 = vmatpush1.bf16.msra.mxu1 %v542_v59 }
  0xeb   : > { %621 = vrot.lane.b32.xlu1 %v3249_v0, %s3140_s20  ;;  %1507 = vmatpush1.bf16.msra.mxu0 %v753_v61 }
  0xec   : > { %v3571_v62 = vpop.permute.xlu0 %878  ;;  %v3573_v63 = vpop.permute.xlu1 %880 }
  0xee   : > { %623 = vrot.lane.b32.xlu0 %v3256_v2, %s3140_s20 }
  0xef   : > { %815 = vrot.lane.b32.xlu1 %v3302_v9, %s3138_s17 }
  0xf0   : > { %v3579_v18 = vpop.permute.xlu0 %882  ;;  %v553_v19 = vpop.permute.xlu1 %552 }
  0xf2   : > { %817 = vrot.lane.b32.xlu0 %v3307_v10, %s3138_s17 }
  0xf3   : > { %619 = vrot.lane.b32.xlu1 %v3252_v1, %s3140_s20 }
  0xf4   : > { %v3585_v0 = vpop.permute.xlu0 %554  ;;  %v750_v25 = vpop.permute.xlu1 %749 }
  0xf5   : > { %v564_v27 = vsel %vm562_vm4, %v553_v19, %v3585_v0 }
  0xf6   : > { %813 = vrot.lane.b32.xlu0 %v3312_v11, %s3138_s17  ;;  %1433 = vmatprep.subr.bf16.mxu1 %v564_v27 }
  0xf7   : > { %940 = vrot.lane.b32.xlu1 %v3321_v12, %s3141_s22 }
  0xf8   : > { %v3593_v2 = vpop.permute.xlu0 %751  ;;  %v551_v28 = vpop.permute.xlu1 %550 }
  0xf9   : > { %v756_v1 = vsel %vm539_vm3, %v750_v25, %v3593_v2  ;;  %v563_v31 = vsel %vm562_vm4, %v551_v28, %v553_v19 }
  0xfa   : > { %942 = vrot.lane.b32.xlu0 %v3325_v13, %s3141_s22  ;;  %1508 = vmatprep.subr.bf16.mxu0 %v756_v1 }
  0xfb   : > { %944 = vrot.lane.b32.xlu1 %v3329_v14, %s3141_s22  ;;  %1434 = vmatpush1.bf16.msra.mxu1 %v563_v31 }
  0xfc   : > { %v748_v32 = vpop.permute.xlu0 %747  ;;  %v3607_v35 = vpop.permute.xlu1 %889 }
  0xfd   : > { %v755_v40 = vsel %vm539_vm3, %v748_v32, %v750_v25 }
  0xfe   : > { %627 = vrot.lane.b32.xlu0 %v3261_v3, %s3140_s20  ;;  %1509 = vmatpush1.bf16.msra.mxu0 %v755_v40 }
  0xff   : > { %629 = vrot.lane.b32.xlu1 %v3270_v5, %s3140_s20 }
 0x100   : > { %v3615_v43 = vpop.permute.xlu0 %891  ;;  %v3622_v50 = vpop.permute.xlu1 %893 }
 0x102   : > { %992 = vrot.lane.b32.xlu0 %v3277_v6, %s3140_s20 }
 0x103   : > { %994 = vrot.lane.b32.xlu1 %v3284_v7, %s3140_s20 }
 0x104   : > { %v559_v3 = vpop.permute.xlu0 %558 }
 0x105   : > { %v3629_v5 = vpop.permute.xlu1 %560 }
 0x106   : > { %625 = vrot.lane.b32.xlu0 %v3265_v4, %s3140_s20  ;;  %v566_v53 = vsel %vm562_vm4, %v559_v3, %v3629_v5 }
 0x107   : > { %946 = vrot.lane.b32.xlu1 %v3339_v15, %s3141_s22  ;;  %1435 = vmatprep.subr.bf16.mxu1 %v566_v53  ;;  %v868_v53 = vsel %vm867_vm6, %v3466_v52, %v3473_v54 }
 0x108   : > { %v766_v56 = vpop.permute.xlu0 %765 }
 0x109   : > { %v3637_v6 = vpop.permute.xlu1 %767 }
 0x10a   : > { %948 = vrot.lane.b32.xlu0 %v3343_v16, %s3141_s22  ;;  %v776_v7 = vsel %vm562_vm4, %v766_v56, %v3637_v6 }
 0x10b   : > { %950 = vrot.lane.b32.xlu1 %v3347_v17, %s3141_s22  ;;  %1510 = vmatprep.subr.bf16.mxu0 %v776_v7  ;;  %v869_v7 = vsel %vm867_vm6, %v3473_v54, %v3475_v55 }
 0x10c   : > { %v557_v4 = vpop.permute.xlu0 %556 }
 0x10d   : > { %v764_v58 = vpop.permute.xlu1 %763  ;;  %v565_v59 = vsel %vm562_vm4, %v557_v4, %v559_v3 }
 0x10e   : > { %990 = vrot.lane.b32.xlu0 %v3287_v8, %s3140_s20  ;;  %1436 = vmatpush1.bf16.msra.mxu1 %v565_v59  ;;  %v775_v61 = vsel %vm562_vm4, %v764_v58, %v766_v56 }
 0x10f   : > { %998 = vrot.lane.b32.xlu1 %v3302_v9, %s3140_s20  ;;  %1511 = vmatpush1.bf16.msra.mxu0 %v775_v61 }
 0x110   : > { %v3651_v19 = vpop.permute.xlu0 %895 }
 0x111   : > { %v3653_v25 = vpop.permute.xlu1 %897 }
 0x112   : > { %1000 = vrot.lane.b32.xlu0 %v3307_v10, %s3140_s20 }
 0x113   : > { %996 = vrot.lane.b32.xlu1 %v3312_v11, %s3140_s20 }
 0x114   : > { %v3659_v27 = vpop.permute.xlu0 %899 }
 0x115   : > { %v576_v8 = vpop.permute.xlu1 %575 }
 0x116   : > { %1004 = vrot.lane.b32.xlu0 %v3419_v36, %s3140_s20 }
 0x117   : > { %1006 = vrot.lane.b32.xlu1 %v3415_v34, %s3140_s20 }
 0x118   : > { %v3665_v9 = vpop.permute.xlu0 %577 }
 0x119   : > { %v772_v28 = vpop.permute.xlu1 %771  ;;  %v587_v1 = vsel %vm585_vm5, %v576_v8, %v3665_v9 }
 0x11a   : > { %1002 = vrot.lane.b32.xlu0 %v3425_v37, %s3140_s20  ;;  %1437 = vmatprep.subr.bf16.mxu1 %v587_v1 }
 0x11b   : > { %1010 = vrot.lane.b32.xlu1 %v3447_v46, %s3140_s20 }
 0x11c   : > { %v3673_v10 = vpop.permute.xlu0 %773 }
 0x11d   : > { %v574_v11 = vpop.permute.xlu1 %573  ;;  %v778_v36 = vsel %vm562_vm4, %v772_v28, %v3673_v10 }
 0x11e   : > { %1012 = vrot.lane.b32.xlu0 %v3443_v44, %s3140_s20  ;;  %v586_v31 = vsel %vm585_vm5, %v574_v11, %v576_v8  ;;  %1512 = vmatprep.subr.bf16.mxu0 %v778_v36  ;;  %v871_v36 = vsel %vm867_vm6, %v3505_v22, %v3511_v23 }
 0x11f   : > { %957 = vrot.lane.b32.xlu1 %v3321_v12, %s3142_s12  ;;  %1438 = vmatpush1.bf16.msra.mxu1 %v586_v31 }
 0x120   : > { %v770_v37 = vpop.permute.xlu0 %769 }
 0x121   : > { %v3681_v32 = vpop.permute.xlu1 %906  ;;  %v777_v46 = vsel %vm562_vm4, %v770_v37, %v772_v28  ;;  %v870_v28 = vsel %vm867_vm6, %v3503_v21, %v3505_v22 }
 0x122   : > { %959 = vrot.lane.b32.xlu0 %v3325_v13, %s3142_s12  ;;  %1513 = vmatpush1.bf16.msra.mxu0 %v777_v46  ;;  %v885_v46 = vsel %vm884_vm7, %v3534_v38, %v3541_v41 }
 0x123   : > { %961 = vrot.lane.b32.xlu1 %v3329_v14, %s3142_s12 }
 0x124   : > { %v3686_v40 = vpop.permute.xlu0 %908 }
 0x125   : > { %v3688_v3 = vpop.permute.xlu1 %910 }
 0x126   : > { %1008 = vrot.lane.b32.xlu0 %v3453_v47, %s3140_s20 }
 0x127   : > { %1016 = vrot.lane.b32.xlu1 %v868_v53, %s3140_s20  ;;  %v886_v53 = vsel %vm884_vm7, %v3541_v41, %v3543_v42  ;;  %v888_v42 = vsel %vm884_vm7, %v3573_v63, %v3579_v18 }
 0x128   : > { %v582_v56 = vpop.permute.xlu0 %581 }
 0x129   : > { %v3699_v4 = vpop.permute.xlu1 %583 }
 0x12a   : > { %1018 = vrot.lane.b32.xlu0 %v869_v7, %s3140_s20  ;;  %v589_v58 = vsel %vm585_vm5, %v582_v56, %v3699_v4 }
 0x12b   : > { %963 = vrot.lane.b32.xlu1 %v3339_v15, %s3142_s12  ;;  %1439 = vmatprep.subr.bf16.mxu1 %v589_v58 }
 0x12c   : > { %v788_v47 = vpop.permute.xlu0 %787 }
 0x12d   : > { %v3705_v59 = vpop.permute.xlu1 %789 }
 0x12e   : > { %965 = vrot.lane.b32.xlu0 %v3343_v16, %s3142_s12  ;;  %v798_v61 = vsel %vm585_vm5, %v788_v47, %v3705_v59 }
 0x12f   : > { %967 = vrot.lane.b32.xlu1 %v3347_v17, %s3142_s12  ;;  %1514 = vmatprep.subr.bf16.mxu0 %v798_v61 }
 0x130   : > { %v580_v54 = vpop.permute.xlu0 %579 }
 0x131   : > { %v786_v55 = vpop.permute.xlu1 %785  ;;  %v588_v8 = vsel %vm585_vm5, %v580_v54, %v582_v56  ;;  %v887_v56 = vsel %vm884_vm7, %v3571_v62, %v3573_v63 }
 0x132   : > { %1014 = vrot.lane.b32.xlu0 %v3466_v52, %s3140_s20  ;;  %1440 = vmatpush1.bf16.msra.mxu1 %v588_v8  ;;  %v797_v1 = vsel %vm585_vm5, %v786_v55, %v788_v47 }
 0x133   : > { %1022 = vrot.lane.b32.xlu1 %v870_v28, %s3140_s20  ;;  %1515 = vmatpush1.bf16.msra.mxu0 %v797_v1 }
 0x134   : > { %v3719_v11 = vpop.permute.xlu0 %912 }
 0x135   : > { %v3724_v31 = vpop.permute.xlu1 %914 }
 0x136   : > { %1024 = vrot.lane.b32.xlu0 %v871_v36, %s3140_s20 }
 0x137   : > { %1020 = vrot.lane.b32.xlu1 %v3503_v21, %s3140_s20 }
 0x138   : > { %v3729_v52 = vpop.permute.xlu0 %916 }
 0x139   : > { %v599_v37 = vpop.permute.xlu1 %598 }
 0x13a   : > { %1028 = vrot.lane.b32.xlu0 %v885_v46, %s3140_s20 }
 0x13b   : > { %1030 = vrot.lane.b32.xlu1 %v886_v53, %s3140_s20 }
 0x13c   : > { %v3739_v22 = vpop.permute.xlu0 %600 }
 0x13d   : > { %v794_v23 = vpop.permute.xlu1 %793  ;;  %v610_v21 = vsel %vm608_vm8, %v599_v37, %v3739_v22 }
 0x13e   : > { %1026 = vrot.lane.b32.xlu0 %v3534_v38, %s3140_s20  ;;  %1441 = vmatprep.subr.bf16.mxu1 %v610_v21  ;;  %v920_v21 = vsel %vm918_vm10, %v3686_v40, %v3688_v3  ;;  %v922_v3 = vsel %vm918_vm10, %v3724_v31, %v3729_v52 }
 0x13f   : > { %1034 = vrot.lane.b32.xlu1 %v887_v56, %s3140_s20  ;;  %v921_v56 = vsel %vm918_vm10, %v3719_v11, %v3724_v31 }
 0x140   : > { %v3749_v41 = vpop.permute.xlu0 %795 }
 0x141   : > { %v597_v7 = vpop.permute.xlu1 %596  ;;  %v800_v58 = vsel %vm585_vm5, %v794_v23, %v3749_v41 }
 0x142   : > { %1036 = vrot.lane.b32.xlu0 %v888_v42, %s3140_s20  ;;  %v609_v38 = vsel %vm608_vm8, %v597_v7, %v599_v37  ;;  %1516 = vmatprep.subr.bf16.mxu0 %v800_v58 }
 0x143   : > { %976 = vrot.lane.b32.xlu1 %v3325_v13, %s3129_s11  ;;  %1442 = vmatpush1.bf16.msra.mxu1 %v609_v38  ;;  %v902_v13 = vsel %vm901_vm9, %v3607_v35, %v3615_v43 }
 0x144   : > { %v792_v47 = vpop.permute.xlu0 %791 }
 0x145   : > { %v3760_v61 = vpop.permute.xlu1 %923  ;;  %v799_v54 = vsel %vm585_vm5, %v792_v47, %v794_v23  ;;  %v919_v23 = vsel %vm918_vm10, %v3681_v32, %v3686_v40  ;;  %v3843_v47 = vld [vmem:[%s4558_s3 + $0x8] ss:$28 sps:$4 sm:$0xff]  }
 0x146   : > { %978 = vrot.lane.b32.xlu0 %v3329_v14, %s3129_s11  ;;  %1517 = vmatpush1.bf16.msra.mxu0 %v799_v54  ;;  %v903_v14 = vsel %vm901_vm9, %v3615_v43, %v3622_v50 }
 0x147   : > { %1032 = vrot.lane.b32.xlu1 %v3571_v62, %s3140_s20 }
 0x148   : > { %v3767_v63 = vpop.permute.xlu0 %925 }
 0x149   : > { %v928_v18 = vpop.permute.xlu1 %927  ;;  %v936_v31 = vsel %vm935_vm12, %v3760_v61, %v3767_v63 }
 0x14a   : > { %974 = vrot.lane.b32.xlu0 %v3321_v12, %s3129_s11  ;;  %v937_v54 = vsel %vm935_vm12, %v3767_v63, %v928_v18 }
 0x14b   : > { %1040 = vrot.lane.b32.xlu1 %v902_v13, %s3140_s20  ;;  %v3852_v13 = vld [vmem:[%s4558_s3 + $0x44] ss:$28 sps:$4 sm:$0xff]  }
 0x14c   : > { %v605_v55 = vpop.permute.xlu0 %604 }
 0x14d   : > { %v3778_v8 = vpop.permute.xlu1 %606 }
 0x14e   : > { %1042 = vrot.lane.b32.xlu0 %v903_v14, %s3140_s20  ;;  %v612_v62 = vsel %vm608_vm8, %v605_v55, %v3778_v8 }
 0x14f   : > { %982 = vrot.lane.b32.xlu1 %v3343_v16, %s3129_s11  ;;  %1443 = vmatprep.subr.bf16.mxu1 %v612_v62  ;;  %v904_v16 = vsel %vm901_vm9, %v3651_v19, %v3653_v25 }
 0x150   : > { %v810_v12 = vpop.permute.xlu0 %809 }
 0x151   : > { %v3785_v28 = vpop.permute.xlu1 %811 }
 0x152   : > { %984 = vrot.lane.b32.xlu0 %v3347_v17, %s3129_s11  ;;  %v820_v43 = vsel %vm608_vm8, %v810_v12, %v3785_v28 }
 0x153   : > { %1038 = vrot.lane.b32.xlu1 %v3607_v35, %s3140_s20  ;;  %1518 = vmatprep.subr.bf16.mxu0 %v820_v43  ;;  %v905_v35 = vsel %vm901_vm9, %v3653_v25, %v3659_v27 }
 0x154   : > { %v603_v50 = vpop.permute.xlu0 %602 }
 0x155   : > { %v808_v1 = vpop.permute.xlu1 %807  ;;  %v611_v36 = vsel %vm608_vm8, %v603_v50, %v605_v55  ;;  %v3875_v50 = vld [vmem:[%s4558_s3 + $0x7c] ss:$28 sps:$4 sm:$0xff]  }
 0x156   : > { %980 = vrot.lane.b32.xlu0 %v3339_v15, %s3129_s11  ;;  %1444 = vmatpush1.bf16.msra.mxu1 %v611_v36  ;;  %v819_v17 = vsel %vm608_vm8, %v808_v1, %v810_v12 }
 0x157   : > { %1046 = vrot.lane.b32.xlu1 %v904_v16, %s3140_s20  ;;  %1519 = vmatpush1.bf16.msra.mxu0 %v819_v17 }
 0x158   : > { %v930_v37 = vpop.permute.xlu0 %929 }
 0x159   : > { %v932_v46 = vpop.permute.xlu1 %931 }
 0x15a   : > { %1048 = vrot.lane.b32.xlu0 %v905_v35, %s3140_s20  ;;  %v938_v14 = vsel %vm935_vm12, %v930_v37, %v932_v46 }
 0x15b   : > { %1044 = vrot.lane.b32.xlu1 %v3651_v19, %s3140_s20 }
 0x15c   : > { %v934_v15 = vpop.permute.xlu0 %933 }
 0x15d   : > { %v622_v53 = vpop.permute.xlu1 %621  ;;  %v939_v18 = vsel %vm935_vm12, %v932_v46, %v934_v15  ;;  %v3891_v15 = vld [vmem:[%s4558_s3] ss:$28 sps:$4 sm:$0xff]  }
 0x15e   : > { %1052 = vrot.lane.b32.xlu0 %v919_v23, %s3140_s20 }
 0x15f   : > { %1054 = vrot.lane.b32.xlu1 %v920_v21, %s3140_s20  ;;  %v3903_v21 = vld [vmem:[%s4558_s3 + $0x3c] ss:$28 sps:$4 sm:$0xff]  }
 0x160   : > { %v3815_v25 = vpop.permute.xlu0 %623 }
 0x161   : > { %v816_v27 = vpop.permute.xlu1 %815  ;;  %v633_v19 = vsel %vm631_vm11, %v622_v53, %v3815_v25 }
 0x162   : > { %1050 = vrot.lane.b32.xlu0 %v3681_v32, %s3140_s20  ;;  %1445 = vmatprep.subr.bf16.mxu1 %v633_v19 }
 0x163   : > { %1058 = vrot.lane.b32.xlu1 %v921_v56, %s3140_s20  ;;  %v3078_v56 = vld [vmem:[%s3221_s19 + $0x8] ss:$12 sps:$4 sm:$0xff]  }
 0x164   : > { %v3825_v40 = vpop.permute.xlu0 %817 }
 0x165   : > { %v620_v42 = vpop.permute.xlu1 %619  ;;  %v822_v7 = vsel %vm608_vm8, %v816_v27, %v3825_v40 }
 0x166   : > { %1060 = vrot.lane.b32.xlu0 %v922_v3, %s3140_s20  ;;  %v632_v32 = vsel %vm631_vm11, %v620_v42, %v622_v53  ;;  %1520 = vmatprep.subr.bf16.mxu0 %v822_v7  ;;  %v3898_v53 = vld [vmem:[%s4558_s3 + $0x78] ss:$28 sps:$4 sm:$0xff]  }
 0x167   : > { %1056 = vrot.lane.b32.xlu1 %v3719_v11, %s3140_s20  ;;  %1446 = vmatpush1.bf16.msra.mxu1 %v632_v32  ;;  %v3914_v3 = vld [vmem:[%s4558_s3 + $0xb4] ss:$28 sps:$4 sm:$0xff]  }
 0x168   : > { %v814_v58 = vpop.permute.xlu0 %813 }
 0x169   : > { %v941_v38 = vpop.permute.xlu1 %940  ;;  %v821_v52 = vsel %vm608_vm8, %v814_v58, %v816_v27  ;;  %v3924_v58 = vld [vmem:[%s4558_s3 + $0x38] ss:$28 sps:$4 sm:$0xff]  }
 0x16a   : > { %1064 = vrot.lane.b32.xlu0 %v936_v31, %s3140_s20  ;;  %1521 = vmatpush1.bf16.msra.mxu0 %v821_v52  ;;  %v3936_v31 = vld [vmem:[%s4558_s3 + $0xb0] ss:$28 sps:$4 sm:$0xff]  }
 0x16b   : > { %1066 = vrot.lane.b32.xlu1 %v937_v54, %s3140_s20 }
 0x16c   : > { %v943_v11 = vpop.permute.xlu0 %942 }
 0x16d   : > { %v945_v55 = vpop.permute.xlu1 %944  ;;  %1523 = vmatmul.mubr.bf16.vlgmr.msra.gmra.mrb[0].mxu0 %v3843_v47  ;;  %v953_v36 = vsel %vm952_vm13, %v941_v38, %v943_v11 }
 0x16e   : > { %1062 = vrot.lane.b32.xlu0 %v3760_v61, %s3140_s20  ;;  %1532 = vmatprep.mubr.bf16.mxu0 %v3852_v13  ;;  %v3870_v61 = vld [vmem:[%s4558_s3 + $0x40] ss:$28 sps:$4 sm:$0xff]   ;;  %v954_v16 = vsel %vm952_vm13, %v943_v11, %v945_v55 }
 0x16f   : > { %1070 = vrot.lane.b32.xlu1 %v938_v14, %s3140_s20 }
 0x170   : > { %v628_v63 = vpop.permute.xlu0 %627 }
 0x171   : > { %v3861_v62 = vpop.permute.xlu1 %629 }
 0x172   : > { %1072 = vrot.lane.b32.xlu0 %v939_v18, %s3140_s20  ;;  %v635_v12 = vsel %vm631_vm11, %v628_v63, %v3861_v62 }
 0x173   : > { %1068 = vrot.lane.b32.xlu1 %v930_v37, %s3140_s20  ;;  %1447 = vmatprep.subr.bf16.mxu1 %v635_v12  ;;  %v3961_v12 = vld [vmem:[%s4558_s3 + $0xac] ss:$28 sps:$4 sm:$0xff]  }
 0x174   : > { %v993_v43 = vpop.permute.xlu0 %992 }
 0x175   : > { %v3877_v1 = vpop.permute.xlu1 %994  ;;  %1533 = vmatmul.mubr.bf16.gmra.mrb[4].mxu0 %v3870_v61 }
 0x176   : > { %1076 = vrot.lane.b32.xlu0 %v953_v36, %s3140_s20  ;;  %v1123_v17 = vsel %vm631_vm11, %v993_v43, %v3877_v1  ;;  %1542 = vmatprep.mubr.bf16.mxu0 %v3875_v50 }
 0x177   : > { %1078 = vrot.lane.b32.xlu1 %v954_v16, %s3140_s20  ;;  %1563 = vmatprep.subr.bf16.mxu0 %v1123_v17  ;;  %v3983_v17 = vld [vmem:[%s4558_s3 + $0xa8] ss:$28 sps:$4 sm:$0xff]  }
 0x178   : > { %v626_v37 = vpop.permute.xlu0 %625 }
 0x179   : > { %v947_v35 = vpop.permute.xlu1 %946  ;;  %v634_v46 = vsel %vm631_vm11, %v626_v37, %v628_v63  ;;  %v3954_v63 = vld [vmem:[%s4558_s3 + $0x70] ss:$28 sps:$4 sm:$0xff]  }
 0x17a   : > { %1074 = vrot.lane.b32.xlu0 %v941_v38, %s3140_s20  ;;  %1448 = vmatpush1.bf16.msra.mxu1 %v634_v46  ;;  %v3079_v38 = vld [vmem:[%s3221_s19 + $0x20] ss:$12 sps:$4 sm:$0xff]  }
 0x17b   : > { %2675 = vmatprep.subr.bf16.mxu1 %v3585_v0 }
 0x17c   : > { %v949_v23 = vpop.permute.xlu0 %948 }
 0x17d   : > { %v951_v27 = vpop.permute.xlu1 %950  ;;  %v955_v19 = vsel %vm952_vm13, %v947_v35, %v949_v23  ;;  %1450 = vmatmul.mubr.bf16.vlgmr.msra.gmra.mrb[0].mxu1 %v3891_v15  ;;  %1543 = vmatmul.mubr.bf16.gmra.mrb[8].mxu0 %v3898_v53 }
 0x17e   : > { %v956_v0 = vsel %vm952_vm13, %v949_v23, %v951_v27  ;;  %1082 = vrot.lane.b32.xlu1 %v955_v19, %s3140_s20  ;;  %2676 = vmatpush3.bf16.msra.mxu1 %v3078_v56  ;;  %v3081_v19 = vld [vmem:[%s3239_s18 + $0x4] ss:$12 sps:$4 sm:$0xff]  }
 0x17f   : > { %1084 = vrot.lane.b32.xlu0 %v956_v0, %s3140_s20  ;;  %2677 = vmatprep.subr.bf16.mxu1 %v3629_v5  ;;  %v3930_v5 = vld [vmem:[%s4558_s3 + $0x74] ss:$28 sps:$4 sm:$0xff]  }
 0x180   : > { %v991_v42 = vpop.permute.xlu0 %990  ;;  %1459 = vmatprep.mubr.bf16.mxu1 %v3903_v21  ;;  %1552 = vmatprep.mubr.bf16.mxu0 %v3914_v3 }
 0x181   : > { %v1122_v7 = vsel %vm631_vm11, %v991_v42, %v993_v43  ;;  %v999_v32 = vpop.permute.xlu1 %998  ;;  %v3082_v42 = vld [vmem:[%s3239_s18 + $0x8] ss:$12 sps:$4 sm:$0xff]  }
 0x182   : > { %1564 = vmatpush1.bf16.msra.mxu0 %v1122_v7  ;;  %1080 = vrot.lane.b32.xlu1 %v947_v35, %s3140_s20  ;;  %v3083_v7 = vld [vmem:[%s3228_s10 + $0x20] ss:$12 sps:$4 sm:$0xff]  }
 0x183   : > { %2678 = vmatpush3.bf16.msra.mxu1 %v3079_v38  ;;  %v3085_v38 = vld [vmem:[%s3239_s18 + $0x1c] ss:$12 sps:$4 sm:$0xff]  }
 0x184   : > { %2679 = vmatprep.subr.bf16.mxu1 %v3665_v9  ;;  %v3939_v52 = vpop.permute.xlu0 %1000 }
 0x185   : > { %v997_v54 = vpop.permute.xlu1 %996  ;;  %1460 = vmatmul.mubr.bf16.gmra.mrb[4].mxu1 %v3924_v58  ;;  %v1125_v11 = vsel %vm631_vm11, %v999_v32, %v3939_v52  ;;  %1553 = vmatmul.mubr.bf16.gmra.mrb[12].mxu0 %v3936_v31 }
 0x186   : > { %v1124_v55 = vsel %vm631_vm11, %v997_v54, %v999_v32  ;;  %1565 = vmatprep.subr.bf16.mxu0 %v1125_v11  ;;  %1469 = vmatprep.mubr.bf16.mxu1 %v3930_v5  ;;  %v3084_v32 = vld [vmem:[%s3239_s18] ss:$12 sps:$4 sm:$0xff]  }
 0x187   : > { %2680 = vmatpush3.bf16.msra.mxu1 %v3399_v29  ;;  %1566 = vmatpush1.bf16.msra.mxu0 %v1124_v55  ;;  %v3086_v55 = vld [vmem:[%s3239_s18 + $0x20] ss:$12 sps:$4 sm:$0xff]  }
 0x188   : > { %2681 = vmatprep.subr.bf16.mxu1 %v3699_v4  ;;  %v1005_v9 = vpop.permute.xlu0 %1004  ;;  %v3968_v4 = vld [vmem:[%s4558_s3 + $0x14] ss:$28 sps:$4 sm:$0xff]  }
 0x189   : > { %v3949_v14 = vpop.permute.xlu1 %1006  ;;  %1595 = vmatprep.mubr.bf16.mxu0 %v3968_v4 }
 0x18a   : > { %v1127_v18 = vsel %vm631_vm11, %v1005_v9, %v3949_v14 }
 0x18b   : > { %1567 = vmatprep.subr.bf16.mxu0 %v1127_v18  ;;  %2682 = vmatpush3.bf16.msra.mxu1 %v3430_v39 }
 0x18c   : > { %2683 = vmatprep.subr.bf16.mxu1 %v3739_v22  ;;  %v1003_v29 = vpop.permute.xlu0 %1002 }
 0x18d   : > { %v1126_v43 = vsel %vm631_vm11, %v1003_v29, %v1005_v9  ;;  %v1011_v36 = vpop.permute.xlu1 %1010  ;;  %1470 = vmatmul.mubr.bf16.gmra.mrb[8].mxu1 %v3954_v63  ;;  %v3087_v9 = vld [vmem:[%s3239_s18 + $0x18] ss:$12 sps:$4 sm:$0xff]  }
 0x18e   : > { %1568 = vmatpush1.bf16.msra.mxu0 %v1126_v43  ;;  %1479 = vmatprep.mubr.bf16.mxu1 %v3961_v12 }
 0x18f   : > { %2684 = vmatpush3.bf16.msra.mxu1 %v3458_v49 }
 0x190   : > { %2685 = vmatprep.subr.bf16.mxu1 %v3778_v8  ;;  %v3976_v39 = vpop.permute.xlu0 %1012 }
 0x191   : > { %v958_v22 = vpop.permute.xlu1 %957  ;;  %v1129_v16 = vsel %vm631_vm11, %v1011_v36, %v3976_v39 }
 0x192   : > { %1569 = vmatprep.subr.bf16.mxu0 %v1129_v16 }
 0x193   : > { %2686 = vmatpush3.bf16.msra.mxu1 %v3481_v57 }
 0x194   : > { %2687 = vmatprep.subr.bf16.mxu1 %v3815_v25  ;;  %v960_v49 = vpop.permute.xlu0 %959 }
 0x195   : > { %v970_v8 = vsel %vm969_vm14, %v958_v22, %v960_v49  ;;  %v962_v37 = vpop.permute.xlu1 %961  ;;  %1480 = vmatmul.mubr.bf16.gmra.mrb[12].mxu1 %v3983_v17 }
 0x196   : > { %v971_v35 = vsel %vm969_vm14, %v960_v49, %v962_v37  ;;  %1088 = vrot.lane.b32.xlu0 %v970_v8, %s3140_s20  ;;  %1741 = vmatprep.mubr.bf16.mxu1 %v3605_v33 }
 0x197   : > { %1090 = vrot.lane.b32.xlu1 %v971_v35, %s3140_s20  ;;  %2688 = vmatpush3.bf16.msra.mxu1 %v3517_v26 }
 0x198   : > { %2689 = vmatprep.subr.bf16.mxu1 %v3861_v62  ;;  %v1009_v57 = vpop.permute.xlu0 %1008 }
 0x199   : > { %v1128_v25 = vsel %vm631_vm11, %v1009_v57, %v1011_v36  ;;  %v1017_v46 = vpop.permute.xlu1 %1016  ;;  %v3143_v36 = vmov 0  }
 0x19a   : > { %1570 = vmatpush1.bf16.msra.mxu0 %v1128_v25  ;;  %1086 = vrot.lane.b32.xlu0 %v958_v22, %s3140_s20 }
 0x19b   : > { %2690 = vmatpush3.bf16.msra.mxu1 %v3549_v45  ;;  %2953 = vset.pattern.permute.xlu1 %v3143_v36 }
 0x19c   : > { %2715 = vmatprep.subr.bf16.mxu1 %v3557_v51  ;;  %v3999_v23 = vpop.permute.xlu0 %1018  ;;  %2952 = vset.pattern.permute.xlu0 %v3143_v36 }
 0x19d   : > { %v964_v33 = vpop.permute.xlu1 %963  ;;  %v1131_v27 = vsel %vm631_vm11, %v1017_v46, %v3999_v23 }
 0x19e   : > { %1571 = vmatprep.subr.bf16.mxu0 %v1131_v27  ;;  %1742 = vmatmul.mubr.bf16.vlgmr.msra.gmra.mrb[16].mxu1 %v3891_v15 }
 0x19f   : > { %2716 = vmatpush3.bf16.msra.mxu1 %v3384_v20  ;;  %1749 = vmatprep.mubr.bf16.mxu1 %v3903_v21  ;;  %v3080_v21 = vld [vmem:[%s3228_s10 + $0x8] ss:$12 sps:$4 sm:$0xff]  }
 0x1a0   : > { %2717 = vmatprep.subr.bf16.mxu1 %v3593_v2  ;;  %v966_v26 = vpop.permute.xlu0 %965 }
 0x1a1   : > { %v972_v45 = vsel %vm969_vm14, %v964_v33, %v966_v26  ;;  %v968_v51 = vpop.permute.xlu1 %967 }
 0x1a2   : > { %v973_v62 = vsel %vm969_vm14, %v966_v26, %v968_v51  ;;  %1094 = vrot.lane.b32.xlu1 %v972_v45, %s3140_s20 }
 0x1a3   : > { %1096 = vrot.lane.b32.xlu0 %v973_v62, %s3140_s20  ;;  %2718 = vmatpush3.bf16.msra.mxu1 %v3391_v24 }
 0x1a4   : > { %2719 = vmatprep.subr.bf16.mxu1 %v3637_v6  ;;  %v1015_v20 = vpop.permute.xlu0 %1014 }
 0x1a5   : > { %v1130_v15 = vsel %vm631_vm11, %v1015_v20, %v1017_v46  ;;  %v1023_v2 = vpop.permute.xlu1 %1022 }
 0x1a6   : > { %1572 = vmatpush1.bf16.msra.mxu0 %v1130_v15  ;;  %1092 = vrot.lane.b32.xlu1 %v964_v33, %s3140_s20 }
 0x1a7   : > { %2720 = vmatpush3.bf16.msra.mxu1 %v3080_v21  ;;  %1100 = vrot.lane.b32.xlu0 %v3081_v19, %s3140_s20 }
 0x1a8   : > { %2721 = vmatprep.subr.bf16.mxu1 %v3673_v10  ;;  %v4019_v24 = vpop.permute.xlu0 %1024  ;;  %1750 = vmatmul.mubr.bf16.gmra.mrb[20].mxu1 %v3924_v58 }
 0x1a9   : > { %v1021_v6 = vpop.permute.xlu1 %1020  ;;  %v1133_v0 = vsel %vm631_vm11, %v1023_v2, %v4019_v24  ;;  %1757 = vmatprep.mubr.bf16.mxu1 %v3930_v5 }
 0x1aa   : > { %v1132_v56 = vsel %vm631_vm11, %v1021_v6, %v1023_v2  ;;  %1573 = vmatprep.subr.bf16.mxu0 %v1133_v0  ;;  %1102 = vrot.lane.b32.xlu1 %v3082_v42, %s3140_s20  ;;  %v1970_v6 = vld [vmem:[%s4559_s4 + $0x8] sm:$0xff]  ;;  %v1969_v0 = vld [vmem:[%s4559_s4] sm:$0xff]  ;;  %v1971_v42 = vld [vmem:[%s4559_s4 + $0x10] sm:$0xff] }
 0x1ab   : > { %2722 = vmatpush3.bf16.msra.mxu1 %v3083_v7  ;;  %1574 = vmatpush1.bf16.msra.mxu0 %v1132_v56 }
 0x1ac   : > { %2723 = vmatprep.subr.bf16.mxu1 %v3705_v59  ;;  %v1029_v10 = vpop.permute.xlu0 %1028  ;;  %1098 = vrot.lane.b32.xlu0 %v3084_v32, %s3140_s20  ;;  %v1972_v32 = vld [vmem:[%s4559_s4 + $0x18] sm:$0xff] }
 0x1ad   : > { %v4032_v58 = vpop.permute.xlu1 %1030 }
 0x1ae   : > { %v1135_v5 = vsel %vm631_vm11, %v1029_v10, %v4032_v58  ;;  %1106 = vrot.lane.b32.xlu1 %v3085_v38, %s3140_s20 }
 0x1af   : > { %1575 = vmatprep.subr.bf16.mxu0 %v1135_v5  ;;  %2724 = vmatpush3.bf16.msra.mxu1 %v3415_v34 }
 0x1b0   : > { %2725 = vmatprep.subr.bf16.mxu1 %v3749_v41  ;;  %v1027_v54 = vpop.permute.xlu0 %1026  ;;  %1758 = vmatmul.mubr.bf16.gmra.mrb[24].mxu1 %v3954_v63 }
 0x1b1   : > { %v1134_v59 = vsel %vm631_vm11, %v1027_v54, %v1029_v10  ;;  %v1035_v11 = vpop.permute.xlu1 %1034  ;;  %1108 = vrot.lane.b32.xlu0 %v3086_v55, %s3140_s20  ;;  %1765 = vmatprep.mubr.bf16.mxu1 %v3961_v12 }
 0x1b2   : > { %1576 = vmatpush1.bf16.msra.mxu0 %v1134_v59  ;;  %1104 = vrot.lane.b32.xlu1 %v3087_v9, %s3140_s20  ;;  %v1973_v59 = vld [vmem:[%s4559_s4 + $0x20] sm:$0xff] }
 0x1b3   : > { %2726 = vmatpush3.bf16.msra.mxu1 %v3443_v44 }
 0x1b4   : > { %2727 = vmatprep.subr.bf16.mxu1 %v3785_v28  ;;  %v4049_v34 = vpop.permute.xlu0 %1036 }
 0x1b5   : > { %v977_v41 = vpop.permute.xlu1 %976  ;;  %v1137_v63 = vsel %vm631_vm11, %v1035_v11, %v4049_v34 }
 0x1b6   : > { %1577 = vmatprep.subr.bf16.mxu0 %v1137_v63  ;;  %v1975_v63 = vld [vmem:[%s4559_s4 + $0x30] sm:$0xff] }
 0x1b7   : > { %2728 = vmatpush3.bf16.msra.mxu1 %v3489_v60 }
 0x1b8   : > { %2729 = vmatprep.subr.bf16.mxu1 %v3825_v40  ;;  %v979_v18 = vpop.permute.xlu0 %978  ;;  %1766 = vmatmul.mubr.bf16.gmra.mrb[28].mxu1 %v3983_v17 }
 0x1b9   : > { %v987_v12 = vsel %vm493_vm1, %v977_v41, %v979_v18  ;;  %v1033_v29 = vpop.permute.xlu1 %1032  ;;  %1114 = vrot.lane.b32.xlu1 %v979_v18, %s3140_s20  ;;  %1806 = vmatprep.mubr.bf16.mxu1 %v3620_v48  ;;  %v1976_v18 = vld [vmem:[%s4559_s4 + $0x38] sm:$0xff] }
 0x1ba   : > { %v1136_v44 = vsel %vm631_vm11, %v1033_v29, %v1035_v11  ;;  %1112 = vrot.lane.b32.xlu0 %v987_v12, %s3140_s20  ;;  %v1974_v11 = vld [vmem:[%s4559_s4 + $0x28] sm:$0xff] }
 0x1bb   : > { %1578 = vmatpush1.bf16.msra.mxu0 %v1136_v44  ;;  %2730 = vmatpush3.bf16.msra.mxu1 %v3525_v30  ;;  %v2041_v44 = vld [vmem:[%s4560_s5] sm:$0xff] }
 0x1bc   : > { %v975_v60 = vpop.permute.xlu0 %974 }
 0x1bd   : > { %v986_v28 = vsel %vm493_vm1, %v975_v60, %v977_v41  ;;  %v1041_v40 = vpop.permute.xlu1 %1040  ;;  %v2042_v60 = vld [vmem:[%s4560_s5 + $0x8] sm:$0xff] }
 0x1be   : > { %1110 = vrot.lane.b32.xlu0 %v986_v28, %s3140_s20 }
 0x1c0   : > { %v4064_v43 = vpop.permute.xlu0 %1042  ;;  %1807 = vmatmul.mubr.bf16.vlgmr.msra.gmra.mrb[32].mxu1 %v3843_v47 }
 0x1c1   : > { %v983_v48 = vpop.permute.xlu1 %982  ;;  %2825 = vmatprep.subr.bf16.mxu1 %v4064_v43  ;;  %v1139_v22 = vsel %vm631_vm11, %v1041_v40, %v4064_v43  ;;  %1814 = vmatprep.mubr.bf16.mxu1 %v3852_v13 }
 0x1c2   : > { %1579 = vmatprep.subr.bf16.mxu0 %v1139_v22  ;;  %2833 = vmatpush3.bf16.msra.mxu1 %v3877_v1 }
 0x1c4   : > { %v985_v30 = vpop.permute.xlu0 %984 }
 0x1c5   : > { %v989_v16 = vsel %vm493_vm1, %v983_v48, %v985_v30  ;;  %v1039_v47 = vpop.permute.xlu1 %1038  ;;  %1120 = vrot.lane.b32.xlu0 %v985_v30, %s3140_s20  ;;  %v2139_v30 = vlaneseq }
 0x1c6   : > { %v1138_v17 = vsel %vm631_vm11, %v1039_v47, %v1041_v40  ;;  %1118 = vrot.lane.b32.xlu1 %v989_v16, %s3140_s20  ;;  %v3062_v40 = vld [vmem:[%s4558_s3 + $0x48] ss:$28 sps:$4 sm:$0xff]   ;;  %v4179_v47 = vld [vmem:[%s4558_s3 + $0x10] ss:$28 sps:$4 sm:$0xff]  }
 0x1c7   : > { %1580 = vmatpush1.bf16.msra.mxu0 %v1138_v17  ;;  %v2043_v17 = vld [vmem:[%s4560_s5 + $0x10] sm:$0xff] }
 0x1c8   : > { %v981_v49 = vpop.permute.xlu0 %980  ;;  %1815 = vmatmul.mubr.bf16.gmra.mrb[36].mxu1 %v3870_v61 }
 0x1c9   : > { %v988_v13 = vsel %vm493_vm1, %v981_v49, %v983_v48  ;;  %v1047_v8 = vpop.permute.xlu1 %1046  ;;  %1822 = vmatprep.mubr.bf16.mxu1 %v3875_v50  ;;  %1979 = vperm.xlu0 %2952, %v1969_v0   ;;  %v3068_v48 = vld [vmem:[%s4558_s3 + $0x84] ss:$28 sps:$4 sm:$0xff]   ;;  %v2044_v49 = vld [vmem:[%s4560_s5 + $0x18] sm:$0xff] }
 0x1ca   : > { %1116 = vrot.lane.b32.xlu1 %v988_v13, %s3140_s20  ;;  %v2140_v13 = vshrl.u32 %v2139_v30, 7 }
 0x1cc   : > { %v4082_v37 = vpop.permute.xlu0 %1048 }
 0x1cd   : > { %v1045_v35 = vpop.permute.xlu1 %1044  ;;  %2826 = vmatprep.subr.bf16.mxu1 %v4082_v37  ;;  %v1141_v57 = vsel %vm631_vm11, %v1047_v8, %v4082_v37  ;;  %1994 = vperm.xlu0 %2952, %v1972_v32  }
 0x1ce   : > { %v1140_v25 = vsel %vm631_vm11, %v1045_v35, %v1047_v8  ;;  %1581 = vmatprep.subr.bf16.mxu0 %v1141_v57  ;;  %2834 = vmatpush3.bf16.msra.mxu1 %v3939_v52  ;;  %v2045_v8 = vld [vmem:[%s4560_s5 + $0x20] sm:$0xff]  ;;  %v2046_v35 = vld [vmem:[%s4560_s5 + $0x28] sm:$0xff] }
 0x1cf   : > { %1582 = vmatpush1.bf16.msra.mxu0 %v1140_v25  ;;  %1984 = vperm.xlu1 %2953, %v1970_v6   ;;  %v3070_v57 = vld [vmem:[%s4558_s3 + $0x80] ss:$28 sps:$4 sm:$0xff]  }
 0x1d0   : > { %v1053_v61 = vpop.permute.xlu0 %1052  ;;  %1823 = vmatmul.mubr.bf16.gmra.mrb[40].mxu1 %v3898_v53  ;;  %v4101_v53 = vld [vmem:[%s4558_s3 + $0x4c] ss:$28 sps:$4 sm:$0xff]   ;;  %v3071_v25 = vld [vmem:[%s4558_s3 + $0xbc] ss:$28 sps:$4 sm:$0xff]  }
 0x1d1   : > { %v4090_v50 = vpop.permute.xlu1 %1054  ;;  %1830 = vmatprep.mubr.bf16.mxu1 %v3914_v3  ;;  %2004 = vperm.xlu0 %2952, %v1974_v11  }
 0x1d2   : > { %2827 = vmatprep.subr.bf16.mxu1 %v4090_v50  ;;  %v1143_v46 = vsel %vm631_vm11, %v1053_v61, %v4090_v50 }
 0x1d3   : > { %1583 = vmatprep.subr.bf16.mxu0 %v1143_v46  ;;  %2835 = vmatpush3.bf16.msra.mxu1 %v3949_v14  ;;  %v2145_v46 = vsub.s32 1, %v2140_v13 }
 0x1d4   : > { %v1051_v33 = vpop.permute.xlu0 %1050  ;;  %1989 = vperm.xlu1 %2953, %v1971_v42  }
 0x1d5   : > { %v1142_v27 = vsel %vm631_vm11, %v1051_v33, %v1053_v61  ;;  %v1059_v26 = vpop.permute.xlu1 %1058  ;;  %2014 = vperm.xlu0 %2952, %v1976_v18   ;;  %v2149_v61 = vsub.s32 2, %v2140_v13  ;;  %v2047_v33 = vld [vmem:[%s4560_s5 + $0x30] sm:$0xff] }
 0x1d6   : > { %1584 = vmatpush1.bf16.msra.mxu0 %v1142_v27  ;;  %v2048_v27 = vld [vmem:[%s4560_s5 + $0x38] sm:$0xff] }
 0x1d8   : > { %v4103_v45 = vpop.permute.xlu0 %1060  ;;  %1831 = vmatmul.mubr.bf16.gmra.mrb[44].mxu1 %v3936_v31  ;;  %1999 = vperm.xlu1 %2953, %v1973_v59  }
 0x1d9   : > { %v1057_v3 = vpop.permute.xlu1 %1056  ;;  %2828 = vmatprep.subr.bf16.mxu1 %v4103_v45  ;;  %v1145_v51 = vsel %vm631_vm11, %v1059_v26, %v4103_v45  ;;  %1879 = vmatprep.mubr.bf16.mxu1 %v4101_v53 }
 0x1da   : > { %v1144_v62 = vsel %vm631_vm11, %v1057_v3, %v1059_v26  ;;  %1585 = vmatprep.subr.bf16.mxu0 %v1145_v51  ;;  %2836 = vmatpush3.bf16.msra.mxu1 %v3976_v39  ;;  %v2137_v26 = vld [vmem:[%s4561_s6] sm:$0x7]  ;;  %v2141_v51 = vsub.s32 0, %v2140_v13  ;;  %v3076_v13 = vld [vmem:[%s4558_s3 + $0x88] ss:$28 sps:$4 sm:$0xff]  }
 0x1db   : > { %1586 = vmatpush1.bf16.msra.mxu0 %v1144_v62  ;;  %2056 = vperm.xlu0 %2952, %v2042_v60   ;;  %v2146_v3 = vrot.slane %v2137_v26, %v2145_v46  ;;  %v3073_v62 = vld [vmem:[%s4558_s3 + $0xb8] ss:$28 sps:$4 sm:$0xff]  }
 0x1dc   : > { %v1065_v20 = vpop.permute.xlu0 %1064  ;;  %2009 = vperm.xlu1 %2953, %v1975_v63  }
 0x1dd   : > { %v4112_v15 = vpop.permute.xlu1 %1066 }
 0x1de   : > { %2829 = vmatprep.subr.bf16.mxu1 %v4112_v15  ;;  %v1147_v31 = vsel %vm631_vm11, %v1065_v20, %v4112_v15 }
 0x1df   : > { %1587 = vmatprep.subr.bf16.mxu0 %v1147_v31  ;;  %2837 = vmatpush3.bf16.msra.mxu1 %v3999_v23  ;;  %v2142_v31 = vrot.slane %v2137_v26, %v2141_v51 }
 0x1e0   : > { %v1063_v2 = vpop.permute.xlu0 %1062  ;;  %2051 = vperm.xlu1 %2953, %v2041_v44   ;;  %2066 = vperm.xlu0 %2952, %v2044_v49  }
 0x1e1   : > { %v1146_v21 = vsel %vm631_vm11, %v1063_v2, %v1065_v20  ;;  %v1071_v19 = vpop.permute.xlu1 %1070  ;;  %v4216_v20 = vld [vmem:[%s4558_s3 + $0x18] ss:$28 sps:$4 sm:$0xff]  }
 0x1e2   : > { %1588 = vmatpush1.bf16.msra.mxu0 %v1146_v21 }
 0x1e4   : > { %v4125_v56 = vpop.permute.xlu0 %1072  ;;  %2061 = vperm.xlu1 %2953, %v2043_v17   ;;  %2076 = vperm.xlu0 %2952, %v2046_v35   ;;  %v3075_v17 = vld [vmem:[%s4558_s3 + $0x50] ss:$28 sps:$4 sm:$0xff]  }
 0x1e5   : > { %v1069_v7 = vpop.permute.xlu1 %1068  ;;  %2830 = vmatprep.subr.bf16.mxu1 %v4125_v56  ;;  %v1149_v10 = vsel %vm631_vm11, %v1071_v19, %v4125_v56 }
 0x1e6   : > { %v1148_v5 = vsel %vm631_vm11, %v1069_v7, %v1071_v19  ;;  %1589 = vmatprep.subr.bf16.mxu0 %v1149_v10  ;;  %2838 = vmatpush3.bf16.msra.mxu1 %v4019_v24 }
 0x1e7   : > { %1590 = vmatpush1.bf16.msra.mxu0 %v1148_v5 }
 0x1e8   : > { %v1077_v38 = vpop.permute.xlu0 %1076  ;;  %2071 = vperm.xlu1 %2953, %v2045_v8   ;;  %2086 = vperm.xlu0 %2952, %v2048_v27  }
 0x1e9   : > { %v4138_v54 = vpop.permute.xlu1 %1078 }
 0x1ea   : > { %2831 = vmatprep.subr.bf16.mxu1 %v4138_v54  ;;  %v1151_v55 = vsel %vm631_vm11, %v1077_v38, %v4138_v54 }
 0x1eb   : > { %1591 = vmatprep.subr.bf16.mxu0 %v1151_v55  ;;  %2839 = vmatpush3.bf16.msra.mxu1 %v4032_v58 }
 0x1ec   : > { %v1075_v9 = vpop.permute.xlu0 %1074  ;;  %2081 = vperm.xlu1 %2953, %v2047_v33  }
 0x1ed   : > { %v1150_v41 = vsel %vm631_vm11, %v1075_v9, %v1077_v38 }
 0x1ee   : > { %1592 = vmatpush1.bf16.msra.mxu0 %v1150_v41 }
 0x1f0   : > { %v1083_v12 = vpop.permute.xlu1 %1082  ;;  %2153 = vrot.lane.b32.xlu1 %v2146_v3, %s3134_s14 }
 0x1f1   : > { %v4157_v29 = vpop.permute.xlu0 %1084 }
 0x1f2   : > { %2832 = vmatprep.subr.bf16.mxu1 %v4157_v29  ;;  %v1153_v28 = vsel %vm631_vm11, %v1083_v12, %v4157_v29 }
 0x1f3   : > { %1593 = vmatprep.subr.bf16.mxu0 %v1153_v28  ;;  %2840 = vmatpush3.bf16.msra.mxu1 %v4049_v34 }
 0x1f4   : > { %v1081_v22 = vpop.permute.xlu1 %1080  ;;  %2151 = vrot.lane.b32.xlu1 %v2142_v31, %s3134_s14 }
 0x1f5   : > { %v1152_v16 = vsel %vm631_vm11, %v1081_v22, %v1083_v12 }
 0x1f6   : > { %1594 = vmatpush1.bf16.msra.mxu0 %v1152_v16  ;;  %1880 = vmatmul.mubr.bf16.vlgmr.msra.gmra.mrb[48].mxu1 %v3062_v40 }
 0x1f7   : > { %1887 = vmatprep.mubr.bf16.mxu1 %v3068_v48 }
 0x1f9   : > { %1596 = vmatmul.mubr.bf16.vlgmr.msra.gmra.mrb[0].mxu0 %v4179_v47 }
 0x1fa   : > { %1605 = vmatprep.mubr.bf16.mxu0 %v4101_v53  ;;  %v2150_v53 = vrot.slane %v2137_v26, %v2149_v61 }
 0x1fc   : > { %2155 = vrot.lane.b32.xlu0 %v2150_v53, %s3134_s14 }
 0x1fe   : > { %1888 = vmatmul.mubr.bf16.gmra.mrb[52].mxu1 %v3070_v57 }
 0x1ff   : > { %1895 = vmatprep.mubr.bf16.mxu1 %v3071_v25 }
 0x201   : > { %1606 = vmatmul.mubr.bf16.gmra.mrb[4].mxu0 %v3062_v40 }
 0x202   : > { %1615 = vmatprep.mubr.bf16.mxu0 %v3068_v48 }
 0x206   : > { %1896 = vmatmul.mubr.bf16.gmra.mrb[56].mxu1 %v3073_v62 }
 0x207   : > { %2817 = vmatprep.mubr.msk.bf16.mxu1 %vm1404_vm15, %v4216_v20 }
 0x208   : > { %v1089_v2 = vpop.permute.xlu0 %1088 }
 0x209   : > { %v1091_v21 = vpop.permute.xlu1 %1090  ;;  %1616 = vmatmul.mubr.bf16.gmra.mrb[8].mxu0 %v3070_v57  ;;  %v3077_v57 = vld [vmem:[%s4558_s3 + $0xc0] ss:$28 sps:$4 sm:$0xff]  }
 0x20a   : > { %2805 = vmatprep.subr.bf16.mxu1 %v1091_v21  ;;  %v1155_v19 = vsel %vm631_vm11, %v1089_v2, %v1091_v21  ;;  %1625 = vmatprep.mubr.bf16.mxu0 %v3071_v25 }
 0x20b   : > { %1636 = vmatprep.subr.bf16.mxu0 %v1155_v19  ;;  %2806 = vmatpush3.bf16.msra.mxu1 %v1091_v21 }
 0x20c   : > { %v1087_v6 = vpop.permute.xlu0 %1086 }
 0x20d   : > { %v1154_v0 = vsel %vm631_vm11, %v1087_v6, %v1089_v2 }
 0x20e   : > { %1637 = vmatpush1.bf16.msra.mxu0 %v1154_v0 }
 0x211   : > { %1626 = vmatmul.mubr.bf16.gmra.mrb[12].mxu0 %v3073_v62 }
 0x212   : > { %1668 = vmatprep.mubr.bf16.mxu0 %v3143_v36 }
 0x214   : > { %v1095_v42 = vpop.permute.xlu1 %1094 }
 0x215   : > { %v1097_v7 = vpop.permute.xlu0 %1096 }
 0x216   : > { %2807 = vmatprep.subr.bf16.mxu1 %v1097_v7  ;;  %v1157_v10 = vsel %vm631_vm11, %v1095_v42, %v1097_v7 }
 0x217   : > { %1638 = vmatprep.subr.bf16.mxu0 %v1157_v10  ;;  %2808 = vmatpush3.bf16.msra.mxu1 %v1097_v7 }
 0x218   : > { %v1093_v32 = vpop.permute.xlu1 %1092 }
 0x219   : > { %v1156_v5 = vsel %vm631_vm11, %v1093_v32, %v1095_v42  ;;  %v1101_v38 = vpop.permute.xlu0 %1100 }
 0x21a   : > { %1639 = vmatpush1.bf16.msra.mxu0 %v1156_v5 }
 0x21c   : > { %v1103_v59 = vpop.permute.xlu1 %1102 }
 0x21d   : > { %2809 = vmatprep.subr.bf16.mxu1 %v1103_v59  ;;  %v1159_v11 = vsel %vm631_vm11, %v1101_v38, %v1103_v59 }
 0x21e   : > { %v1099_v55 = vpop.permute.xlu0 %1098  ;;  %2810 = vmatpush3.bf16.msra.mxu1 %v1103_v59  ;;  %1640 = vmatprep.subr.bf16.mxu0 %v1159_v11 }
 0x21f   : > { %v1158_v9 = vsel %vm631_vm11, %v1099_v55, %v1101_v38 }
 0x220   : > { %v1107_v41 = vpop.permute.xlu1 %1106  ;;  %1641 = vmatpush1.bf16.msra.mxu0 %v1158_v9 }
 0x223   : > { %v1109_v63 = vpop.permute.xlu0 %1108 }
 0x224   : > { %v1105_v18 = vpop.permute.xlu1 %1104  ;;  %2811 = vmatprep.subr.bf16.mxu1 %v1109_v63  ;;  %v1161_v12 = vsel %vm631_vm11, %v1107_v41, %v1109_v63 }
 0x225   : > { %v1160_v44 = vsel %vm631_vm11, %v1105_v18, %v1107_v41  ;;  %2812 = vmatpush3.bf16.msra.mxu1 %v1109_v63  ;;  %1642 = vmatprep.subr.bf16.mxu0 %v1161_v12 }
 0x226   : > { %1643 = vmatpush1.bf16.msra.mxu0 %v1160_v44 }
 0x22b   : > { %v1115_v60 = vpop.permute.xlu1 %1114 }
 0x22c   : > { %v1113_v28 = vpop.permute.xlu0 %1112  ;;  %2813 = vmatprep.subr.bf16.mxu1 %v1115_v60 }
 0x22d   : > { %2814 = vmatpush3.bf16.msra.mxu1 %v1115_v60  ;;  %v1163_v40 = vsel %vm631_vm11, %v1113_v28, %v1115_v60 }
 0x22e   : > { %1644 = vmatprep.subr.bf16.mxu0 %v1163_v40 }
 0x230   : > { %v1111_v48 = vpop.permute.xlu0 %1110 }
 0x231   : > { %v1162_v22 = vsel %vm631_vm11, %v1111_v48, %v1113_v28 }
 0x232   : > { %1645 = vmatpush1.bf16.msra.mxu0 %v1162_v22 }
 0x237   : > { %v1121_v30 = vpop.permute.xlu0 %1120 }
 0x238   : > { %v1119_v16 = vpop.permute.xlu1 %1118  ;;  %2815 = vmatprep.subr.bf16.mxu1 %v1121_v30 }
 0x239   : > { %2816 = vmatpush3.bf16.msra.mxu1 %v1121_v30  ;;  %v1165_v49 = vsel %vm631_vm11, %v1119_v16, %v1121_v30 }
 0x23a   : > { %1646 = vmatprep.subr.bf16.mxu0 %v1165_v49 }
 0x23c   : > { %v1117_v8 = vpop.permute.xlu1 %1116  ;;  %2818 = vmatmul.mubr.msk.bf16.vlgmr.msra.gmra.mrb[60].mxu1 %vm1404_vm15, %v3075_v17 }
 0x23d   : > { %v1164_v35 = vsel %vm631_vm11, %v1117_v8, %v1119_v16  ;;  %2821 = vmatprep.mubr.msk.bf16.mxu1 %vm1404_vm15, %v3076_v13 }
 0x23e   : > { %1647 = vmatpush1.bf16.msra.mxu0 %v1164_v35 }
 0x23f   : > { %2755 = vmatprep.subr.bf16.mxu0 %v4064_v43 }
 0x241   : > { %2633 = vmatmul.mubr.msk.bf16.vlgmr.msra.gmra.mrb[0].mxu0 %vm1404_vm15, %v4216_v20 }
 0x242   : > { %2756 = vmatpush3.bf16.msra.mxu0 %v3877_v1  ;;  %1678 = vmatprep.mubr.bf16.mxu0 %v3143_v36 }
 0x243   : > { %2757 = vmatprep.subr.bf16.mxu0 %v4082_v37 }
 0x244   : > { %2822 = vmatmul.mubr.msk.bf16.gmra.mrb[64].mxu1 %vm1404_vm15, %v3077_v57 }
 0x246   : > { %2758 = vmatpush3.bf16.msra.mxu0 %v3939_v52 }
 0x247   : > { %2759 = vmatprep.subr.bf16.mxu0 %v4090_v50 }
 0x249   : > { %2634 = vmatmul.mubr.msk.bf16.gmra.mrb[4].mxu0 %vm1404_vm15, %v3075_v17 }
 0x24a   : > { %2760 = vmatpush3.bf16.msra.mxu0 %v3949_v14  ;;  %1688 = vmatprep.mubr.bf16.mxu0 %v3143_v36 }
 0x24b   : > { %2761 = vmatprep.subr.bf16.mxu0 %v4103_v45 }
 0x24e   : > { %2762 = vmatpush3.bf16.msra.mxu0 %v3976_v39 }
 0x24f   : > { %2763 = vmatprep.subr.bf16.mxu0 %v4112_v15 }
 0x250   : > { %v4262_v1 = vpop.f32.mrb[0].mxu1 }
 0x251   : > { %2635 = vmatmul.mubr.msk.bf16.gmra.mrb[8].mxu0 %vm1404_vm15, %v3076_v13  ;;  %v4265_v43 = vpop.f32.mrb[1].mxu1 }
 0x252   : > { %2764 = vmatpush3.bf16.msra.mxu0 %v3999_v23  ;;  %1698 = vmatprep.mubr.bf16.mxu0 %v3143_v36  ;;  %v4269_v52 = vpop.f32.mrb[2].mxu1 }
 0x253   : > { %2765 = vmatprep.subr.bf16.mxu0 %v4125_v56  ;;  %v4272_v14 = vpop.f32.mrb[3].mxu1 }
 0x256   : > { %2766 = vmatpush3.bf16.msra.mxu0 %v4019_v24 }
 0x257   : > { %2767 = vmatprep.subr.bf16.mxu0 %v4138_v54 }
 0x258   : > { %v4276_v39 = vpop.f32.mrb[4].mxu1 }
 0x259   : > { %2636 = vmatmul.mubr.msk.bf16.gmra.mrb[12].mxu0 %vm1404_vm15, %v3077_v57  ;;  %v4279_v37 = vpop.f32.mrb[5].mxu1 }
 0x25a   : > { %2768 = vmatpush3.bf16.msra.mxu0 %v4032_v58  ;;  %1871 = vmatprep.mubr.bf16.mxu0 %v3968_v4  ;;  %v4283_v23 = vpop.f32.mrb[6].mxu1 }
 0x25b   : > { %2769 = vmatprep.subr.bf16.mxu0 %v4157_v29  ;;  %v4286_v36 = vpop.f32.mrb[7].mxu1 }
 0x25e   : > { %2770 = vmatpush3.bf16.msra.mxu0 %v4049_v34 }
 0x260   : > { %v4289_v24 = vpop.f32.mrb[8].mxu1 }
 0x261   : > { %1872 = vmatmul.mubr.bf16.vlgmr.msra.gmra.mrb[16].mxu0 %v4179_v47  ;;  %v4292_v50 = vpop.f32.mrb[9].mxu1 }
 0x262   : > { %v4294_v45 = vpop.f32.mrb[10].mxu1 }
 0x263   : > { %v4296_v15 = vpop.f32.mrb[11].mxu1 }
 0x268   : > { %v4298_v58 = vpop.f32.mrb[12].mxu1 }
 0x269   : > { %v4300_v4 = vpop.f32.mrb[13].mxu1 }
 0x26a   : > { %v4302_v56 = vpop.f32.mrb[14].mxu1 }
 0x26b   : > { %v4304_v54 = vpop.f32.mrb[15].mxu1 }
 0x271   : > { %v2691_v29 = vpop.f32.mrb[16].mxu1 }
 0x272   : > { %v2692_v34 = vpop.f32.mrb[17].mxu1 }
 0x273   : > { %v2693_v25 = vadd.f32 %v2692_v34, %v2691_v29  ;;  %v2694_v61 = vpop.f32.mrb[18].mxu1 }
 0x274   : > { %v2695_v46 = vpop.f32.mrb[19].mxu1 }
 0x275   : > { %v2696_v47 = vadd.f32 %v2695_v46, %v2694_v61 }
 0x27b   : > { %v2697_v33 = vpop.f32.mrb[20].mxu1 }
 0x27c   : > { %v2698_v27 = vpop.f32.mrb[21].mxu1 }
 0x27d   : > { %v2699_v26 = vadd.f32 %v2698_v27, %v2697_v33  ;;  %v2700_v53 = vpop.f32.mrb[22].mxu1 }
 0x27e   : > { %v2701_v3 = vpop.f32.mrb[23].mxu1 }
 0x27f   : > { %v2702_v51 = vadd.f32 %v2701_v3, %v2700_v53 }
 0x283   : > { %v2703_v62 = vpop.f32.mrb[24].mxu1 }
 0x284   : > { %v2704_v20 = vpop.f32.mrb[25].mxu1 }
 0x285   : > { %v2705_v31 = vadd.f32 %v2704_v20, %v2703_v62  ;;  %v2706_v2 = vpop.f32.mrb[26].mxu1 }
 0x286   : > { %v2707_v21 = vpop.f32.mrb[27].mxu1 }
 0x287   : > { %v2708_v19 = vadd.f32 %v2707_v21, %v2706_v2 }
 0x28b   : > { %v2709_v6 = vpop.f32.mrb[28].mxu1 }
 0x28c   : > { %v2710_v0 = vpop.f32.mrb[29].mxu1 }
 0x28d   : > { %v2711_v42 = vadd.f32 %v2710_v0, %v2709_v6  ;;  %v2712_v7 = vpop.f32.mrb[30].mxu1 }
 0x28e   : > { %v2713_v10 = vpop.f32.mrb[31].mxu1 }
 0x28f   : > { %v2714_v32 = vadd.f32 %v2713_v10, %v2712_v7 }
 0x293   : > { %v2731_v5 = vpop.f32.mrb[32].mxu1 }
 0x294   : > { %v2732_v38 = vpop.f32.mrb[33].mxu1 }
 0x295   : > { %v2733_v59 = vadd.f32 %v2732_v38, %v2731_v5  ;;  %v2734_v11 = vpop.f32.mrb[34].mxu1 }
 0x296   : > { %v2735_v55 = vpop.f32.mrb[35].mxu1 }
 0x297   : > { %v4306_v9 = vadd.f32 %v2733_v59, %v2693_v25  ;;  %v2736_v41 = vadd.f32 %v2735_v55, %v2734_v11 }
 0x299   : > { %v4308_v63 = vadd.f32 %v2736_v41, %v2696_v47 }
 0x29b   : > { %v2737_v18 = vpop.f32.mrb[36].mxu1 }
 0x29c   : > { %v2738_v12 = vpop.f32.mrb[37].mxu1 }
 0x29d   : > { %v2739_v44 = vadd.f32 %v2738_v12, %v2737_v18  ;;  %v2740_v60 = vpop.f32.mrb[38].mxu1 }
 0x29e   : > { %v2741_v28 = vpop.f32.mrb[39].mxu1 }
 0x29f   : > { %v1817_v40 = vadd.f32 %v2739_v44, %v2699_v26  ;;  %v2742_v48 = vadd.f32 %v2741_v28, %v2740_v60  ;;  %v4310_v44 = vpop.permute.xlu1 %1984  ;;  %v4314_v28 = vpop.permute.xlu0 %1979 }
 0x2a1   : > { %v1820_v22 = vadd.f32 %v2742_v48, %v2702_v51 }
 0x2a3   : > { %v2743_v30 = vpop.f32.mrb[40].mxu1  ;;  %v4312_v60 = vpop.permute.xlu1 %1989 }
 0x2a4   : > { %v2744_v16 = vpop.f32.mrb[41].mxu1  ;;  %v4318_v48 = vpop.permute.xlu0 %1994 }
 0x2a5   : > { %v2745_v17 = vadd.f32 %v2744_v16, %v2743_v30  ;;  %v2746_v49 = vpop.f32.mrb[42].mxu1 }
 0x2a6   : > { %v2747_v13 = vpop.f32.mrb[43].mxu1 }
 0x2a7   : > { %v1825_v8 = vadd.f32 %v2745_v17, %v2705_v31  ;;  %v2748_v35 = vadd.f32 %v2747_v13, %v2746_v49 }
 0x2a8   : > { %v4322_v30 = vpop.permute.xlu0 %2004 }
 0x2a9   : > { %v1828_v57 = vadd.f32 %v2748_v35, %v2708_v19 }
 0x2ab   : > { %v2749_v29 = vpop.f32.mrb[44].mxu1 }
 0x2ac   : > { %v2750_v34 = vpop.f32.mrb[45].mxu1  ;;  %v4326_v17 = vpop.permute.xlu0 %2014 }
 0x2ad   : > { %v2751_v25 = vadd.f32 %v2750_v34, %v2749_v29  ;;  %v2752_v61 = vpop.f32.mrb[46].mxu1 }
 0x2ae   : > { %v2753_v46 = vpop.f32.mrb[47].mxu1 }
 0x2af   : > { %v1833_v47 = vadd.f32 %v2751_v25, %v2711_v42  ;;  %v2754_v33 = vadd.f32 %v2753_v46, %v2752_v61 }
 0x2b0   : > { %v4328_v13 = vpop.permute.xlu0 %2056 }
 0x2b1   : > { %v1836_v27 = vadd.f32 %v2754_v33, %v2714_v32 }
 0x2b4   : > { %v4332_v35 = vpop.permute.xlu0 %2066 }
 0x2b8   : > { %v4340_v33 = vpop.permute.xlu0 %2076 }
 0x2c9   : > { %v2777_v53 = vpop.f32.mrb[48].mxu1 }
 0x2ca   : > { %v2778_v26 = vpop.f32.mrb[49].mxu1 }
 0x2cb   : > { %v2779_v3 = vadd.f32 %v2778_v26, %v2777_v53  ;;  %v2780_v51 = vpop.f32.mrb[50].mxu1 }
 0x2cc   : > { %v2781_v62 = vpop.f32.mrb[51].mxu1 }
 0x2cd   : > { %v2782_v20 = vadd.f32 %v2781_v62, %v2780_v51  ;;  %v1882_v2 = vadd.f32 %v2779_v3, %v1817_v40  ;;  %v4316_v40 = vpop.permute.xlu1 %1999 }
 0x2cf   : > { %v1885_v21 = vadd.f32 %v2782_v20, %v1820_v22 }
 0x2d1   : > { %v2783_v6 = vpop.f32.mrb[52].mxu1  ;;  %v4320_v22 = vpop.permute.xlu1 %2009 }
 0x2d2   : > { %v2784_v31 = vpop.f32.mrb[53].mxu1 }
 0x2d3   : > { %v2785_v0 = vadd.f32 %v2784_v31, %v2783_v6  ;;  %v2786_v19 = vpop.f32.mrb[54].mxu1 }
 0x2d4   : > { %v2787_v7 = vpop.f32.mrb[55].mxu1 }
 0x2d5   : > { %v2788_v10 = vadd.f32 %v2787_v7, %v2786_v19  ;;  %v1890_v5 = vadd.f32 %v2785_v0, %v1825_v8  ;;  %v4324_v16 = vpop.permute.xlu1 %2051 }
 0x2d7   : > { %v1893_v38 = vadd.f32 %v2788_v10, %v1828_v57  ;;  %v4351_v10 = vpop.permute.xlu0 %2086 }
 0x2d9   : > { %v2789_v59 = vpop.f32.mrb[56].mxu1  ;;  %v2062_v49 = vpop.permute.xlu1 %2061 }
 0x2da   : > { %v2790_v42 = vpop.f32.mrb[57].mxu1 }
 0x2db   : > { %v2791_v11 = vadd.f32 %v2790_v42, %v2789_v59  ;;  %v2792_v32 = vpop.f32.mrb[58].mxu1 }
 0x2dc   : > { %v2793_v55 = vpop.f32.mrb[59].mxu1 }
 0x2dd   : > { %v2794_v41 = vadd.f32 %v2793_v55, %v2792_v32  ;;  %v1898_v18 = vadd.f32 %v2791_v11, %v1833_v47  ;;  %v4330_v8 = vpop.permute.xlu1 %2071 }
 0x2df   : > { %v1901_v12 = vadd.f32 %v2794_v41, %v1836_v27 }
 0x2e1   : > { %v4336_v25 = vpop.permute.xlu1 %2081 }
 0x2e5   : > { %v2154_v3 = vpop.permute.xlu1 %2153 }
 0x30f   : > { %v2819_v57 = vpop.f32.mrb[60].mxu1 }
 0x310   : > { %v1947_v29 = vadd.f32 %v2819_v57, %v1882_v2  ;;  %v4334_v34 = vpop.f32.mrb[61].mxu1  ;;  %v2152_v57 = vpop.permute.xlu1 %2151 }
 0x311   : > { %v2820_v61 = vpop.f32.mrb[62].mxu1 }
 0x312   : > { %v1950_v46 = vadd.f32 %v2820_v61, %v1885_v21  ;;  %v4338_v47 = vpop.f32.mrb[63].mxu1  ;;  %v2025_v51 = vmul.f32 %v4312_v60, %v1947_v29 }
 0x314   : > { %v1670_v27 = vpop.f32.mrb[0].mxu0  ;;  %v2097_v11 = vadd.f32 %v2062_v49, %v2025_v51 }
 0x315   : > { %v2841_v53 = vadd.f32 %v1670_v27, %v4262_v1  ;;  %v1672_v26 = vpop.f32.mrb[1].mxu0  ;;  %v2028_v1 = vmul.f32 %v4318_v48, %v1950_v46 }
 0x316   : > { %v4345_v62 = vadd.f32 %v1672_v26, %v4265_v43  ;;  %v1674_v20 = vpop.f32.mrb[2].mxu0 }
 0x317   : > { %v2017_v2 = vmul.f32 %v2841_v53, %v4314_v28  ;;  %v2843_v6 = vadd.f32 %v1674_v20, %v4269_v52  ;;  %v1676_v21 = vpop.f32.mrb[3].mxu0  ;;  %v2823_v31 = vpop.f32.mrb[64].mxu1  ;;  %v2100_v61 = vadd.f32 %v4332_v35, %v2028_v1  ;;  %v4362_v53 = vsel %vm562_vm4, %v2152_v57, %v2154_v3 }
 0x318   : > { %v2844_v0 = vadd.f32 %v1676_v21, %v4272_v14  ;;  %v1963_v19 = vadd.f32 %v2823_v31, %v1898_v18  ;;  %v1954_v7 = vpop.f32.mrb[65].mxu1 }
 0x319   : > { %v2020_v59 = vmul.f32 %v2843_v6, %v4310_v44  ;;  %v1955_v42 = vadd.f32 %v1954_v7, %v1890_v5  ;;  %v2824_v43 = vpop.f32.mrb[66].mxu1  ;;  %v2089_v41 = vadd.f32 %v4324_v16, %v2017_v2  ;;  %v2121_v5 = vmax.f32 %v2097_v11, 0.0  ;;  %v4365_v2 = vpop.permute.xlu0 %2155 }
 0x31a   : > { %v4355_v32 = vmul.f32 %v2844_v0, %v4310_v44  ;;  %v1966_v55 = vadd.f32 %v2824_v43, %v1901_v12  ;;  %v1957_v52 = vpop.f32.mrb[67].mxu1  ;;  %v2124_v7 = vmax.f32 %v2100_v61, 0.0  ;;  %v2037_v11 = vmul.f32 %v4320_v22, %v1963_v19 }
 0x31b   : > { %v2092_v14 = vadd.f32 %v4328_v13, %v2020_v59  ;;  %v1958_v18 = vadd.f32 %v1957_v52, %v1893_v38  ;;  %v2113_v51 = vmax.f32 %v2089_v41, 0.0  ;;  %v2031_v31 = vmul.f32 %v4316_v40, %v1955_v42 }
 0x31c   : > { %v1680_v29 = vpop.f32.mrb[4].mxu0 }
 0x31d   : > { %v2845_v46 = vadd.f32 %v1680_v29, %v4276_v39  ;;  %v1682_v27 = vpop.f32.mrb[5].mxu0  ;;  %v2116_v20 = vmax.f32 %v2092_v14, 0.0  ;;  %v4371_v39 = vsel %vm562_vm4, %v2154_v3, %v4365_v2  ;;  %v2034_v1 = vmul.f32 %v4322_v30, %v1958_v18 }
 0x31e   : > { %v2846_v26 = vadd.f32 %v1682_v27, %v4279_v37  ;;  %v1684_v12 = vpop.f32.mrb[6].mxu0  ;;  %v2171_v3 = vmul.f32 %v4365_v2, %v2121_v5  ;;  %v2103_v14 = vadd.f32 %v4330_v8, %v2031_v31  ;;  %v2040_v18 = vmul.f32 %v4326_v17, %v1966_v55 }
 0x31f   : > { %v2023_v38 = vmul.f32 %v2845_v46, %v4312_v60  ;;  %v2847_v6 = vadd.f32 %v1684_v12, %v4283_v23  ;;  %v1686_v21 = vpop.f32.mrb[7].mxu0 }
 0x320   : > { %v2024_v0 = vmul.f32 %v2846_v26, %v4312_v60  ;;  %v2848_v37 = vadd.f32 %v1686_v21, %v4286_v36  ;;  %v2163_v60 = vmul.f32 %v4362_v53, %v2113_v51  ;;  %v2166_v36 = vmul.f32 %v4362_v53, %v2116_v20 }
 0x321   : > { %v2095_v59 = vadd.f32 %v2062_v49, %v2023_v38  ;;  %v2026_v43 = vmul.f32 %v2847_v6, %v4318_v48  ;;  %v2174_v20 = vmul.f32 %v4365_v2, %v2124_v7 }
 0x322   : > { %v2096_v23 = vadd.f32 %v2062_v49, %v2024_v0  ;;  %v2027_v52 = vmul.f32 %v2848_v37, %v4318_v48  ;;  %v2106_v49 = vadd.f32 %v4340_v33, %v2034_v1  ;;  %v2954_v61 = vpack.i.bf16 %v2166_v36, %v2163_v60 }
 0x323   : > { %v2119_v41 = vmax.f32 %v2095_v59, 0.0  ;;  %v2098_v42 = vadd.f32 %v4332_v35, %v2026_v43  ;;  %v2127_v37 = vmax.f32 %v2103_v14, 0.0 }
 0x324   : > { %v2120_v57 = vmax.f32 %v2096_v23, 0.0  ;;  %v2099_v29 = vadd.f32 %v4332_v35, %v2027_v52  ;;  %v1690_v19 = vpop.f32.mrb[8].mxu0  ;;  %2955 = vrot.lane.b32.xlu0 %v2954_v61, %s3137_s25  ;;  %v2130_v43 = vmax.f32 %v2106_v49, 0.0 }
 0x325   : > { %v2122_v48 = vmax.f32 %v2098_v42, 0.0  ;;  %v2849_v46 = vadd.f32 %v1690_v19, %v4289_v24  ;;  %v1692_v27 = vpop.f32.mrb[9].mxu0  ;;  %v2169_v55 = vmul.f32 %v4362_v53, %v2119_v41  ;;  %v2177_v36 = vmul.f32 %v4365_v2, %v2127_v37 }
 0x326   : > { %v2170_v5 = vmul.f32 %v4371_v39, %v2120_v57  ;;  %v2123_v26 = vmax.f32 %v2099_v29, 0.0  ;;  %v2850_v12 = vadd.f32 %v1692_v27, %v4292_v50  ;;  %v1694_v51 = vpop.f32.mrb[10].mxu0  ;;  %v2180_v29 = vmul.f32 %v4365_v2, %v2130_v43 }
 0x327   : > { %v2172_v35 = vmul.f32 %v4362_v53, %v2122_v48  ;;  %v2029_v38 = vmul.f32 %v2849_v46, %v4316_v40  ;;  %v2851_v6 = vadd.f32 %v1694_v51, %v4294_v45  ;;  %v1696_v24 = vpop.f32.mrb[11].mxu0 }
 0x328   : > { %v2173_v21 = vmul.f32 %v4371_v39, %v2123_v26  ;;  %v2030_v31 = vmul.f32 %v2850_v12, %v4316_v40  ;;  %v2852_v50 = vadd.f32 %v1696_v24, %v4296_v15  ;;  %v2959_v0 = vpack.i.bf16 %v2171_v3, %v2170_v5 }
 0x329   : > { %v2101_v7 = vadd.f32 %v4330_v8, %v2029_v38  ;;  %v2032_v1 = vmul.f32 %v2851_v6, %v4322_v30  ;;  %v2964_v59 = vpack.i.bf16 %v2172_v35, %v2169_v55  ;;  %v2109_v15 = vadd.f32 %v4336_v25, %v2037_v11 }
 0x32a   : > { %v2102_v23 = vadd.f32 %v4330_v8, %v2030_v31  ;;  %v2033_v52 = vmul.f32 %v2852_v50, %v4322_v30  ;;  %v2969_v45 = vpack.i.bf16 %v2174_v20, %v2173_v21  ;;  %2960 = vrot.lane.b32.xlu0 %v2959_v0, %s3137_s25  ;;  %v2112_v8 = vadd.f32 %v4351_v10, %v2040_v18 }
 0x32b   : > { %v2125_v41 = vmax.f32 %v2101_v7, 0.0  ;;  %v2104_v42 = vadd.f32 %v4340_v33, %v2032_v1  ;;  %2965 = vrot.lane.b32.xlu1 %v2964_v59, %s3137_s25  ;;  %v2133_v55 = vmax.f32 %v2109_v15, 0.0  ;;  %v2018_v50 = vmul.f32 %v4345_v62, %v4314_v28 }
 0x32c   : > { %v2126_v40 = vmax.f32 %v2102_v23, 0.0  ;;  %v2105_v3 = vadd.f32 %v4340_v33, %v2033_v52  ;;  %v1700_v60 = vpop.f32.mrb[12].mxu0  ;;  %v2136_v6 = vmax.f32 %v2112_v8, 0.0 }
 0x32d   : > { %v2128_v14 = vmax.f32 %v2104_v42, 0.0  ;;  %v2853_v30 = vadd.f32 %v1700_v60, %v4298_v58  ;;  %v1702_v57 = vpop.f32.mrb[13].mxu0  ;;  %v4416_v61 = vmul.f32 %v4362_v53, %v2125_v41 }
 0x32e   : > { %v2176_v19 = vmul.f32 %v4371_v39, %v2126_v40  ;;  %v2129_v49 = vmax.f32 %v2105_v3, 0.0  ;;  %v2854_v48 = vadd.f32 %v1702_v57, %v4300_v4  ;;  %v1704_v11 = vpop.f32.mrb[14].mxu0  ;;  %v2186_v43 = vmul.f32 %v4365_v2, %v2136_v6 }
 0x32f   : > { %v4419_v33 = vmul.f32 %v4362_v53, %v2128_v14  ;;  %v2035_v18 = vmul.f32 %v2853_v30, %v4320_v22  ;;  %v2855_v46 = vadd.f32 %v1704_v11, %v4302_v56  ;;  %v1706_v58 = vpop.f32.mrb[15].mxu0  ;;  %2970 = vrot.lane.b32.xlu1 %v2969_v45, %s3137_s25  ;;  %v2090_v40 = vadd.f32 %v4324_v16, %v2018_v50 }
 0x330   : > { %v2179_v27 = vmul.f32 %v4371_v39, %v2129_v49  ;;  %v2036_v5 = vmul.f32 %v2854_v48, %v4320_v22  ;;  %v2856_v4 = vadd.f32 %v1706_v58, %v4304_v54  ;;  %v2974_v26 = vpack.i.bf16 %v2177_v36, %v2176_v19 }
 0x331   : > { %v2107_v12 = vadd.f32 %v4336_v25, %v2035_v18  ;;  %v2038_v51 = vmul.f32 %v2855_v46, %v4326_v17  ;;  %v3004_v20 = vpack.i.bf16 %v4419_v33, %v4416_v61 }
 0x332   : > { %v2108_v56 = vadd.f32 %v4336_v25, %v2036_v5  ;;  %v2039_v35 = vmul.f32 %v2856_v4, %v4326_v17  ;;  %2975 = vrot.lane.b32.xlu0 %v2974_v26, %s3137_s25  ;;  %v2979_v38 = vpack.i.bf16 %v2180_v29, %v2179_v27  ;;  %v2183_v17 = vmul.f32 %v4365_v2, %v2133_v55 }
 0x333   : > { %v2131_v22 = vmax.f32 %v2107_v12, 0.0  ;;  %v2110_v54 = vadd.f32 %v4351_v10, %v2038_v51 }
 0x334   : > { %v2132_v24 = vmax.f32 %v2108_v56, 0.0  ;;  %v2111_v21 = vadd.f32 %v4351_v10, %v2039_v35  ;;  %v2771_v31 = vpop.f32.mrb[16].mxu0  ;;  %2980 = vrot.lane.b32.xlu1 %v2979_v38, %s3137_s25 }
 0x335   : > { %v2134_v0 = vmax.f32 %v2110_v54, 0.0  ;;  %v2772_v25 = vpop.f32.mrb[17].mxu0  ;;  %v2181_v23 = vmul.f32 %v4362_v53, %v2131_v22 }
 0x336   : > { %v2182_v37 = vmul.f32 %v4371_v39, %v2132_v24  ;;  %v2135_v7 = vmax.f32 %v2111_v21, 0.0  ;;  %v2773_v1 = vadd.f32 %v2772_v25, %v2771_v31  ;;  %v2774_v59 = vpop.f32.mrb[18].mxu0 }
 0x337   : > { %v2184_v10 = vmul.f32 %v4362_v53, %v2134_v0  ;;  %v2775_v52 = vpop.f32.mrb[19].mxu0  ;;  %v2093_v53 = vadd.f32 %v4328_v13, %v4355_v32 }
 0x338   : > { %v2185_v45 = vmul.f32 %v4371_v39, %v2135_v7  ;;  %v1874_v62 = vadd.f32 %v2773_v1, %v4306_v9  ;;  %v2776_v41 = vadd.f32 %v2775_v52, %v2774_v59  ;;  %v2984_v42 = vpack.i.bf16 %v2183_v17, %v2182_v37 }
 0x339   : > { %v3009_v15 = vpack.i.bf16 %v2184_v10, %v2181_v23  ;;  %v2114_v9 = vmax.f32 %v2090_v40, 0.0 }
 0x33a   : > { %v1939_v3 = vadd.f32 %v4334_v34, %v1874_v62  ;;  %v1877_v60 = vadd.f32 %v2776_v41, %v4308_v63  ;;  %2985 = vrot.lane.b32.xlu0 %v2984_v42, %s3137_s25  ;;  %v2989_v36 = vpack.i.bf16 %v2186_v43, %v2185_v45  ;;  %v2117_v34 = vmax.f32 %v2093_v53, 0.0 }
 0x33b   : > { %v2164_v49 = vmul.f32 %v4371_v39, %v2114_v9 }
 0x33c   : > { %v2019_v8 = vmul.f32 %v4314_v28, %v1939_v3  ;;  %v1942_v14 = vadd.f32 %v4338_v47, %v1877_v60  ;;  %2990 = vrot.lane.b32.xlu1 %v2989_v36, %s3137_s25  ;;  %v2167_v28 = vmul.f32 %v4371_v39, %v2117_v34 }
 0x33e   : > { %v2091_v30 = vadd.f32 %v4324_v16, %v2019_v8  ;;  %v2022_v57 = vmul.f32 %v4310_v44, %v1942_v14 }
 0x340   : > { %v2115_v29 = vmax.f32 %v2091_v30, 0.0  ;;  %v2094_v63 = vadd.f32 %v4328_v13, %v2022_v57 }
 0x342   : > { %v2118_v19 = vmax.f32 %v2094_v63, 0.0  ;;  %v2165_v32 = vmul.f32 %v4365_v2, %v2115_v29 }
 0x344   : > { %v2994_v48 = vpack.i.bf16 %v2165_v32, %v2164_v49  ;;  %v2168_v47 = vmul.f32 %v4365_v2, %v2118_v19 }
 0x346   : > { %2995 = vrot.lane.b32.xlu0 %v2994_v48, %s3137_s25  ;;  %v2999_v11 = vpack.i.bf16 %v2168_v47, %v2167_v28 }
 0x348   : > { %3000 = vrot.lane.b32.xlu1 %v2999_v11, %s3137_s25 }
 0x34a   : > { %3005 = vrot.lane.b32.xlu0 %v3004_v20, %s3137_s25 }
 0x34c   : > { %3010 = vrot.lane.b32.xlu1 %v3009_v15, %s3137_s25 }
 0x396   : > { %v4466_v44 = vpop.permute.xlu0 %2955 }
 0x397   : > { %v2957_v60 = vunpack.i.l.bf16 %v4466_v44  ;;  %v2958_v36 = vunpack.i.h.bf16 %v4466_v44 }
 0x399   : > { %v2300_v9 = vsel %vm918_vm10, 0.0, %v2957_v60  ;;  %v2301_v19 = vsel %vm918_vm10, 0.0, %v2958_v36 }
 0x39c   : > { %v2961_v16 = vpop.permute.xlu0 %2960 }
 0x39d   : > { %v2966_v13 = vpop.permute.xlu1 %2965  ;;  %v2963_v61 = vunpack.i.h.bf16 %v2961_v16  ;;  %v2962_v39 = vunpack.i.l.bf16 %v2961_v16 }
 0x39e   : > { %v2967_v33 = vunpack.i.l.bf16 %v2966_v13  ;;  %v2968_v18 = vunpack.i.h.bf16 %v2966_v13 }
 0x39f   : > { %v2265_v2 = vsel %vm918_vm10, %v2962_v39, %v2963_v61 }
 0x3a0   : > { %v2264_v46 = vsel %vm918_vm10, %v2967_v33, %v2962_v39  ;;  %v2302_v58 = vsel %vm918_vm10, 0.0, %v2967_v33  ;;  %v2311_v27 = vsel %vm2308_vm0, %v2265_v2, 0.0  ;;  %v2303_v20 = vsel %vm918_vm10, 0.0, %v2968_v18 }
 0x3a1   : > { %v2663_v5 = vpack.c.bf16 %v2264_v46, %v2302_v58  ;;  %v2971_v4 = vpop.permute.xlu1 %2970  ;;  %v2664_v26 = vpack.c.bf16 %v2311_v27, %v2311_v27 }
 0x3a2   : > { %v2973_v12 = vunpack.i.h.bf16 %v2971_v4  ;;  %v2972_v51 = vunpack.i.l.bf16 %v2971_v4 }
 0x3a3   : > { %2401 = vst [vmem:[%s3244_s23 + $0x18] sm:$0xff] %v2663_v5  ;;  %2402 = vst [vmem:[%s3244_s23 + $0x20] sm:$0xf] %v2664_v26 }
 0x3a4   : > { %v2266_v55 = vsel %vm918_vm10, %v2968_v18, %v2972_v51  ;;  %v2267_v56 = vsel %vm918_vm10, %v2972_v51, %v2973_v12  ;;  %v4477_v35 = vpop.permute.xlu0 %2975 }
 0x3a5   : > { %v2312_v38 = vsel %vm2308_vm0, %v2267_v56, 0.0  ;;  %v2665_v6 = vpack.c.bf16 %v2266_v55, %v2303_v20  ;;  %v2978_v22 = vunpack.i.h.bf16 %v4477_v35  ;;  %v2977_v54 = vunpack.i.l.bf16 %v4477_v35 }
 0x3a6   : > { %v2666_v24 = vpack.c.bf16 %v2312_v38, %v2312_v38  ;;  %v2981_v21 = vpop.permute.xlu1 %2980 }
 0x3a7   : > { %2403 = vst [vmem:[%s3244_s23 + $0x24] sm:$0xff] %v2665_v6  ;;  %v2269_v31 = vsel %vm918_vm10, %v2977_v54, %v2978_v22  ;;  %v2983_v50 = vunpack.i.h.bf16 %v2981_v21  ;;  %v2982_v0 = vunpack.i.l.bf16 %v2981_v21 }
 0x3a8   : > { %2404 = vst [vmem:[%s3244_s23 + $0x2c] sm:$0xf] %v2666_v24  ;;  %v2313_v25 = vsel %vm2308_vm0, %v2269_v31, 0.0 }
 0x3a9   : > { %v2668_v17 = vpack.c.bf16 %v2313_v25, %v2313_v25  ;;  %v2271_v37 = vsel %vm918_vm10, %v2982_v0, %v2983_v50 }
 0x3aa   : > { %v2314_v7 = vsel %vm2308_vm0, %v2271_v37, 0.0 }
 0x3ab   : > { %2406 = vst [vmem:[%s3244_s23 + $0x38] sm:$0xf] %v2668_v17  ;;  %v2670_v1 = vpack.c.bf16 %v2314_v7, %v2314_v7 }
 0x3ac   : > { %v2986_v59 = vpop.permute.xlu0 %2985 }
 0x3ad   : > { %2408 = vst [vmem:[%s3244_s23 + $0x44] sm:$0xf] %v2670_v1  ;;  %v2988_v43 = vunpack.i.h.bf16 %v2986_v59  ;;  %v2987_v23 = vunpack.i.l.bf16 %v2986_v59 }
 0x3ae   : > { %v2991_v10 = vpop.permute.xlu1 %2990 }
 0x3af   : > { %v2273_v52 = vsel %vm918_vm10, %v2987_v23, %v2988_v43  ;;  %v2993_v45 = vunpack.i.h.bf16 %v2991_v10  ;;  %v2992_v62 = vunpack.i.l.bf16 %v2991_v10 }
 0x3b0   : > { %v2315_v41 = vsel %vm2308_vm0, %v2273_v52, 0.0 }
 0x3b1   : > { %v2672_v42 = vpack.c.bf16 %v2315_v41, %v2315_v41  ;;  %v2275_v15 = vsel %vm918_vm10, %v2992_v62, %v2993_v45 }
 0x3b2   : > { %v2316_v40 = vsel %vm2308_vm0, %v2275_v15, 0.0 }
 0x3b3   : > { %2410 = vst [vmem:[%s3244_s23 + $0x50] sm:$0xf] %v2672_v42  ;;  %v2674_v3 = vpack.c.bf16 %v2316_v40, %v2316_v40 }
 0x3b5   : > { %2412 = vst [vmem:[%s3244_s23 + $0x5c] sm:$0xf] %v2674_v3 }
 0x3b8   : > { %v2996_v53 = vpop.permute.xlu0 %2995 }
 0x3b9   : > { %v2998_v8 = vunpack.i.h.bf16 %v2996_v53  ;;  %v2997_v14 = vunpack.i.l.bf16 %v2996_v53 }
 0x3ba   : > { %v3001_v30 = vpop.permute.xlu1 %3000 }
 0x3bb   : > { %v2260_v57 = vsel %vm918_vm10, %v2957_v60, %v2997_v14  ;;  %v2261_v34 = vsel %vm918_vm10, %v2997_v14, %v2998_v8  ;;  %v3003_v29 = vunpack.i.h.bf16 %v3001_v30  ;;  %v3002_v63 = vunpack.i.l.bf16 %v3001_v30 }
 0x3bc   : > { %v2309_v49 = vsel %vm2308_vm0, %v2261_v34, 0.0  ;;  %v2659_v32 = vpack.c.bf16 %v2260_v57, %v2300_v9  ;;  %v3006_v48 = vpop.permute.xlu0 %3005 }
 0x3bd   : > { %v2660_v28 = vpack.c.bf16 %v2309_v49, %v2309_v49  ;;  %v2262_v47 = vsel %vm918_vm10, %v2958_v36, %v3002_v63  ;;  %v2263_v11 = vsel %vm918_vm10, %v3002_v63, %v3003_v29  ;;  %v3008_v44 = vunpack.i.h.bf16 %v3006_v48 }
 0x3be   : > { %2397 = vst [vmem:[%s3244_s23] sm:$0xff] %v2659_v32  ;;  %v2310_v16 = vsel %vm2308_vm0, %v2263_v11, 0.0  ;;  %v2661_v13 = vpack.c.bf16 %v2262_v47, %v2301_v19  ;;  %v3007_v61 = vunpack.i.l.bf16 %v3006_v48  ;;  %v3011_v39 = vpop.permute.xlu1 %3010 }
 0x3bf   : > { %2398 = vst [vmem:[%s3244_s23 + $0x8] sm:$0xf] %v2660_v28  ;;  %v2662_v33 = vpack.c.bf16 %v2310_v16, %v2310_v16  ;;  %v2270_v2 = vsel %vm918_vm10, %v3008_v44, %v2982_v0  ;;  %v2305_v18 = vsel %vm918_vm10, 0.0, %v3008_v44  ;;  %v3013_v46 = vunpack.i.h.bf16 %v3011_v39 }
 0x3c0   : > { %2399 = vst [vmem:[%s3244_s23 + $0xc] sm:$0xff] %v2661_v13  ;;  %v2669_v58 = vpack.c.bf16 %v2270_v2, %v2305_v18  ;;  %v2268_v27 = vsel %vm918_vm10, %v3007_v61, %v2977_v54  ;;  %v2304_v5 = vsel %vm918_vm10, 0.0, %v3007_v61  ;;  %v3012_v4 = vunpack.i.l.bf16 %v3011_v39 }
 0x3c1   : > { %2400 = vst [vmem:[%s3244_s23 + $0x14] sm:$0xf] %v2662_v33  ;;  %v2667_v26 = vpack.c.bf16 %v2268_v27, %v2304_v5  ;;  %v2307_v12 = vsel %vm918_vm10, 0.0, %v3013_v46  ;;  %v2274_v51 = vsel %vm918_vm10, %v3013_v46, %v2992_v62 }
 0x3c2   : > { %2407 = vst [vmem:[%s3244_s23 + $0x3c] sm:$0xff] %v2669_v58  ;;  %v2272_v20 = vsel %vm918_vm10, %v3012_v4, %v2987_v23  ;;  %v2306_v55 = vsel %vm918_vm10, 0.0, %v3012_v4  ;;  %v2673_v56 = vpack.c.bf16 %v2274_v51, %v2307_v12 }
 0x3c3   : > { %2405 = vst [vmem:[%s3244_s23 + $0x30] sm:$0xff] %v2667_v26  ;;  %v2671_v35 = vpack.c.bf16 %v2272_v20, %v2306_v55 }
 0x3c4   : > { %2411 = vst [vmem:[%s3244_s23 + $0x54] sm:$0xff] %v2673_v56 }
 0x3c5   : > { %2409 = vst [vmem:[%s3244_s23 + $0x48] sm:$0xff] %v2671_v35 }
 0x3c6 PF: > { %2415 = sbr.rel (!%p3232_p12) target bundleno = 975 (0x3cf), region = 56  ;;  %v3144_v38 = vmov (%p3232_p12), 0  }
 0x3c7   : > { %2416 = vst [vmem:[%s3244_s23] sm:$0xff] (%p3232_p12), %v3144_v38  ;;  %2417 = vst [vmem:[%s3244_s23 + $0x8] sm:$0xf] (%p3232_p12), %v3144_v38 }
 0x3c8   : > { %2418 = vst [vmem:[%s3244_s23 + $0xc] sm:$0xff] (%p3232_p12), %v3144_v38  ;;  %2419 = vst [vmem:[%s3244_s23 + $0x14] sm:$0xf] (%p3232_p12), %v3144_v38 }
 0x3c9   : > { %2420 = vst [vmem:[%s3244_s23 + $0x18] sm:$0xff] (%p3232_p12), %v3144_v38  ;;  %2421 = vst [vmem:[%s3244_s23 + $0x20] sm:$0xf] (%p3232_p12), %v3144_v38 }
 0x3ca   : > { %2422 = vst [vmem:[%s3244_s23 + $0x24] sm:$0xff] (%p3232_p12), %v3144_v38  ;;  %2423 = vst [vmem:[%s3244_s23 + $0x2c] sm:$0xf] (%p3232_p12), %v3144_v38 }
 0x3cb   : > { %2424 = vst [vmem:[%s3244_s23 + $0x30] sm:$0xff] (%p3232_p12), %v3144_v38  ;;  %2425 = vst [vmem:[%s3244_s23 + $0x38] sm:$0xf] (%p3232_p12), %v3144_v38 }
 0x3cc   : > { %2426 = vst [vmem:[%s3244_s23 + $0x3c] sm:$0xff] (%p3232_p12), %v3144_v38  ;;  %2427 = vst [vmem:[%s3244_s23 + $0x44] sm:$0xf] (%p3232_p12), %v3144_v38 }
 0x3cd   : > { %2428 = vst [vmem:[%s3244_s23 + $0x48] sm:$0xff] %v3144_v38  ;;  %2429 = vst [vmem:[%s3244_s23 + $0x50] sm:$0xf] %v3144_v38 }
 0x3ce   : > { %2430 = vst [vmem:[%s3244_s23 + $0x54] sm:$0xff] %v3144_v38  ;;  %2431 = vst [vmem:[%s3244_s23 + $0x5c] sm:$0xf] %v3144_v38 }
 0x3cf PF: > { %s17_s28 = sadd.s32 1, %s3126_s28   ;;  %s4565_s9 = sld [smem:[#allocation2_spill]] }
 0x3d0   : > { %p14_p13 = scmp.ge.s32.totalorder %s17_s28, 10   ;;  %s4566_s24 = smov %s3118_s26 }
 0x3d1   : > { %s4567_s25 = smov %s3122_s27  ;;  %s4568_s26 = smov %s4571_s29 }
 0x3d2   :  { %16 = sbr.rel (!%p14_p13) target bundleno = 3 (0x3), region = 92 }
 0x3d5   : > { %s4569_s27 = smov %s4565_s9 }

// kernel: cost_volume_network.10
= control target key start
LH: loop header
LB: loop body
LE: loop exit
PB: predicated region body
PF: predicated region fallthrough
CT: control target
= control target key end

     0   :  { %s2638_s15 = smov 0   ;;  %s2640_s16 = smov 0   ;;  %s3122_s0 = inlined_call_operand.vmem [shape: bf16[2,6,64,128], index: 0, kind: input, shape index: {}, may-alias: {0,1}]   ;;  %s3123_s1 = inlined_call_operand.vmem [shape: bf16[2,6,64,128], index: 1, kind: input, shape index: {}, may-alias: {0,1}]   ;;  %s3124_s2 = inlined_call_operand.vmem [shape: bf16[256,512], index: 2, kind: input, shape index: {}]   ;;  %s3125_s3 = inlined_call_operand.vmem [shape: f32[256,1], index: 3, kind: input, shape index: {}]   ;;  %s3126_s4 = inlined_call_operand.vmem [shape: bf16[2,4,256,128], index: 4, kind: output, shape index: {}]  }
   0x1   :  { %s2642_s17 = smov 0   ;;  %s2644_s18 = smov 0  }
   0x2   :  { %s2646_s19 = smov 0  }
   0x3 LB: > { %s23_s20 = sadd.s32 1, %s2598_s17  ;;  %s26_s21 = sadd.s32 1, %s2602_s18  ;;  %s2606_s19 = sphi %s2646_s19, %s14_s19   ;;  %s2602_s18 = sphi %s2644_s18, %s3130_s18   ;;  %s2598_s17 = sphi %s2642_s17, %s3129_s17   ;;  %s2594_s16 = sphi %s2640_s16, %s3128_s16   ;;  %s2590_s15 = sphi %s2638_s15, %s3127_s15  }
   0x4   : > { %p24_p0 = scmp.ge.s32.totalorder %s23_s20, 4  ;;  %p1871_p1 = scmp.ge.s32.totalorder %s2606_s19, 1 }
   0x5   : > { %p206_p2 = scmp.lt.s32.totalorder %s2606_s19, 9 }
   0x6   : > { %s3132_s20 = smov (%p24_p0, %s23_s20), 0  ;;  %s3134_s21 = smov (!%p24_p0, %s26_s21), %s2602_s18 }
   0x7   : > { %p207_p3 = pnand %p1871_p1, %p206_p2  ;;  %p28_p4 = scmp.ge.s32.totalorder %s3134_s21, 2 }
   0x8   : > { %s251_s22 = sadd.s32 (!%p207_p3), 1, %s2590_s15  ;;  %p252_p5 = scmp.lt.s32.totalorder (!%p207_p3), %s2594_s16, 1  ;;  %v2474_v25 = vld [vmem:[%s3124_s2 + $0x4] ss:$16 sps:$4 sm:$0xff] (!%p207_p3)   ;;  %v2477_v28 = vld [vmem:[%s3124_s2 + $0xc] ss:$16 sps:$4 sm:$0xff] (!%p207_p3)  }
   0x9   : > { %s3136_s21 = smov (%p28_p4, %s3134_s21), 0  ;;  %210 = sbr.rel (%p207_p3) target bundleno = 769 (0x301), region = 36 }
   0xa   : > { %p254_p6 = scmp.lt.s32.totalorder (!%p207_p3), %s251_s22, 5  ;;  %s262_s26 = sadd.s32 (!%p207_p3), 2, %s2590_s15  ;;  %1075 = vmatprep.mubr.bf16.mxu0 (!%p207_p3), %v2474_v25  ;;  %1236 = vmatprep.mubr.bf16.mxu1 (!%p207_p3), %v2477_v28  ;;  %v451_v37 = vld [vmem:[%s3125_s3] sm:$0xff] (!%p207_p3)  ;;  %v2611_v38 = vmov (!%p207_p3), 0   ;;  %v452_v41 = vld [vmem:[%s3125_s3 + $0x8] sm:$0xff] (!%p207_p3)  ;;  %v453_v44 = vld [vmem:[%s3125_s3 + $0x10] sm:$0xff] (!%p207_p3) }
   0xb   : > { %p265_p7 = scmp.lt.s32.totalorder (!%p207_p3), %s262_s26, 5  ;;  %s2608_s5 = smov (!%p207_p3), 118   ;;  %2382 = vset.pattern.permute.xlu0 (!%p207_p3), %v2611_v38  ;;  %2383 = vset.pattern.permute.xlu1 (!%p207_p3), %v2611_v38  ;;  %v454_v45 = vld [vmem:[%s3125_s3 + $0x18] sm:$0xff] (!%p207_p3)  ;;  %v455_v48 = vld [vmem:[%s3125_s3 + $0x20] sm:$0xff] (!%p207_p3)  ;;  %v456_v49 = vld [vmem:[%s3125_s3 + $0x28] sm:$0xff] (!%p207_p3)  ;;  %vm1525_vm0 = vcmask (!%p207_p3), 89088  }
   0xc   : > { %s2609_s12 = smov (!%p207_p3), 117   ;;  %s2610_s13 = smov (!%p207_p3), 127   ;;  %v457_v52 = vld [vmem:[%s3125_s3 + $0x30] sm:$0xff] (!%p207_p3)  ;;  %v458_v53 = vld [vmem:[%s3125_s3 + $0x38] sm:$0xff] (!%p207_p3)  ;;  %v459_v56 = vld [vmem:[%s3125_s3 + $0x40] sm:$0xff] (!%p207_p3)  ;;  %vm1558_vm1 = vcmask (!%p207_p3), 908288  }
   0xd   : > { %v460_v57 = vld [vmem:[%s3125_s3 + $0x48] sm:$0xff] (!%p207_p3)  ;;  %v461_v60 = vld [vmem:[%s3125_s3 + $0x50] sm:$0xff] (!%p207_p3)  ;;  %v462_v61 = vld [vmem:[%s3125_s3 + $0x58] sm:$0xff] (!%p207_p3)  ;;  %p275_p8 = scmp.lt.s32.totalorder (!%p207_p3), %s2590_s15, 3 }
   0xe   : > { %v2483_v25 = vld [vmem:[%s3124_s2 + $0x28] ss:$16 sps:$4 sm:$0xff] (!%p207_p3)   ;;  %v2487_v28 = vld [vmem:[%s3124_s2 + $0x4c] ss:$16 sps:$4 sm:$0xff] (!%p207_p3)   ;;  %v481_v38 = vld [vmem:[%s3125_s3 + $0xf0] sm:$0xff] (!%p207_p3) }
  0x10   : > { %s3138_s16 = smov (!%p252_p5, %s2594_s16), 1  ;;  %s3140_s22 = smov (!%p254_p6, %s251_s22), 5 }
  0x11   : > { %s2336_s23 = smul.u32 48, %s3138_s16  ;;  %s1872_s24 = sshll.u32 %s3140_s22, 3 }
  0x12   : > { %s3142_s26 = smov (!%p265_p7, %s262_s26), 5  ;;  %s3144_s15 = smov (!%p275_p8, %s2590_s15), 3 }
  0x13   : > { %s258_s25 = sadd.s32 %s2336_s23, %s1872_s24  ;;  %s1874_s6 = sshll.u32 %s3142_s26, 3 }
  0x14   : > { %s1873_s27 = sshll.u32 %s258_s25, 2  ;;  %s269_s7 = sadd.s32 %s2336_s23, %s1874_s6 }
  0x15   : > { %s260_s30 = scalar_lea.vmem %s3122_s0, %s1873_s27  ;;  %s1875_s8 = sshll.u32 %s269_s7, 2 }
  0x16   : > { %v2464_v0 = vld [vmem:[%s260_s30] sm:$0xff]   ;;  %v2465_v1 = vld [vmem:[%s260_s30 + $0x8] sm:$0xff]   ;;  %s271_s11 = scalar_lea.vmem %s3123_s1, %s1875_s8  ;;  %v2468_v4 = vld [vmem:[%s260_s30 + $0x10] sm:$0xff]   ;;  %s2612_s23 = smov 11  }
  0x17   : > { %327 = vrot.lane.b32.xlu0 %v2464_v0, %s2608_s5  ;;  %329 = vrot.lane.b32.xlu1 %v2465_v1, %s2608_s5  ;;  %v2466_v2 = vld [vmem:[%s271_s11] sm:$0xff]   ;;  %v2467_v3 = vld [vmem:[%s271_s11 + $0x8] sm:$0xff]   ;;  %s1876_s24 = sshll.u32 %s3144_s15, 5  ;;  %s1877_s25 = sshll.u32 %s3138_s16, 7 }
  0x18   : > { %v2469_v5 = vld [vmem:[%s271_s11 + $0x10] sm:$0xff]   ;;  %v2470_v6 = vld [vmem:[%s260_s30 + $0x18] sm:$0xff]   ;;  %s279_s26 = sadd.s32 %s1877_s25, %s1876_s24 }
  0x19   : > { %v2471_v7 = vld [vmem:[%s271_s11 + $0x18] sm:$0xff]   ;;  %s1878_s27 = sshll.u32 %s279_s26, 2 }
  0x1a   : > { %s3026_s28 = scalar_lea.vmem %s3126_s4, %s1878_s27 }
  0x1b   : > { %371 = vrot.lane.b32.xlu0 %v2466_v2, %s2608_s5  ;;  %373 = vrot.lane.b32.xlu1 %v2467_v3, %s2608_s5 }
  0x1f   : > { %331 = vrot.lane.b32.xlu0 %v2468_v4, %s2608_s5  ;;  %375 = vrot.lane.b32.xlu1 %v2469_v5, %s2608_s5 }
  0x23   : > { %333 = vrot.lane.b32.xlu0 %v2470_v6, %s2608_s5  ;;  %377 = vrot.lane.b32.xlu1 %v2471_v7, %s2608_s5 }
  0x27   : > { %335 = vrot.lane.b32.xlu0 %v2464_v0, %s2609_s12  ;;  %319 = vrot.lane.b32.xlu1 %v2464_v0, %s2610_s13  ;;  %v463_v0 = vld [vmem:[%s3125_s3 + $0x60] sm:$0xff] }
  0x2b   : > { %379 = vrot.lane.b32.xlu0 %v2466_v2, %s2609_s12  ;;  %363 = vrot.lane.b32.xlu1 %v2466_v2, %s2610_s13 }
  0x2f   : > { %337 = vrot.lane.b32.xlu0 %v2465_v1, %s2609_s12  ;;  %321 = vrot.lane.b32.xlu1 %v2465_v1, %s2610_s13  ;;  %v464_v1 = vld [vmem:[%s3125_s3 + $0x68] sm:$0xff] }
  0x33   : > { %381 = vrot.lane.b32.xlu0 %v2467_v3, %s2609_s12  ;;  %365 = vrot.lane.b32.xlu1 %v2467_v3, %s2610_s13 }
  0x37   : > { %339 = vrot.lane.b32.xlu0 %v2468_v4, %s2609_s12  ;;  %323 = vrot.lane.b32.xlu1 %v2468_v4, %s2610_s13  ;;  %v465_v4 = vld [vmem:[%s3125_s3 + $0x70] sm:$0xff] }
  0x3b   : > { %383 = vrot.lane.b32.xlu0 %v2469_v5, %s2609_s12  ;;  %367 = vrot.lane.b32.xlu1 %v2469_v5, %s2610_s13  ;;  %v466_v5 = vld [vmem:[%s3125_s3 + $0x78] sm:$0xff] }
  0x3f   : > { %341 = vrot.lane.b32.xlu0 %v2470_v6, %s2609_s12  ;;  %325 = vrot.lane.b32.xlu1 %v2470_v6, %s2610_s13 }
  0x43   : > { %385 = vrot.lane.b32.xlu0 %v2471_v7, %s2609_s12  ;;  %369 = vrot.lane.b32.xlu1 %v2471_v7, %s2610_s13 }
  0x89   : > { %v328_v8 = vpop.permute.xlu0 %327  ;;  %v330_v9 = vpop.permute.xlu1 %329 }
  0x8a   : > { %971 = vrot.lane.b32.xlu0 %v328_v8, %s2609_s12  ;;  %v467_v8 = vld [vmem:[%s3125_s3 + $0x80] sm:$0xff] }
  0x8d   : > { %v372_v10 = vpop.permute.xlu0 %371  ;;  %v374_v11 = vpop.permute.xlu1 %373 }
  0x8e   : > { %973 = vrot.lane.b32.xlu0 %v330_v9, %s2609_s12  ;;  %995 = vrot.lane.b32.xlu1 %v372_v10, %s2609_s12  ;;  %v468_v9 = vld [vmem:[%s3125_s3 + $0x88] sm:$0xff] }
  0x91   : > { %v332_v12 = vpop.permute.xlu0 %331  ;;  %v376_v13 = vpop.permute.xlu1 %375 }
  0x92   : > { %997 = vrot.lane.b32.xlu1 %v374_v11, %s2609_s12  ;;  %975 = vrot.lane.b32.xlu0 %v332_v12, %s2609_s12  ;;  %v2472_v11 = vld [vmem:[%s3124_s2] ss:$16 sps:$4 sm:$0xff]  }
  0x95   : > { %v334_v14 = vpop.permute.xlu0 %333  ;;  %v378_v15 = vpop.permute.xlu1 %377 }
  0x96   : > { %999 = vrot.lane.b32.xlu1 %v376_v13, %s2609_s12  ;;  %977 = vrot.lane.b32.xlu0 %v334_v14, %s2609_s12  ;;  %v469_v13 = vld [vmem:[%s3125_s3 + $0x90] sm:$0xff]  ;;  %v470_v14 = vld [vmem:[%s3125_s3 + $0x98] sm:$0xff] }
  0x99   : > { %v336_v16 = vpop.permute.xlu0 %335  ;;  %v320_v17 = vpop.permute.xlu1 %319 }
  0x9a   : > { %1001 = vrot.lane.b32.xlu1 %v378_v15, %s2609_s12  ;;  %979 = vrot.lane.b32.xlu0 %v336_v16, %s2609_s12  ;;  %v2478_v15 = vld [vmem:[%s3124_s2 + $0x24] ss:$16 sps:$4 sm:$0xff]  }
  0x9d   : > { %v380_v18 = vpop.permute.xlu0 %379  ;;  %v364_v19 = vpop.permute.xlu1 %363 }
  0x9e   : > { %963 = vrot.lane.b32.xlu1 %v320_v17, %s2609_s12  ;;  %1003 = vrot.lane.b32.xlu0 %v380_v18, %s2609_s12  ;;  %v2475_v17 = vld [vmem:[%s3124_s2 + $0x8] ss:$16 sps:$4 sm:$0xff]  }
  0xa1   : > { %v338_v20 = vpop.permute.xlu0 %337  ;;  %v322_v21 = vpop.permute.xlu1 %321 }
  0xa2   : > { %987 = vrot.lane.b32.xlu1 %v364_v19, %s2609_s12  ;;  %981 = vrot.lane.b32.xlu0 %v338_v20, %s2609_s12  ;;  %v472_v19 = vld [vmem:[%s3125_s3 + $0xa8] sm:$0xff] }
  0xa5   : > { %v382_v22 = vpop.permute.xlu0 %381  ;;  %v366_v23 = vpop.permute.xlu1 %365 }
  0xa6   : > { %965 = vrot.lane.b32.xlu1 %v322_v21, %s2609_s12  ;;  %1005 = vrot.lane.b32.xlu0 %v382_v22, %s2609_s12  ;;  %v2480_v21 = vld [vmem:[%s3124_s2 + $0x20] ss:$16 sps:$4 sm:$0xff]  }
  0xa9   : > { %v340_v24 = vpop.permute.xlu0 %339  ;;  %v324_v26 = vpop.permute.xlu1 %323 }
  0xaa   : > { %989 = vrot.lane.b32.xlu1 %v366_v23, %s2609_s12  ;;  %983 = vrot.lane.b32.xlu0 %v340_v24, %s2609_s12  ;;  %v474_v23 = vld [vmem:[%s3125_s3 + $0xb8] sm:$0xff] }
  0xad   : > { %v384_v27 = vpop.permute.xlu0 %383  ;;  %v368_v29 = vpop.permute.xlu1 %367 }
  0xae   : > { %967 = vrot.lane.b32.xlu1 %v324_v26, %s2609_s12  ;;  %1007 = vrot.lane.b32.xlu0 %v384_v27, %s2609_s12  ;;  %v475_v26 = vld [vmem:[%s3125_s3 + $0xc0] sm:$0xff] }
  0xb1   : > { %v342_v30 = vpop.permute.xlu0 %341  ;;  %v326_v31 = vpop.permute.xlu1 %325 }
  0xb2   : > { %991 = vrot.lane.b32.xlu1 %v368_v29, %s2609_s12  ;;  %985 = vrot.lane.b32.xlu0 %v342_v30, %s2609_s12  ;;  %v2486_v29 = vld [vmem:[%s3124_s2 + $0x40] ss:$16 sps:$4 sm:$0xff]  }
  0xb5   : > { %v386_v32 = vpop.permute.xlu0 %385  ;;  %v370_v33 = vpop.permute.xlu1 %369 }
  0xb6   : > { %969 = vrot.lane.b32.xlu1 %v326_v31, %s2609_s12  ;;  %1009 = vrot.lane.b32.xlu0 %v386_v32, %s2609_s12  ;;  %v478_v31 = vld [vmem:[%s3125_s3 + $0xd8] sm:$0xff] }
  0xba   : > { %993 = vrot.lane.b32.xlu1 %v370_v33, %s2609_s12  ;;  %485 = vperm.xlu0 %2382, %v451_v37   ;;  %v2489_v33 = vld [vmem:[%s3124_s2 + $0x48] ss:$16 sps:$4 sm:$0xff]   ;;  %v2492_v37 = vld [vmem:[%s3124_s2 + $0x60] ss:$16 sps:$4 sm:$0xff]  }
  0xbe   : > { %490 = vperm.xlu1 %2383, %v452_v41   ;;  %500 = vperm.xlu0 %2382, %v454_v45   ;;  %v2495_v41 = vld [vmem:[%s3124_s2 + $0x68] ss:$16 sps:$4 sm:$0xff]  }
  0xbf   : > { %v2501_v45 = vld [vmem:[%s3124_s2 + $0x88] ss:$16 sps:$4 sm:$0xff]  }
  0xc2   : > { %495 = vperm.xlu1 %2383, %v453_v44   ;;  %510 = vperm.xlu0 %2382, %v456_v49   ;;  %v2502_v44 = vld [vmem:[%s3124_s2 + $0xa4] ss:$16 sps:$4 sm:$0xff]   ;;  %v2507_v49 = vld [vmem:[%s3124_s2 + $0xa8] ss:$16 sps:$4 sm:$0xff]  }
  0xc6   : > { %505 = vperm.xlu1 %2383, %v455_v48   ;;  %520 = vperm.xlu0 %2382, %v458_v53   ;;  %v2508_v48 = vld [vmem:[%s3124_s2 + $0xc4] ss:$16 sps:$4 sm:$0xff]   ;;  %v2513_v53 = vld [vmem:[%s3124_s2 + $0xc8] ss:$16 sps:$4 sm:$0xff]  }
  0xca   : > { %515 = vperm.xlu1 %2383, %v457_v52   ;;  %530 = vperm.xlu0 %2382, %v460_v57   ;;  %v2514_v52 = vld [vmem:[%s3124_s2 + $0xe4] ss:$16 sps:$4 sm:$0xff]   ;;  %v2519_v57 = vld [vmem:[%s3124_s2 + $0xe8] ss:$16 sps:$4 sm:$0xff]  }
  0xce   : > { %525 = vperm.xlu1 %2383, %v459_v56   ;;  %540 = vperm.xlu0 %2382, %v462_v61   ;;  %v2520_v56 = vld [vmem:[%s3124_s2 + $0x104] ss:$16 sps:$4 sm:$0xff]   ;;  %v2525_v61 = vld [vmem:[%s3124_s2 + $0x108] ss:$16 sps:$4 sm:$0xff]  }
  0xd2   : > { %535 = vperm.xlu1 %2383, %v461_v60   ;;  %550 = vperm.xlu0 %2382, %v464_v1   ;;  %v2526_v60 = vld [vmem:[%s3124_s2 + $0x124] ss:$16 sps:$4 sm:$0xff]   ;;  %v2531_v1 = vld [vmem:[%s3124_s2 + $0x128] ss:$16 sps:$4 sm:$0xff]  }
  0xd6   : > { %545 = vperm.xlu1 %2383, %v463_v0   ;;  %560 = vperm.xlu0 %2382, %v466_v5   ;;  %v2532_v0 = vld [vmem:[%s3124_s2 + $0x144] ss:$16 sps:$4 sm:$0xff]   ;;  %v2537_v5 = vld [vmem:[%s3124_s2 + $0x148] ss:$16 sps:$4 sm:$0xff]  }
  0xda   : > { %555 = vperm.xlu1 %2383, %v465_v4   ;;  %570 = vperm.xlu0 %2382, %v468_v9   ;;  %v2538_v4 = vld [vmem:[%s3124_s2 + $0x164] ss:$16 sps:$4 sm:$0xff]   ;;  %v2543_v9 = vld [vmem:[%s3124_s2 + $0x168] ss:$16 sps:$4 sm:$0xff]  }
  0xde   : > { %565 = vperm.xlu1 %2383, %v467_v8   ;;  %580 = vperm.xlu0 %2382, %v470_v14   ;;  %v2544_v8 = vld [vmem:[%s3124_s2 + $0x184] ss:$16 sps:$4 sm:$0xff]   ;;  %v2553_v14 = vld [vmem:[%s3124_s2 + $0x1ac] ss:$16 sps:$4 sm:$0xff]  }
  0xe2   : > { %575 = vperm.xlu1 %2383, %v469_v13   ;;  %590 = vperm.xlu0 %2382, %v472_v19   ;;  %v2549_v13 = vld [vmem:[%s3124_s2 + $0x188] ss:$16 sps:$4 sm:$0xff]   ;;  %v2558_v19 = vld [vmem:[%s3124_s2 + $0x1c0] ss:$16 sps:$4 sm:$0xff]  }
  0xe6   : > { %600 = vperm.xlu0 %2382, %v474_v23   ;;  %v2564_v23 = vld [vmem:[%s3124_s2 + $0x1e0] ss:$16 sps:$4 sm:$0xff]  }
  0xfc   : > { %v972_v34 = vpop.permute.xlu0 %971 }
  0xfd   : > { %2112 = vmatprep.subr.bf16.mxu0 %v972_v34  ;;  %v479_v34 = vld [vmem:[%s3125_s3 + $0xe0] sm:$0xff] }
  0xfe   : > { %2113 = vmatpush3.bf16.msra.mxu0 %v336_v16 }
 0x100   : > { %v974_v35 = vpop.permute.xlu0 %973  ;;  %v996_v36 = vpop.permute.xlu1 %995 }
 0x101   : > { %2114 = vmatprep.subr.bf16.mxu0 %v974_v35  ;;  %2224 = vmatprep.subr.bf16.mxu1 %v996_v36  ;;  %v480_v35 = vld [vmem:[%s3125_s3 + $0xe8] sm:$0xff] }
 0x102   : > { %2115 = vmatpush3.bf16.msra.mxu0 %v338_v20  ;;  %2225 = vmatpush3.bf16.msra.mxu1 %v380_v18  ;;  %v471_v18 = vld [vmem:[%s3125_s3 + $0xa0] sm:$0xff]  ;;  %v2481_v20 = vld [vmem:[%s3124_s2 + $0x2c] ss:$16 sps:$4 sm:$0xff]  }
 0x103   : > { %585 = vperm.xlu1 %2383, %v471_v18   ;;  %v2493_v36 = vld [vmem:[%s3124_s2 + $0x6c] ss:$16 sps:$4 sm:$0xff]  }
 0x104   : > { %v998_v39 = vpop.permute.xlu1 %997  ;;  %v976_v40 = vpop.permute.xlu0 %975  ;;  %v2559_v18 = vld [vmem:[%s3124_s2 + $0x1cc] ss:$16 sps:$4 sm:$0xff]  }
 0x105   : > { %2116 = vmatprep.subr.bf16.mxu0 %v976_v40  ;;  %2226 = vmatprep.subr.bf16.mxu1 %v998_v39  ;;  %v482_v39 = vld [vmem:[%s3125_s3 + $0xf8] sm:$0xff]  ;;  %v2496_v40 = vld [vmem:[%s3124_s2 + $0x84] ss:$16 sps:$4 sm:$0xff]  }
 0x106   : > { %2117 = vmatpush3.bf16.msra.mxu0 %v340_v24  ;;  %2227 = vmatpush3.bf16.msra.mxu1 %v382_v22  ;;  %v473_v22 = vld [vmem:[%s3125_s3 + $0xb0] sm:$0xff] }
 0x107   : > { %v2484_v24 = vld [vmem:[%s3124_s2 + $0x44] ss:$16 sps:$4 sm:$0xff]   ;;  %595 = vperm.xlu1 %2383, %v473_v22   ;;  %v2565_v22 = vld [vmem:[%s3124_s2 + $0x1ec] ss:$16 sps:$4 sm:$0xff]  }
 0x108   : > { %v1000_v42 = vpop.permute.xlu1 %999  ;;  %v978_v43 = vpop.permute.xlu0 %977 }
 0x109   : > { %2118 = vmatprep.subr.bf16.mxu0 %v978_v43  ;;  %2228 = vmatprep.subr.bf16.mxu1 %v1000_v42  ;;  %v2499_v42 = vld [vmem:[%s3124_s2 + $0x8c] ss:$16 sps:$4 sm:$0xff]   ;;  %v2498_v43 = vld [vmem:[%s3124_s2 + $0x80] ss:$16 sps:$4 sm:$0xff]  }
 0x10a   : > { %2119 = vmatpush3.bf16.msra.mxu0 %v342_v30  ;;  %2229 = vmatpush3.bf16.msra.mxu1 %v384_v27  ;;  %v476_v27 = vld [vmem:[%s3125_s3 + $0xc8] sm:$0xff]  ;;  %v477_v30 = vld [vmem:[%s3125_s3 + $0xd0] sm:$0xff] }
 0x10b   : > { %605 = vperm.xlu1 %2383, %v475_v26   ;;  %610 = vperm.xlu0 %2382, %v476_v27  }
 0x10c   : > { %v1002_v46 = vpop.permute.xlu1 %1001  ;;  %v980_v47 = vpop.permute.xlu0 %979 }
 0x10d   : > { %2230 = vmatprep.subr.bf16.mxu1 %v1002_v46  ;;  %2120 = vmatprep.subr.bf16.mxu0 %v980_v47  ;;  %v2505_v46 = vld [vmem:[%s3124_s2 + $0xac] ss:$16 sps:$4 sm:$0xff]   ;;  %v2504_v47 = vld [vmem:[%s3124_s2 + $0xa0] ss:$16 sps:$4 sm:$0xff]  }
 0x10e   : > { %2231 = vmatpush3.bf16.msra.mxu1 %v386_v32  ;;  %v2490_v32 = vld [vmem:[%s3124_s2 + $0x64] ss:$16 sps:$4 sm:$0xff]  }
 0x10f   : > { %615 = vperm.xlu1 %2383, %v477_v30   ;;  %620 = vperm.xlu0 %2382, %v478_v31  }
 0x110   : > { %v964_v50 = vpop.permute.xlu1 %963  ;;  %v1004_v51 = vpop.permute.xlu0 %1003 }
 0x111   : > { %2121 = vmatpush3.bf16.msra.mxu0 %v964_v50  ;;  %2232 = vmatprep.subr.bf16.mxu1 %v1004_v51  ;;  %v2511_v50 = vld [vmem:[%s3124_s2 + $0xcc] ss:$16 sps:$4 sm:$0xff]   ;;  %v2510_v51 = vld [vmem:[%s3124_s2 + $0xc0] ss:$16 sps:$4 sm:$0xff]  }
 0x113   : > { %625 = vperm.xlu1 %2383, %v479_v34   ;;  %630 = vperm.xlu0 %2382, %v480_v35  }
 0x114   : > { %v988_v54 = vpop.permute.xlu1 %987  ;;  %v982_v55 = vpop.permute.xlu0 %981 }
 0x115   : > { %2233 = vmatpush3.bf16.msra.mxu1 %v988_v54  ;;  %2122 = vmatprep.subr.bf16.mxu0 %v982_v55  ;;  %v2517_v54 = vld [vmem:[%s3124_s2 + $0xec] ss:$16 sps:$4 sm:$0xff]   ;;  %v2516_v55 = vld [vmem:[%s3124_s2 + $0xe0] ss:$16 sps:$4 sm:$0xff]  }
 0x117   : > { %635 = vperm.xlu1 %2383, %v481_v38   ;;  %640 = vperm.xlu0 %2382, %v482_v39  }
 0x118   : > { %v966_v58 = vpop.permute.xlu1 %965  ;;  %v1006_v59 = vpop.permute.xlu0 %1005 }
 0x119   : > { %2123 = vmatpush3.bf16.msra.mxu0 %v966_v58  ;;  %2234 = vmatprep.subr.bf16.mxu1 %v1006_v59  ;;  %v2523_v58 = vld [vmem:[%s3124_s2 + $0x10c] ss:$16 sps:$4 sm:$0xff]   ;;  %v2522_v59 = vld [vmem:[%s3124_s2 + $0x100] ss:$16 sps:$4 sm:$0xff]  }
 0x11c   : > { %v990_v62 = vpop.permute.xlu1 %989  ;;  %v984_v63 = vpop.permute.xlu0 %983 }
 0x11d   : > { %2235 = vmatpush3.bf16.msra.mxu1 %v990_v62  ;;  %2124 = vmatprep.subr.bf16.mxu0 %v984_v63  ;;  %v2529_v62 = vld [vmem:[%s3124_s2 + $0x12c] ss:$16 sps:$4 sm:$0xff]   ;;  %v2528_v63 = vld [vmem:[%s3124_s2 + $0x120] ss:$16 sps:$4 sm:$0xff]  }
 0x120   : > { %v968_v2 = vpop.permute.xlu1 %967  ;;  %v1008_v3 = vpop.permute.xlu0 %1007 }
 0x121   : > { %2125 = vmatpush3.bf16.msra.mxu0 %v968_v2  ;;  %2236 = vmatprep.subr.bf16.mxu1 %v1008_v3  ;;  %v2535_v2 = vld [vmem:[%s3124_s2 + $0x14c] ss:$16 sps:$4 sm:$0xff]   ;;  %v2534_v3 = vld [vmem:[%s3124_s2 + $0x140] ss:$16 sps:$4 sm:$0xff]  }
 0x124   : > { %v992_v6 = vpop.permute.xlu1 %991  ;;  %v986_v7 = vpop.permute.xlu0 %985 }
 0x125   : > { %2237 = vmatpush3.bf16.msra.mxu1 %v992_v6  ;;  %2126 = vmatprep.subr.bf16.mxu0 %v986_v7  ;;  %v2541_v6 = vld [vmem:[%s3124_s2 + $0x16c] ss:$16 sps:$4 sm:$0xff]   ;;  %v2540_v7 = vld [vmem:[%s3124_s2 + $0x160] ss:$16 sps:$4 sm:$0xff]  }
 0x128   : > { %v970_v10 = vpop.permute.xlu1 %969  ;;  %v1010_v12 = vpop.permute.xlu0 %1009 }
 0x129   : > { %2127 = vmatpush3.bf16.msra.mxu0 %v970_v10  ;;  %2238 = vmatprep.subr.bf16.mxu1 %v1010_v12  ;;  %v2547_v10 = vld [vmem:[%s3124_s2 + $0x18c] ss:$16 sps:$4 sm:$0xff]   ;;  %v2550_v12 = vld [vmem:[%s3124_s2 + $0x1a4] ss:$16 sps:$4 sm:$0xff]  }
 0x12c   : > { %v994_v16 = vpop.permute.xlu1 %993  ;;  %1076 = vmatmul.mubr.bf16.vlgmr.msra.gmra.mrb[0].mxu0 %v2472_v11  ;;  %v2546_v11 = vld [vmem:[%s3124_s2 + $0x180] ss:$16 sps:$4 sm:$0xff]  }
 0x12d   : > { %2239 = vmatpush3.bf16.msra.mxu1 %v994_v16  ;;  %1083 = vmatprep.mubr.bf16.mxu0 %v2478_v15  ;;  %v2552_v15 = vld [vmem:[%s3124_s2 + $0x1a0] ss:$16 sps:$4 sm:$0xff]   ;;  %v2556_v16 = vld [vmem:[%s3124_s2 + $0x1c4] ss:$16 sps:$4 sm:$0xff]  }
 0x130   : > { %1237 = vmatmul.mubr.bf16.vlgmr.msra.gmra.mrb[0].mxu1 %v2475_v17  ;;  %v2555_v17 = vld [vmem:[%s3124_s2 + $0x1a8] ss:$16 sps:$4 sm:$0xff]  }
 0x131   : > { %1244 = vmatprep.mubr.bf16.mxu1 %v2481_v20  ;;  %v2562_v20 = vld [vmem:[%s3124_s2 + $0x1e4] ss:$16 sps:$4 sm:$0xff]  }
 0x134   : > { %1084 = vmatmul.mubr.bf16.gmra.mrb[4].mxu0 %v2480_v21  ;;  %v2561_v21 = vld [vmem:[%s3124_s2 + $0x1c8] ss:$16 sps:$4 sm:$0xff]  }
 0x135   : > { %1091 = vmatprep.mubr.bf16.mxu0 %v2484_v24  ;;  %v2567_v24 = vld [vmem:[%s3124_s2 + $0x1e8] ss:$16 sps:$4 sm:$0xff]  }
 0x138   : > { %1245 = vmatmul.mubr.bf16.gmra.mrb[4].mxu1 %v2483_v25 }
 0x139   : > { %1252 = vmatprep.mubr.bf16.mxu1 %v2487_v28  ;;  %v486_v27 = vpop.permute.xlu0 %485 }
 0x13c   : > { %1092 = vmatmul.mubr.bf16.gmra.mrb[8].mxu0 %v2486_v29 }
 0x13d   : > { %1099 = vmatprep.mubr.bf16.mxu0 %v2490_v32  ;;  %v491_v34 = vpop.permute.xlu1 %490 }
 0x140   : > { %1253 = vmatmul.mubr.bf16.gmra.mrb[8].mxu1 %v2489_v33 }
 0x141   : > { %1260 = vmatprep.mubr.bf16.mxu1 %v2493_v36 }
 0x144   : > { %1100 = vmatmul.mubr.bf16.gmra.mrb[12].mxu0 %v2492_v37 }
 0x145   : > { %1107 = vmatprep.mubr.bf16.mxu0 %v2496_v40 }
 0x148   : > { %1261 = vmatmul.mubr.bf16.gmra.mrb[12].mxu1 %v2495_v41 }
 0x149   : > { %1268 = vmatprep.mubr.bf16.mxu1 %v2499_v42 }
 0x14c   : > { %1108 = vmatmul.mubr.bf16.gmra.mrb[16].mxu0 %v2498_v43 }
 0x14d   : > { %1115 = vmatprep.mubr.bf16.mxu0 %v2502_v44  ;;  %v496_v44 = vpop.permute.xlu1 %495 }
 0x150   : > { %1269 = vmatmul.mubr.bf16.gmra.mrb[16].mxu1 %v2501_v45 }
 0x151   : > { %1276 = vmatprep.mubr.bf16.mxu1 %v2505_v46 }
 0x154   : > { %1116 = vmatmul.mubr.bf16.gmra.mrb[20].mxu0 %v2504_v47 }
 0x155   : > { %1123 = vmatprep.mubr.bf16.mxu0 %v2508_v48 }
 0x158   : > { %1277 = vmatmul.mubr.bf16.gmra.mrb[20].mxu1 %v2507_v49 }
 0x159   : > { %1284 = vmatprep.mubr.bf16.mxu1 %v2511_v50 }
 0x15c   : > { %1124 = vmatmul.mubr.bf16.gmra.mrb[24].mxu0 %v2510_v51 }
 0x15d   : > { %1131 = vmatprep.mubr.bf16.mxu0 %v2514_v52 }
 0x160   : > { %1285 = vmatmul.mubr.bf16.gmra.mrb[24].mxu1 %v2513_v53 }
 0x161   : > { %1292 = vmatprep.mubr.bf16.mxu1 %v2517_v54 }
 0x164   : > { %1132 = vmatmul.mubr.bf16.gmra.mrb[28].mxu0 %v2516_v55 }
 0x165   : > { %1139 = vmatprep.mubr.bf16.mxu0 %v2520_v56 }
 0x168   : > { %1293 = vmatmul.mubr.bf16.gmra.mrb[28].mxu1 %v2519_v57 }
 0x169   : > { %1300 = vmatprep.mubr.bf16.mxu1 %v2523_v58  ;;  %v501_v58 = vpop.permute.xlu0 %500 }
 0x16c   : > { %1140 = vmatmul.mubr.bf16.gmra.mrb[32].mxu0 %v2522_v59 }
 0x16d   : > { %1147 = vmatprep.mubr.bf16.mxu0 %v2526_v60 }
 0x170   : > { %1301 = vmatmul.mubr.bf16.gmra.mrb[32].mxu1 %v2525_v61 }
 0x171   : > { %1308 = vmatprep.mubr.bf16.mxu1 %v2529_v62 }
 0x174   : > { %1148 = vmatmul.mubr.bf16.gmra.mrb[36].mxu0 %v2528_v63 }
 0x175   : > { %1155 = vmatprep.mubr.bf16.mxu0 %v2532_v0 }
 0x178   : > { %1309 = vmatmul.mubr.bf16.gmra.mrb[36].mxu1 %v2531_v1 }
 0x179   : > { %1316 = vmatprep.mubr.bf16.mxu1 %v2535_v2 }
 0x17c   : > { %1156 = vmatmul.mubr.bf16.gmra.mrb[40].mxu0 %v2534_v3 }
 0x17d   : > { %1163 = vmatprep.mubr.bf16.mxu0 %v2538_v4  ;;  %v506_v4 = vpop.permute.xlu1 %505 }
 0x180   : > { %1317 = vmatmul.mubr.bf16.gmra.mrb[40].mxu1 %v2537_v5 }
 0x181   : > { %1324 = vmatprep.mubr.bf16.mxu1 %v2541_v6 }
 0x184   : > { %1164 = vmatmul.mubr.bf16.gmra.mrb[44].mxu0 %v2540_v7 }
 0x185   : > { %1171 = vmatprep.mubr.bf16.mxu0 %v2544_v8 }
 0x188   : > { %1325 = vmatmul.mubr.bf16.gmra.mrb[44].mxu1 %v2543_v9 }
 0x189   : > { %1332 = vmatprep.mubr.bf16.mxu1 %v2547_v10 }
 0x18c   : > { %1172 = vmatmul.mubr.bf16.gmra.mrb[48].mxu0 %v2546_v11 }
 0x18d   : > { %1179 = vmatprep.mubr.bf16.mxu0 %v2550_v12 }
 0x190   : > { %1333 = vmatmul.mubr.bf16.gmra.mrb[48].mxu1 %v2549_v13 }
 0x191   : > { %1340 = vmatprep.mubr.bf16.mxu1 %v2553_v14 }
 0x194   : > { %1180 = vmatmul.mubr.bf16.gmra.mrb[52].mxu0 %v2552_v15  ;;  %v511_v15 = vpop.permute.xlu0 %510 }
 0x195   : > { %1187 = vmatprep.mubr.bf16.mxu0 %v2556_v16 }
 0x198   : > { %1341 = vmatmul.mubr.bf16.gmra.mrb[52].mxu1 %v2555_v17 }
 0x199   : > { %1348 = vmatprep.mubr.bf16.mxu1 %v2559_v18 }
 0x19c   : > { %1188 = vmatmul.mubr.bf16.gmra.mrb[56].mxu0 %v2558_v19 }
 0x19d   : > { %1195 = vmatprep.mubr.bf16.mxu0 %v2562_v20 }
 0x1a0   : > { %1349 = vmatmul.mubr.bf16.gmra.mrb[56].mxu1 %v2561_v21 }
 0x1a1   : > { %1356 = vmatprep.mubr.bf16.mxu1 %v2565_v22 }
 0x1a4   : > { %1196 = vmatmul.mubr.bf16.gmra.mrb[60].mxu0 %v2564_v23 }
 0x1a8   : > { %1357 = vmatmul.mubr.bf16.gmra.mrb[60].mxu1 %v2567_v24 }
 0x1ff   : > { %v2128_v25 = vpop.f32.mrb[0].mxu0 }
 0x200   : > { %v2129_v26 = vpop.f32.mrb[1].mxu0 }
 0x201   : > { %v2130_v28 = vadd.f32 %v2129_v26, %v2128_v25  ;;  %v2131_v29 = vpop.f32.mrb[2].mxu0  ;;  %v516_v25 = vpop.permute.xlu1 %515 }
 0x202   : > { %v2132_v30 = vpop.f32.mrb[3].mxu0 }
 0x203   : > { %v2133_v31 = vadd.f32 %v2132_v30, %v2131_v29  ;;  %v2240_v32 = vpop.f32.mrb[0].mxu1  ;;  %v1078_v33 = vadd.f32 %v2130_v28, %v486_v27 }
 0x204   : > { %v2241_v35 = vpop.f32.mrb[1].mxu1 }
 0x205   : > { %v2242_v36 = vadd.f32 %v2241_v35, %v2240_v32  ;;  %v2243_v37 = vpop.f32.mrb[2].mxu1  ;;  %v1081_v39 = vadd.f32 %v2133_v31, %v491_v34 }
 0x206   : > { %v2244_v38 = vpop.f32.mrb[3].mxu1 }
 0x207   : > { %v1239_v40 = vadd.f32 %v2242_v36, %v1078_v33  ;;  %v2245_v41 = vadd.f32 %v2244_v38, %v2243_v37  ;;  %v2134_v42 = vpop.f32.mrb[4].mxu0  ;;  %v521_v36 = vpop.permute.xlu0 %520 }
 0x208   : > { %v2135_v43 = vpop.f32.mrb[5].mxu0 }
 0x209   : > { %v1242_v45 = vadd.f32 %v2245_v41, %v1081_v39  ;;  %v2136_v46 = vadd.f32 %v2135_v43, %v2134_v42  ;;  %v2137_v47 = vpop.f32.mrb[6].mxu0  ;;  %v1365_v49 = vmax.f32 %v1239_v40, 0.0 }
 0x20a   : > { %v2138_v48 = vpop.f32.mrb[7].mxu0 }
 0x20b   : > { %v1366_v50 = vmax.f32 %v1242_v45, 0.0  ;;  %v1086_v51 = vadd.f32 %v2136_v46, %v496_v44  ;;  %v2139_v52 = vadd.f32 %v2138_v48, %v2137_v47  ;;  %v2246_v53 = vpop.f32.mrb[4].mxu1  ;;  %v526_v46 = vpop.permute.xlu1 %525 }
 0x20c   : > { %v2247_v54 = vpop.f32.mrb[5].mxu1 }
 0x20d   : > { %v2248_v55 = vadd.f32 %v2247_v54, %v2246_v53  ;;  %v2249_v56 = vpop.f32.mrb[6].mxu1  ;;  %v2384_v57 = vpack.i.bf16 %v1366_v50, %v1365_v49  ;;  %v1089_v60 = vadd.f32 %v2139_v52, %v501_v58 }
 0x20e   : > { %v2250_v59 = vpop.f32.mrb[7].mxu1 }
 0x20f   : > { %v1247_v61 = vadd.f32 %v2248_v55, %v1086_v51  ;;  %v2251_v62 = vadd.f32 %v2250_v59, %v2249_v56  ;;  %v2140_v63 = vpop.f32.mrb[8].mxu0  ;;  %2385 = vrot.lane.b32.xlu1 %v2384_v57, %s2612_s23  ;;  %v531_v57 = vpop.permute.xlu0 %530 }
 0x210   : > { %v2141_v0 = vpop.f32.mrb[9].mxu0 }
 0x211   : > { %v1250_v1 = vadd.f32 %v2251_v62, %v1089_v60  ;;  %v2142_v2 = vadd.f32 %v2141_v0, %v2140_v63  ;;  %v2143_v3 = vpop.f32.mrb[10].mxu0  ;;  %v1367_v6 = vmax.f32 %v1247_v61, 0.0 }
 0x212   : > { %v2144_v5 = vpop.f32.mrb[11].mxu0 }
 0x213   : > { %v1368_v7 = vmax.f32 %v1250_v1, 0.0  ;;  %v1094_v8 = vadd.f32 %v2142_v2, %v506_v4  ;;  %v2145_v9 = vadd.f32 %v2144_v5, %v2143_v3  ;;  %v2252_v10 = vpop.f32.mrb[8].mxu1  ;;  %v536_v3 = vpop.permute.xlu1 %535 }
 0x214   : > { %v2253_v11 = vpop.f32.mrb[9].mxu1 }
 0x215   : > { %v2254_v12 = vadd.f32 %v2253_v11, %v2252_v10  ;;  %v2255_v13 = vpop.f32.mrb[10].mxu1  ;;  %v2389_v14 = vpack.i.bf16 %v1368_v7, %v1367_v6  ;;  %v1097_v17 = vadd.f32 %v2145_v9, %v511_v15 }
 0x216   : > { %v2256_v16 = vpop.f32.mrb[11].mxu1 }
 0x217   : > { %v1255_v18 = vadd.f32 %v2254_v12, %v1094_v8  ;;  %v2257_v19 = vadd.f32 %v2256_v16, %v2255_v13  ;;  %v2146_v20 = vpop.f32.mrb[12].mxu0  ;;  %2390 = vrot.lane.b32.xlu0 %v2389_v14, %s2612_s23  ;;  %v541_v14 = vpop.permute.xlu0 %540 }
 0x218   : > { %v2147_v21 = vpop.f32.mrb[13].mxu0 }
 0x219   : > { %v1258_v22 = vadd.f32 %v2257_v19, %v1097_v17  ;;  %v2148_v23 = vadd.f32 %v2147_v21, %v2146_v20  ;;  %v2149_v24 = vpop.f32.mrb[14].mxu0  ;;  %v1369_v27 = vmax.f32 %v1255_v18, 0.0 }
 0x21a   : > { %v2150_v26 = vpop.f32.mrb[15].mxu0 }
 0x21b   : > { %v1370_v28 = vmax.f32 %v1258_v22, 0.0  ;;  %v1102_v29 = vadd.f32 %v2148_v23, %v516_v25  ;;  %v2151_v30 = vadd.f32 %v2150_v26, %v2149_v24  ;;  %v2258_v31 = vpop.f32.mrb[12].mxu1  ;;  %v546_v24 = vpop.permute.xlu1 %545 }
 0x21c   : > { %v2259_v32 = vpop.f32.mrb[13].mxu1 }
 0x21d   : > { %v2260_v33 = vadd.f32 %v2259_v32, %v2258_v31  ;;  %v2261_v34 = vpop.f32.mrb[14].mxu1  ;;  %v2394_v35 = vpack.i.bf16 %v1370_v28, %v1369_v27  ;;  %v1105_v38 = vadd.f32 %v2151_v30, %v521_v36 }
 0x21e   : > { %v2262_v37 = vpop.f32.mrb[15].mxu1 }
 0x21f   : > { %v1263_v39 = vadd.f32 %v2260_v33, %v1102_v29  ;;  %v2263_v40 = vadd.f32 %v2262_v37, %v2261_v34  ;;  %v2152_v41 = vpop.f32.mrb[16].mxu0  ;;  %2395 = vrot.lane.b32.xlu1 %v2394_v35, %s2612_s23  ;;  %v551_v35 = vpop.permute.xlu0 %550 }
 0x220   : > { %v2153_v42 = vpop.f32.mrb[17].mxu0 }
 0x221   : > { %v1266_v43 = vadd.f32 %v2263_v40, %v1105_v38  ;;  %v2154_v44 = vadd.f32 %v2153_v42, %v2152_v41  ;;  %v2155_v45 = vpop.f32.mrb[18].mxu0  ;;  %v1371_v48 = vmax.f32 %v1263_v39, 0.0 }
 0x222   : > { %v2156_v47 = vpop.f32.mrb[19].mxu0 }
 0x223   : > { %v1372_v49 = vmax.f32 %v1266_v43, 0.0  ;;  %v1110_v50 = vadd.f32 %v2154_v44, %v526_v46  ;;  %v2157_v51 = vadd.f32 %v2156_v47, %v2155_v45  ;;  %v2264_v52 = vpop.f32.mrb[16].mxu1  ;;  %v556_v45 = vpop.permute.xlu1 %555 }
 0x224   : > { %v2265_v53 = vpop.f32.mrb[17].mxu1 }
 0x225   : > { %v2266_v54 = vadd.f32 %v2265_v53, %v2264_v52  ;;  %v2267_v55 = vpop.f32.mrb[18].mxu1  ;;  %v2399_v56 = vpack.i.bf16 %v1372_v49, %v1371_v48  ;;  %v1113_v59 = vadd.f32 %v2157_v51, %v531_v57 }
 0x226   : > { %v2268_v58 = vpop.f32.mrb[19].mxu1 }
 0x227   : > { %v1271_v60 = vadd.f32 %v2266_v54, %v1110_v50  ;;  %v2269_v61 = vadd.f32 %v2268_v58, %v2267_v55  ;;  %v2158_v62 = vpop.f32.mrb[20].mxu0  ;;  %2400 = vrot.lane.b32.xlu0 %v2399_v56, %s2612_s23  ;;  %v561_v56 = vpop.permute.xlu0 %560 }
 0x228   : > { %v2159_v63 = vpop.f32.mrb[21].mxu0 }
 0x229   : > { %v1274_v0 = vadd.f32 %v2269_v61, %v1113_v59  ;;  %v2160_v1 = vadd.f32 %v2159_v63, %v2158_v62  ;;  %v2161_v2 = vpop.f32.mrb[22].mxu0  ;;  %v1373_v5 = vmax.f32 %v1271_v60, 0.0 }
 0x22a   : > { %v2162_v4 = vpop.f32.mrb[23].mxu0 }
 0x22b   : > { %v1374_v6 = vmax.f32 %v1274_v0, 0.0  ;;  %v1118_v7 = vadd.f32 %v2160_v1, %v536_v3  ;;  %v2163_v8 = vadd.f32 %v2162_v4, %v2161_v2  ;;  %v2270_v9 = vpop.f32.mrb[20].mxu1 }
 0x22c   : > { %v2271_v10 = vpop.f32.mrb[21].mxu1 }
 0x22d   : > { %v2272_v11 = vadd.f32 %v2271_v10, %v2270_v9  ;;  %v2273_v12 = vpop.f32.mrb[22].mxu1  ;;  %v2404_v13 = vpack.i.bf16 %v1374_v6, %v1373_v5  ;;  %v1121_v16 = vadd.f32 %v2163_v8, %v541_v14 }
 0x22e   : > { %v2274_v15 = vpop.f32.mrb[23].mxu1 }
 0x22f   : > { %v1279_v17 = vadd.f32 %v2272_v11, %v1118_v7  ;;  %v2275_v18 = vadd.f32 %v2274_v15, %v2273_v12  ;;  %v2164_v19 = vpop.f32.mrb[24].mxu0  ;;  %2405 = vrot.lane.b32.xlu1 %v2404_v13, %s2612_s23  ;;  %v566_v7 = vpop.permute.xlu1 %565 }
 0x230   : > { %v2165_v20 = vpop.f32.mrb[25].mxu0  ;;  %v571_v13 = vpop.permute.xlu0 %570 }
 0x231   : > { %v1282_v21 = vadd.f32 %v2275_v18, %v1121_v16  ;;  %v2166_v22 = vadd.f32 %v2165_v20, %v2164_v19  ;;  %v2167_v23 = vpop.f32.mrb[26].mxu0  ;;  %v1375_v26 = vmax.f32 %v1279_v17, 0.0 }
 0x232   : > { %v2168_v25 = vpop.f32.mrb[27].mxu0 }
 0x233   : > { %v1376_v27 = vmax.f32 %v1282_v21, 0.0  ;;  %v1126_v28 = vadd.f32 %v2166_v22, %v546_v24  ;;  %v2169_v29 = vadd.f32 %v2168_v25, %v2167_v23  ;;  %v2276_v30 = vpop.f32.mrb[24].mxu1 }
 0x234   : > { %v2277_v31 = vpop.f32.mrb[25].mxu1 }
 0x235   : > { %v2278_v32 = vadd.f32 %v2277_v31, %v2276_v30  ;;  %v2279_v33 = vpop.f32.mrb[26].mxu1  ;;  %v2409_v34 = vpack.i.bf16 %v1376_v27, %v1375_v26  ;;  %v1129_v37 = vadd.f32 %v2169_v29, %v551_v35 }
 0x236   : > { %v2280_v36 = vpop.f32.mrb[27].mxu1 }
 0x237   : > { %v1287_v38 = vadd.f32 %v2278_v32, %v1126_v28  ;;  %v2281_v39 = vadd.f32 %v2280_v36, %v2279_v33  ;;  %v2170_v40 = vpop.f32.mrb[28].mxu0  ;;  %2410 = vrot.lane.b32.xlu0 %v2409_v34, %s2612_s23  ;;  %v576_v28 = vpop.permute.xlu1 %575 }
 0x238   : > { %v2171_v41 = vpop.f32.mrb[29].mxu0  ;;  %v581_v34 = vpop.permute.xlu0 %580 }
 0x239   : > { %v1290_v42 = vadd.f32 %v2281_v39, %v1129_v37  ;;  %v2172_v43 = vadd.f32 %v2171_v41, %v2170_v40  ;;  %v2173_v44 = vpop.f32.mrb[30].mxu0  ;;  %v1377_v47 = vmax.f32 %v1287_v38, 0.0 }
 0x23a   : > { %v2174_v46 = vpop.f32.mrb[31].mxu0 }
 0x23b   : > { %v1378_v48 = vmax.f32 %v1290_v42, 0.0  ;;  %v1134_v49 = vadd.f32 %v2172_v43, %v556_v45  ;;  %v2175_v50 = vadd.f32 %v2174_v46, %v2173_v44  ;;  %v2282_v51 = vpop.f32.mrb[28].mxu1 }
 0x23c   : > { %v2283_v52 = vpop.f32.mrb[29].mxu1 }
 0x23d   : > { %v2284_v53 = vadd.f32 %v2283_v52, %v2282_v51  ;;  %v2285_v54 = vpop.f32.mrb[30].mxu1  ;;  %v2414_v55 = vpack.i.bf16 %v1378_v48, %v1377_v47  ;;  %v1137_v58 = vadd.f32 %v2175_v50, %v561_v56 }
 0x23e   : > { %v2286_v57 = vpop.f32.mrb[31].mxu1 }
 0x23f   : > { %v1295_v59 = vadd.f32 %v2284_v53, %v1134_v49  ;;  %v2287_v60 = vadd.f32 %v2286_v57, %v2285_v54  ;;  %v2176_v61 = vpop.f32.mrb[32].mxu0  ;;  %2415 = vrot.lane.b32.xlu1 %v2414_v55, %s2612_s23  ;;  %v586_v49 = vpop.permute.xlu1 %585 }
 0x240   : > { %v2177_v62 = vpop.f32.mrb[33].mxu0  ;;  %v591_v55 = vpop.permute.xlu0 %590 }
 0x241   : > { %v1298_v63 = vadd.f32 %v2287_v60, %v1137_v58  ;;  %v2178_v0 = vadd.f32 %v2177_v62, %v2176_v61  ;;  %v2179_v1 = vpop.f32.mrb[34].mxu0  ;;  %v1379_v3 = vmax.f32 %v1295_v59, 0.0 }
 0x242   : > { %v2180_v2 = vpop.f32.mrb[35].mxu0 }
 0x243   : > { %v1380_v4 = vmax.f32 %v1298_v63, 0.0  ;;  %v2181_v5 = vadd.f32 %v2180_v2, %v2179_v1  ;;  %v2288_v6 = vpop.f32.mrb[32].mxu1  ;;  %v1142_v9 = vadd.f32 %v2178_v0, %v566_v7 }
 0x244   : > { %v2289_v8 = vpop.f32.mrb[33].mxu1 }
 0x245   : > { %v2290_v10 = vadd.f32 %v2289_v8, %v2288_v6  ;;  %v2291_v11 = vpop.f32.mrb[34].mxu1  ;;  %v2419_v12 = vpack.i.bf16 %v1380_v4, %v1379_v3  ;;  %v1145_v15 = vadd.f32 %v2181_v5, %v571_v13  ;;  %v596_v6 = vpop.permute.xlu1 %595 }
 0x246   : > { %v2292_v14 = vpop.f32.mrb[35].mxu1 }
 0x247   : > { %v1303_v16 = vadd.f32 %v2290_v10, %v1142_v9  ;;  %v2293_v17 = vadd.f32 %v2292_v14, %v2291_v11  ;;  %v2182_v18 = vpop.f32.mrb[36].mxu0  ;;  %2420 = vrot.lane.b32.xlu0 %v2419_v12, %s2612_s23  ;;  %v601_v12 = vpop.permute.xlu0 %600 }
 0x248   : > { %v2183_v19 = vpop.f32.mrb[37].mxu0 }
 0x249   : > { %v1306_v20 = vadd.f32 %v2293_v17, %v1145_v15  ;;  %v2184_v21 = vadd.f32 %v2183_v19, %v2182_v18  ;;  %v2185_v22 = vpop.f32.mrb[38].mxu0  ;;  %v1381_v24 = vmax.f32 %v1303_v16, 0.0 }
 0x24a   : > { %v2186_v23 = vpop.f32.mrb[39].mxu0 }
 0x24b   : > { %v1382_v25 = vmax.f32 %v1306_v20, 0.0  ;;  %v2187_v26 = vadd.f32 %v2186_v23, %v2185_v22  ;;  %v2294_v27 = vpop.f32.mrb[36].mxu1  ;;  %v1150_v30 = vadd.f32 %v2184_v21, %v576_v28 }
 0x24c   : > { %v2295_v29 = vpop.f32.mrb[37].mxu1 }
 0x24d   : > { %v2296_v31 = vadd.f32 %v2295_v29, %v2294_v27  ;;  %v2297_v32 = vpop.f32.mrb[38].mxu1  ;;  %v2424_v33 = vpack.i.bf16 %v1382_v25, %v1381_v24  ;;  %v1153_v36 = vadd.f32 %v2187_v26, %v581_v34  ;;  %v606_v27 = vpop.permute.xlu1 %605 }
 0x24e   : > { %v2298_v35 = vpop.f32.mrb[39].mxu1 }
 0x24f   : > { %v1311_v37 = vadd.f32 %v2296_v31, %v1150_v30  ;;  %v2299_v38 = vadd.f32 %v2298_v35, %v2297_v32  ;;  %v2188_v39 = vpop.f32.mrb[40].mxu0  ;;  %2425 = vrot.lane.b32.xlu1 %v2424_v33, %s2612_s23  ;;  %v611_v33 = vpop.permute.xlu0 %610 }
 0x250   : > { %v2189_v40 = vpop.f32.mrb[41].mxu0 }
 0x251   : > { %v1314_v41 = vadd.f32 %v2299_v38, %v1153_v36  ;;  %v2190_v42 = vadd.f32 %v2189_v40, %v2188_v39  ;;  %v2191_v43 = vpop.f32.mrb[42].mxu0  ;;  %v1383_v45 = vmax.f32 %v1311_v37, 0.0 }
 0x252   : > { %v2192_v44 = vpop.f32.mrb[43].mxu0 }
 0x253   : > { %v1384_v46 = vmax.f32 %v1314_v41, 0.0  ;;  %v2193_v47 = vadd.f32 %v2192_v44, %v2191_v43  ;;  %v2300_v48 = vpop.f32.mrb[40].mxu1  ;;  %v1158_v51 = vadd.f32 %v2190_v42, %v586_v49 }
 0x254   : > { %v2301_v50 = vpop.f32.mrb[41].mxu1 }
 0x255   : > { %v2302_v52 = vadd.f32 %v2301_v50, %v2300_v48  ;;  %v2303_v53 = vpop.f32.mrb[42].mxu1  ;;  %v2429_v54 = vpack.i.bf16 %v1384_v46, %v1383_v45  ;;  %v1161_v57 = vadd.f32 %v2193_v47, %v591_v55  ;;  %v616_v48 = vpop.permute.xlu1 %615 }
 0x256   : > { %v2304_v56 = vpop.f32.mrb[43].mxu1 }
 0x257   : > { %v1319_v58 = vadd.f32 %v2302_v52, %v1158_v51  ;;  %v2305_v59 = vadd.f32 %v2304_v56, %v2303_v53  ;;  %v2194_v60 = vpop.f32.mrb[44].mxu0  ;;  %2430 = vrot.lane.b32.xlu0 %v2429_v54, %s2612_s23  ;;  %v621_v54 = vpop.permute.xlu0 %620 }
 0x258   : > { %v2195_v61 = vpop.f32.mrb[45].mxu0 }
 0x259   : > { %v1322_v62 = vadd.f32 %v2305_v59, %v1161_v57  ;;  %v2196_v63 = vadd.f32 %v2195_v61, %v2194_v60  ;;  %v2197_v0 = vpop.f32.mrb[46].mxu0  ;;  %v1385_v2 = vmax.f32 %v1319_v58, 0.0 }
 0x25a   : > { %v2198_v1 = vpop.f32.mrb[47].mxu0 }
 0x25b   : > { %v1386_v3 = vmax.f32 %v1322_v62, 0.0  ;;  %v2199_v4 = vadd.f32 %v2198_v1, %v2197_v0  ;;  %v2306_v5 = vpop.f32.mrb[44].mxu1  ;;  %v1166_v8 = vadd.f32 %v2196_v63, %v596_v6 }
 0x25c   : > { %v2307_v7 = vpop.f32.mrb[45].mxu1 }
 0x25d   : > { %v2308_v9 = vadd.f32 %v2307_v7, %v2306_v5  ;;  %v2309_v10 = vpop.f32.mrb[46].mxu1  ;;  %v2434_v11 = vpack.i.bf16 %v1386_v3, %v1385_v2  ;;  %v1169_v14 = vadd.f32 %v2199_v4, %v601_v12  ;;  %v626_v5 = vpop.permute.xlu1 %625 }
 0x25e   : > { %v2310_v13 = vpop.f32.mrb[47].mxu1 }
 0x25f   : > { %v1327_v15 = vadd.f32 %v2308_v9, %v1166_v8  ;;  %v2311_v16 = vadd.f32 %v2310_v13, %v2309_v10  ;;  %v2200_v17 = vpop.f32.mrb[48].mxu0  ;;  %2435 = vrot.lane.b32.xlu1 %v2434_v11, %s2612_s23  ;;  %v631_v11 = vpop.permute.xlu0 %630 }
 0x260   : > { %v2201_v18 = vpop.f32.mrb[49].mxu0 }
 0x261   : > { %v1330_v19 = vadd.f32 %v2311_v16, %v1169_v14  ;;  %v2202_v20 = vadd.f32 %v2201_v18, %v2200_v17  ;;  %v2203_v21 = vpop.f32.mrb[50].mxu0  ;;  %v1387_v23 = vmax.f32 %v1327_v15, 0.0 }
 0x262   : > { %v2204_v22 = vpop.f32.mrb[51].mxu0 }
 0x263   : > { %v1388_v24 = vmax.f32 %v1330_v19, 0.0  ;;  %v2205_v25 = vadd.f32 %v2204_v22, %v2203_v21  ;;  %v2312_v26 = vpop.f32.mrb[48].mxu1  ;;  %v1174_v29 = vadd.f32 %v2202_v20, %v606_v27 }
 0x264   : > { %v2313_v28 = vpop.f32.mrb[49].mxu1 }
 0x265   : > { %v2314_v30 = vadd.f32 %v2313_v28, %v2312_v26  ;;  %v2315_v31 = vpop.f32.mrb[50].mxu1  ;;  %v2439_v32 = vpack.i.bf16 %v1388_v24, %v1387_v23  ;;  %v1177_v35 = vadd.f32 %v2205_v25, %v611_v33  ;;  %v636_v26 = vpop.permute.xlu1 %635 }
 0x266   : > { %v2316_v34 = vpop.f32.mrb[51].mxu1 }
 0x267   : > { %v1335_v36 = vadd.f32 %v2314_v30, %v1174_v29  ;;  %v2317_v37 = vadd.f32 %v2316_v34, %v2315_v31  ;;  %v2206_v38 = vpop.f32.mrb[52].mxu0  ;;  %2440 = vrot.lane.b32.xlu0 %v2439_v32, %s2612_s23  ;;  %v641_v32 = vpop.permute.xlu0 %640 }
 0x268   : > { %v2207_v39 = vpop.f32.mrb[53].mxu0 }
 0x269   : > { %v1338_v40 = vadd.f32 %v2317_v37, %v1177_v35  ;;  %v2208_v41 = vadd.f32 %v2207_v39, %v2206_v38  ;;  %v2209_v42 = vpop.f32.mrb[54].mxu0  ;;  %v1389_v44 = vmax.f32 %v1335_v36, 0.0 }
 0x26a   : > { %v2210_v43 = vpop.f32.mrb[55].mxu0 }
 0x26b   : > { %v1390_v45 = vmax.f32 %v1338_v40, 0.0  ;;  %v2211_v46 = vadd.f32 %v2210_v43, %v2209_v42  ;;  %v2318_v47 = vpop.f32.mrb[52].mxu1  ;;  %v1182_v50 = vadd.f32 %v2208_v41, %v616_v48 }
 0x26c   : > { %v2319_v49 = vpop.f32.mrb[53].mxu1 }
 0x26d   : > { %v2320_v51 = vadd.f32 %v2319_v49, %v2318_v47  ;;  %v2321_v52 = vpop.f32.mrb[54].mxu1  ;;  %v2444_v53 = vpack.i.bf16 %v1390_v45, %v1389_v44  ;;  %v1185_v56 = vadd.f32 %v2211_v46, %v621_v54 }
 0x26e   : > { %v2322_v55 = vpop.f32.mrb[55].mxu1 }
 0x26f   : > { %v1343_v57 = vadd.f32 %v2320_v51, %v1182_v50  ;;  %v2323_v58 = vadd.f32 %v2322_v55, %v2321_v52  ;;  %v2212_v59 = vpop.f32.mrb[56].mxu0  ;;  %2445 = vrot.lane.b32.xlu1 %v2444_v53, %s2612_s23 }
 0x270   : > { %v2213_v60 = vpop.f32.mrb[57].mxu0 }
 0x271   : > { %v1346_v61 = vadd.f32 %v2323_v58, %v1185_v56  ;;  %v2214_v62 = vadd.f32 %v2213_v60, %v2212_v59  ;;  %v2215_v63 = vpop.f32.mrb[58].mxu0  ;;  %v1391_v1 = vmax.f32 %v1343_v57, 0.0 }
 0x272   : > { %v2216_v0 = vpop.f32.mrb[59].mxu0 }
 0x273   : > { %v1392_v2 = vmax.f32 %v1346_v61, 0.0  ;;  %v2217_v3 = vadd.f32 %v2216_v0, %v2215_v63  ;;  %v2324_v4 = vpop.f32.mrb[56].mxu1  ;;  %v1190_v7 = vadd.f32 %v2214_v62, %v626_v5 }
 0x274   : > { %v2325_v6 = vpop.f32.mrb[57].mxu1 }
 0x275   : > { %v2326_v8 = vadd.f32 %v2325_v6, %v2324_v4  ;;  %v2327_v9 = vpop.f32.mrb[58].mxu1  ;;  %v2449_v10 = vpack.i.bf16 %v1392_v2, %v1391_v1  ;;  %v1193_v13 = vadd.f32 %v2217_v3, %v631_v11 }
 0x276   : > { %v2328_v12 = vpop.f32.mrb[59].mxu1 }
 0x277   : > { %v1351_v14 = vadd.f32 %v2326_v8, %v1190_v7  ;;  %v2329_v15 = vadd.f32 %v2328_v12, %v2327_v9  ;;  %v2218_v16 = vpop.f32.mrb[60].mxu0  ;;  %2450 = vrot.lane.b32.xlu0 %v2449_v10, %s2612_s23 }
 0x278   : > { %v2219_v17 = vpop.f32.mrb[61].mxu0 }
 0x279   : > { %v1354_v18 = vadd.f32 %v2329_v15, %v1193_v13  ;;  %v2220_v19 = vadd.f32 %v2219_v17, %v2218_v16  ;;  %v2221_v20 = vpop.f32.mrb[62].mxu0  ;;  %v1393_v22 = vmax.f32 %v1351_v14, 0.0 }
 0x27a   : > { %v2222_v21 = vpop.f32.mrb[63].mxu0 }
 0x27b   : > { %v1394_v23 = vmax.f32 %v1354_v18, 0.0  ;;  %v2223_v24 = vadd.f32 %v2222_v21, %v2221_v20  ;;  %v2330_v25 = vpop.f32.mrb[60].mxu1  ;;  %v1198_v28 = vadd.f32 %v2220_v19, %v636_v26 }
 0x27c   : > { %v2331_v27 = vpop.f32.mrb[61].mxu1 }
 0x27d   : > { %v2332_v29 = vadd.f32 %v2331_v27, %v2330_v25  ;;  %v2333_v30 = vpop.f32.mrb[62].mxu1  ;;  %v2454_v31 = vpack.i.bf16 %v1394_v23, %v1393_v22  ;;  %v1201_v34 = vadd.f32 %v2223_v24, %v641_v32 }
 0x27e   : > { %v2334_v33 = vpop.f32.mrb[63].mxu1 }
 0x27f   : > { %v1359_v35 = vadd.f32 %v2332_v29, %v1198_v28  ;;  %v2335_v36 = vadd.f32 %v2334_v33, %v2333_v30  ;;  %2455 = vrot.lane.b32.xlu1 %v2454_v31, %s2612_s23 }
 0x281   : > { %v1362_v37 = vadd.f32 %v2335_v36, %v1201_v34  ;;  %v2386_v38 = vpop.permute.xlu1 %2385  ;;  %v1395_v41 = vmax.f32 %v1359_v35, 0.0 }
 0x282   : > { %v2388_v39 = vunpack.i.h.bf16 %v2386_v38  ;;  %v2387_v40 = vunpack.i.l.bf16 %v2386_v38 }
 0x283   : > { %v1396_v42 = vmax.f32 %v1362_v37, 0.0 }
 0x284   : > { %v1527_v43 = vsel %vm1525_vm0, 0.0, %v2388_v39  ;;  %v1526_v44 = vsel %vm1525_vm0, 0.0, %v2387_v40 }
 0x285   : > { %v1560_v45 = vsel %vm1558_vm1, %v1527_v43, 0.0  ;;  %v1559_v46 = vsel %vm1558_vm1, %v1526_v44, 0.0  ;;  %v2459_v47 = vpack.i.bf16 %v1396_v42, %v1395_v41 }
 0x286   : > { %v2020_v48 = vpack.c.bf16 %v1560_v45, %v1559_v46 }
 0x287   : > { %2460 = vrot.lane.b32.xlu0 %v2459_v47, %s2612_s23 }
 0x288   : > { %2021 = vst [vmem:[%s3026_s28] sm:$0xff] %v2020_v48  }
 0x289   : > { %v2391_v49 = vpop.permute.xlu0 %2390 }
 0x28a   : > { %v2393_v50 = vunpack.i.h.bf16 %v2391_v49  ;;  %v2392_v51 = vunpack.i.l.bf16 %v2391_v49 }
 0x28c   : > { %v1529_v52 = vsel %vm1525_vm0, 0.0, %v2393_v50  ;;  %v1528_v53 = vsel %vm1525_vm0, 0.0, %v2392_v51 }
 0x28d   : > { %v1562_v54 = vsel %vm1558_vm1, %v1529_v52, 0.0  ;;  %v1561_v55 = vsel %vm1558_vm1, %v1528_v53, 0.0 }
 0x28e   : > { %v2025_v56 = vpack.c.bf16 %v1562_v54, %v1561_v55 }
 0x290   : > { %2097 = vst [vmem:[%s3026_s28 + $0x8] sm:$0xff] %v2025_v56  }
 0x291   : > { %v2396_v57 = vpop.permute.xlu1 %2395 }
 0x292   : > { %v2398_v58 = vunpack.i.h.bf16 %v2396_v57  ;;  %v2397_v59 = vunpack.i.l.bf16 %v2396_v57 }
 0x294   : > { %v1531_v60 = vsel %vm1525_vm0, 0.0, %v2398_v58  ;;  %v1530_v61 = vsel %vm1525_vm0, 0.0, %v2397_v59 }
 0x295   : > { %v1564_v62 = vsel %vm1558_vm1, %v1531_v60, 0.0  ;;  %v1563_v63 = vsel %vm1558_vm1, %v1530_v61, 0.0 }
 0x296   : > { %v2030_v0 = vpack.c.bf16 %v1564_v62, %v1563_v63 }
 0x298   : > { %2098 = vst [vmem:[%s3026_s28 + $0x10] sm:$0xff] %v2030_v0  }
 0x299   : > { %v2401_v1 = vpop.permute.xlu0 %2400 }
 0x29a   : > { %v2403_v2 = vunpack.i.h.bf16 %v2401_v1  ;;  %v2402_v3 = vunpack.i.l.bf16 %v2401_v1 }
 0x29c   : > { %v1533_v4 = vsel %vm1525_vm0, 0.0, %v2403_v2  ;;  %v1532_v5 = vsel %vm1525_vm0, 0.0, %v2402_v3 }
 0x29d   : > { %v1566_v6 = vsel %vm1558_vm1, %v1533_v4, 0.0  ;;  %v1565_v7 = vsel %vm1558_vm1, %v1532_v5, 0.0 }
 0x29e   : > { %v2035_v8 = vpack.c.bf16 %v1566_v6, %v1565_v7 }
 0x2a0   : > { %2099 = vst [vmem:[%s3026_s28 + $0x18] sm:$0xff] %v2035_v8  }
 0x2a1   : > { %v2406_v9 = vpop.permute.xlu1 %2405 }
 0x2a2   : > { %v2408_v10 = vunpack.i.h.bf16 %v2406_v9  ;;  %v2407_v11 = vunpack.i.l.bf16 %v2406_v9 }
 0x2a4   : > { %v1535_v12 = vsel %vm1525_vm0, 0.0, %v2408_v10  ;;  %v1534_v13 = vsel %vm1525_vm0, 0.0, %v2407_v11 }
 0x2a5   : > { %v1568_v14 = vsel %vm1558_vm1, %v1535_v12, 0.0  ;;  %v1567_v15 = vsel %vm1558_vm1, %v1534_v13, 0.0 }
 0x2a6   : > { %v2040_v16 = vpack.c.bf16 %v1568_v14, %v1567_v15 }
 0x2a8   : > { %2100 = vst [vmem:[%s3026_s28 + $0x20] sm:$0xff] %v2040_v16  }
 0x2a9   : > { %v2411_v17 = vpop.permute.xlu0 %2410 }
 0x2aa   : > { %v2413_v18 = vunpack.i.h.bf16 %v2411_v17  ;;  %v2412_v19 = vunpack.i.l.bf16 %v2411_v17 }
 0x2ac   : > { %v1537_v20 = vsel %vm1525_vm0, 0.0, %v2413_v18  ;;  %v1536_v21 = vsel %vm1525_vm0, 0.0, %v2412_v19 }
 0x2ad   : > { %v1570_v22 = vsel %vm1558_vm1, %v1537_v20, 0.0  ;;  %v1569_v23 = vsel %vm1558_vm1, %v1536_v21, 0.0 }
 0x2ae   : > { %v2045_v24 = vpack.c.bf16 %v1570_v22, %v1569_v23 }
 0x2b0   : > { %2101 = vst [vmem:[%s3026_s28 + $0x28] sm:$0xff] %v2045_v24  }
 0x2b1   : > { %v2416_v25 = vpop.permute.xlu1 %2415 }
 0x2b2   : > { %v2418_v26 = vunpack.i.h.bf16 %v2416_v25  ;;  %v2417_v27 = vunpack.i.l.bf16 %v2416_v25 }
 0x2b4   : > { %v1539_v28 = vsel %vm1525_vm0, 0.0, %v2418_v26  ;;  %v1538_v29 = vsel %vm1525_vm0, 0.0, %v2417_v27 }
 0x2b5   : > { %v1572_v30 = vsel %vm1558_vm1, %v1539_v28, 0.0  ;;  %v1571_v31 = vsel %vm1558_vm1, %v1538_v29, 0.0 }
 0x2b6   : > { %v2050_v32 = vpack.c.bf16 %v1572_v30, %v1571_v31 }
 0x2b8   : > { %2102 = vst [vmem:[%s3026_s28 + $0x30] sm:$0xff] %v2050_v32  }
 0x2b9   : > { %v2421_v33 = vpop.permute.xlu0 %2420 }
 0x2ba   : > { %v2423_v34 = vunpack.i.h.bf16 %v2421_v33  ;;  %v2422_v35 = vunpack.i.l.bf16 %v2421_v33 }
 0x2bc   : > { %v1541_v36 = vsel %vm1525_vm0, 0.0, %v2423_v34  ;;  %v1540_v37 = vsel %vm1525_vm0, 0.0, %v2422_v35 }
 0x2bd   : > { %v1574_v38 = vsel %vm1558_vm1, %v1541_v36, 0.0  ;;  %v1573_v39 = vsel %vm1558_vm1, %v1540_v37, 0.0 }
 0x2be   : > { %v2055_v40 = vpack.c.bf16 %v1574_v38, %v1573_v39 }
 0x2c0   : > { %2103 = vst [vmem:[%s3026_s28 + $0x38] sm:$0xff] %v2055_v40  }
 0x2c1   : > { %v2426_v41 = vpop.permute.xlu1 %2425 }
 0x2c2   : > { %v2428_v42 = vunpack.i.h.bf16 %v2426_v41  ;;  %v2427_v43 = vunpack.i.l.bf16 %v2426_v41 }
 0x2c4   : > { %v1543_v44 = vsel %vm1525_vm0, 0.0, %v2428_v42  ;;  %v1542_v45 = vsel %vm1525_vm0, 0.0, %v2427_v43 }
 0x2c5   : > { %v1576_v46 = vsel %vm1558_vm1, %v1543_v44, 0.0  ;;  %v1575_v47 = vsel %vm1558_vm1, %v1542_v45, 0.0 }
 0x2c6   : > { %v2060_v48 = vpack.c.bf16 %v1576_v46, %v1575_v47 }
 0x2c8   : > { %2104 = vst [vmem:[%s3026_s28 + $0x40] sm:$0xff] %v2060_v48  }
 0x2c9   : > { %v2431_v49 = vpop.permute.xlu0 %2430 }
 0x2ca   : > { %v2433_v50 = vunpack.i.h.bf16 %v2431_v49  ;;  %v2432_v51 = vunpack.i.l.bf16 %v2431_v49 }
 0x2cc   : > { %v1545_v52 = vsel %vm1525_vm0, 0.0, %v2433_v50  ;;  %v1544_v53 = vsel %vm1525_vm0, 0.0, %v2432_v51 }
 0x2cd   : > { %v1578_v54 = vsel %vm1558_vm1, %v1545_v52, 0.0  ;;  %v1577_v55 = vsel %vm1558_vm1, %v1544_v53, 0.0 }
 0x2ce   : > { %v2065_v56 = vpack.c.bf16 %v1578_v54, %v1577_v55 }
 0x2d0   : > { %2105 = vst [vmem:[%s3026_s28 + $0x48] sm:$0xff] %v2065_v56  }
 0x2d1   : > { %v2436_v57 = vpop.permute.xlu1 %2435 }
 0x2d2   : > { %v2438_v58 = vunpack.i.h.bf16 %v2436_v57  ;;  %v2437_v59 = vunpack.i.l.bf16 %v2436_v57 }
 0x2d4   : > { %v1547_v60 = vsel %vm1525_vm0, 0.0, %v2438_v58  ;;  %v1546_v61 = vsel %vm1525_vm0, 0.0, %v2437_v59 }
 0x2d5   : > { %v1580_v62 = vsel %vm1558_vm1, %v1547_v60, 0.0  ;;  %v1579_v63 = vsel %vm1558_vm1, %v1546_v61, 0.0 }
 0x2d6   : > { %v2070_v0 = vpack.c.bf16 %v1580_v62, %v1579_v63 }
 0x2d8   : > { %2106 = vst [vmem:[%s3026_s28 + $0x50] sm:$0xff] %v2070_v0  }
 0x2d9   : > { %v2441_v1 = vpop.permute.xlu0 %2440 }
 0x2da   : > { %v2443_v2 = vunpack.i.h.bf16 %v2441_v1  ;;  %v2442_v3 = vunpack.i.l.bf16 %v2441_v1 }
 0x2dc   : > { %v1549_v4 = vsel %vm1525_vm0, 0.0, %v2443_v2  ;;  %v1548_v5 = vsel %vm1525_vm0, 0.0, %v2442_v3 }
 0x2dd   : > { %v1582_v6 = vsel %vm1558_vm1, %v1549_v4, 0.0  ;;  %v1581_v7 = vsel %vm1558_vm1, %v1548_v5, 0.0 }
 0x2de   : > { %v2075_v8 = vpack.c.bf16 %v1582_v6, %v1581_v7 }
 0x2e0   : > { %2107 = vst [vmem:[%s3026_s28 + $0x58] sm:$0xff] %v2075_v8  }
 0x2e1   : > { %v2446_v9 = vpop.permute.xlu1 %2445 }
 0x2e2   : > { %v2448_v10 = vunpack.i.h.bf16 %v2446_v9  ;;  %v2447_v11 = vunpack.i.l.bf16 %v2446_v9 }
 0x2e4   : > { %v1551_v12 = vsel %vm1525_vm0, 0.0, %v2448_v10  ;;  %v1550_v13 = vsel %vm1525_vm0, 0.0, %v2447_v11 }
 0x2e5   : > { %v1584_v14 = vsel %vm1558_vm1, %v1551_v12, 0.0  ;;  %v1583_v15 = vsel %vm1558_vm1, %v1550_v13, 0.0 }
 0x2e6   : > { %v2080_v16 = vpack.c.bf16 %v1584_v14, %v1583_v15 }
 0x2e8   : > { %2108 = vst [vmem:[%s3026_s28 + $0x60] sm:$0xff] %v2080_v16  }
 0x2e9   : > { %v2451_v17 = vpop.permute.xlu0 %2450 }
 0x2ea   : > { %v2453_v18 = vunpack.i.h.bf16 %v2451_v17  ;;  %v2452_v19 = vunpack.i.l.bf16 %v2451_v17 }
 0x2ec   : > { %v1553_v20 = vsel %vm1525_vm0, 0.0, %v2453_v18  ;;  %v1552_v21 = vsel %vm1525_vm0, 0.0, %v2452_v19 }
 0x2ed   : > { %v1586_v22 = vsel %vm1558_vm1, %v1553_v20, 0.0  ;;  %v1585_v23 = vsel %vm1558_vm1, %v1552_v21, 0.0 }
 0x2ee   : > { %v2085_v24 = vpack.c.bf16 %v1586_v22, %v1585_v23 }
 0x2f0   : > { %2109 = vst [vmem:[%s3026_s28 + $0x68] sm:$0xff] %v2085_v24  }
 0x2f1   : > { %v2456_v25 = vpop.permute.xlu1 %2455 }
 0x2f2   : > { %v2458_v26 = vunpack.i.h.bf16 %v2456_v25  ;;  %v2457_v27 = vunpack.i.l.bf16 %v2456_v25 }
 0x2f4   : > { %v1555_v28 = vsel %vm1525_vm0, 0.0, %v2458_v26  ;;  %v1554_v29 = vsel %vm1525_vm0, 0.0, %v2457_v27 }
 0x2f5   : > { %v1588_v30 = vsel %vm1558_vm1, %v1555_v28, 0.0  ;;  %v1587_v31 = vsel %vm1558_vm1, %v1554_v29, 0.0 }
 0x2f6   : > { %v2090_v32 = vpack.c.bf16 %v1588_v30, %v1587_v31 }
 0x2f8   : > { %2110 = vst [vmem:[%s3026_s28 + $0x70] sm:$0xff] %v2090_v32  }
 0x2f9   : > { %v2461_v33 = vpop.permute.xlu0 %2460 }
 0x2fa   : > { %v2463_v34 = vunpack.i.h.bf16 %v2461_v33  ;;  %v2462_v35 = vunpack.i.l.bf16 %v2461_v33 }
 0x2fc   : > { %v1557_v36 = vsel %vm1525_vm0, 0.0, %v2463_v34  ;;  %v1556_v37 = vsel %vm1525_vm0, 0.0, %v2462_v35 }
 0x2fd   : > { %v1590_v38 = vsel %vm1558_vm1, %v1557_v36, 0.0  ;;  %v1589_v39 = vsel %vm1558_vm1, %v1556_v37, 0.0 }
 0x2fe   : > { %v2095_v40 = vpack.c.bf16 %v1590_v38, %v1589_v39 }
 0x300   : > { %2111 = vst [vmem:[%s3026_s28 + $0x78] sm:$0xff] %v2095_v40  }
 0x301 PF: > { %s14_s19 = sadd.s32 1, %s2606_s19   ;;  %s3127_s15 = smov %s2598_s17 }
 0x302   : > { %p11_p9 = scmp.ge.s32.totalorder %s14_s19, 10   ;;  %s3128_s16 = smov %s2602_s18 }
 0x303   : > { %s3129_s17 = smov %s3132_s20  ;;  %s3130_s18 = smov %s3136_s21 }
 0x304   :  { %13 = sbr.rel (!%p11_p9) target bundleno = 3 (0x3), region = 69 }

// kernel: cost_volume_network.9
= control target key start
LH: loop header
LB: loop body
LE: loop exit
PB: predicated region body
PF: predicated region fallthrough
CT: control target
= control target key end

     0   :  { %s2825_s24 = smov 0   ;;  %s2827_s25 = smov 0   ;;  %s3510_s0 = inlined_call_operand.vmem [shape: bf16[2,6,64,128], index: 0, kind: input, shape index: {}, may-alias: {0,1,2}]   ;;  %s3511_s1 = inlined_call_operand.vmem [shape: bf16[2,6,64,128], index: 1, kind: input, shape index: {}, may-alias: {0,1,2}]   ;;  %s3512_s2 = inlined_call_operand.vmem [shape: bf16[2,6,64,128], index: 2, kind: input, shape index: {}, may-alias: {0,1,2}]   ;;  %s3513_s3 = inlined_call_operand.vmem [shape: bf16[64,1728], index: 3, kind: input, shape index: {}]   ;;  %s3514_s4 = inlined_call_operand.vmem [shape: f32[64,1], index: 4, kind: input, shape index: {}]   ;;  %s3515_s5 = inlined_call_operand.vmem [shape: f32[64,1], index: 5, kind: input, shape index: {}]   ;;  %s3516_s6 = inlined_call_operand.vmem [shape: f32[1,128], index: 6, kind: input, shape index: {}]   ;;  %s3517_s7 = inlined_call_operand.vmem [shape: bf16[2,6,64,128], index: 7, kind: output, shape index: {}]  }
   0x1   :  { %3518 = sst [smem:[#allocation2_spill]] %s3510_s0  ;;  %s2829_s26 = smov 0  }
   0x2   :  { %s2831_s27 = smov 0   ;;  %s2833_s28 = smov 0  }
   0x3 LB: > { %s26_s29 = sadd.s32 1, %s2758_s26  ;;  %s29_s30 = sadd.s32 1, %s2762_s27  ;;  %s2766_s28 = sphi %s2833_s28, %s17_s28   ;;  %s2762_s27 = sphi %s2831_s27, %s3524_s27   ;;  %s2758_s26 = sphi %s2829_s26, %s3523_s26   ;;  %s2754_s25 = sphi %s2827_s25, %s3522_s25   ;;  %s2750_s24 = sphi %s2825_s24, %s3521_s24  }
   0x4   : > { %p27_p0 = scmp.ge.s32.totalorder %s26_s29, 6  ;;  %p2155_p1 = scmp.ge.s32.totalorder %s2766_s28, 1 }
   0x5   : > { %p345_p2 = scmp.lt.s32.totalorder %s2766_s28, 13 }
   0x6   : > { %s3526_s29 = smov (%p27_p0, %s26_s29), 0  ;;  %s3528_s30 = smov (!%p27_p0, %s29_s30), %s2762_s27 }
   0x7   : > { %p346_p3 = pnand %p2155_p1, %p345_p2  ;;  %p31_p4 = scmp.ge.s32.totalorder %s3528_s30, 2 }
   0x8   : > { %s2156_s8 = sadd.s32 (!%p346_p3), 4294967295, %s2750_s24  ;;  %p422_p5 = scmp.lt.s32.totalorder (!%p346_p3), %s2754_s25, 1 }
   0x9   : > { %s3530_s30 = smov (%p31_p4, %s3528_s30), 0  ;;  %349 = sbr.rel (%p346_p3) target bundleno = 819 (0x333), region = 48 }
   0xa   : > { %p418_p6 = scmp.gt.s32.totalorder (!%p346_p3), %s2156_s8, 0  ;;  %p2157_p7 = scmp.lt.s32.totalorder (!%p346_p3), %s2156_s8, 5 }
   0xb   : > { %p436_p8 = scmp.gt.s32.totalorder (!%p346_p3), %s2750_s24, 0  ;;  %p2164_p10 = scmp.lt.s32.totalorder (!%p346_p3), %s2750_s24, 5 }
   0xc   : > { %s453_s11 = sadd.s32 (!%p346_p3), 1, %s2750_s24  ;;  %p482_p11 = scmp.ge.s32.totalorder (!%p346_p3), %s2750_s24, 1 }
   0xd   : > { %p454_p12 = scmp.gt.s32.totalorder (!%p346_p3), %s453_s11, 0  ;;  %p2171_p0 = scmp.lt.s32.totalorder (!%p346_p3), %s453_s11, 5 }
   0xe   : > { %s3519_s0 = sld [smem:[#allocation2_spill]] (!%p346_p3)  ;;  %p483_p1 = scmp.le.s32.totalorder (!%p346_p3), %s2750_s24, 4 }
  0x10   : > { %s3532_s25 = smov (!%p422_p5, %s2754_s25), 1  ;;  %s3534_s8 = smov (!%p418_p6, %s2156_s8), 0 }
  0x11   : > { %s2858_s9 = smul.u32 48, %s3532_s25  ;;  %s3536_s8 = smov (!%p2157_p7, %s3534_s8), 5 }
  0x12   : > { %s437_s10 = scalar_select %p436_p8, %s2750_s24, 0 }
  0x13   : > { %p424_p9 = scmp.lt.s32.totalorder %s3536_s8, 5  ;;  %s3544_s11 = smov (!%p454_p12, %s453_s11), 0 }
  0x14   : > { %s3540_s10 = smov (!%p2164_p10, %s437_s10), 5  ;;  %p2876_p2 = pnand %p483_p1, %p482_p11 }
  0x15   : > { %s3538_s8 = smov (!%p424_p9, %s3536_s8), 5  ;;  %p442_p13 = scmp.lt.s32.totalorder %s3540_s10, 5  ;;  %v2646_v12 = vld [vmem:[%s3513_s3 + $0x4] ss:$56 sps:$4 sm:$0xff] (!%p2876_p2)   ;;  %v2649_v13 = vld [vmem:[%s3513_s3 + $0x14] ss:$56 sps:$4 sm:$0xff] (!%p2876_p2)  }
  0x16   : > { %s2162_s12 = sshll.u32 %s3538_s8, 3  ;;  %s3546_s11 = smov (!%p2171_p0, %s3544_s11), 5  ;;  %1321 = vmatprep.mubr.bf16.mxu1 (!%p2876_p2), %v2646_v12  ;;  %1451 = vmatprep.mubr.bf16.mxu0 (!%p2876_p2), %v2649_v13  ;;  %v2644_v41 = vld [vmem:[%s3513_s3] ss:$56 sps:$4 sm:$0xff] (!%p2876_p2)   ;;  %v2650_v43 = vld [vmem:[%s3513_s3 + $0x74] ss:$56 sps:$4 sm:$0xff] (!%p2876_p2)  }
  0x17   : > { %s428_s13 = sadd.s32 %s2858_s9, %s2162_s12  ;;  %s3542_s10 = smov (!%p442_p13, %s3540_s10), 5  ;;  %v2652_v47 = vld [vmem:[%s3513_s3 + $0x70] ss:$56 sps:$4 sm:$0xff] (!%p2876_p2)   ;;  %v2653_v49 = vld [vmem:[%s3513_s3 + $0xe4] ss:$56 sps:$4 sm:$0xff] (!%p2876_p2)   ;;  %v2783_v58 = vmov (!%p2876_p2), 0  }
  0x18   : > { %s2163_s14 = sshll.u32 %s428_s13, 2  ;;  %s2169_s18 = sshll.u32 %s3542_s10, 3  ;;  %v2655_v53 = vld [vmem:[%s3513_s3 + $0xe0] ss:$56 sps:$4 sm:$0xff] (!%p2876_p2)   ;;  %v2656_v55 = vld [vmem:[%s3513_s3 + $0x154] ss:$56 sps:$4 sm:$0xff] (!%p2876_p2)   ;;  %2611 = vset.pattern.permute.xlu1 (!%p2876_p2), %v2783_v58  ;;  %2610 = vset.pattern.permute.xlu0 (!%p2876_p2), %v2783_v58 }
  0x19   : > { %s2871_s17 = scalar_lea.vmem %s3519_s0, %s2163_s14  ;;  %s446_s20 = sadd.s32 %s2858_s9, %s2169_s18  ;;  %v2658_v60 = vld [vmem:[%s3513_s3 + $0x150] ss:$56 sps:$4 sm:$0xff] (!%p2876_p2)   ;;  %v2661_v62 = vld [vmem:[%s3513_s3 + $0xc] ss:$56 sps:$4 sm:$0xff] (!%p2876_p2)   ;;  %vm1276_vm0 = vcmask (!%p2876_p2), 523264   ;;  %vm1913_vm1 = vcmask (!%p2876_p2), 89088  }
  0x1a   : > { %s2170_s21 = sshll.u32 %s446_s20, 2  ;;  %s3548_s24 = smov (!%p2164_p10, %s2750_s24), 5  ;;  %v2904_v1 = vld [vmem:[%s2871_s17] sm:$0xff] (!%p2876_p2)   ;;  %v2915_v4 = vld [vmem:[%s2871_s17 + $0x8] sm:$0xff] (!%p2876_p2)   ;;  %v2923_v6 = vld [vmem:[%s2871_s17 + $0x10] sm:$0xff] (!%p2876_p2)   ;;  %vm1922_vm2 = vcmask (!%p2876_p2), 908288  }
  0x1b   : > { %s2884_s25 = scalar_lea.vmem %s3511_s1, %s2170_s21  ;;  %p460_p3 = scmp.lt.s32.totalorder %s3546_s11, 5  ;;  %v2927_v7 = vld [vmem:[%s2871_s17 + $0x18] sm:$0xff] (!%p2876_p2)  }
  0x1c   : > { %s2178_s8 = sshll.u32 %s3548_s24, 3  ;;  %487 = sbr.rel (%p2876_p2) target bundleno = 812 (0x32c), region = 52  ;;  %v2930_v8 = vld [vmem:[%s2884_s25] sm:$0xff] (!%p2876_p2)   ;;  %v2940_v9 = vld [vmem:[%s2884_s25 + $0x8] sm:$0xff] (!%p2876_p2)   ;;  %v2951_v10 = vld [vmem:[%s2884_s25 + $0x10] sm:$0xff] (!%p2876_p2)  }
  0x1d   : > { %s3550_s11 = smov (!%p460_p3, %s3546_s11), 5  ;;  %s478_s12 = sadd.s32 %s2858_s9, %s2178_s8  ;;  %v2962_v11 = vld [vmem:[%s2884_s25 + $0x18] sm:$0xff] (!%p2876_p2)  }
  0x1e   : > { %s2176_s10 = sshll.u32 %s3550_s11, 3  ;;  %s2179_s13 = sshll.u32 %s478_s12, 2 }
  0x1f   : > { %s464_s14 = sadd.s32 %s2858_s9, %s2176_s10  ;;  %s2894_s18 = scalar_lea.vmem %s3517_s7, %s2179_s13 }
  0x20   : > { %s2177_s20 = sshll.u32 %s464_s14, 2  ;;  %s2768_s24 = smov (!%p2876_p2), 21  }
  0x21   : > { %s466_s21 = scalar_lea.vmem %s3512_s2, %s2177_s20  ;;  %s2769_s9 = smov (!%p2876_p2), 126  }
  0x22   : > { %v2901_v0 = vld [vmem:[%s466_s21] sm:$0xff] (!%p2876_p2)   ;;  %v2907_v2 = vld [vmem:[%s466_s21 + $0x8] sm:$0xff] (!%p2876_p2)   ;;  %548 = vrot.lane.b32.xlu1 (!%p2876_p2), %v2904_v1, %s2769_s9  ;;  %v2911_v3 = vld [vmem:[%s466_s21 + $0x10] sm:$0xff] (!%p2876_p2)   ;;  %s2770_s0 = smov (!%p2876_p2), 20   ;;  %s2771_s11 = smov (!%p2876_p2), 127  }
  0x23   : > { %748 = vrot.lane.b32.xlu0 %v2901_v0, %s2768_s24  ;;  %v2918_v5 = vld [vmem:[%s466_s21 + $0x18] sm:$0xff]   ;;  %s2772_s17 = smov 118   ;;  %s2773_s23 = smov 106  }
  0x24   : > { %s2774_s25 = smov 1   ;;  %s2775_s10 = smov 108  }
  0x25   : > { %s2776_s13 = smov 117   ;;  %s2777_s14 = smov 10  }
  0x26   : > { %752 = vrot.lane.b32.xlu1 %v2911_v3, %s2768_s24  ;;  %s2778_s15 = smov 19   ;;  %s2779_s16 = smov 107  }
  0x27   : > { %750 = vrot.lane.b32.xlu0 %v2907_v2, %s2768_s24  ;;  %s2780_s20 = smov 116  }
  0x2a   : > { %754 = vrot.lane.b32.xlu1 %v2918_v5, %s2768_s24  ;;  %s2781_s24 = smov 9  }
  0x2b   : > { %550 = vrot.lane.b32.xlu0 %v2915_v4, %s2769_s9 }
  0x2e   : > { %756 = vrot.lane.b32.xlu1 %v2901_v0, %s2770_s0 }
  0x2f   : > { %552 = vrot.lane.b32.xlu0 %v2923_v6, %s2769_s9 }
  0x32   : > { %656 = vrot.lane.b32.xlu1 %v2930_v8, %s2771_s11 }
  0x33   : > { %554 = vrot.lane.b32.xlu0 %v2927_v7, %s2769_s9 }
  0x36   : > { %560 = vrot.lane.b32.xlu1 %v2904_v1, %s2772_s17 }
  0x37   : > { %758 = vrot.lane.b32.xlu0 %v2907_v2, %s2770_s0 }
  0x3a   : > { %536 = vrot.lane.b32.xlu1 %v2904_v1, %s2771_s11 }
  0x3b   : > { %658 = vrot.lane.b32.xlu0 %v2940_v9, %s2771_s11 }
  0x3e   : > { %562 = vrot.lane.b32.xlu1 %v2915_v4, %s2772_s17 }
  0x3f   : > { %760 = vrot.lane.b32.xlu0 %v2911_v3, %s2770_s0 }
  0x42   : > { %538 = vrot.lane.b32.xlu1 %v2915_v4, %s2771_s11 }
  0x43   : > { %660 = vrot.lane.b32.xlu0 %v2951_v10, %s2771_s11 }
  0x46   : > { %762 = vrot.lane.b32.xlu1 %v2918_v5, %s2770_s0 }
  0x47   : > { %620 = vrot.lane.b32.xlu0 %v2904_v1, %s2773_s23 }
  0x4a   : > { %662 = vrot.lane.b32.xlu1 %v2962_v11, %s2771_s11 }
  0x4b   : > { %564 = vrot.lane.b32.xlu0 %v2923_v6, %s2772_s17 }
  0x4e   : > { %622 = vrot.lane.b32.xlu1 %v2915_v4, %s2773_s23 }
  0x4f   : > { %540 = vrot.lane.b32.xlu0 %v2923_v6, %s2771_s11 }
  0x52   : > { %796 = vrot.lane.b32.xlu1 %v2901_v0, %s2774_s25 }
  0x53   : > { %566 = vrot.lane.b32.xlu0 %v2927_v7, %s2772_s17 }
  0x56   : > { %624 = vrot.lane.b32.xlu1 %v2923_v6, %s2773_s23 }
  0x57   : > { %542 = vrot.lane.b32.xlu0 %v2927_v7, %s2771_s11 }
  0x5a   : > { %798 = vrot.lane.b32.xlu1 %v2907_v2, %s2774_s25 }
  0x5b   : > { %596 = vrot.lane.b32.xlu0 %v2904_v1, %s2775_s10 }
  0x5e   : > { %626 = vrot.lane.b32.xlu1 %v2927_v7, %s2773_s23 }
  0x5f   : > { %572 = vrot.lane.b32.xlu0 %v2904_v1, %s2776_s13 }
  0x62   : > { %800 = vrot.lane.b32.xlu1 %v2911_v3, %s2774_s25 }
  0x63   : > { %598 = vrot.lane.b32.xlu0 %v2915_v4, %s2775_s10 }
  0x66   : > { %668 = vrot.lane.b32.xlu1 %v2930_v8, %s2769_s9 }
  0x67   : > { %574 = vrot.lane.b32.xlu0 %v2915_v4, %s2776_s13 }
  0x6a   : > { %764 = vrot.lane.b32.xlu1 %v2901_v0, %s2778_s15 }
  0x6b   : > { %780 = vrot.lane.b32.xlu0 %v2901_v0, %s2777_s14 }
  0x6e   : > { %802 = vrot.lane.b32.xlu1 %v2918_v5, %s2774_s25 }
  0x6f   : > { %600 = vrot.lane.b32.xlu0 %v2923_v6, %s2775_s10 }
  0x72   : > { %670 = vrot.lane.b32.xlu1 %v2940_v9, %s2769_s9 }
  0x73   : > { %576 = vrot.lane.b32.xlu0 %v2923_v6, %s2776_s13 }
  0x76   : > { %766 = vrot.lane.b32.xlu1 %v2907_v2, %s2778_s15 }
  0x77   : > { %782 = vrot.lane.b32.xlu0 %v2907_v2, %s2777_s14 }
  0x7a   : > { %578 = vrot.lane.b32.xlu1 %v2927_v7, %s2776_s13 }
  0x7b   : > { %602 = vrot.lane.b32.xlu0 %v2927_v7, %s2775_s10 }
  0x7e   : > { %784 = vrot.lane.b32.xlu1 %v2911_v3, %s2777_s14 }
  0x7f   : > { %672 = vrot.lane.b32.xlu0 %v2951_v10, %s2769_s9 }
  0x82   : > { %608 = vrot.lane.b32.xlu1 %v2904_v1, %s2779_s16 }
  0x83   : > { %768 = vrot.lane.b32.xlu0 %v2911_v3, %s2778_s15 }
  0x86   : > { %674 = vrot.lane.b32.xlu1 %v2962_v11, %s2769_s9  ;;  %s2782_s9 = smov 11  }
  0x87   : > { %584 = vrot.lane.b32.xlu0 %v2904_v1, %s2780_s20 }
  0x8a   : > { %770 = vrot.lane.b32.xlu1 %v2918_v5, %s2778_s15 }
  0x8b   : > { %786 = vrot.lane.b32.xlu0 %v2918_v5, %s2777_s14 }
  0x8e   : > { %586 = vrot.lane.b32.xlu1 %v2915_v4, %s2780_s20 }
  0x8f   : > { %610 = vrot.lane.b32.xlu0 %v2915_v4, %s2779_s16 }
  0x92   : > { %788 = vrot.lane.b32.xlu1 %v2901_v0, %s2781_s24 }
  0x93   : > { %812 = vrot.lane.b32.xlu0 %v2930_v8, %s2779_s16 }
  0x94   : > { %v549_v15 = vpop.permute.xlu1 %548 }
  0x95   : > { %v749_v14 = vpop.permute.xlu0 %748  ;;  %2312 = vmatprep.subr.bf16.mxu1 %v549_v15 }
  0x96   : > { %772 = vrot.lane.b32.xlu1 %v2901_v0, %s2782_s9  ;;  %2313 = vmatpush3.bf16.msra.mxu1 %v2904_v1 }
  0x97   : > { %828 = vrot.lane.b32.xlu0 %v749_v14, %s2779_s16 }
  0x98   : > { %v753_v17 = vpop.permute.xlu1 %752 }
  0x99   : > { %v751_v16 = vpop.permute.xlu0 %750 }
  0x9a   : > { %588 = vrot.lane.b32.xlu1 %v2923_v6, %s2780_s20 }
  0x9b   : > { %612 = vrot.lane.b32.xlu0 %v2923_v6, %s2779_s16 }
  0x9c   : > { %v755_v19 = vpop.permute.xlu1 %754 }
  0x9d   : > { %v551_v18 = vpop.permute.xlu0 %550 }
  0x9e   : > { %2314 = vmatprep.subr.bf16.mxu1 %v551_v18  ;;  %790 = vrot.lane.b32.xlu1 %v2907_v2, %s2781_s24 }
  0x9f   : > { %830 = vrot.lane.b32.xlu0 %v751_v16, %s2779_s16  ;;  %2315 = vmatpush3.bf16.msra.mxu1 %v2915_v4 }
  0xa0   : > { %v757_v21 = vpop.permute.xlu1 %756 }
  0xa1   : > { %v553_v20 = vpop.permute.xlu0 %552 }
  0xa2   : > { %2316 = vmatprep.subr.bf16.mxu1 %v553_v20  ;;  %774 = vrot.lane.b32.xlu1 %v2907_v2, %s2782_s9 }
  0xa3   : > { %814 = vrot.lane.b32.xlu0 %v2940_v9, %s2779_s16  ;;  %2317 = vmatpush3.bf16.msra.mxu1 %v2923_v6 }
  0xa4   : > { %v657_v23 = vpop.permute.xlu1 %656 }
  0xa5   : > { %v555_v22 = vpop.permute.xlu0 %554  ;;  %2392 = vmatprep.subr.bf16.mxu0 %v657_v23 }
  0xa6   : > { %2318 = vmatprep.subr.bf16.mxu1 %v555_v22  ;;  %804 = vrot.lane.b32.xlu1 %v2901_v0, %s2771_s11  ;;  %v2665_v22 = vld [vmem:[%s3513_s3 + $0xf4] ss:$56 sps:$4 sm:$0xff]  }
  0xa7   : > { %614 = vrot.lane.b32.xlu0 %v2927_v7, %s2779_s16  ;;  %2319 = vmatpush3.bf16.msra.mxu1 %v2927_v7 }
  0xa8   : > { %v561_v25 = vpop.permute.xlu1 %560 }
  0xa9   : > { %v3053_v24 = vpop.permute.xlu0 %758  ;;  %2320 = vmatprep.subr.bf16.mxu1 %v561_v25 }
  0xaa   : > { %832 = vrot.lane.b32.xlu1 %v753_v17, %s2779_s16  ;;  %v2662_v17 = vld [vmem:[%s3513_s3 + $0x84] ss:$56 sps:$4 sm:$0xff]  }
  0xab   : > { %590 = vrot.lane.b32.xlu0 %v2927_v7, %s2780_s20 }
  0xac   : > { %v537_v27 = vpop.permute.xlu1 %536 }
  0xad   : > { %v659_v26 = vpop.permute.xlu0 %658  ;;  %2321 = vmatpush3.bf16.msra.mxu1 %v537_v27 }
  0xae   : > { %816 = vrot.lane.b32.xlu1 %v2951_v10, %s2779_s16 }
  0xaf   : > { %792 = vrot.lane.b32.xlu0 %v2911_v3, %s2781_s24 }
  0xb0   : > { %v563_v29 = vpop.permute.xlu1 %562 }
  0xb1   : > { %v3062_v28 = vpop.permute.xlu0 %760  ;;  %2322 = vmatprep.subr.bf16.mxu1 %v563_v29 }
  0xb2   : > { %704 = vrot.lane.b32.xlu1 %v2930_v8, %s2780_s20 }
  0xb3   : > { %776 = vrot.lane.b32.xlu0 %v2911_v3, %s2782_s9 }
  0xb4   : > { %v539_v31 = vpop.permute.xlu1 %538 }
  0xb5   : > { %v3068_v30 = vpop.permute.xlu0 %660  ;;  %2323 = vmatpush3.bf16.msra.mxu1 %v539_v31  ;;  %v2673_v31 = vld [vmem:[%s3513_s3 + $0x160] ss:$56 sps:$4 sm:$0xff]  }
  0xb6   : > { %680 = vrot.lane.b32.xlu1 %v2930_v8, %s2772_s17 }
  0xb7   : > { %806 = vrot.lane.b32.xlu0 %v2907_v2, %s2771_s11 }
  0xb8   : > { %v3074_v33 = vpop.permute.xlu1 %762 }
  0xb9   : > { %v621_v32 = vpop.permute.xlu0 %620 }
  0xba   : > { %2393 = vmatpush3.bf16.msra.mxu0 %v621_v32  ;;  %794 = vrot.lane.b32.xlu1 %v2918_v5, %s2781_s24 }
  0xbb   : > { %834 = vrot.lane.b32.xlu0 %v755_v19, %s2779_s16  ;;  %2394 = vmatprep.subr.bf16.mxu0 %v659_v26 }
  0xbc   : > { %v3079_v35 = vpop.permute.xlu1 %662 }
  0xbd   : > { %v565_v34 = vpop.permute.xlu0 %564 }
  0xbe   : > { %2324 = vmatprep.subr.bf16.mxu1 %v565_v34  ;;  %778 = vrot.lane.b32.xlu1 %v2918_v5, %s2782_s9 }
  0xbf   : > { %818 = vrot.lane.b32.xlu0 %v2962_v11, %s2779_s16 }
  0xc0   : > { %v623_v37 = vpop.permute.xlu1 %622 }
  0xc1   : > { %v541_v36 = vpop.permute.xlu0 %540  ;;  %2395 = vmatpush3.bf16.msra.mxu0 %v623_v37 }
  0xc2   : > { %2325 = vmatpush3.bf16.msra.mxu1 %v541_v36  ;;  %808 = vrot.lane.b32.xlu1 %v2911_v3, %s2771_s11  ;;  %v2659_v36 = vld [vmem:[%s3513_s3 + $0x8] ss:$56 sps:$4 sm:$0xff]  }
  0xc3   : > { %706 = vrot.lane.b32.xlu0 %v2940_v9, %s2780_s20  ;;  %2396 = vmatprep.subr.bf16.mxu0 %v3068_v30 }
  0xc4   : > { %v3090_v39 = vpop.permute.xlu1 %796 }
  0xc5   : > { %v567_v38 = vpop.permute.xlu0 %566 }
  0xc6   : > { %2326 = vmatprep.subr.bf16.mxu1 %v567_v38  ;;  %836 = vrot.lane.b32.xlu1 %v757_v21, %s2779_s16  ;;  %v2668_v38 = vld [vmem:[%s3513_s3 + $0x7c] ss:$56 sps:$4 sm:$0xff]  }
  0xc7   : > { %682 = vrot.lane.b32.xlu0 %v2940_v9, %s2772_s17 }
  0xc8   : > { %v625_v42 = vpop.permute.xlu1 %624 }
  0xc9   : > { %v543_v40 = vpop.permute.xlu0 %542  ;;  %2397 = vmatpush3.bf16.msra.mxu0 %v625_v42  ;;  %v2670_v42 = vld [vmem:[%s3513_s3 + $0x78] ss:$56 sps:$4 sm:$0xff]  }
  0xca   : > { %2327 = vmatpush3.bf16.msra.mxu1 %v543_v40  ;;  %708 = vrot.lane.b32.xlu1 %v2951_v10, %s2780_s20 }
  0xcb   : > { %820 = vrot.lane.b32.xlu0 %v657_v23, %s2779_s16  ;;  %2398 = vmatprep.subr.bf16.mxu0 %v3079_v35 }
  0xcc   : > { %v799_v45 = vpop.permute.xlu1 %798 }
  0xcd   : > { %v597_v44 = vpop.permute.xlu0 %596  ;;  %1322 = vmatmul.mubr.bf16.vlgmr.msra.gmra.mrb[0].mxu1 %v2644_v41 }
  0xce   : > { %2352 = vmatprep.subr.bf16.mxu1 %v597_v44  ;;  %1329 = vmatprep.mubr.bf16.mxu1 %v2650_v43  ;;  %v2674_v44 = vld [vmem:[%s3513_s3 + $0xec] ss:$56 sps:$4 sm:$0xff]  }
  0xcf   : > { %810 = vrot.lane.b32.xlu0 %v2918_v5, %s2771_s11  ;;  %684 = vrot.lane.b32.xlu1 %v2951_v10, %s2772_s17 }
  0xd0   : > { %v627_v48 = vpop.permute.xlu1 %626 }
  0xd1   : > { %v573_v46 = vpop.permute.xlu0 %572  ;;  %2399 = vmatpush3.bf16.msra.mxu0 %v627_v48  ;;  %v2676_v48 = vld [vmem:[%s3513_s3 + $0xe8] ss:$56 sps:$4 sm:$0xff]  }
  0xd2   : > { %2353 = vmatpush3.bf16.msra.mxu1 %v573_v46 }
  0xd3   : > { %838 = vrot.lane.b32.xlu0 %v3053_v24, %s2779_s16  ;;  %822 = vrot.lane.b32.xlu1 %v659_v26, %s2779_s16  ;;  %v2667_v26 = vld [vmem:[%s3513_s3 + $0xf0] ss:$56 sps:$4 sm:$0xff]  }
  0xd4   : > { %v801_v51 = vpop.permute.xlu1 %800 }
  0xd5   : > { %v599_v50 = vpop.permute.xlu0 %598  ;;  %1330 = vmatmul.mubr.bf16.gmra.mrb[4].mxu1 %v2652_v47 }
  0xd6   : > { %2354 = vmatprep.subr.bf16.mxu1 %v599_v50  ;;  %1337 = vmatprep.mubr.bf16.mxu1 %v2653_v49  ;;  %v2680_v50 = vld [vmem:[%s3513_s3 + $0x15c] ss:$56 sps:$4 sm:$0xff]  }
  0xd7   : > { %710 = vrot.lane.b32.xlu0 %v2962_v11, %s2780_s20  ;;  %686 = vrot.lane.b32.xlu1 %v2962_v11, %s2772_s17 }
  0xd8   : > { %v669_v54 = vpop.permute.xlu1 %668 }
  0xd9   : > { %v575_v52 = vpop.permute.xlu0 %574  ;;  %2400 = vmatprep.subr.bf16.mxu0 %v669_v54  ;;  %v2682_v54 = vld [vmem:[%s3513_s3 + $0x158] ss:$56 sps:$4 sm:$0xff]  }
  0xda   : > { %2355 = vmatpush3.bf16.msra.mxu1 %v575_v52  ;;  %2401 = vmatpush3.bf16.msra.mxu0 %v2930_v8 }
  0xdb   : > { %840 = vrot.lane.b32.xlu0 %v3062_v28, %s2779_s16  ;;  %824 = vrot.lane.b32.xlu1 %v3068_v30, %s2779_s16  ;;  %v2671_v28 = vld [vmem:[%s3513_s3 + $0x164] ss:$56 sps:$4 sm:$0xff]  }
  0xdc   : > { %v765_v57 = vpop.permute.xlu1 %764 }
  0xdd   : > { %v781_v56 = vpop.permute.xlu0 %780  ;;  %1338 = vmatmul.mubr.bf16.gmra.mrb[8].mxu1 %v2655_v53 }
  0xde   : > { %1345 = vmatprep.mubr.bf16.mxu1 %v2656_v55 }
  0xdf   : > { %716 = vrot.lane.b32.xlu0 %v2930_v8, %s2775_s10  ;;  %692 = vrot.lane.b32.xlu1 %v2930_v8, %s2776_s13 }
  0xe0   : > { %v803_v61 = vpop.permute.xlu1 %802 }
  0xe1   : > { %v601_v59 = vpop.permute.xlu0 %600 }
  0xe2   : > { %2356 = vmatprep.subr.bf16.mxu1 %v601_v59 }
  0xe3   : > { %842 = vrot.lane.b32.xlu0 %v3074_v33, %s2779_s16  ;;  %826 = vrot.lane.b32.xlu1 %v3079_v35, %s2779_s16 }
  0xe4   : > { %v671_v1 = vpop.permute.xlu1 %670 }
  0xe5   : > { %v577_v63 = vpop.permute.xlu0 %576  ;;  %1346 = vmatmul.mubr.bf16.gmra.mrb[12].mxu1 %v2658_v60  ;;  %2402 = vmatprep.subr.bf16.mxu0 %v671_v1 }
  0xe6   : > { %2357 = vmatpush3.bf16.msra.mxu1 %v577_v63  ;;  %1386 = vmatprep.mubr.bf16.mxu1 %v2661_v62 }
  0xe7   : > { %718 = vrot.lane.b32.xlu0 %v2940_v9, %s2775_s10  ;;  %694 = vrot.lane.b32.xlu1 %v2940_v9, %s2776_s13 }
  0xe8   : > { %2403 = vmatpush3.bf16.msra.mxu0 %v2940_v9  ;;  %v767_v6 = vpop.permute.xlu1 %766 }
  0xe9   : > { %v783_v4 = vpop.permute.xlu0 %782 }
  0xeb   : > { %876 = vrot.lane.b32.xlu0 %v3090_v39, %s2779_s16  ;;  %720 = vrot.lane.b32.xlu1 %v2951_v10, %s2775_s10 }
  0xec   : > { %v579_v8 = vpop.permute.xlu1 %578 }
  0xed   : > { %v603_v7 = vpop.permute.xlu0 %602 }
  0xee   : > { %2358 = vmatprep.subr.bf16.mxu1 %v603_v7 }
  0xef   : > { %696 = vrot.lane.b32.xlu0 %v2951_v10, %s2776_s13  ;;  %2359 = vmatpush3.bf16.msra.mxu1 %v579_v8 }
  0xf0   : > { %878 = vrot.lane.b32.xlu1 %v799_v45, %s2779_s16  ;;  %v785_v13 = vpop.permute.xlu1 %784 }
  0xf1   : > { %v673_v12 = vpop.permute.xlu0 %672 }
  0xf2   : > { %2404 = vmatprep.subr.bf16.mxu0 %v673_v12 }
  0xf3   : > { %722 = vrot.lane.b32.xlu0 %v2962_v11, %s2775_s10  ;;  %2405 = vmatpush3.bf16.msra.mxu0 %v2951_v10  ;;  %v2647_v10 = vld [vmem:[%s3513_s3 + $0x10] ss:$56 sps:$4 sm:$0xff]  }
  0xf4   : > { %698 = vrot.lane.b32.xlu1 %v2962_v11, %s2776_s13  ;;  %v609_v14 = vpop.permute.xlu1 %608 }
  0xf5   : > { %v769_v9 = vpop.permute.xlu0 %768  ;;  %2360 = vmatprep.subr.bf16.mxu1 %v609_v14 }
  0xf7   : > { %880 = vrot.lane.b32.xlu0 %v801_v51, %s2779_s16 }
  0xf8   : > { %860 = vrot.lane.b32.xlu1 %v781_v56, %s2779_s16  ;;  %v675_v16 = vpop.permute.xlu1 %674  ;;  %v2685_v56 = vld [vmem:[%s3513_s3 + $0x1c] ss:$56 sps:$4 sm:$0xff]  }
  0xf9   : > { %v585_v15 = vpop.permute.xlu0 %584  ;;  %2406 = vmatprep.subr.bf16.mxu0 %v675_v16  ;;  %v1746_v16 = vld [vmem:[%s3514_s4 + $0x10] sm:$0xff] }
  0xfa   : > { %2361 = vmatpush3.bf16.msra.mxu1 %v585_v15  ;;  %2407 = vmatpush3.bf16.msra.mxu0 %v2962_v11  ;;  %v2664_v11 = vld [vmem:[%s3513_s3 + $0x80] ss:$56 sps:$4 sm:$0xff]  }
  0xfb   : > { %844 = vrot.lane.b32.xlu0 %v765_v57, %s2779_s16 }
  0xfc   : > { %882 = vrot.lane.b32.xlu1 %v803_v61, %s2779_s16  ;;  %v771_v19 = vpop.permute.xlu1 %770 }
  0xfd   : > { %v787_v18 = vpop.permute.xlu0 %786  ;;  %1452 = vmatmul.mubr.bf16.vlgmr.msra.gmra.mrb[0].mxu0 %v2647_v10  ;;  %v1747_v10 = vld [vmem:[%s3514_s4 + $0x18] sm:$0xff] }
  0xfe   : > { %1459 = vmatprep.mubr.bf16.mxu0 %v2662_v17 }
  0xff   : > { %862 = vrot.lane.b32.xlu0 %v783_v4, %s2779_s16 }
 0x100   : > { %846 = vrot.lane.b32.xlu1 %v767_v6, %s2779_s16  ;;  %v587_v21 = vpop.permute.xlu1 %586 }
 0x101   : > { %v611_v20 = vpop.permute.xlu0 %610 }
 0x102   : > { %2362 = vmatprep.subr.bf16.mxu1 %v611_v20  ;;  %v1748_v20 = vld [vmem:[%s3514_s4 + $0x20] sm:$0xff] }
 0x103   : > { %884 = vrot.lane.b32.xlu0 %v2901_v0, %s2779_s16  ;;  %2363 = vmatpush3.bf16.msra.mxu1 %v587_v21  ;;  %v1749_v21 = vld [vmem:[%s3514_s4 + $0x28] sm:$0xff] }
 0x104   : > { %864 = vrot.lane.b32.xlu1 %v785_v13, %s2779_s16  ;;  %v789_v24 = vpop.permute.xlu1 %788  ;;  %v1745_v13 = vld [vmem:[%s3514_s4 + $0x8] sm:$0xff] }
 0x105   : > { %v813_v23 = vpop.permute.xlu0 %812  ;;  %1460 = vmatmul.mubr.bf16.gmra.mrb[4].mxu0 %v2664_v11  ;;  %v2689_v11 = vld [vmem:[%s3513_s3 + $0x94] ss:$56 sps:$4 sm:$0xff]  }
 0x106   : > { %1467 = vmatprep.mubr.bf16.mxu0 %v2665_v22 }
 0x107   : > { %848 = vrot.lane.b32.xlu0 %v769_v9, %s2779_s16  ;;  %v1744_v9 = vld [vmem:[%s3514_s4] sm:$0xff] }
 0x108   : > { %886 = vrot.lane.b32.xlu1 %v2907_v2, %s2779_s16  ;;  %v773_v25 = vpop.permute.xlu1 %772 }
 0x109   : > { %v829_v0 = vpop.permute.xlu0 %828 }
 0x10a   : > { %2472 = vmatprep.subr.bf16.mxu0 %v829_v0  ;;  %v1751_v0 = vld [vmem:[%s3514_s4 + $0x38] sm:$0xff] }
 0x10b   : > { %866 = vrot.lane.b32.xlu0 %v787_v18, %s2779_s16  ;;  %2473 = vmatpush3.bf16.msra.mxu0 %v813_v23 }
 0x10c   : > { %850 = vrot.lane.b32.xlu1 %v771_v19, %s2779_s16  ;;  %v589_v29 = vpop.permute.xlu1 %588  ;;  %v2677_v19 = vld [vmem:[%s3513_s3 + $0x20] ss:$56 sps:$4 sm:$0xff]  }
 0x10d   : > { %v613_v27 = vpop.permute.xlu0 %612  ;;  %1468 = vmatmul.mubr.bf16.gmra.mrb[8].mxu0 %v2667_v26 }
 0x10e   : > { %2364 = vmatprep.subr.bf16.mxu1 %v613_v27  ;;  %1475 = vmatprep.mubr.bf16.mxu0 %v2671_v28  ;;  %v2691_v27 = vld [vmem:[%s3513_s3 + $0x90] ss:$56 sps:$4 sm:$0xff]   ;;  %v1800_v28 = vld [vmem:[%s3515_s5] sm:$0xff] }
 0x10f   : > { %888 = vrot.lane.b32.xlu0 %v2911_v3, %s2779_s16  ;;  %2365 = vmatpush3.bf16.msra.mxu1 %v589_v29  ;;  %v2679_v3 = vld [vmem:[%s3513_s3 + $0x24] ss:$56 sps:$4 sm:$0xff]   ;;  %v1801_v29 = vld [vmem:[%s3515_s5 + $0x8] sm:$0xff] }
 0x110   : > { %868 = vrot.lane.b32.xlu1 %v789_v24, %s2779_s16  ;;  %v791_v30 = vpop.permute.xlu1 %790  ;;  %v1750_v24 = vld [vmem:[%s3514_s4 + $0x30] sm:$0xff] }
 0x111   : > { %v831_v2 = vpop.permute.xlu0 %830 }
 0x112   : > { %2474 = vmatprep.subr.bf16.mxu0 %v831_v2  ;;  %v2695_v2 = vld [vmem:[%s3513_s3 + $0x104] ss:$56 sps:$4 sm:$0xff]  }
 0x113   : > { %852 = vrot.lane.b32.xlu0 %v773_v25, %s2779_s16 }
 0x114   : > { %890 = vrot.lane.b32.xlu1 %v2918_v5, %s2779_s16  ;;  %v775_v33 = vpop.permute.xlu1 %774 }
 0x115   : > { %v815_v32 = vpop.permute.xlu0 %814  ;;  %1476 = vmatmul.mubr.bf16.gmra.mrb[12].mxu0 %v2673_v31 }
 0x116   : > { %2475 = vmatpush3.bf16.msra.mxu0 %v815_v32  ;;  %1581 = vmatprep.mubr.bf16.mxu0 %v2679_v3  ;;  %v1802_v32 = vld [vmem:[%s3515_s5 + $0x10] sm:$0xff]  ;;  %v1803_v3 = vld [vmem:[%s3515_s5 + $0x18] sm:$0xff] }
 0x117   : > { %870 = vrot.lane.b32.xlu0 %v791_v30, %s2779_s16 }
 0x118   : > { %854 = vrot.lane.b32.xlu1 %v775_v33, %s2779_s16  ;;  %v805_v35 = vpop.permute.xlu1 %804 }
 0x119   : > { %v615_v34 = vpop.permute.xlu0 %614 }
 0x11a   : > { %2366 = vmatprep.subr.bf16.mxu1 %v615_v34 }
 0x11b   : > { %892 = vrot.lane.b32.xlu0 %v805_v35, %s2779_s16  ;;  %v2683_v35 = vld [vmem:[%s3513_s3 + $0x18] ss:$56 sps:$4 sm:$0xff]  }
 0x11c   : > { %v833_v37 = vpop.permute.xlu1 %832 }
 0x11d   : > { %v591_v5 = vpop.permute.xlu0 %590  ;;  %2476 = vmatprep.subr.bf16.mxu0 %v833_v37  ;;  %v2686_v37 = vld [vmem:[%s3513_s3 + $0x8c] ss:$56 sps:$4 sm:$0xff]  }
 0x11e   : > { %2367 = vmatpush3.bf16.msra.mxu1 %v591_v5  ;;  %v1804_v5 = vld [vmem:[%s3515_s5 + $0x20] sm:$0xff] }
 0x120   : > { %v817_v40 = vpop.permute.xlu1 %816 }
 0x121   : > { %v793_v39 = vpop.permute.xlu0 %792  ;;  %1387 = vmatmul.mubr.bf16.vlgmr.msra.gmra.mrb[16].mxu1 %v2659_v36  ;;  %2477 = vmatpush3.bf16.msra.mxu0 %v817_v40  ;;  %v1805_v36 = vld [vmem:[%s3515_s5 + $0x28] sm:$0xff] }
 0x122   : > { %872 = vrot.lane.b32.xlu1 %v793_v39, %s2779_s16  ;;  %1394 = vmatprep.mubr.bf16.mxu1 %v2668_v38  ;;  %v2697_v38 = vld [vmem:[%s3513_s3 + $0x100] ss:$56 sps:$4 sm:$0xff]   ;;  %v2701_v40 = vld [vmem:[%s3513_s3 + $0x174] ss:$56 sps:$4 sm:$0xff]  }
 0x124   : > { %v705_v43 = vpop.permute.xlu1 %704 }
 0x125   : > { %v777_v41 = vpop.permute.xlu0 %776  ;;  %2432 = vmatprep.subr.bf16.mxu1 %v705_v43  ;;  %v1807_v43 = vld [vmem:[%s3515_s5 + $0x38] sm:$0xff] }
 0x126   : > { %856 = vrot.lane.b32.xlu0 %v777_v41, %s2779_s16 }
 0x128   : > { %v681_v46 = vpop.permute.xlu1 %680 }
 0x129   : > { %v807_v45 = vpop.permute.xlu0 %806  ;;  %1395 = vmatmul.mubr.bf16.gmra.mrb[20].mxu1 %v2670_v42  ;;  %v1806_v42 = vld [vmem:[%s3515_s5 + $0x30] sm:$0xff] }
 0x12a   : > { %894 = vrot.lane.b32.xlu1 %v807_v45, %s2779_s16  ;;  %1402 = vmatprep.mubr.bf16.mxu1 %v2674_v44 }
 0x12b   : > { %2433 = vmatpush3.bf16.msra.mxu1 %v681_v46  ;;  %v2688_v46 = vld [vmem:[%s3513_s3 + $0x88] ss:$56 sps:$4 sm:$0xff]  }
 0x12c   : > { %v795_v49 = vpop.permute.xlu1 %794 }
 0x12d   : > { %v835_v47 = vpop.permute.xlu0 %834  ;;  %874 = vrot.lane.b32.xlu0 %v795_v49, %s2779_s16  ;;  %v2703_v49 = vld [vmem:[%s3513_s3 + $0x170] ss:$56 sps:$4 sm:$0xff]  }
 0x12e   : > { %2478 = vmatprep.subr.bf16.mxu0 %v835_v47  ;;  %v2252_v47 = vld [vmem:[%s3516_s6] ss:$0 sm:$0xff] }
 0x130   : > { %v779_v52 = vpop.permute.xlu1 %778 }
 0x131   : > { %v819_v51 = vpop.permute.xlu0 %818  ;;  %1403 = vmatmul.mubr.bf16.gmra.mrb[24].mxu1 %v2676_v48  ;;  %858 = vrot.lane.b32.xlu1 %v779_v52, %s2779_s16  ;;  %v2692_v48 = vld [vmem:[%s3513_s3 + $0xfc] ss:$56 sps:$4 sm:$0xff]  }
 0x132   : > { %2479 = vmatpush3.bf16.msra.mxu0 %v819_v51  ;;  %1410 = vmatprep.mubr.bf16.mxu1 %v2680_v50  ;;  %v2714_v51 = vld [vmem:[%s3513_s3 + $0x34] ss:$56 sps:$4 sm:$0xff]  }
 0x134   : > { %v809_v55 = vpop.permute.xlu1 %808 }
 0x135   : > { %v707_v53 = vpop.permute.xlu0 %706  ;;  %896 = vrot.lane.b32.xlu0 %v809_v55, %s2779_s16  ;;  %v2694_v55 = vld [vmem:[%s3513_s3 + $0xf8] ss:$56 sps:$4 sm:$0xff]  }
 0x136   : > { %2434 = vmatprep.subr.bf16.mxu1 %v707_v53 }
 0x138   : > { %v837_v59 = vpop.permute.xlu1 %836 }
 0x139   : > { %v683_v57 = vpop.permute.xlu0 %682  ;;  %1411 = vmatmul.mubr.bf16.gmra.mrb[28].mxu1 %v2682_v54  ;;  %2480 = vmatprep.subr.bf16.mxu0 %v837_v59 }
 0x13a   : > { %2435 = vmatpush3.bf16.msra.mxu1 %v683_v57  ;;  %1516 = vmatprep.mubr.bf16.mxu1 %v2685_v56  ;;  %v2698_v56 = vld [vmem:[%s3513_s3 + $0x16c] ss:$56 sps:$4 sm:$0xff]  }
 0x13b   : > { %1754 = vperm.xlu0 %2610, %v1744_v9  }
 0x13c   : > { %v709_v61 = vpop.permute.xlu1 %708 }
 0x13d   : > { %v821_v60 = vpop.permute.xlu0 %820  ;;  %2436 = vmatprep.subr.bf16.mxu1 %v709_v61 }
 0x13e   : > { %2481 = vmatpush3.bf16.msra.mxu0 %v821_v60 }
 0x13f   : > { %1769 = vperm.xlu0 %2610, %v1747_v10  }
 0x141   : > { %v811_v62 = vpop.permute.xlu0 %810  ;;  %v685_v63 = vpop.permute.xlu1 %684 }
 0x142   : > { %898 = vrot.lane.b32.xlu1 %v811_v62, %s2779_s16  ;;  %2437 = vmatpush3.bf16.msra.mxu1 %v685_v63  ;;  %v2700_v62 = vld [vmem:[%s3513_s3 + $0x168] ss:$56 sps:$4 sm:$0xff]   ;;  %v2706_v63 = vld [vmem:[%s3513_s3 + $0x2c] ss:$56 sps:$4 sm:$0xff]  }
 0x143   : > { %1779 = vperm.xlu0 %2610, %v1749_v21  }
 0x145   : > { %v839_v1 = vpop.permute.xlu0 %838  ;;  %v823_v4 = vpop.permute.xlu1 %822 }
 0x146   : > { %2482 = vmatprep.subr.bf16.mxu0 %v839_v1  ;;  %1759 = vperm.xlu1 %2611, %v1745_v13  }
 0x147   : > { %2483 = vmatpush3.bf16.msra.mxu0 %v823_v4  ;;  %1789 = vperm.xlu0 %2610, %v1751_v0  }
 0x149   : > { %v711_v6 = vpop.permute.xlu0 %710  ;;  %v687_v7 = vpop.permute.xlu1 %686 }
 0x14a   : > { %2438 = vmatprep.subr.bf16.mxu1 %v711_v6  ;;  %1764 = vperm.xlu1 %2611, %v1746_v16  }
 0x14b   : > { %2439 = vmatpush3.bf16.msra.mxu1 %v687_v7  ;;  %1815 = vperm.xlu0 %2610, %v1801_v29  }
 0x14d   : > { %v841_v8 = vpop.permute.xlu0 %840  ;;  %v825_v12 = vpop.permute.xlu1 %824 }
 0x14e   : > { %2484 = vmatprep.subr.bf16.mxu0 %v841_v8  ;;  %1774 = vperm.xlu1 %2611, %v1748_v20  }
 0x14f   : > { %2485 = vmatpush3.bf16.msra.mxu0 %v825_v12  ;;  %1825 = vperm.xlu0 %2610, %v1803_v3  }
 0x151   : > { %v717_v14 = vpop.permute.xlu0 %716  ;;  %v693_v15 = vpop.permute.xlu1 %692 }
 0x152   : > { %2440 = vmatprep.subr.bf16.mxu1 %v717_v14  ;;  %1784 = vperm.xlu1 %2611, %v1750_v24  }
 0x153   : > { %2441 = vmatpush3.bf16.msra.mxu1 %v693_v15  ;;  %1835 = vperm.xlu0 %2610, %v1805_v36   ;;  %v2715_v36 = vld [vmem:[%s3513_s3 + $0x108] ss:$56 sps:$4 sm:$0xff]  }
 0x155   : > { %v843_v17 = vpop.permute.xlu0 %842  ;;  %v827_v18 = vpop.permute.xlu1 %826 }
 0x156   : > { %2486 = vmatprep.subr.bf16.mxu0 %v843_v17  ;;  %1810 = vperm.xlu1 %2611, %v1800_v28  }
 0x157   : > { %2487 = vmatpush3.bf16.msra.mxu0 %v827_v18  ;;  %1845 = vperm.xlu0 %2610, %v1807_v43  }
 0x158   : > { %1679 = vmatprep.subr.bf16.mxu0 %v2783_v58 }
 0x159   : > { %v719_v22 = vpop.permute.xlu0 %718  ;;  %v695_v23 = vpop.permute.xlu1 %694 }
 0x15a   : > { %2442 = vmatprep.subr.bf16.mxu1 %v719_v22  ;;  %1582 = vmatmul.mubr.bf16.vlgmr.msra.gmra.mrb[16].mxu0 %v2677_v19  ;;  %v2704_v22 = vld [vmem:[%s3513_s3 + $0x28] ss:$56 sps:$4 sm:$0xff]  }
 0x15b   : > { %2443 = vmatpush3.bf16.msra.mxu1 %v695_v23  ;;  %1589 = vmatprep.mubr.bf16.mxu0 %v2689_v11  ;;  %v2707_v23 = vld [vmem:[%s3513_s3 + $0x9c] ss:$56 sps:$4 sm:$0xff]  }
 0x15c   : > { %1820 = vperm.xlu1 %2611, %v1802_v32  }
 0x15d   : > { %v877_v25 = vpop.permute.xlu0 %876  ;;  %v721_v26 = vpop.permute.xlu1 %720 }
 0x15e   : > { %1680 = vmatpush1.bf16.msra.mxu0 %v877_v25  ;;  %2444 = vmatprep.subr.bf16.mxu1 %v721_v26 }
 0x15f   : > { %1681 = vmatprep.subr.bf16.mxu0 %v2783_v58 }
 0x160   : > { %1830 = vperm.xlu1 %2611, %v1804_v5  }
 0x161   : > { %v697_v30 = vpop.permute.xlu0 %696 }
 0x162   : > { %v879_v31 = vpop.permute.xlu1 %878  ;;  %2445 = vmatpush3.bf16.msra.mxu1 %v697_v30  ;;  %1590 = vmatmul.mubr.bf16.gmra.mrb[20].mxu0 %v2691_v27  ;;  %v2710_v30 = vld [vmem:[%s3513_s3 + $0x10c] ss:$56 sps:$4 sm:$0xff]  }
 0x163   : > { %1682 = vmatpush1.bf16.msra.mxu0 %v879_v31  ;;  %1597 = vmatprep.mubr.bf16.mxu0 %v2695_v2  ;;  %v2709_v2 = vld [vmem:[%s3513_s3 + $0x98] ss:$56 sps:$4 sm:$0xff]  }
 0x164   : > { %1683 = vmatprep.subr.bf16.mxu0 %v2783_v58  ;;  %1840 = vperm.xlu1 %2611, %v1806_v42  }
 0x165   : > { %v723_v33 = vpop.permute.xlu0 %722 }
 0x166   : > { %v699_v34 = vpop.permute.xlu1 %698  ;;  %2446 = vmatprep.subr.bf16.mxu1 %v723_v33 }
 0x167   : > { %2447 = vmatpush3.bf16.msra.mxu1 %v699_v34 }
 0x168   : > { %1870 = vrot.lane.b32.xlu1 %v2252_v47, %s2776_s13  ;;  %v2722_v47 = vld [vmem:[%s3513_s3 + $0x114] ss:$56 sps:$4 sm:$0xff]  }
 0x169   : > { %v881_v39 = vpop.permute.xlu0 %880 }
 0x16a   : > { %v861_v41 = vpop.permute.xlu1 %860  ;;  %1517 = vmatmul.mubr.bf16.vlgmr.msra.gmra.mrb[32].mxu1 %v2683_v35  ;;  %1684 = vmatpush1.bf16.msra.mxu0 %v881_v39  ;;  %v2712_v35 = vld [vmem:[%s3513_s3 + $0x30] ss:$56 sps:$4 sm:$0xff]  }
 0x16b   : > { %2512 = vmatprep.subr.bf16.mxu1 %v861_v41  ;;  %1685 = vmatprep.subr.bf16.mxu0 %v2783_v58 }
 0x16c   : > { %1524 = vmatprep.mubr.bf16.mxu1 %v2686_v37  ;;  %1598 = vmatmul.mubr.bf16.gmra.mrb[24].mxu0 %v2697_v38  ;;  %v2718_v37 = vld [vmem:[%s3513_s3 + $0xa4] ss:$56 sps:$4 sm:$0xff]  }
 0x16d   : > { %v845_v44 = vpop.permute.xlu0 %844  ;;  %1605 = vmatprep.mubr.bf16.mxu0 %v2701_v40  ;;  %v2716_v38 = vld [vmem:[%s3513_s3 + $0x17c] ss:$56 sps:$4 sm:$0xff]  }
 0x16e   : > { %v883_v45 = vpop.permute.xlu1 %882  ;;  %2513 = vmatpush3.bf16.msra.mxu1 %v845_v44  ;;  %v2721_v44 = vld [vmem:[%s3513_s3 + $0xa0] ss:$56 sps:$4 sm:$0xff]  }
 0x16f   : > { %1686 = vmatpush1.bf16.msra.mxu0 %v883_v45 }
 0x170   : > { %1687 = vmatprep.subr.bf16.mxu0 %v2783_v58 }
 0x171   : > { %v863_v50 = vpop.permute.xlu0 %862 }
 0x172   : > { %v847_v52 = vpop.permute.xlu1 %846  ;;  %1525 = vmatmul.mubr.bf16.gmra.mrb[36].mxu1 %v2688_v46  ;;  %2514 = vmatprep.subr.bf16.mxu1 %v863_v50  ;;  %v2720_v46 = vld [vmem:[%s3513_s3 + $0x178] ss:$56 sps:$4 sm:$0xff]  }
 0x173   : > { %2515 = vmatpush3.bf16.msra.mxu1 %v847_v52  ;;  %1532 = vmatprep.mubr.bf16.mxu1 %v2692_v48  ;;  %v2724_v48 = vld [vmem:[%s3513_s3 + $0x110] ss:$56 sps:$4 sm:$0xff]   ;;  %v2727_v50 = vld [vmem:[%s3513_s3 + $0x180] ss:$56 sps:$4 sm:$0xff]  }
 0x174   : > { %1606 = vmatmul.mubr.bf16.gmra.mrb[28].mxu0 %v2703_v49  ;;  %v2725_v49 = vld [vmem:[%s3513_s3 + $0x184] ss:$56 sps:$4 sm:$0xff]  }
 0x175   : > { %v885_v53 = vpop.permute.xlu0 %884  ;;  %2248 = vmatprep.mubr.msk.bf16.mxu0 %vm1276_vm0, %v2714_v51 }
 0x176   : > { %v865_v54 = vpop.permute.xlu1 %864  ;;  %1688 = vmatpush1.bf16.msra.mxu0 %v885_v53 }
 0x177   : > { %2516 = vmatprep.subr.bf16.mxu1 %v865_v54  ;;  %1689 = vmatprep.subr.bf16.mxu0 %v2783_v58 }
 0x179   : > { %v849_v57 = vpop.permute.xlu0 %848 }
 0x17a   : > { %v887_v59 = vpop.permute.xlu1 %886  ;;  %1533 = vmatmul.mubr.bf16.gmra.mrb[40].mxu1 %v2694_v55 }
 0x17b   : > { %2517 = vmatpush3.bf16.msra.mxu1 %v849_v57  ;;  %1540 = vmatprep.mubr.bf16.mxu1 %v2698_v56 }
 0x17c   : > { %1690 = vmatpush1.bf16.msra.mxu0 %v887_v59 }
 0x17d   : > { %v867_v60 = vpop.permute.xlu0 %866  ;;  %1691 = vmatprep.subr.bf16.mxu0 %v2783_v58 }
 0x17e   : > { %v851_v61 = vpop.permute.xlu1 %850  ;;  %2518 = vmatprep.subr.bf16.mxu1 %v867_v60 }
 0x17f   : > { %2519 = vmatpush3.bf16.msra.mxu1 %v851_v61 }
 0x181   : > { %v889_v1 = vpop.permute.xlu0 %888 }
 0x182   : > { %v869_v4 = vpop.permute.xlu1 %868  ;;  %1541 = vmatmul.mubr.bf16.gmra.mrb[44].mxu1 %v2700_v62  ;;  %1692 = vmatpush1.bf16.msra.mxu0 %v889_v1 }
 0x183   : > { %2520 = vmatprep.subr.bf16.mxu1 %v869_v4  ;;  %1693 = vmatprep.subr.bf16.mxu0 %v2783_v58 }
 0x184   : > { %1646 = vmatprep.mubr.bf16.mxu1 %v2706_v63 }
 0x185   : > { %v853_v6 = vpop.permute.xlu0 %852 }
 0x186   : > { %2521 = vmatpush3.bf16.msra.mxu1 %v853_v6  ;;  %v891_v7 = vpop.permute.xlu1 %890 }
 0x187   : > { %1694 = vmatpush1.bf16.msra.mxu0 %v891_v7 }
 0x188   : > { %1695 = vmatprep.subr.bf16.mxu0 %v2783_v58 }
 0x189   : > { %v871_v8 = vpop.permute.xlu0 %870 }
 0x18a   : > { %2522 = vmatprep.subr.bf16.mxu1 %v871_v8  ;;  %v855_v12 = vpop.permute.xlu1 %854 }
 0x18b   : > { %2523 = vmatpush3.bf16.msra.mxu1 %v855_v12 }
 0x18d   : > { %v893_v13 = vpop.permute.xlu0 %892 }
 0x18e   : > { %1696 = vmatpush1.bf16.msra.mxu0 %v893_v13 }
 0x18f   : > { %1697 = vmatprep.subr.bf16.mxu0 %v2783_v58 }
 0x194   : > { %v873_v9 = vpop.permute.xlu1 %872 }
 0x195   : > { %2524 = vmatprep.subr.bf16.mxu1 %v873_v9 }
 0x198   : > { %v857_v14 = vpop.permute.xlu0 %856 }
 0x199   : > { %2525 = vmatpush3.bf16.msra.mxu1 %v857_v14 }
 0x19c   : > { %v895_v15 = vpop.permute.xlu1 %894 }
 0x19d   : > { %1698 = vmatpush1.bf16.msra.mxu0 %v895_v15 }
 0x19e   : > { %1699 = vmatprep.subr.bf16.mxu0 %v2783_v58 }
 0x19f   : > { %v875_v10 = vpop.permute.xlu0 %874 }
 0x1a0   : > { %v2328_v16 = vpop.f32.mrb[0].mxu1  ;;  %2526 = vmatprep.subr.bf16.mxu1 %v875_v10 }
 0x1a1   : > { %v2329_v17 = vpop.f32.mrb[1].mxu1 }
 0x1a2   : > { %v3357_v18 = vadd.f32 %v2329_v17, %v2328_v16  ;;  %v2331_v19 = vpop.f32.mrb[2].mxu1 }
 0x1a3   : > { %v2332_v20 = vpop.f32.mrb[3].mxu1  ;;  %v859_v11 = vpop.permute.xlu1 %858 }
 0x1a4   : > { %v3359_v21 = vadd.f32 %v2332_v20, %v2331_v19  ;;  %2527 = vmatpush3.bf16.msra.mxu1 %v859_v11 }
 0x1a7   : > { %1647 = vmatmul.mubr.bf16.vlgmr.msra.gmra.mrb[48].mxu1 %v2704_v22  ;;  %v897_v0 = vpop.permute.xlu0 %896 }
 0x1a8   : > { %v2334_v24 = vpop.f32.mrb[4].mxu1  ;;  %1654 = vmatprep.mubr.bf16.mxu1 %v2707_v23  ;;  %1700 = vmatpush1.bf16.msra.mxu0 %v897_v0 }
 0x1a9   : > { %v2335_v25 = vpop.f32.mrb[5].mxu1  ;;  %1701 = vmatprep.subr.bf16.mxu0 %v2783_v58 }
 0x1aa   : > { %v3367_v26 = vadd.f32 %v2335_v25, %v2334_v24  ;;  %v2337_v27 = vpop.f32.mrb[6].mxu1 }
 0x1ab   : > { %v2338_v28 = vpop.f32.mrb[7].mxu1 }
 0x1ac   : > { %v3370_v29 = vadd.f32 %v2338_v28, %v2337_v27 }
 0x1af   : > { %1655 = vmatmul.mubr.bf16.gmra.mrb[52].mxu1 %v2709_v2 }
 0x1b0   : > { %v2340_v31 = vpop.f32.mrb[8].mxu1  ;;  %1662 = vmatprep.mubr.bf16.mxu1 %v2710_v30 }
 0x1b1   : > { %v2341_v32 = vpop.f32.mrb[9].mxu1 }
 0x1b2   : > { %v3378_v3 = vadd.f32 %v2341_v32, %v2340_v31  ;;  %v2343_v33 = vpop.f32.mrb[10].mxu1 }
 0x1b3   : > { %v2344_v34 = vpop.f32.mrb[11].mxu1 }
 0x1b4   : > { %v899_v58 = vpop.permute.xlu1 %898  ;;  %v3383_v5 = vadd.f32 %v2344_v34, %v2343_v33 }
 0x1b5   : > { %1702 = vmatpush1.bf16.msra.mxu0 %v899_v58 }
 0x1b7   : > { %1663 = vmatmul.mubr.bf16.gmra.mrb[56].mxu1 %v2715_v36 }
 0x1b8   : > { %1712 = vmatmul.mubr.bf16.vlgmr.msra.gmra.mrb[32].mxu0 %v2712_v35  ;;  %v2346_v39 = vpop.f32.mrb[12].mxu1  ;;  %1670 = vmatprep.mubr.bf16.mxu1 %v2716_v38 }
 0x1b9   : > { %2249 = vmatprep.mubr.msk.bf16.mxu0 %vm1276_vm0, %v2718_v37  ;;  %v2347_v40 = vpop.f32.mrb[13].mxu1 }
 0x1ba   : > { %v3395_v41 = vadd.f32 %v2347_v40, %v2346_v39  ;;  %v2349_v42 = vpop.f32.mrb[14].mxu1 }
 0x1bb   : > { %v2350_v43 = vpop.f32.mrb[15].mxu1 }
 0x1bc   : > { %v3400_v45 = vadd.f32 %v2350_v43, %v2349_v42 }
 0x1bf   : > { %1671 = vmatmul.mubr.bf16.gmra.mrb[60].mxu1 %v2720_v46 }
 0x1c0   : > { %1720 = vmatmul.mubr.bf16.gmra.mrb[36].mxu0 %v2721_v44 }
 0x1c1   : > { %2250 = vmatprep.mubr.msk.bf16.mxu0 %vm1276_vm0, %v2722_v47 }
 0x1c8   : > { %1728 = vmatmul.mubr.bf16.gmra.mrb[40].mxu0 %v2724_v48 }
 0x1c9   : > { %2251 = vmatprep.mubr.msk.bf16.mxu0 %vm1276_vm0, %v2725_v49 }
 0x1d0   : > { %1736 = vmatmul.mubr.bf16.gmra.mrb[44].mxu0 %v2727_v50  ;;  %v2408_v51 = vpop.f32.mrb[0].mxu0 }
 0x1d1   : > { %v2409_v52 = vpop.f32.mrb[1].mxu0 }
 0x1d2   : > { %v2410_v53 = vadd.f32 %v2409_v52, %v2408_v51  ;;  %v2411_v54 = vpop.f32.mrb[2].mxu0 }
 0x1d3   : > { %v2412_v55 = vpop.f32.mrb[3].mxu0 }
 0x1d4   : > { %v2413_v56 = vadd.f32 %v2412_v55, %v2411_v54 }
 0x1d8   : > { %v2414_v57 = vpop.f32.mrb[4].mxu0 }
 0x1d9   : > { %v2415_v59 = vpop.f32.mrb[5].mxu0 }
 0x1da   : > { %v2416_v60 = vadd.f32 %v2415_v59, %v2414_v57  ;;  %v2417_v61 = vpop.f32.mrb[6].mxu0 }
 0x1db   : > { %v2418_v62 = vpop.f32.mrb[7].mxu0 }
 0x1dc   : > { %v2419_v63 = vadd.f32 %v2418_v62, %v2417_v61 }
 0x1e0   : > { %v2420_v1 = vpop.f32.mrb[8].mxu0 }
 0x1e1   : > { %v2421_v4 = vpop.f32.mrb[9].mxu0 }
 0x1e2   : > { %v2422_v6 = vadd.f32 %v2421_v4, %v2420_v1  ;;  %v2423_v7 = vpop.f32.mrb[10].mxu0 }
 0x1e3   : > { %v2424_v8 = vpop.f32.mrb[11].mxu0 }
 0x1e4   : > { %v2425_v12 = vadd.f32 %v2424_v8, %v2423_v7 }
 0x1e8   : > { %v2426_v13 = vpop.f32.mrb[12].mxu0 }
 0x1e9   : > { %v2427_v9 = vpop.f32.mrb[13].mxu0 }
 0x1ea   : > { %v2428_v14 = vadd.f32 %v2427_v9, %v2426_v13  ;;  %v2429_v15 = vpop.f32.mrb[14].mxu0 }
 0x1eb   : > { %v2430_v16 = vpop.f32.mrb[15].mxu0 }
 0x1ec   : > { %v2431_v10 = vadd.f32 %v2430_v16, %v2429_v15 }
 0x1f4   : > { %v2368_v17 = vpop.f32.mrb[16].mxu1 }
 0x1f5   : > { %v2369_v19 = vpop.f32.mrb[17].mxu1 }
 0x1f6   : > { %v2370_v20 = vadd.f32 %v2369_v19, %v2368_v17  ;;  %v2371_v11 = vpop.f32.mrb[18].mxu1 }
 0x1f7   : > { %v2372_v22 = vpop.f32.mrb[19].mxu1 }
 0x1f8   : > { %v1389_v23 = vadd.f32 %v2370_v20, %v3357_v18  ;;  %v2373_v24 = vadd.f32 %v2372_v22, %v2371_v11 }
 0x1fa   : > { %v1392_v0 = vadd.f32 %v2373_v24, %v3359_v21  ;;  %v1454_v25 = vadd.f32 %v2410_v53, %v1389_v23 }
 0x1fc   : > { %v1457_v27 = vadd.f32 %v2413_v56, %v1392_v0  ;;  %v2374_v28 = vpop.f32.mrb[20].mxu1 }
 0x1fd   : > { %v2375_v2 = vpop.f32.mrb[21].mxu1 }
 0x1fe   : > { %v2376_v30 = vadd.f32 %v2375_v2, %v2374_v28  ;;  %v2377_v31 = vpop.f32.mrb[22].mxu1 }
 0x1ff   : > { %v2378_v32 = vpop.f32.mrb[23].mxu1 }
 0x200   : > { %v1397_v33 = vadd.f32 %v2376_v30, %v3367_v26  ;;  %v2379_v34 = vadd.f32 %v2378_v32, %v2377_v31 }
 0x202   : > { %v1400_v58 = vadd.f32 %v2379_v34, %v3370_v29  ;;  %v1462_v35 = vadd.f32 %v2416_v60, %v1397_v33 }
 0x204   : > { %v1465_v36 = vadd.f32 %v2419_v63, %v1400_v58  ;;  %v2380_v37 = vpop.f32.mrb[24].mxu1 }
 0x205   : > { %v2381_v38 = vpop.f32.mrb[25].mxu1 }
 0x206   : > { %v2382_v18 = vadd.f32 %v2381_v38, %v2380_v37  ;;  %v2383_v39 = vpop.f32.mrb[26].mxu1 }
 0x207   : > { %v2384_v40 = vpop.f32.mrb[27].mxu1 }
 0x208   : > { %v1405_v21 = vadd.f32 %v2382_v18, %v3378_v3  ;;  %v2385_v42 = vadd.f32 %v2384_v40, %v2383_v39 }
 0x20a   : > { %v1408_v43 = vadd.f32 %v2385_v42, %v3383_v5  ;;  %v1470_v44 = vadd.f32 %v2422_v6, %v1405_v21 }
 0x20c   : > { %v1473_v46 = vadd.f32 %v2425_v12, %v1408_v43  ;;  %v2386_v47 = vpop.f32.mrb[28].mxu1 }
 0x20d   : > { %v2387_v48 = vpop.f32.mrb[29].mxu1 }
 0x20e   : > { %v2388_v26 = vadd.f32 %v2387_v48, %v2386_v47  ;;  %v2389_v49 = vpop.f32.mrb[30].mxu1 }
 0x20f   : > { %v2390_v50 = vpop.f32.mrb[31].mxu1 }
 0x210   : > { %v1413_v29 = vadd.f32 %v2388_v26, %v3395_v41  ;;  %v2391_v51 = vadd.f32 %v2390_v50, %v2389_v49 }
 0x212   : > { %v1416_v52 = vadd.f32 %v2391_v51, %v3400_v45  ;;  %v1478_v53 = vadd.f32 %v2428_v14, %v1413_v29 }
 0x214   : > { %v1481_v54 = vadd.f32 %v2431_v10, %v1416_v52 }
 0x22d   : > { %v2488_v55 = vpop.f32.mrb[16].mxu0 }
 0x22e   : > { %v2489_v56 = vpop.f32.mrb[17].mxu0 }
 0x22f   : > { %v2490_v3 = vadd.f32 %v2489_v56, %v2488_v55  ;;  %v2491_v57 = vpop.f32.mrb[18].mxu0 }
 0x230   : > { %v2492_v59 = vpop.f32.mrb[19].mxu0 }
 0x231   : > { %v2493_v5 = vadd.f32 %v2492_v59, %v2491_v57  ;;  %v1760_v59 = vpop.permute.xlu1 %1759 }
 0x235   : > { %v2494_v60 = vpop.f32.mrb[20].mxu0 }
 0x236   : > { %v2495_v61 = vpop.f32.mrb[21].mxu0 }
 0x237   : > { %v2496_v62 = vadd.f32 %v2495_v61, %v2494_v60  ;;  %v2497_v63 = vpop.f32.mrb[22].mxu0 }
 0x238   : > { %v2498_v1 = vpop.f32.mrb[23].mxu0 }
 0x239   : > { %v2499_v4 = vadd.f32 %v2498_v1, %v2497_v63 }
 0x23d   : > { %v2448_v6 = vpop.f32.mrb[32].mxu1 }
 0x23e   : > { %v2449_v7 = vpop.f32.mrb[33].mxu1 }
 0x23f   : > { %v2450_v41 = vadd.f32 %v2449_v7, %v2448_v6  ;;  %v2451_v8 = vpop.f32.mrb[34].mxu1  ;;  %v2500_v12 = vpop.f32.mrb[24].mxu0 }
 0x240   : > { %v2452_v45 = vpop.f32.mrb[35].mxu1  ;;  %v2501_v13 = vpop.f32.mrb[25].mxu0 }
 0x241   : > { %v1519_v9 = vadd.f32 %v2450_v41, %v1454_v25  ;;  %v2453_v14 = vadd.f32 %v2452_v45, %v2451_v8  ;;  %v2502_v15 = vadd.f32 %v2501_v13, %v2500_v12  ;;  %v2503_v16 = vpop.f32.mrb[26].mxu0 }
 0x242   : > { %v2504_v10 = vpop.f32.mrb[27].mxu0 }
 0x243   : > { %v1522_v17 = vadd.f32 %v2453_v14, %v1457_v27  ;;  %v1584_v19 = vadd.f32 %v2490_v3, %v1519_v9  ;;  %v2505_v20 = vadd.f32 %v2504_v10, %v2503_v16 }
 0x245   : > { %v1587_v11 = vadd.f32 %v2493_v5, %v1522_v17  ;;  %v2454_v22 = vpop.f32.mrb[36].mxu1  ;;  %v1765_v5 = vpop.permute.xlu1 %1764 }
 0x246   : > { %v2455_v23 = vpop.f32.mrb[37].mxu1 }
 0x247   : > { %v2456_v24 = vadd.f32 %v2455_v23, %v2454_v22  ;;  %v2457_v0 = vpop.f32.mrb[38].mxu1  ;;  %v2506_v28 = vpop.f32.mrb[28].mxu0 }
 0x248   : > { %v2458_v2 = vpop.f32.mrb[39].mxu1  ;;  %v2507_v30 = vpop.f32.mrb[29].mxu0 }
 0x249   : > { %v1527_v31 = vadd.f32 %v2456_v24, %v1462_v35  ;;  %v2459_v32 = vadd.f32 %v2458_v2, %v2457_v0  ;;  %v2508_v33 = vadd.f32 %v2507_v30, %v2506_v28  ;;  %v2509_v34 = vpop.f32.mrb[30].mxu0  ;;  %v3431_v60 = vpop.permute.xlu1 %1774 }
 0x24a   : > { %v2510_v25 = vpop.f32.mrb[31].mxu0 }
 0x24b   : > { %v1530_v58 = vadd.f32 %v2459_v32, %v1465_v36  ;;  %v1592_v37 = vadd.f32 %v2496_v62, %v1527_v31  ;;  %v2511_v38 = vadd.f32 %v2510_v25, %v2509_v34 }
 0x24d   : > { %v1595_v18 = vadd.f32 %v2499_v4, %v1530_v58  ;;  %v2460_v27 = vpop.f32.mrb[40].mxu1 }
 0x24e   : > { %v2461_v39 = vpop.f32.mrb[41].mxu1 }
 0x24f   : > { %v2462_v40 = vadd.f32 %v2461_v39, %v2460_v27  ;;  %v2463_v21 = vpop.f32.mrb[42].mxu1 }
 0x250   : > { %v2464_v42 = vpop.f32.mrb[43].mxu1 }
 0x251   : > { %v1535_v43 = vadd.f32 %v2462_v40, %v1470_v44  ;;  %v2465_v47 = vadd.f32 %v2464_v42, %v2463_v21  ;;  %v3433_v44 = vpop.permute.xlu1 %1784 }
 0x253   : > { %v1538_v48 = vadd.f32 %v2465_v47, %v1473_v46  ;;  %v1600_v26 = vadd.f32 %v2502_v15, %v1535_v43  ;;  %v1755_v46 = vpop.permute.xlu0 %1754 }
 0x255   : > { %v1603_v49 = vadd.f32 %v2505_v20, %v1538_v48  ;;  %v2466_v50 = vpop.f32.mrb[44].mxu1  ;;  %v1811_v61 = vpop.permute.xlu1 %1810 }
 0x256   : > { %v2467_v35 = vpop.f32.mrb[45].mxu1 }
 0x257   : > { %v2468_v29 = vadd.f32 %v2467_v35, %v2466_v50  ;;  %v2469_v51 = vpop.f32.mrb[46].mxu1  ;;  %v1770_v1 = vpop.permute.xlu0 %1769 }
 0x258   : > { %v2470_v52 = vpop.f32.mrb[47].mxu1 }
 0x259   : > { %v1543_v55 = vadd.f32 %v2468_v29, %v1478_v53  ;;  %v2471_v36 = vadd.f32 %v2470_v52, %v2469_v51  ;;  %v1821_v7 = vpop.permute.xlu1 %1820 }
 0x25b   : > { %v1546_v56 = vadd.f32 %v2471_v36, %v1481_v54  ;;  %v3427_v3 = vadd.f32 %v2508_v33, %v1543_v55  ;;  %v3435_v12 = vpop.permute.xlu0 %1779 }
 0x25d   : > { %v3429_v57 = vadd.f32 %v2511_v38, %v1546_v56  ;;  %v3437_v9 = vpop.permute.xlu1 %1830 }
 0x25f   : > { %v3439_v20 = vpop.permute.xlu0 %1789 }
 0x261   : > { %v3441_v23 = vpop.permute.xlu1 %1840 }
 0x263   : > { %v1816_v39 = vpop.permute.xlu0 %1815 }
 0x265   : > { %v3443_v21 = vpop.permute.xlu1 %1870 }
 0x27a   : > { %v2528_v62 = vpop.f32.mrb[48].mxu1 }
 0x27b   : > { %v2529_v63 = vpop.f32.mrb[49].mxu1 }
 0x27c   : > { %v2530_v4 = vadd.f32 %v2529_v63, %v2528_v62  ;;  %v2531_v6 = vpop.f32.mrb[50].mxu1 }
 0x27d   : > { %v2532_v53 = vpop.f32.mrb[51].mxu1 }
 0x27e   : > { %v2533_v54 = vadd.f32 %v2532_v53, %v2531_v6  ;;  %v1649_v41 = vadd.f32 %v2530_v4, %v1584_v19  ;;  %v1826_v6 = vpop.permute.xlu0 %1825 }
 0x280   : > { %v1652_v8 = vadd.f32 %v2533_v54, %v1587_v11 }
 0x282   : > { %v2534_v45 = vpop.f32.mrb[52].mxu1 }
 0x283   : > { %v2535_v13 = vpop.f32.mrb[53].mxu1 }
 0x284   : > { %v2536_v14 = vadd.f32 %v2535_v13, %v2534_v45  ;;  %v2537_v15 = vpop.f32.mrb[54].mxu1 }
 0x285   : > { %v2538_v16 = vpop.f32.mrb[55].mxu1 }
 0x286   : > { %v2539_v10 = vadd.f32 %v2538_v16, %v2537_v15  ;;  %v1657_v17 = vadd.f32 %v2536_v14, %v1592_v37 }
 0x288   : > { %v1660_v22 = vadd.f32 %v2539_v10, %v1595_v18 }
 0x28a   : > { %v2540_v0 = vpop.f32.mrb[56].mxu1 }
 0x28b   : > { %v1713_v24 = vpop.f32.mrb[32].mxu0  ;;  %v2541_v28 = vpop.f32.mrb[57].mxu1 }
 0x28c   : > { %v1714_v19 = vadd.f32 %v1713_v24, %v1649_v41  ;;  %v1715_v11 = vpop.f32.mrb[33].mxu0  ;;  %v2542_v31 = vadd.f32 %v2541_v28, %v2540_v0  ;;  %v2543_v32 = vpop.f32.mrb[58].mxu1 }
 0x28d   : > { %v1716_v2 = vpop.f32.mrb[34].mxu0  ;;  %v2544_v25 = vpop.f32.mrb[59].mxu1 }
 0x28e   : > { %v1792_v30 = vmul.f32 %v1755_v46, %v1714_v19  ;;  %v1717_v33 = vadd.f32 %v1716_v2, %v1652_v8  ;;  %v1718_v34 = vpop.f32.mrb[35].mxu0  ;;  %v2545_v37 = vadd.f32 %v2544_v25, %v2543_v32  ;;  %v1665_v27 = vadd.f32 %v2542_v31, %v1600_v26  ;;  %v1836_v0 = vpop.permute.xlu0 %1835 }
 0x290   : > { %v1848_v58 = vadd.f32 %v1811_v61, %v1792_v30  ;;  %v1793_v38 = vmul.f32 %v1760_v59, %v1717_v33  ;;  %v1668_v42 = vadd.f32 %v2545_v37, %v1603_v49 }
 0x292   : > { %v1856_v18 = vmax.f32 %v1848_v58, 0.0  ;;  %v1849_v40 = vadd.f32 %v1816_v39, %v1793_v38  ;;  %v2546_v48 = vpop.f32.mrb[60].mxu1  ;;  %v1846_v38 = vpop.permute.xlu0 %1845 }
 0x293   : > { %v1721_v43 = vpop.f32.mrb[36].mxu0  ;;  %v2547_v29 = vpop.f32.mrb[61].mxu1 }
 0x294   : > { %v1857_v47 = vmax.f32 %v1849_v40, 0.0  ;;  %v1722_v50 = vadd.f32 %v1721_v43, %v1657_v17  ;;  %v1723_v35 = vpop.f32.mrb[37].mxu0  ;;  %v1873_v52 = vmul.f32 %v3443_v21, %v1856_v18  ;;  %v2548_v36 = vadd.f32 %v2547_v29, %v2546_v48  ;;  %v2549_v56 = vpop.f32.mrb[62].mxu1 }
 0x295   : > { %v1724_v51 = vpop.f32.mrb[38].mxu0  ;;  %v2550_v61 = vpop.f32.mrb[63].mxu1 }
 0x296   : > { %v1794_v55 = vmul.f32 %v1765_v5, %v1722_v50  ;;  %v1725_v59 = vadd.f32 %v1724_v51, %v1660_v22  ;;  %v1726_v26 = vpop.f32.mrb[39].mxu0  ;;  %v1874_v46 = vmul.f32 %v3443_v21, %v1857_v47  ;;  %v2551_v49 = vadd.f32 %v2550_v61, %v2549_v56 }
 0x297   : > { %v1673_v53 = vadd.f32 %v2548_v36, %v3427_v3 }
 0x298   : > { %v1850_v62 = vadd.f32 %v1821_v7, %v1794_v55  ;;  %v1795_v63 = vmul.f32 %v1770_v1, %v1725_v59  ;;  %v2612_v4 = vpack.i.bf16 %v1874_v46, %v1873_v52  ;;  %v1676_v5 = vadd.f32 %v2551_v49, %v3429_v57 }
 0x29a   : > { %v1858_v54 = vmax.f32 %v1850_v62, 0.0  ;;  %v1851_v41 = vadd.f32 %v1826_v6, %v1795_v63  ;;  %2613 = vrot.lane.b32.xlu0 %v2612_v4, %s2782_s9 }
 0x29b   : > { %v1729_v8 = vpop.f32.mrb[40].mxu0 }
 0x29c   : > { %v1859_v45 = vmax.f32 %v1851_v41, 0.0  ;;  %v1730_v13 = vadd.f32 %v1729_v8, %v1665_v27  ;;  %v1731_v14 = vpop.f32.mrb[41].mxu0  ;;  %v1875_v17 = vmul.f32 %v3443_v21, %v1858_v54 }
 0x29d   : > { %v1732_v15 = vpop.f32.mrb[42].mxu0 }
 0x29e   : > { %v1876_v16 = vmul.f32 %v3443_v21, %v1859_v45  ;;  %v1796_v1 = vmul.f32 %v3431_v60, %v1730_v13  ;;  %v1733_v7 = vadd.f32 %v1732_v15, %v1668_v42  ;;  %v1734_v10 = vpop.f32.mrb[43].mxu0 }
 0x2a0   : > { %v1852_v3 = vadd.f32 %v3437_v9, %v1796_v1  ;;  %v1797_v22 = vmul.f32 %v3435_v12, %v1733_v7  ;;  %v2617_v24 = vpack.i.bf16 %v1876_v16, %v1875_v17 }
 0x2a2   : > { %v1860_v57 = vmax.f32 %v1852_v3, 0.0  ;;  %v1853_v19 = vadd.f32 %v1836_v0, %v1797_v22  ;;  %2618 = vrot.lane.b32.xlu1 %v2617_v24, %s2782_s9 }
 0x2a3   : > { %v1737_v11 = vpop.f32.mrb[44].mxu0 }
 0x2a4   : > { %v1861_v28 = vmax.f32 %v1853_v19, 0.0  ;;  %v1738_v2 = vadd.f32 %v1737_v11, %v1673_v53  ;;  %v1739_v30 = vpop.f32.mrb[45].mxu0  ;;  %v1877_v60 = vmul.f32 %v3443_v21, %v1860_v57 }
 0x2a5   : > { %v1740_v31 = vpop.f32.mrb[46].mxu0 }
 0x2a6   : > { %v1878_v32 = vmul.f32 %v3443_v21, %v1861_v28  ;;  %v1798_v33 = vmul.f32 %v3433_v44, %v1738_v2  ;;  %v1741_v9 = vadd.f32 %v1740_v31, %v1676_v5  ;;  %v1742_v34 = vpop.f32.mrb[47].mxu0 }
 0x2a8   : > { %v1854_v12 = vadd.f32 %v3441_v23, %v1798_v33  ;;  %v1799_v25 = vmul.f32 %v3439_v20, %v1741_v9  ;;  %v2622_v58 = vpack.i.bf16 %v1878_v32, %v1877_v60 }
 0x2aa   : > { %v1862_v37 = vmax.f32 %v1854_v12, 0.0  ;;  %v1855_v27 = vadd.f32 %v1846_v38, %v1799_v25  ;;  %2623 = vrot.lane.b32.xlu0 %v2622_v58, %s2782_s9 }
 0x2ac   : > { %v1863_v39 = vmax.f32 %v1855_v27, 0.0  ;;  %v1879_v18 = vmul.f32 %v3443_v21, %v1862_v37 }
 0x2ae   : > { %v1880_v40 = vmul.f32 %v3443_v21, %v1863_v39 }
 0x2b0   : > { %v2627_v42 = vpack.i.bf16 %v1880_v40, %v1879_v18 }
 0x2b2   : > { %2628 = vrot.lane.b32.xlu1 %v2627_v42, %s2782_s9 }
 0x30c   : > { %v2614_v44 = vpop.permute.xlu0 %2613 }
 0x30d   : > { %v2616_v23 = vunpack.i.h.bf16 %v2614_v44  ;;  %v2615_v20 = vunpack.i.l.bf16 %v2614_v44 }
 0x30f   : > { %v1915_v43 = vsel %vm1913_vm1, 0.0, %v2616_v23  ;;  %v1914_v47 = vsel %vm1913_vm1, 0.0, %v2615_v20 }
 0x310   : > { %v1924_v48 = vsel %vm1922_vm2, %v1915_v43, 0.0  ;;  %v1923_v50 = vsel %vm1922_vm2, %v1914_v47, 0.0 }
 0x311   : > { %v2292_v35 = vpack.c.bf16 %v1924_v48, %v1923_v50 }
 0x313   : > { %2293 = vst [vmem:[%s2894_s18] sm:$0xff] %v2292_v35  }
 0x314   : > { %v2619_v21 = vpop.permute.xlu1 %2618 }
 0x315   : > { %v2621_v29 = vunpack.i.h.bf16 %v2619_v21  ;;  %v2620_v51 = vunpack.i.l.bf16 %v2619_v21 }
 0x317   : > { %v1917_v52 = vsel %vm1913_vm1, 0.0, %v2621_v29  ;;  %v1916_v55 = vsel %vm1913_vm1, 0.0, %v2620_v51 }
 0x318   : > { %v1926_v36 = vsel %vm1922_vm2, %v1917_v52, 0.0  ;;  %v1925_v56 = vsel %vm1922_vm2, %v1916_v55, 0.0 }
 0x319   : > { %v2297_v59 = vpack.c.bf16 %v1926_v36, %v1925_v56 }
 0x31b   : > { %2309 = vst [vmem:[%s2894_s18 + $0x8] sm:$0xff] %v2297_v59  }
 0x31c   : > { %v2624_v26 = vpop.permute.xlu0 %2623 }
 0x31d   : > { %v2626_v46 = vunpack.i.h.bf16 %v2624_v26  ;;  %v2625_v61 = vunpack.i.l.bf16 %v2624_v26 }
 0x31f   : > { %v1919_v62 = vsel %vm1913_vm1, 0.0, %v2626_v46  ;;  %v1918_v63 = vsel %vm1913_vm1, 0.0, %v2625_v61 }
 0x320   : > { %v1928_v49 = vsel %vm1922_vm2, %v1919_v62, 0.0  ;;  %v1927_v4 = vsel %vm1922_vm2, %v1918_v63, 0.0 }
 0x321   : > { %v2302_v6 = vpack.c.bf16 %v1928_v49, %v1927_v4 }
 0x323   : > { %2310 = vst [vmem:[%s2894_s18 + $0x10] sm:$0xff] %v2302_v6  }
 0x324   : > { %v2629_v53 = vpop.permute.xlu1 %2628 }
 0x325   : > { %v2631_v54 = vunpack.i.h.bf16 %v2629_v53  ;;  %v2630_v41 = vunpack.i.l.bf16 %v2629_v53 }
 0x327   : > { %v1921_v5 = vsel %vm1913_vm1, 0.0, %v2631_v54  ;;  %v1920_v8 = vsel %vm1913_vm1, 0.0, %v2630_v41 }
 0x328   : > { %v1930_v45 = vsel %vm1922_vm2, %v1921_v5, 0.0  ;;  %v1929_v13 = vsel %vm1922_vm2, %v1920_v8, 0.0 }
 0x329   : > { %v2307_v14 = vpack.c.bf16 %v1930_v45, %v1929_v13 }
 0x32b   : > { %2311 = vst [vmem:[%s2894_s18 + $0x18] sm:$0xff] %v2307_v14  }
 0x32c PF: > { %1973 = sbr.rel (!%p2876_p2) target bundleno = 819 (0x333), region = 56  ;;  %v2784_v15 = vmov (%p2876_p2), 0  }
 0x32d   : > { %1974 = vst [vmem:[%s2894_s18] sm:$0xf] (%p2876_p2), %v2784_v15  ;;  %1975 = vst [vmem:[%s2894_s18 + $0x4] sm:$0xf] (%p2876_p2), %v2784_v15 }
 0x32e   : > { %1976 = vst [vmem:[%s2894_s18 + $0x8] sm:$0xf] (%p2876_p2), %v2784_v15  ;;  %1977 = vst [vmem:[%s2894_s18 + $0xc] sm:$0xf] (%p2876_p2), %v2784_v15 }
 0x32f   : > { %1978 = vst [vmem:[%s2894_s18 + $0x10] sm:$0xf] (%p2876_p2), %v2784_v15  ;;  %1979 = vst [vmem:[%s2894_s18 + $0x14] sm:$0xf] (%p2876_p2), %v2784_v15 }
 0x330   : > { %1980 = vst [vmem:[%s2894_s18 + $0x18] sm:$0xf] (%p2876_p2), %v2784_v15  ;;  %1981 = vst [vmem:[%s2894_s18 + $0x1c] sm:$0xf] (%p2876_p2), %v2784_v15 }
 0x333 PF: > { %s17_s28 = sadd.s32 1, %s2766_s28   ;;  %s3521_s24 = smov %s2758_s26 }
 0x334   : > { %p14_p4 = scmp.ge.s32.totalorder %s17_s28, 14   ;;  %s3522_s25 = smov %s2762_s27 }
 0x335   : > { %s3523_s26 = smov %s3526_s29  ;;  %s3524_s27 = smov %s3530_s30 }
 0x336   :  { %16 = sbr.rel (!%p14_p4) target bundleno = 3 (0x3), region = 92 }

// kernel: cost_volume_network.11
= control target key start
LH: loop header
LB: loop body
LE: loop exit
PB: predicated region body
PF: predicated region fallthrough
CT: control target
= control target key end

     0   :  { %s2272_s24 = smov 0   ;;  %s2274_s25 = smov 0   ;;  %s3204_s0 = inlined_call_operand.vmem [shape: bf16[2,10,32,384], index: 0, kind: input, shape index: {}, may-alias: {0,1,2}]   ;;  %s3205_s1 = inlined_call_operand.vmem [shape: bf16[2,10,32,384], index: 1, kind: input, shape index: {}, may-alias: {0,1,2}]   ;;  %s3206_s2 = inlined_call_operand.vmem [shape: bf16[2,10,32,384], index: 2, kind: input, shape index: {}, may-alias: {0,1,2}]   ;;  %s3207_s3 = inlined_call_operand.vmem [shape: bf16[8,864], index: 3, kind: input, shape index: {}]   ;;  %s3208_s4 = inlined_call_operand.vmem [shape: f32[8,1], index: 4, kind: input, shape index: {}]   ;;  %s3209_s5 = inlined_call_operand.vmem [shape: f32[8,1], index: 5, kind: input, shape index: {}]   ;;  %s3210_s6 = inlined_call_operand.vmem [shape: f32[1,384], index: 6, kind: input, shape index: {}]   ;;  %s3211_s7 = inlined_call_operand.vmem [shape: f32[2,10,8,384], index: 7, kind: output, shape index: {}]  }
   0x1   :  { %3213 = sst [smem:[#allocation5_spill]] %s3204_s0  ;;  %s2276_s26 = smov 0  }
   0x2   :  { %s2278_s27 = smov 0   ;;  %s2280_s28 = smov 0  }
   0x3 LB: > { %3214 = sst [smem:[#allocation2_spill]] %s2207_s27  ;;  %s26_s29 = sadd.s32 1, %s2203_s26  ;;  %s2211_s28 = sphi %s2280_s28, %s17_s28   ;;  %s2207_s27 = sphi %s2278_s27, %s3221_s27   ;;  %s2203_s26 = sphi %s2276_s26, %s3223_s26   ;;  %s2199_s25 = sphi %s2274_s25, %s3219_s25   ;;  %s2195_s24 = sphi %s2272_s24, %s3222_s24  }
   0x4   : > { %s29_s30 = sadd.s32 1, %s2207_s27  ;;  %p27_p0 = scmp.ge.s32.totalorder %s26_s29, 10 }
   0x5   : > { %p1898_p1 = scmp.ge.s32.totalorder %s2211_s28, 1  ;;  %p345_p2 = scmp.lt.s32.totalorder %s2211_s28, 21 }
   0x6   : > { %s3225_s29 = smov (%p27_p0, %s26_s29), 0  ;;  %s3227_s30 = smov (!%p27_p0, %s29_s30), %s2207_s27 }
   0x7   : > { %3215 = sst [smem:[#allocation3_spill]] %s3225_s29  ;;  %p346_p3 = pnand %p1898_p1, %p345_p2 }
   0x8   : > { %p31_p4 = scmp.ge.s32.totalorder %s3227_s30, 2  ;;  %s1899_s8 = sadd.s32 (!%p346_p3), 4294967295, %s2195_s24 }
   0x9   : > { %349 = sbr.rel (%p346_p3) target bundleno = 938 (0x3aa), region = 48  ;;  %p422_p5 = scmp.lt.s32.totalorder (!%p346_p3), %s2199_s25, 1 }
   0xa   : > { %s3229_s30 = smov (%p31_p4, %s3227_s30), 0  ;;  %p418_p6 = scmp.gt.s32.totalorder (!%p346_p3), %s1899_s8, 0 }
   0xb   : > { %3216 = sst [smem:[#allocation4_spill]] %s3229_s30  ;;  %p1900_p7 = scmp.lt.s32.totalorder (!%p346_p3), %s1899_s8, 9 }
   0xc   : > { %p436_p8 = scmp.gt.s32.totalorder (!%p346_p3), %s2195_s24, 0  ;;  %p1906_p10 = scmp.lt.s32.totalorder (!%p346_p3), %s2195_s24, 9 }
   0xd   : > { %s453_s11 = sadd.s32 (!%p346_p3), 1, %s2195_s24  ;;  %p482_p13 = scmp.ge.s32.totalorder (!%p346_p3), %s2195_s24, 1 }
   0xe   : > { %p454_p12 = scmp.gt.s32.totalorder (!%p346_p3), %s453_s11, 0  ;;  %p483_p0 = scmp.le.s32.totalorder (!%p346_p3), %s2195_s24, 8 }
   0xf   : > { %s3217_s0 = sld [smem:[#allocation5_spill]] (!%p346_p3)  ;;  %p1912_p1 = scmp.lt.s32.totalorder (!%p346_p3), %s453_s11, 9 }
  0x10   : > { %s3231_s25 = smov (!%p422_p5, %s2199_s25), 1  ;;  %s3233_s8 = smov (!%p418_p6, %s1899_s8), 0 }
  0x11   : > { %s3235_s8 = smov (!%p1900_p7, %s3233_s8), 9  ;;  %s2066_s10 = smul.u32 120, %s3231_s25 }
  0x12   : > { %s437_s9 = scalar_select %p436_p8, %s2195_s24, 0 }
  0x13   : > { %p424_p9 = scmp.lt.s32.totalorder %s3235_s8, 9  ;;  %s3243_s11 = smov (!%p454_p12, %s453_s11), 0 }
  0x14   : > { %s3239_s9 = smov (!%p1906_p10, %s437_s9), 9  ;;  %p2321_p2 = pnand %p483_p0, %p482_p13 }
  0x15   : > { %s3237_s8 = smov (!%p424_p9, %s3235_s8), 9  ;;  %p442_p11 = scmp.lt.s32.totalorder %s3239_s9, 9  ;;  %vm717_vm0 = vcmask (!%p2321_p2), 736256   ;;  %vm556_vm1 = vcmask (!%p2321_p2), 1039360   ;;  %vm579_vm2 = vcmask (!%p2321_p2), 1031168   ;;  %vm602_vm3 = vcmask (!%p2321_p2), 900096  }
  0x16   : > { %s2065_s12 = smul.u32 12, %s3237_s8  ;;  %s3245_s11 = smov (!%p1912_p1, %s3243_s11), 9  ;;  %vm625_vm4 = vcmask (!%p2321_p2), 891904   ;;  %vm648_vm5 = vcmask (!%p2321_p2), 883712   ;;  %vm930_vm6 = vcmask (!%p2321_p2), 302080   ;;  %vm947_vm7 = vcmask (!%p2321_p2), 293888  }
  0x17   : > { %s3241_s9 = smov (!%p442_p11, %s3239_s9), 9  ;;  %p460_p3 = scmp.lt.s32.totalorder %s3245_s11, 9  ;;  %vm671_vm8 = vcmask (!%p2321_p2), 752640   ;;  %vm964_vm9 = vcmask (!%p2321_p2), 285696   ;;  %vm981_vm10 = vcmask (!%p2321_p2), 154624   ;;  %vm998_vm11 = vcmask (!%p2321_p2), 146432  }
  0x18   : > { %s428_s13 = sadd.s32 %s2066_s10, %s2065_s12  ;;  %s2067_s18 = smul.u32 12, %s3241_s9  ;;  %vm694_vm12 = vcmask (!%p2321_p2), 744448   ;;  %vm1015_vm13 = vcmask (!%p2321_p2), 138240   ;;  %vm1032_vm14 = vcmask (!%p2321_p2), 7168   ;;  %vm1323_vm15 = vcmask (!%p2321_p2), 785408  }
  0x19   : > { %s1905_s14 = sshll.u32 %s428_s13, 2  ;;  %s2070_s12 = smul.u32 30, %s3231_s25 }
  0x1a   : > { %s2319_s17 = scalar_lea.vmem %s3217_s0, %s1905_s14  ;;  %s446_s20 = sadd.s32 %s2067_s18, %s2066_s10 }
  0x1b   : > { %s1911_s21 = sshll.u32 %s446_s20, 2  ;;  %s3247_s11 = smov (!%p460_p3, %s3245_s11), 9  ;;  %v2347_v0 = vld [vmem:[%s2319_s17 + $0x4] ss:$12 sps:$4 sm:$0xff] (!%p2321_p2)   ;;  %v2350_v1 = vld [vmem:[%s2319_s17] ss:$12 sps:$4 sm:$0xff] (!%p2321_p2)  }
  0x1c   : > { %s2328_s8 = scalar_lea.vmem %s3205_s1, %s1911_s21  ;;  %s3249_s24 = smov (!%p1906_p10, %s2195_s24), 9  ;;  %v2354_v2 = vld [vmem:[%s2319_s17 + $0x8] ss:$12 sps:$4 sm:$0xff] (!%p2321_p2)   ;;  %1327 = vmatprep.subr.bf16.mxu1 (!%p2321_p2), %v2347_v0  ;;  %v2363_v4 = vld [vmem:[%s2319_s17 + $0x18] ss:$12 sps:$4 sm:$0xff] (!%p2321_p2)  }
  0x1d   : > { %s2068_s13 = smul.u32 12, %s3247_s11  ;;  %s2213_s0 = smov (!%p2321_p2), 90   ;;  %v2359_v3 = vld [vmem:[%s2319_s17 + $0x1c] ss:$12 sps:$4 sm:$0xff] (!%p2321_p2)   ;;  %1328 = vmatpush1.bf16.msra.mxu1 (!%p2321_p2), %v2350_v1  ;;  %v2368_v5 = vld [vmem:[%s2319_s17 + $0x20] ss:$12 sps:$4 sm:$0xff] (!%p2321_p2)  }
  0x1e   : > { %s2069_s14 = smul.u32 3, %s3249_s24  ;;  %707 = vrot.lane.b32.xlu0 (!%p2321_p2), %v2347_v0, %s2213_s0  ;;  %705 = vrot.lane.b32.xlu1 (!%p2321_p2), %v2350_v1, %s2213_s0  ;;  %v2374_v6 = vld [vmem:[%s2328_s8 + $0x4] ss:$12 sps:$4 sm:$0xff] (!%p2321_p2)   ;;  %v2378_v7 = vld [vmem:[%s2328_s8 + $0x8] ss:$12 sps:$4 sm:$0xff] (!%p2321_p2)   ;;  %s2214_s24 = smov (!%p2321_p2), 127  }
  0x1f   : > { %s464_s9 = sadd.s32 %s2068_s13, %s2066_s10  ;;  %487 = sbr.rel (%p2321_p2) target bundleno = 931 (0x3a3), region = 52  ;;  %1329 = vmatprep.subr.bf16.mxu1 (!%p2321_p2), %v2359_v3  ;;  %v2383_v8 = vld [vmem:[%s2328_s8] ss:$12 sps:$4 sm:$0xff] (!%p2321_p2)   ;;  %v2388_v9 = vld [vmem:[%s2328_s8 + $0x1c] ss:$12 sps:$4 sm:$0xff] (!%p2321_p2)  }
  0x20   : > { %s1917_s15 = sshll.u32 %s464_s9, 2  ;;  %s478_s16 = sadd.s32 %s2070_s12, %s2069_s14  ;;  %v2393_v10 = vld [vmem:[%s2328_s8 + $0x20] ss:$12 sps:$4 sm:$0xff] (!%p2321_p2)   ;;  %v2398_v11 = vld [vmem:[%s2328_s8 + $0x18] ss:$12 sps:$4 sm:$0xff] (!%p2321_p2)  }
  0x21   : > { %s2337_s18 = scalar_lea.vmem %s3206_s2, %s1917_s15  ;;  %s1918_s20 = sshll.u32 %s478_s16, 3  ;;  %1330 = vmatpush1.bf16.msra.mxu1 (!%p2321_p2), %v2363_v4 }
  0x22   : > { %s2342_s21 = scalar_lea.vmem %s3211_s7, %s1918_s20  ;;  %709 = vrot.lane.b32.xlu0 (!%p2321_p2), %v2354_v2, %s2213_s0  ;;  %713 = vrot.lane.b32.xlu1 (!%p2321_p2), %v2359_v3, %s2213_s0  ;;  %v2409_v12 = vld [vmem:[%s2337_s18] ss:$12 sps:$4 sm:$0xff] (!%p2321_p2)   ;;  %v2414_v13 = vld [vmem:[%s2337_s18 + $0x4] ss:$12 sps:$4 sm:$0xff] (!%p2321_p2)   ;;  %s2215_s25 = smov (!%p2321_p2), 37  }
  0x23   : > { %v2418_v14 = vld [vmem:[%s2337_s18 + $0x8] ss:$12 sps:$4 sm:$0xff] (!%p2321_p2)   ;;  %s2216_s27 = smov (!%p2321_p2), 126   ;;  %v2431_v15 = vld [vmem:[%s2337_s18 + $0x18] ss:$12 sps:$4 sm:$0xff] (!%p2321_p2)   ;;  %s2217_s29 = smov (!%p2321_p2), 36  }
  0x24   : > { %v2435_v16 = vld [vmem:[%s2337_s18 + $0x1c] ss:$12 sps:$4 sm:$0xff] (!%p2321_p2)   ;;  %v2439_v17 = vld [vmem:[%s2337_s18 + $0x20] ss:$12 sps:$4 sm:$0xff] (!%p2321_p2)   ;;  %s2218_s30 = smov (!%p2321_p2), 110   ;;  %s2219_s10 = smov (!%p2321_p2), 35  }
  0x25   : > { %s2220_s11 = smov (!%p2321_p2), 109   ;;  %s2221_s22 = smov (!%p2321_p2), 19  }
  0x26   : > { %715 = vrot.lane.b32.xlu0 %v2368_v5, %s2213_s0  ;;  %711 = vrot.lane.b32.xlu1 %v2363_v4, %s2213_s0  ;;  %s2222_s23 = smov 108   ;;  %s2223_s12 = smov 18  }
  0x27   : > { %s2224_s13 = smov 92   ;;  %s2225_s14 = smov 17  }
  0x28   : > { %s2226_s16 = smov 91   ;;  %s2227_s20 = smov 1  }
  0x2a   : > { %762 = vrot.lane.b32.xlu0 %v2374_v6, %s2214_s24  ;;  %764 = vrot.lane.b32.xlu1 %v2378_v7, %s2214_s24 }
  0x2e   : > { %760 = vrot.lane.b32.xlu0 %v2383_v8, %s2214_s24  ;;  %768 = vrot.lane.b32.xlu1 %v2388_v9, %s2214_s24 }
  0x32   : > { %770 = vrot.lane.b32.xlu0 %v2393_v10, %s2214_s24  ;;  %766 = vrot.lane.b32.xlu1 %v2398_v11, %s2214_s24 }
  0x36   : > { %546 = vrot.lane.b32.xlu0 %v2347_v0, %s2214_s24  ;;  %548 = vrot.lane.b32.xlu1 %v2354_v2, %s2214_s24 }
  0x3a   : > { %544 = vrot.lane.b32.xlu0 %v2350_v1, %s2214_s24  ;;  %918 = vrot.lane.b32.xlu1 %v2409_v12, %s2215_s25 }
  0x3e   : > { %920 = vrot.lane.b32.xlu0 %v2414_v13, %s2215_s25  ;;  %922 = vrot.lane.b32.xlu1 %v2418_v14, %s2215_s25 }
  0x42   : > { %552 = vrot.lane.b32.xlu0 %v2359_v3, %s2214_s24  ;;  %554 = vrot.lane.b32.xlu1 %v2368_v5, %s2214_s24 }
  0x46   : > { %550 = vrot.lane.b32.xlu0 %v2363_v4, %s2214_s24  ;;  %784 = vrot.lane.b32.xlu1 %v2374_v6, %s2216_s27 }
  0x4a   : > { %786 = vrot.lane.b32.xlu0 %v2378_v7, %s2216_s27  ;;  %782 = vrot.lane.b32.xlu1 %v2383_v8, %s2216_s27 }
  0x4e   : > { %924 = vrot.lane.b32.xlu0 %v2431_v15, %s2215_s25  ;;  %926 = vrot.lane.b32.xlu1 %v2435_v16, %s2215_s25 }
  0x52   : > { %928 = vrot.lane.b32.xlu0 %v2439_v17, %s2215_s25  ;;  %569 = vrot.lane.b32.xlu1 %v2347_v0, %s2216_s27 }
  0x56   : > { %571 = vrot.lane.b32.xlu0 %v2354_v2, %s2216_s27  ;;  %567 = vrot.lane.b32.xlu1 %v2350_v1, %s2216_s27 }
  0x5a   : > { %790 = vrot.lane.b32.xlu0 %v2388_v9, %s2216_s27  ;;  %792 = vrot.lane.b32.xlu1 %v2393_v10, %s2216_s27 }
  0x5e   : > { %788 = vrot.lane.b32.xlu0 %v2398_v11, %s2216_s27  ;;  %935 = vrot.lane.b32.xlu1 %v2409_v12, %s2217_s29 }
  0x62   : > { %937 = vrot.lane.b32.xlu0 %v2414_v13, %s2217_s29  ;;  %939 = vrot.lane.b32.xlu1 %v2418_v14, %s2217_s29 }
  0x66   : > { %575 = vrot.lane.b32.xlu0 %v2359_v3, %s2216_s27  ;;  %577 = vrot.lane.b32.xlu1 %v2368_v5, %s2216_s27 }
  0x6a   : > { %573 = vrot.lane.b32.xlu0 %v2363_v4, %s2216_s27  ;;  %806 = vrot.lane.b32.xlu1 %v2374_v6, %s2218_s30 }
  0x6e   : > { %808 = vrot.lane.b32.xlu0 %v2378_v7, %s2218_s30  ;;  %804 = vrot.lane.b32.xlu1 %v2383_v8, %s2218_s30 }
  0x72   : > { %941 = vrot.lane.b32.xlu0 %v2431_v15, %s2217_s29  ;;  %943 = vrot.lane.b32.xlu1 %v2435_v16, %s2217_s29 }
  0x76   : > { %945 = vrot.lane.b32.xlu0 %v2439_v17, %s2217_s29  ;;  %592 = vrot.lane.b32.xlu1 %v2347_v0, %s2218_s30 }
  0x7a   : > { %594 = vrot.lane.b32.xlu0 %v2354_v2, %s2218_s30  ;;  %590 = vrot.lane.b32.xlu1 %v2350_v1, %s2218_s30 }
  0x7e   : > { %812 = vrot.lane.b32.xlu0 %v2388_v9, %s2218_s30  ;;  %814 = vrot.lane.b32.xlu1 %v2393_v10, %s2218_s30 }
  0x82   : > { %810 = vrot.lane.b32.xlu0 %v2398_v11, %s2218_s30  ;;  %952 = vrot.lane.b32.xlu1 %v2409_v12, %s2219_s10 }
  0x86   : > { %954 = vrot.lane.b32.xlu0 %v2414_v13, %s2219_s10  ;;  %956 = vrot.lane.b32.xlu1 %v2418_v14, %s2219_s10 }
  0x8a   : > { %598 = vrot.lane.b32.xlu0 %v2359_v3, %s2218_s30  ;;  %600 = vrot.lane.b32.xlu1 %v2368_v5, %s2218_s30 }
  0x8e   : > { %596 = vrot.lane.b32.xlu0 %v2363_v4, %s2218_s30  ;;  %828 = vrot.lane.b32.xlu1 %v2374_v6, %s2220_s11 }
  0x90   : > { %v708_v18 = vpop.permute.xlu0 %707  ;;  %v706_v19 = vpop.permute.xlu1 %705 }
  0x91   : > { %v718_v23 = vsel %vm717_vm0, %v706_v19, %v708_v18 }
  0x92   : > { %830 = vrot.lane.b32.xlu0 %v2378_v7, %s2220_s11  ;;  %826 = vrot.lane.b32.xlu1 %v2383_v8, %s2220_s11 }
  0x94   : > { %v2479_v20 = vpop.permute.xlu0 %709  ;;  %v714_v21 = vpop.permute.xlu1 %713 }
  0x95   : > { %v719_v22 = vsel %vm717_vm0, %v708_v18, %v2479_v20 }
  0x96   : > { %1368 = vmatprep.subr.bf16.mxu0 %v719_v22  ;;  %958 = vrot.lane.b32.xlu0 %v2431_v15, %s2219_s10 }
  0x97   : > { %960 = vrot.lane.b32.xlu1 %v2435_v16, %s2219_s10  ;;  %1369 = vmatpush1.bf16.msra.mxu0 %v718_v23 }
  0x98   : > { %v2484_v24 = vpop.permute.xlu0 %715  ;;  %v712_v25 = vpop.permute.xlu1 %711 }
  0x99   : > { %v721_v26 = vsel %vm717_vm0, %v714_v21, %v2484_v24  ;;  %v720_v27 = vsel %vm717_vm0, %v712_v25, %v714_v21  ;;  %vm2230_vm0 = vmmov 0  }
  0x9a   : > { %962 = vrot.lane.b32.xlu0 %v2439_v17, %s2219_s10  ;;  %1370 = vmatprep.subr.bf16.mxu0 %v721_v26 }
  0x9b   : > { %615 = vrot.lane.b32.xlu1 %v2347_v0, %s2220_s11  ;;  %1371 = vmatpush1.bf16.msra.mxu0 %v720_v27 }
  0x9c   : > { %v763_v28 = vpop.permute.xlu0 %762  ;;  %1372 = vmatprep.subr.bf16.mxu0 %v2374_v6  ;;  %v2491_v29 = vpop.permute.xlu1 %764 }
  0x9d   : > { %v2506_v32 = vsel %vm556_vm1, %v763_v28, %v2491_v29 }
  0x9e   : > { %617 = vrot.lane.b32.xlu0 %v2354_v2, %s2220_s11 }
  0x9f   : > { %613 = vrot.lane.b32.xlu1 %v2350_v1, %s2220_s11  ;;  %1373 = vmatpush1.bf16.msra.mxu0 %v2383_v8 }
  0xa0   : > { %v761_v30 = vpop.permute.xlu0 %760  ;;  %1374 = vmatprep.subr.bf16.mxu0 %v2388_v9  ;;  %v769_v31 = vpop.permute.xlu1 %768 }
  0xa1   : > { %v2514_v35 = vsel %vm556_vm1, %v761_v30, %v763_v28 }
  0xa2   : > { %834 = vrot.lane.b32.xlu0 %v2388_v9, %s2220_s11 }
  0xa3   : > { %836 = vrot.lane.b32.xlu1 %v2393_v10, %s2220_s11  ;;  %1375 = vmatpush1.bf16.msra.mxu0 %v2398_v11 }
  0xa4   : > { %v2508_v33 = vpop.permute.xlu0 %770  ;;  %1376 = vmatprep.subr.bf16.mxu0 %v2506_v32  ;;  %v767_v34 = vpop.permute.xlu1 %766 }
  0xa5   : > { %v2521_v36 = vsel %vm556_vm1, %v769_v31, %v2508_v33  ;;  %v2533_v40 = vsel %vm556_vm1, %v767_v34, %v769_v31 }
  0xa6   : > { %832 = vrot.lane.b32.xlu0 %v2398_v11, %s2220_s11 }
  0xa7   : > { %969 = vrot.lane.b32.xlu1 %v2409_v12, %s2221_s22  ;;  %1377 = vmatpush1.bf16.msra.mxu0 %v2514_v35 }
  0xa8   : > { %v547_v37 = vpop.permute.xlu0 %546  ;;  %1378 = vmatprep.subr.bf16.mxu0 %v2521_v36  ;;  %v2524_v38 = vpop.permute.xlu1 %548 }
  0xa9   : > { %v558_v39 = vsel %vm556_vm1, %v547_v37, %v2524_v38 }
  0xaa   : > { %971 = vrot.lane.b32.xlu0 %v2414_v13, %s2221_s22  ;;  %1331 = vmatprep.subr.bf16.mxu1 %v558_v39 }
  0xab   : > { %973 = vrot.lane.b32.xlu1 %v2418_v14, %s2221_s22  ;;  %1379 = vmatpush1.bf16.msra.mxu0 %v2533_v40 }
  0xac   : > { %v545_v41 = vpop.permute.xlu0 %544  ;;  %v2536_v42 = vpop.permute.xlu1 %918 }
  0xad   : > { %v557_v43 = vsel %vm556_vm1, %v545_v41, %v547_v37 }
  0xae   : > { %621 = vrot.lane.b32.xlu0 %v2359_v3, %s2220_s11  ;;  %1332 = vmatpush1.bf16.msra.mxu1 %v557_v43 }
  0xaf   : > { %623 = vrot.lane.b32.xlu1 %v2368_v5, %s2220_s11 }
  0xb0   : > { %v2543_v44 = vpop.permute.xlu0 %920  ;;  %v2545_v45 = vpop.permute.xlu1 %922 }
  0xb2   : > { %619 = vrot.lane.b32.xlu0 %v2363_v4, %s2220_s11 }
  0xb3   : > { %850 = vrot.lane.b32.xlu1 %v2374_v6, %s2222_s23 }
  0xb4   : > { %v553_v46 = vpop.permute.xlu0 %552  ;;  %v2551_v47 = vpop.permute.xlu1 %554 }
  0xb5   : > { %v560_v48 = vsel %vm556_vm1, %v553_v46, %v2551_v47 }
  0xb6   : > { %852 = vrot.lane.b32.xlu0 %v2378_v7, %s2222_s23  ;;  %1333 = vmatprep.subr.bf16.mxu1 %v560_v48 }
  0xb7   : > { %848 = vrot.lane.b32.xlu1 %v2383_v8, %s2222_s23 }
  0xb8   : > { %v551_v49 = vpop.permute.xlu0 %550  ;;  %v785_v50 = vpop.permute.xlu1 %784 }
  0xb9   : > { %v559_v51 = vsel %vm556_vm1, %v551_v49, %v553_v46 }
  0xba   : > { %975 = vrot.lane.b32.xlu0 %v2431_v15, %s2221_s22  ;;  %1334 = vmatpush1.bf16.msra.mxu1 %v559_v51 }
  0xbb   : > { %977 = vrot.lane.b32.xlu1 %v2435_v16, %s2221_s22 }
  0xbc   : > { %v2564_v52 = vpop.permute.xlu0 %786  ;;  %v783_v53 = vpop.permute.xlu1 %782 }
  0xbd   : > { %v795_v54 = vsel %vm579_vm2, %v785_v50, %v2564_v52  ;;  %v794_v55 = vsel %vm579_vm2, %v783_v53, %v785_v50 }
  0xbe   : > { %979 = vrot.lane.b32.xlu0 %v2439_v17, %s2221_s22  ;;  %1380 = vmatprep.subr.bf16.mxu0 %v795_v54 }
  0xbf   : > { %638 = vrot.lane.b32.xlu1 %v2347_v0, %s2222_s23  ;;  %1381 = vmatpush1.bf16.msra.mxu0 %v794_v55 }
  0xc0   : > { %v2573_v56 = vpop.permute.xlu0 %924  ;;  %v2575_v57 = vpop.permute.xlu1 %926 }
  0xc2   : > { %640 = vrot.lane.b32.xlu0 %v2354_v2, %s2222_s23 }
  0xc3   : > { %636 = vrot.lane.b32.xlu1 %v2350_v1, %s2222_s23 }
  0xc4   : > { %v2581_v58 = vpop.permute.xlu0 %928  ;;  %v570_v59 = vpop.permute.xlu1 %569 }
  0xc6   : > { %856 = vrot.lane.b32.xlu0 %v2388_v9, %s2222_s23 }
  0xc7   : > { %858 = vrot.lane.b32.xlu1 %v2393_v10, %s2222_s23 }
  0xc8   : > { %v2587_v60 = vpop.permute.xlu0 %571  ;;  %v568_v61 = vpop.permute.xlu1 %567 }
  0xc9   : > { %v581_v62 = vsel %vm579_vm2, %v570_v59, %v2587_v60  ;;  %v580_v63 = vsel %vm579_vm2, %v568_v61, %v570_v59 }
  0xca   : > { %854 = vrot.lane.b32.xlu0 %v2398_v11, %s2222_s23  ;;  %1335 = vmatprep.subr.bf16.mxu1 %v581_v62 }
  0xcb   : > { %986 = vrot.lane.b32.xlu1 %v2409_v12, %s2223_s12  ;;  %1336 = vmatpush1.bf16.msra.mxu1 %v580_v63 }
  0xcc   : > { %v791_v18 = vpop.permute.xlu0 %790  ;;  %v2596_v19 = vpop.permute.xlu1 %792 }
  0xcd   : > { %v797_v21 = vsel %vm579_vm2, %v791_v18, %v2596_v19 }
  0xce   : > { %988 = vrot.lane.b32.xlu0 %v2414_v13, %s2223_s12  ;;  %1382 = vmatprep.subr.bf16.mxu0 %v797_v21 }
  0xcf   : > { %990 = vrot.lane.b32.xlu1 %v2418_v14, %s2223_s12 }
  0xd0   : > { %v789_v22 = vpop.permute.xlu0 %788  ;;  %v2604_v23 = vpop.permute.xlu1 %935 }
  0xd1   : > { %v796_v25 = vsel %vm579_vm2, %v789_v22, %v791_v18 }
  0xd2   : > { %644 = vrot.lane.b32.xlu0 %v2359_v3, %s2222_s23  ;;  %1383 = vmatpush1.bf16.msra.mxu0 %v796_v25 }
  0xd3   : > { %646 = vrot.lane.b32.xlu1 %v2368_v5, %s2222_s23 }
  0xd4   : > { %v2611_v26 = vpop.permute.xlu0 %937  ;;  %v2613_v27 = vpop.permute.xlu1 %939 }
  0xd6   : > { %642 = vrot.lane.b32.xlu0 %v2363_v4, %s2222_s23 }
  0xd7   : > { %872 = vrot.lane.b32.xlu1 %v2374_v6, %s2224_s13 }
  0xd8   : > { %v576_v28 = vpop.permute.xlu0 %575  ;;  %v2619_v30 = vpop.permute.xlu1 %577 }
  0xd9   : > { %v583_v31 = vsel %vm579_vm2, %v576_v28, %v2619_v30 }
  0xda   : > { %874 = vrot.lane.b32.xlu0 %v2378_v7, %s2224_s13  ;;  %1337 = vmatprep.subr.bf16.mxu1 %v583_v31 }
  0xdb   : > { %870 = vrot.lane.b32.xlu1 %v2383_v8, %s2224_s13 }
  0xdc   : > { %v574_v34 = vpop.permute.xlu0 %573  ;;  %v807_v37 = vpop.permute.xlu1 %806 }
  0xdd   : > { %v582_v39 = vsel %vm579_vm2, %v574_v34, %v576_v28  ;;  %v2682_v28 = vld [vmem:[%s3207_s3 + $0x8] sm:$0xff] }
  0xde   : > { %992 = vrot.lane.b32.xlu0 %v2431_v15, %s2223_s12  ;;  %1338 = vmatpush1.bf16.msra.mxu1 %v582_v39  ;;  %v2688_v34 = vcombine.high %v2682_v28, %v2682_v28 }
  0xdf   : > { %994 = vrot.lane.b32.xlu1 %v2435_v16, %s2223_s12 }
  0xe0   : > { %v2632_v41 = vpop.permute.xlu0 %808  ;;  %v805_v43 = vpop.permute.xlu1 %804  ;;  %1400 = vmatprep.mubr.bf16.mxu0 %v2688_v34 }
  0xe1   : > { %v817_v46 = vsel %vm602_vm3, %v807_v37, %v2632_v41  ;;  %v816_v48 = vsel %vm602_vm3, %v805_v43, %v807_v37 }
  0xe2   : > { %996 = vrot.lane.b32.xlu0 %v2439_v17, %s2223_s12  ;;  %1384 = vmatprep.subr.bf16.mxu0 %v817_v46 }
  0xe3   : > { %661 = vrot.lane.b32.xlu1 %v2347_v0, %s2224_s13  ;;  %1385 = vmatpush1.bf16.msra.mxu0 %v816_v48 }
  0xe4   : > { %v2641_v49 = vpop.permute.xlu0 %941  ;;  %v2643_v50 = vpop.permute.xlu1 %943 }
  0xe6   : > { %663 = vrot.lane.b32.xlu0 %v2354_v2, %s2224_s13 }
  0xe7   : > { %659 = vrot.lane.b32.xlu1 %v2350_v1, %s2224_s13 }
  0xe8   : > { %v2649_v51 = vpop.permute.xlu0 %945  ;;  %v593_v53 = vpop.permute.xlu1 %592 }
  0xea   : > { %878 = vrot.lane.b32.xlu0 %v2388_v9, %s2224_s13 }
  0xeb   : > { %880 = vrot.lane.b32.xlu1 %v2393_v10, %s2224_s13 }
  0xec   : > { %v2655_v54 = vpop.permute.xlu0 %594  ;;  %v591_v55 = vpop.permute.xlu1 %590 }
  0xed   : > { %v604_v59 = vsel %vm602_vm3, %v593_v53, %v2655_v54  ;;  %v603_v61 = vsel %vm602_vm3, %v591_v55, %v593_v53 }
  0xee   : > { %876 = vrot.lane.b32.xlu0 %v2398_v11, %s2224_s13  ;;  %1339 = vmatprep.subr.bf16.mxu1 %v604_v59 }
  0xef   : > { %1003 = vrot.lane.b32.xlu1 %v2409_v12, %s2225_s14  ;;  %1340 = vmatpush1.bf16.msra.mxu1 %v603_v61 }
  0xf0   : > { %v813_v62 = vpop.permute.xlu0 %812  ;;  %v2664_v63 = vpop.permute.xlu1 %814 }
  0xf1   : > { %v819_v18 = vsel %vm602_vm3, %v813_v62, %v2664_v63 }
  0xf2   : > { %1005 = vrot.lane.b32.xlu0 %v2414_v13, %s2225_s14  ;;  %1386 = vmatprep.subr.bf16.mxu0 %v819_v18 }
  0xf3   : > { %1007 = vrot.lane.b32.xlu1 %v2418_v14, %s2225_s14 }
  0xf4   : > { %v811_v21 = vpop.permute.xlu0 %810  ;;  %v2672_v22 = vpop.permute.xlu1 %952 }
  0xf5   : > { %v818_v25 = vsel %vm602_vm3, %v811_v21, %v813_v62 }
  0xf6   : > { %667 = vrot.lane.b32.xlu0 %v2359_v3, %s2224_s13  ;;  %1387 = vmatpush1.bf16.msra.mxu0 %v818_v25 }
  0xf7   : > { %669 = vrot.lane.b32.xlu1 %v2368_v5, %s2224_s13 }
  0xf8   : > { %v2684_v31 = vpop.permute.xlu0 %954  ;;  %v2690_v37 = vpop.permute.xlu1 %956 }
  0xfa   : > { %665 = vrot.lane.b32.xlu0 %v2363_v4, %s2224_s13 }
  0xfb   : > { %1055 = vrot.lane.b32.xlu1 %v2374_v6, %s2226_s16 }
  0xfc   : > { %v599_v39 = vpop.permute.xlu0 %598  ;;  %v2697_v43 = vpop.permute.xlu1 %600 }
  0xfd   : > { %v606_v46 = vsel %vm602_vm3, %v599_v39, %v2697_v43 }
  0xfe   : > { %1057 = vrot.lane.b32.xlu0 %v2378_v7, %s2226_s16  ;;  %1341 = vmatprep.subr.bf16.mxu1 %v606_v46 }
  0xff   : > { %1009 = vrot.lane.b32.xlu1 %v2431_v15, %s2225_s14 }
 0x100   : > { %v597_v48 = vpop.permute.xlu0 %596  ;;  %v829_v53 = vpop.permute.xlu1 %828 }
 0x101   : > { %v605_v55 = vsel %vm602_vm3, %v597_v48, %v599_v39 }
 0x102   : > { %1011 = vrot.lane.b32.xlu0 %v2435_v16, %s2225_s14  ;;  %1342 = vmatpush1.bf16.msra.mxu1 %v605_v55 }
 0x103   : > { %1013 = vrot.lane.b32.xlu1 %v2439_v17, %s2225_s14 }
 0x104   : > { %v2710_v6 = vpop.permute.xlu0 %830  ;;  %v827_v7 = vpop.permute.xlu1 %826 }
 0x105   : > { %v839_v59 = vsel %vm625_vm4, %v829_v53, %v2710_v6  ;;  %v838_v61 = vsel %vm625_vm4, %v827_v7, %v829_v53 }
 0x106   : > { %1053 = vrot.lane.b32.xlu0 %v2383_v8, %s2226_s16  ;;  %1388 = vmatprep.subr.bf16.mxu0 %v839_v59 }
 0x107   : > { %684 = vrot.lane.b32.xlu1 %v2347_v0, %s2226_s16  ;;  %1389 = vmatpush1.bf16.msra.mxu0 %v838_v61 }
 0x108   : > { %v2719_v62 = vpop.permute.xlu0 %958 }
 0x109   : > { %v2721_v18 = vpop.permute.xlu1 %960 }
 0x10a   : > { %686 = vrot.lane.b32.xlu0 %v2354_v2, %s2226_s16  ;;  %v2745_v2 = vld [vmem:[%s3207_s3] sm:$0xff] }
 0x10b   : > { %682 = vrot.lane.b32.xlu1 %v2350_v1, %s2226_s16 }
 0x10c   : > { %v2727_v21 = vpop.permute.xlu0 %962 }
 0x10d   : > { %v616_v8 = vpop.permute.xlu1 %615 }
 0x10e   : > { %1061 = vrot.lane.b32.xlu0 %v2388_v9, %s2226_s16 }
 0x10f   : > { %1063 = vrot.lane.b32.xlu1 %v2393_v10, %s2226_s16  ;;  %v2749_v10 = vcombine.high %v2745_v2, %v2745_v2 }
 0x110   : > { %v2733_v0 = vpop.permute.xlu0 %617 }
 0x111   : > { %v614_v25 = vpop.permute.xlu1 %613  ;;  %v627_v39 = vsel %vm625_vm4, %v616_v8, %v2733_v0  ;;  %1359 = vmatprep.mubr.bf16.mxu1 %v2749_v10 }
 0x112   : > { %1020 = vrot.lane.b32.xlu0 %v2409_v12, %s2227_s20  ;;  %1343 = vmatprep.subr.bf16.mxu1 %v627_v39  ;;  %v626_v1 = vsel %vm625_vm4, %v614_v25, %v616_v8 }
 0x113   : > { %1022 = vrot.lane.b32.xlu1 %v2414_v13, %s2227_s20  ;;  %1344 = vmatpush1.bf16.msra.mxu1 %v626_v1 }
 0x114   : > { %v835_v9 = vpop.permute.xlu0 %834 }
 0x115   : > { %v2751_v46 = vpop.permute.xlu1 %836 }
 0x116   : > { %1024 = vrot.lane.b32.xlu0 %v2418_v14, %s2227_s20  ;;  %v841_v48 = vsel %vm625_vm4, %v835_v9, %v2751_v46 }
 0x117   : > { %1059 = vrot.lane.b32.xlu1 %v2398_v11, %s2226_s16  ;;  %1390 = vmatprep.subr.bf16.mxu0 %v841_v48 }
 0x118   : > { %v833_v53 = vpop.permute.xlu0 %832 }
 0x119   : > { %v2760_v55 = vpop.permute.xlu1 %969  ;;  %v840_v7 = vsel %vm625_vm4, %v833_v53, %v835_v9 }
 0x11a   : > { %690 = vrot.lane.b32.xlu0 %v2359_v3, %s2226_s16  ;;  %1391 = vmatpush1.bf16.msra.mxu0 %v840_v7 }
 0x11b   : > { %692 = vrot.lane.b32.xlu1 %v2368_v5, %s2226_s16 }
 0x11c   : > { %v2767_v59 = vpop.permute.xlu0 %971 }
 0x11d   : > { %v2769_v61 = vpop.permute.xlu1 %973 }
 0x11e   : > { %688 = vrot.lane.b32.xlu0 %v2363_v4, %s2226_s16 }
 0x11f   : > { %1067 = vrot.lane.b32.xlu1 %v2506_v32, %s2226_s16 }
 0x120   : > { %v622_v11 = vpop.permute.xlu0 %621 }
 0x121   : > { %v2775_v8 = vpop.permute.xlu1 %623 }
 0x122   : > { %1069 = vrot.lane.b32.xlu0 %v2491_v29, %s2226_s16  ;;  %v629_v3 = vsel %vm625_vm4, %v622_v11, %v2775_v8 }
 0x123   : > { %1026 = vrot.lane.b32.xlu1 %v2431_v15, %s2227_s20  ;;  %1345 = vmatprep.subr.bf16.mxu1 %v629_v3 }
 0x124   : > { %v620_v5 = vpop.permute.xlu0 %619 }
 0x125   : > { %v851_v25 = vpop.permute.xlu1 %850  ;;  %v628_v4 = vsel %vm625_vm4, %v620_v5, %v622_v11  ;;  %v931_v11 = vsel %vm930_vm6, %v2536_v42, %v2543_v44 }
 0x126   : > { %1028 = vrot.lane.b32.xlu0 %v2435_v16, %s2227_s20  ;;  %1346 = vmatpush1.bf16.msra.mxu1 %v628_v4  ;;  %v934_v4 = vsel %vm930_vm6, %v2575_v57, %v2581_v58 }
 0x127   : > { %1030 = vrot.lane.b32.xlu1 %v2439_v17, %s2227_s20 }
 0x128   : > { %v2788_v32 = vpop.permute.xlu0 %852 }
 0x129   : > { %v849_v39 = vpop.permute.xlu1 %848  ;;  %v861_v1 = vsel %vm648_vm5, %v851_v25, %v2788_v32 }
 0x12a   : > { %1065 = vrot.lane.b32.xlu0 %v2514_v35, %s2226_s16  ;;  %1392 = vmatprep.subr.bf16.mxu0 %v861_v1  ;;  %v860_v9 = vsel %vm648_vm5, %v849_v39, %v851_v25  ;;  %v933_v25 = vsel %vm930_vm6, %v2573_v56, %v2575_v57 }
 0x12b   : > { %1073 = vrot.lane.b32.xlu1 %v2521_v36, %s2226_s16  ;;  %1393 = vmatpush1.bf16.msra.mxu0 %v860_v9  ;;  %v932_v36 = vsel %vm930_vm6, %v2543_v44, %v2545_v45 }
 0x12c   : > { %v2797_v48 = vpop.permute.xlu0 %975 }
 0x12d   : > { %v2799_v53 = vpop.permute.xlu1 %977 }
 0x12e   : > { %1075 = vrot.lane.b32.xlu0 %v2508_v33, %s2226_s16 }
 0x12f   : > { %1071 = vrot.lane.b32.xlu1 %v2533_v40, %s2226_s16 }
 0x130   : > { %v2805_v7 = vpop.permute.xlu0 %979 }
 0x131   : > { %v639_v35 = vpop.permute.xlu1 %638 }
 0x132   : > { %1079 = vrot.lane.b32.xlu0 %v931_v11, %s2226_s16 }
 0x133   : > { %1081 = vrot.lane.b32.xlu1 %v932_v36, %s2226_s16 }
 0x134   : > { %v2815_v3 = vpop.permute.xlu0 %640 }
 0x135   : > { %v637_v5 = vpop.permute.xlu1 %636  ;;  %v650_v40 = vsel %vm648_vm5, %v639_v35, %v2815_v3 }
 0x136   : > { %1077 = vrot.lane.b32.xlu0 %v2536_v42, %s2226_s16  ;;  %1347 = vmatprep.subr.bf16.mxu1 %v650_v40  ;;  %v649_v44 = vsel %vm648_vm5, %v637_v5, %v639_v35 }
 0x137   : > { %1085 = vrot.lane.b32.xlu1 %v933_v25, %s2226_s16  ;;  %1348 = vmatpush1.bf16.msra.mxu1 %v649_v44  ;;  %v951_v44 = vsel %vm947_vm7, %v2643_v50, %v2649_v51 }
 0x138   : > { %v857_v45 = vpop.permute.xlu0 %856 }
 0x139   : > { %v2829_v39 = vpop.permute.xlu1 %858 }
 0x13a   : > { %1087 = vrot.lane.b32.xlu0 %v934_v4, %s2226_s16  ;;  %v863_v42 = vsel %vm648_vm5, %v857_v45, %v2829_v39 }
 0x13b   : > { %1039 = vrot.lane.b32.xlu1 %v2414_v13, %s2214_s24  ;;  %1394 = vmatprep.subr.bf16.mxu0 %v863_v42  ;;  %v948_v13 = vsel %vm947_vm7, %v2604_v23, %v2611_v26  ;;  %v965_v42 = vsel %vm964_vm9, %v2672_v22, %v2684_v31 }
 0x13c   : > { %v855_v1 = vpop.permute.xlu0 %854 }
 0x13d   : > { %v2836_v9 = vpop.permute.xlu1 %986  ;;  %v862_v35 = vsel %vm648_vm5, %v855_v1, %v857_v45  ;;  %v966_v1 = vsel %vm964_vm9, %v2684_v31, %v2690_v37 }
 0x13e   : > { %1041 = vrot.lane.b32.xlu0 %v2418_v14, %s2214_s24  ;;  %1395 = vmatpush1.bf16.msra.mxu0 %v862_v35  ;;  %v949_v14 = vsel %vm947_vm7, %v2611_v26, %v2613_v27  ;;  %v967_v35 = vsel %vm964_vm9, %v2719_v62, %v2721_v18 }
 0x13f   : > { %1083 = vrot.lane.b32.xlu1 %v2573_v56, %s2226_s16 }
 0x140   : > { %v2843_v57 = vpop.permute.xlu0 %988 }
 0x141   : > { %v2845_v58 = vpop.permute.xlu1 %990 }
 0x142   : > { %1037 = vrot.lane.b32.xlu0 %v2409_v12, %s2214_s24 }
 0x143   : > { %1091 = vrot.lane.b32.xlu1 %v948_v13, %s2226_s16  ;;  %v968_v13 = vsel %vm964_vm9, %v2721_v18, %v2727_v21  ;;  %v2926_v21 = vcombine.low %v2682_v28, %v2682_v28  ;;  %v984_v28 = vsel %vm981_vm10, %v2797_v48, %v2799_v53 }
 0x144   : > { %v645_v11 = vpop.permute.xlu0 %644 }
 0x145   : > { %v2856_v36 = vpop.permute.xlu1 %646 }
 0x146   : > { %1093 = vrot.lane.b32.xlu0 %v949_v14, %s2226_s16  ;;  %v652_v56 = vsel %vm648_vm5, %v645_v11, %v2856_v36 }
 0x147   : > { %1045 = vrot.lane.b32.xlu1 %v2435_v16, %s2214_s24  ;;  %1349 = vmatprep.subr.bf16.mxu1 %v652_v56  ;;  %v950_v16 = vsel %vm947_vm7, %v2641_v49, %v2643_v50 }
 0x148   : > { %v643_v12 = vpop.permute.xlu0 %642 }
 0x149   : > { %v873_v5 = vpop.permute.xlu1 %872  ;;  %v651_v40 = vsel %vm648_vm5, %v643_v12, %v645_v11  ;;  %v982_v12 = vsel %vm981_vm10, %v2760_v55, %v2767_v59 }
 0x14a   : > { %1047 = vrot.lane.b32.xlu0 %v2439_v17, %s2214_s24  ;;  %1350 = vmatpush1.bf16.msra.mxu1 %v651_v40 }
 0x14b   : > { %1089 = vrot.lane.b32.xlu1 %v2604_v23, %s2226_s16 }
 0x14c   : > { %v2868_v26 = vpop.permute.xlu0 %874 }
 0x14d   : > { %v871_v27 = vpop.permute.xlu1 %870  ;;  %v883_v25 = vsel %vm671_vm8, %v873_v5, %v2868_v26 }
 0x14e   : > { %1043 = vrot.lane.b32.xlu0 %v2431_v15, %s2214_s24  ;;  %1396 = vmatprep.subr.bf16.mxu0 %v883_v25  ;;  %v882_v17 = vsel %vm671_vm8, %v871_v27, %v873_v5  ;;  %v983_v5 = vsel %vm981_vm10, %v2767_v59, %v2769_v61  ;;  %v985_v59 = vsel %vm981_vm10, %v2799_v53, %v2805_v7 }
 0x14f   : > { %1097 = vrot.lane.b32.xlu1 %v950_v16, %s2226_s16  ;;  %1397 = vmatpush1.bf16.msra.mxu0 %v882_v17  ;;  %v999_v17 = vsel %vm998_vm11, %v2836_v9, %v2843_v57  ;;  %v1000_v7 = vsel %vm998_vm11, %v2843_v57, %v2845_v58 }
 0x150   : > { %v2879_v23 = vpop.permute.xlu0 %992 }
 0x151   : > { %v2884_v45 = vpop.permute.xlu1 %994 }
 0x152   : > { %1099 = vrot.lane.b32.xlu0 %v951_v44, %s2226_s16 }
 0x153   : > { %1095 = vrot.lane.b32.xlu1 %v2641_v49, %s2226_s16 }
 0x154   : > { %v2889_v15 = vpop.permute.xlu0 %996 }
 0x155   : > { %v662_v4 = vpop.permute.xlu1 %661  ;;  %v1002_v58 = vsel %vm998_vm11, %v2884_v45, %v2889_v15  ;;  %v2985_v15 = vld [vmem:[%s3207_s3 + $0x10] sm:$0xff] }
 0x156   : > { %1103 = vrot.lane.b32.xlu0 %v965_v42, %s2226_s16  ;;  %v1001_v42 = vsel %vm998_vm11, %v2879_v23, %v2884_v45 }
 0x157   : > { %1105 = vrot.lane.b32.xlu1 %v966_v1, %s2226_s16 }
 0x158   : > { %v2899_v50 = vpop.permute.xlu0 %663 }
 0x159   : > { %v660_v51 = vpop.permute.xlu1 %659  ;;  %v673_v49 = vsel %vm671_vm8, %v662_v4, %v2899_v50 }
 0x15a   : > { %1101 = vrot.lane.b32.xlu0 %v2672_v22, %s2226_s16  ;;  %1351 = vmatprep.subr.bf16.mxu1 %v673_v49  ;;  %v672_v31 = vsel %vm671_vm8, %v660_v51, %v662_v4 }
 0x15b   : > { %1109 = vrot.lane.b32.xlu1 %v967_v35, %s2226_s16  ;;  %1352 = vmatpush1.bf16.msra.mxu1 %v672_v31 }
 0x15c   : > { %v879_v37 = vpop.permute.xlu0 %878 }
 0x15d   : > { %v2913_v11 = vpop.permute.xlu1 %880 }
 0x15e   : > { %1111 = vrot.lane.b32.xlu0 %v968_v13, %s2226_s16  ;;  %v885_v22 = vsel %vm671_vm8, %v879_v37, %v2913_v11  ;;  %v2991_v13 = vcombine.high %v2985_v15, %v2985_v15 }
 0x15f   : > { %1107 = vrot.lane.b32.xlu1 %v2719_v62, %s2226_s16  ;;  %1398 = vmatprep.subr.bf16.mxu0 %v885_v22 }
 0x160   : > { %v877_v14 = vpop.permute.xlu0 %876 }
 0x161   : > { %v1004_v56 = vpop.permute.xlu1 %1003  ;;  %v884_v18 = vsel %vm671_vm8, %v877_v14, %v879_v37 }
 0x162   : > { %1115 = vrot.lane.b32.xlu0 %v982_v12, %s2226_s16  ;;  %1399 = vmatpush1.bf16.msra.mxu0 %v884_v18 }
 0x163   : > { %1117 = vrot.lane.b32.xlu1 %v983_v5, %s2226_s16 }
 0x164   : > { %v1006_v62 = vpop.permute.xlu0 %1005 }
 0x165   : > { %v1008_v40 = vpop.permute.xlu1 %1007  ;;  %1401 = vmatmul.mubr.bf16.vlgmr.msra.gmra.mrb[0].mxu0 %v2926_v21  ;;  %v1016_v35 = vsel %vm1015_vm13, %v1004_v56, %v1006_v62 }
 0x166   : > { %1113 = vrot.lane.b32.xlu0 %v2760_v55, %s2226_s16  ;;  %v1017_v31 = vsel %vm1015_vm13, %v1006_v62, %v1008_v40  ;;  %1441 = vmatprep.mubr.bf16.mxu0 %v2991_v13 }
 0x167   : > { %1121 = vrot.lane.b32.xlu1 %v984_v28, %s2226_s16 }
 0x168   : > { %v668_v27 = vpop.permute.xlu0 %667 }
 0x169   : > { %v2943_v61 = vpop.permute.xlu1 %669 }
 0x16a   : > { %1123 = vrot.lane.b32.xlu0 %v985_v59, %s2226_s16  ;;  %v675_v25 = vsel %vm671_vm8, %v668_v27, %v2943_v61 }
 0x16b   : > { %1119 = vrot.lane.b32.xlu1 %v2797_v48, %s2226_s16  ;;  %1353 = vmatprep.subr.bf16.mxu1 %v675_v25 }
 0x16c   : > { %v666_v55 = vpop.permute.xlu0 %665 }
 0x16d   : > { %v1056_v16 = vpop.permute.xlu1 %1055  ;;  %v674_v53 = vsel %vm671_vm8, %v666_v55, %v668_v27 }
 0x16e   : > { %1127 = vrot.lane.b32.xlu0 %v999_v17, %s2226_s16  ;;  %1354 = vmatpush1.bf16.msra.mxu1 %v674_v53 }
 0x16f   : > { %1129 = vrot.lane.b32.xlu1 %v1000_v7, %s2226_s16 }
 0x170   : > { %v2959_v48 = vpop.permute.xlu0 %1057 }
 0x171   : > { %v1010_v44 = vpop.permute.xlu1 %1009  ;;  %v1186_v4 = vsel %vm694_vm12, %v1056_v16, %v2959_v48 }
 0x172   : > { %1125 = vrot.lane.b32.xlu0 %v2836_v9, %s2226_s16  ;;  %1409 = vmatprep.subr.bf16.mxu0 %v1186_v4 }
 0x173   : > { %1133 = vrot.lane.b32.xlu1 %v1001_v42, %s2226_s16  ;;  %v3018_v42 = vcombine.low %v2745_v2, %v2745_v2 }
 0x174   : > { %v1012_v57 = vpop.permute.xlu0 %1011 }
 0x175   : > { %v1014_v1 = vpop.permute.xlu1 %1013  ;;  %v1018_v22 = vsel %vm1015_vm13, %v1010_v44, %v1012_v57 }
 0x176   : > { %1135 = vrot.lane.b32.xlu0 %v1002_v58, %s2226_s16  ;;  %v1019_v18 = vsel %vm1015_vm13, %v1012_v57, %v1014_v1 }
 0x177   : > { %1131 = vrot.lane.b32.xlu1 %v2879_v23, %s2226_s16 }
 0x178   : > { %v1054_v9 = vpop.permute.xlu0 %1053 }
 0x179   : > { %v1185_v51 = vsel %vm694_vm12, %v1054_v9, %v1056_v16  ;;  %v685_v49 = vpop.permute.xlu1 %684  ;;  %v2163_v9 = vld [vmem:[%s2319_s17 + $0x8] ss:$12 sps:$4 sm:$0xff]  }
 0x17a   : > { %1139 = vrot.lane.b32.xlu0 %v1016_v35, %s2226_s16  ;;  %1410 = vmatpush1.bf16.msra.mxu0 %v1185_v51  ;;  %v2164_v35 = vld [vmem:[%s2319_s17 + $0x20] ss:$12 sps:$4 sm:$0xff]  }
 0x17b   : > { %1141 = vrot.lane.b32.xlu1 %v1017_v31, %s2226_s16 }
 0x17c   : > { %v2980_v45 = vpop.permute.xlu0 %686 }
 0x17d   : > { %v683_v23 = vpop.permute.xlu1 %682  ;;  %v696_v37 = vsel %vm694_vm12, %v685_v49, %v2980_v45 }
 0x17e   : > { %1137 = vrot.lane.b32.xlu0 %v1004_v56, %s2226_s16  ;;  %1355 = vmatprep.subr.bf16.mxu1 %v696_v37  ;;  %v695_v14 = vsel %vm694_vm12, %v683_v23, %v685_v49  ;;  %v2165_v23 = vld [vmem:[%s2337_s18 + $0x4] ss:$12 sps:$4 sm:$0xff]  }
 0x17f   : > { %1145 = vrot.lane.b32.xlu1 %v1018_v22, %s2226_s16  ;;  %1356 = vmatpush1.bf16.msra.mxu1 %v695_v14 }
 0x180   : > { %v1062_v12 = vpop.permute.xlu0 %1061 }
 0x181   : > { %v2999_v5 = vpop.permute.xlu1 %1063 }
 0x182   : > { %1147 = vrot.lane.b32.xlu0 %v1019_v18, %s2226_s16  ;;  %v1188_v62 = vsel %vm694_vm12, %v1062_v12, %v2999_v5 }
 0x183   : > { %1143 = vrot.lane.b32.xlu1 %v1010_v44, %s2226_s16  ;;  %1411 = vmatprep.subr.bf16.mxu0 %v1188_v62 }
 0x184   : > { %v1021_v56 = vpop.permute.xlu0 %1020 }
 0x185   : > { %v1023_v40 = vpop.permute.xlu1 %1022 }
 0x186   : > { %v1033_v28 = vsel %vm1032_vm14, %v1021_v56, %v1023_v40 }
 0x187   : > { %1151 = vrot.lane.b32.xlu0 %v1033_v28, %s2226_s16 }
 0x188   : > { %v1025_v27 = vpop.permute.xlu0 %1024 }
 0x189   : > { %v1034_v59 = vsel %vm1032_vm14, %v1023_v40, %v1025_v27  ;;  %v1060_v25 = vpop.permute.xlu1 %1059  ;;  %v2170_v27 = vld [vmem:[%s2337_s18 + $0x18] ss:$12 sps:$4 sm:$0xff]  }
 0x18a   : > { %v1187_v55 = vsel %vm694_vm12, %v1060_v25, %v1062_v12  ;;  %1153 = vrot.lane.b32.xlu1 %v1034_v59, %s2226_s16  ;;  %v2166_v12 = vld [vmem:[%s2337_s18 + $0x8] ss:$12 sps:$4 sm:$0xff]  }
 0x18b   : > { %1149 = vrot.lane.b32.xlu0 %v1021_v56, %s2226_s16  ;;  %1412 = vmatpush1.bf16.msra.mxu0 %v1187_v55  ;;  %v2168_v56 = vld [vmem:[%s2337_s18 + $0x1c] ss:$12 sps:$4 sm:$0xff]  }
 0x18c   : > { %v691_v16 = vpop.permute.xlu0 %690 }
 0x18d   : > { %v3011_v17 = vpop.permute.xlu1 %692 }
 0x18e   : > { %v698_v53 = vsel %vm694_vm12, %v691_v16, %v3011_v17 }
 0x18f   : > { %1357 = vmatprep.subr.bf16.mxu1 %v698_v53 }
 0x190   : > { %v689_v7 = vpop.permute.xlu0 %688 }
 0x191   : > { %v1068_v44 = vpop.permute.xlu1 %1067  ;;  %v697_v4 = vsel %vm694_vm12, %v689_v7, %v691_v16 }
 0x192   : > { %1358 = vmatpush1.bf16.msra.mxu1 %v697_v4  ;;  %v2171_v4 = vld [vmem:[%s2328_s8 + $0x8] ss:$12 sps:$4 sm:$0xff]  }
 0x193   : > { %1966 = vmatprep.subr.bf16.mxu1 %v2733_v0 }
 0x194   : > { %v3021_v57 = vpop.permute.xlu0 %1069 }
 0x195   : > { %v1027_v58 = vpop.permute.xlu1 %1026  ;;  %1360 = vmatmul.mubr.bf16.vlgmr.msra.gmra.mrb[0].mxu1 %v3018_v42  ;;  %v1190_v1 = vsel %vm694_vm12, %v1068_v44, %v3021_v57 }
 0x196   : > { %1413 = vmatprep.subr.bf16.mxu0 %v1190_v1  ;;  %1967 = vmatpush3.bf16.msra.mxu1 %v2163_v9 }
 0x197   : > { %1968 = vmatprep.subr.bf16.mxu1 %v2775_v8  ;;  %1523 = vmatprep.mubr.bf16.mxu1 %v2749_v10 }
 0x198   : > { %v1029_v2 = vpop.permute.xlu0 %1028 }
 0x199   : > { %v1035_v51 = vsel %vm1032_vm14, %v1027_v58, %v1029_v2  ;;  %v1031_v0 = vpop.permute.xlu1 %1030 }
 0x19a   : > { %v1036_v49 = vsel %vm1032_vm14, %v1029_v2, %v1031_v0  ;;  %1157 = vrot.lane.b32.xlu1 %v1035_v51, %s2226_s16  ;;  %1969 = vmatpush3.bf16.msra.mxu1 %v2164_v35 }
 0x19b   : > { %1159 = vrot.lane.b32.xlu0 %v1036_v49, %s2226_s16  ;;  %1970 = vmatprep.subr.bf16.mxu1 %v2815_v3 }
 0x19c   : > { %v1066_v31 = vpop.permute.xlu0 %1065 }
 0x19d   : > { %v1189_v8 = vsel %vm694_vm12, %v1066_v31, %v1068_v44  ;;  %v1074_v10 = vpop.permute.xlu1 %1073 }
 0x19e   : > { %1414 = vmatpush1.bf16.msra.mxu0 %v1189_v8  ;;  %1155 = vrot.lane.b32.xlu1 %v1027_v58, %s2226_s16 }
 0x19f   : > { %1971 = vmatpush3.bf16.msra.mxu1 %v2524_v38  ;;  %1163 = vrot.lane.b32.xlu0 %v2165_v23, %s2226_s16 }
 0x1a0   : > { %1972 = vmatprep.subr.bf16.mxu1 %v2856_v36  ;;  %v3041_v37 = vpop.permute.xlu0 %1075  ;;  %v2167_v36 = vld [vmem:[%s2337_s18] ss:$12 sps:$4 sm:$0xff]  }
 0x1a1   : > { %v1072_v22 = vpop.permute.xlu1 %1071  ;;  %v1192_v3 = vsel %vm694_vm12, %v1074_v10, %v3041_v37 }
 0x1a2   : > { %v1191_v14 = vsel %vm694_vm12, %v1072_v22, %v1074_v10  ;;  %1415 = vmatprep.subr.bf16.mxu0 %v1192_v3  ;;  %1165 = vrot.lane.b32.xlu1 %v2166_v12, %s2226_s16  ;;  %v1660_v10 = vld [vmem:[%s3209_s5] sm:$0xff] }
 0x1a3   : > { %1973 = vmatpush3.bf16.msra.mxu1 %v2551_v47  ;;  %1416 = vmatpush1.bf16.msra.mxu0 %v1191_v14  ;;  %v1669_v22 = vld [vmem:[%s3210_s6] sm:$0x7] }
 0x1a4   : > { %1974 = vmatprep.subr.bf16.mxu1 %v2899_v50  ;;  %v1080_v38 = vpop.permute.xlu0 %1079  ;;  %1161 = vrot.lane.b32.xlu0 %v2167_v36, %s2226_s16  ;;  %v2169_v50 = vld [vmem:[%s2337_s18 + $0x20] ss:$12 sps:$4 sm:$0xff]  }
 0x1a5   : > { %v3052_v18 = vpop.permute.xlu1 %1081 }
 0x1a6   : > { %v1194_v62 = vsel %vm694_vm12, %v1080_v38, %v3052_v18  ;;  %1169 = vrot.lane.b32.xlu1 %v2168_v56, %s2226_s16 }
 0x1a7   : > { %1417 = vmatprep.subr.bf16.mxu0 %v1194_v62  ;;  %1975 = vmatpush3.bf16.msra.mxu1 %v2587_v60 }
 0x1a8   : > { %1976 = vmatprep.subr.bf16.mxu1 %v2943_v61  ;;  %v1078_v47 = vpop.permute.xlu0 %1077  ;;  %1171 = vrot.lane.b32.xlu0 %v2169_v50, %s2226_s16 }
 0x1a9   : > { %v1193_v40 = vsel %vm694_vm12, %v1078_v47, %v1080_v38  ;;  %v1086_v28 = vpop.permute.xlu1 %1085 }
 0x1aa   : > { %1418 = vmatpush1.bf16.msra.mxu0 %v1193_v40  ;;  %1167 = vrot.lane.b32.xlu1 %v2170_v27, %s2226_s16 }
 0x1ab   : > { %1977 = vmatpush3.bf16.msra.mxu1 %v2619_v30 }
 0x1ac   : > { %1978 = vmatprep.subr.bf16.mxu1 %v2980_v45  ;;  %v3067_v59 = vpop.permute.xlu0 %1087 }
 0x1ad   : > { %v1040_v60 = vpop.permute.xlu1 %1039  ;;  %v1196_v61 = vsel %vm694_vm12, %v1086_v28, %v3067_v59 }
 0x1ae   : > { %1419 = vmatprep.subr.bf16.mxu0 %v1196_v61 }
 0x1af   : > { %1979 = vmatpush3.bf16.msra.mxu1 %v2655_v54 }
 0x1b0   : > { %1980 = vmatprep.subr.bf16.mxu1 %v3011_v17  ;;  %v1042_v25 = vpop.permute.xlu0 %1041 }
 0x1b1   : > { %v1050_v55 = vsel %vm556_vm1, %v1040_v60, %v1042_v25  ;;  %v1084_v16 = vpop.permute.xlu1 %1083  ;;  %1177 = vrot.lane.b32.xlu1 %v1042_v25, %s2226_s16 }
 0x1b2   : > { %v1195_v30 = vsel %vm694_vm12, %v1084_v16, %v1086_v28  ;;  %1175 = vrot.lane.b32.xlu0 %v1050_v55, %s2226_s16 }
 0x1b3   : > { %1420 = vmatpush1.bf16.msra.mxu0 %v1195_v30  ;;  %1981 = vmatpush3.bf16.msra.mxu1 %v2697_v43  ;;  %v2228_v43 = vmov 0  }
 0x1b4   : > { %1988 = vmatprep.subr.bf16.mxu1 %v2632_v41  ;;  %v1038_v45 = vpop.permute.xlu0 %1037  ;;  %2131 = vset.pattern.permute.xlu1 %v2228_v43 }
 0x1b5   : > { %v1049_v54 = vsel %vm556_vm1, %v1038_v45, %v1040_v60  ;;  %v1092_v53 = vpop.permute.xlu1 %1091  ;;  %2130 = vset.pattern.permute.xlu0 %v2228_v43 }
 0x1b6   : > { %1173 = vrot.lane.b32.xlu0 %v1049_v54, %s2226_s16  ;;  %1524 = vmatmul.mubr.bf16.vlgmr.msra.gmra.mrb[4].mxu1 %v3018_v42 }
 0x1b7   : > { %1989 = vmatpush3.bf16.msra.mxu1 %v2479_v20  ;;  %1563 = vmatprep.mubr.bf16.mxu1 %v2688_v34 }
 0x1b8   : > { %1990 = vmatprep.subr.bf16.mxu1 %v2664_v63  ;;  %v3085_v17 = vpop.permute.xlu0 %1093 }
 0x1b9   : > { %v1046_v41 = vpop.permute.xlu1 %1045  ;;  %v1198_v7 = vsel %vm694_vm12, %v1092_v53, %v3085_v17 }
 0x1ba   : > { %1421 = vmatprep.subr.bf16.mxu0 %v1198_v7 }
 0x1bb   : > { %1991 = vmatpush3.bf16.msra.mxu1 %v2484_v24 }
 0x1bc   : > { %1992 = vmatprep.subr.bf16.mxu1 %v2710_v6  ;;  %v1048_v20 = vpop.permute.xlu0 %1047  ;;  %v2172_v6 = vld [vmem:[%s2328_s8 + $0x20] ss:$12 sps:$4 sm:$0xff]  }
 0x1bd   : > { %v1052_v63 = vsel %vm556_vm1, %v1046_v41, %v1048_v20  ;;  %v1090_v34 = vpop.permute.xlu1 %1089  ;;  %1183 = vrot.lane.b32.xlu0 %v1048_v20, %s2226_s16 }
 0x1be   : > { %v1197_v44 = vsel %vm694_vm12, %v1090_v34, %v1092_v53  ;;  %1181 = vrot.lane.b32.xlu1 %v1052_v63, %s2226_s16 }
 0x1bf   : > { %1422 = vmatpush1.bf16.msra.mxu0 %v1197_v44  ;;  %1993 = vmatpush3.bf16.msra.mxu1 %v2171_v4  ;;  %v1941_v44 = vcombine.low %v2985_v15, %v2985_v15 }
 0x1c0   : > { %1994 = vmatprep.subr.bf16.mxu1 %v2751_v46  ;;  %v1044_v42 = vpop.permute.xlu0 %1043 }
 0x1c1   : > { %v1051_v24 = vsel %vm556_vm1, %v1044_v42, %v1046_v41  ;;  %v1098_v58 = vpop.permute.xlu1 %1097  ;;  %vm1714_vm1 = vcmask 711680  }
 0x1c2   : > { %1179 = vrot.lane.b32.xlu1 %v1051_v24, %s2226_s16 }
 0x1c3   : > { %1995 = vmatpush3.bf16.msra.mxu1 %v2172_v6 }
 0x1c4   : > { %1996 = vmatprep.subr.bf16.mxu1 %v2788_v32  ;;  %v3103_v1 = vpop.permute.xlu0 %1099 }
 0x1c5   : > { %v1096_v9 = vpop.permute.xlu1 %1095  ;;  %v1200_v2 = vsel %vm694_vm12, %v1098_v58, %v3103_v1 }
 0x1c6   : > { %v1199_v51 = vsel %vm694_vm12, %v1096_v9, %v1098_v58  ;;  %1423 = vmatprep.subr.bf16.mxu0 %v1200_v2  ;;  %1663 = vperm.xlu1 %2131, %v1660_v10  }
 0x1c7   : > { %1997 = vmatpush3.bf16.msra.mxu1 %v2491_v29  ;;  %1424 = vmatpush1.bf16.msra.mxu0 %v1199_v51 }
 0x1c8   : > { %1998 = vmatprep.subr.bf16.mxu1 %v2829_v39  ;;  %v1104_v46 = vpop.permute.xlu0 %1103 }
 0x1c9   : > { %v1106_v0 = vpop.permute.xlu1 %1105 }
 0x1ca   : > { %v1202_v49 = vsel %vm694_vm12, %v1104_v46, %v1106_v0 }
 0x1cb   : > { %1425 = vmatprep.subr.bf16.mxu0 %v1202_v49  ;;  %1999 = vmatpush3.bf16.msra.mxu1 %v2508_v33  ;;  %v1651_v33 = vld [vmem:[%s3208_s4] sm:$0xff] }
 0x1cc   : > { %2000 = vmatprep.subr.bf16.mxu1 %v2868_v26  ;;  %v1102_v32 = vpop.permute.xlu0 %1101  ;;  %v1671_v26 = vlaneseq  ;;  %1654 = vperm.xlu0 %2130, %v1651_v33  }
 0x1cd   : > { %v1201_v35 = vsel %vm694_vm12, %v1102_v32, %v1104_v46  ;;  %v1110_v31 = vpop.permute.xlu1 %1109 }
 0x1ce   : > { %1426 = vmatpush1.bf16.msra.mxu0 %v1201_v35 }
 0x1cf   : > { %2001 = vmatpush3.bf16.msra.mxu1 %v2564_v52  ;;  %v1672_v52 = vshrl.u32 %v1671_v26, 7 }
 0x1d0   : > { %2002 = vmatprep.subr.bf16.mxu1 %v2913_v11  ;;  %v1112_v29 = vpop.permute.xlu0 %1111 }
 0x1d1   : > { %v1108_v39 = vpop.permute.xlu1 %1107  ;;  %v1204_v8 = vsel %vm694_vm12, %v1110_v31, %v1112_v29  ;;  %v1677_v14 = vsub.s32 1, %v1672_v52  ;;  %v1673_v12 = vsub.s32 0, %v1672_v52  ;;  %v1681_v38 = vsub.s32 2, %v1672_v52 }
 0x1d2   : > { %v1203_v23 = vsel %vm694_vm12, %v1108_v39, %v1110_v31  ;;  %1427 = vmatprep.subr.bf16.mxu0 %v1204_v8 }
 0x1d3   : > { %2003 = vmatpush3.bf16.msra.mxu1 %v2596_v19  ;;  %1428 = vmatpush1.bf16.msra.mxu0 %v1203_v23  ;;  %v1678_v19 = vrot.slane %v1669_v22, %v1677_v14  ;;  %v1682_v62 = vrot.slane %v1669_v22, %v1681_v38  ;;  %v1674_v40 = vrot.slane %v1669_v22, %v1673_v12  ;;  %v2162_v12 = vld [vmem:[%s3207_s3 + $0x18] ss:$0 sps:$4 sm:$0xff]   ;;  %v2229_v38 = vmov 0.0  }
 0x1d4   : > { %2010 = vmatprep.subr.bf16.mxu1 %v1106_v0  ;;  %v1116_v11 = vpop.permute.xlu0 %1115 }
 0x1d5   : > { %v1118_v3 = vpop.permute.xlu1 %1117  ;;  %1685 = vrot.lane.b32.xlu1 %v1678_v19, %s2220_s11  ;;  %1687 = vrot.lane.b32.xlu0 %v1682_v62, %s2220_s11 }
 0x1d6   : > { %v1206_v36 = vsel %vm694_vm12, %v1116_v11, %v1118_v3  ;;  %1564 = vmatmul.mubr.bf16.vlgmr.msra.gmra.mrb[8].mxu1 %v2926_v21 }
 0x1d7   : > { %1429 = vmatprep.subr.bf16.mxu0 %v1206_v36  ;;  %2011 = vmatpush3.bf16.msra.mxu1 %v2959_v48 }
 0x1d8   : > { %2012 = vmatprep.subr.bf16.mxu1 %v1112_v29  ;;  %v1114_v56 = vpop.permute.xlu0 %1113  ;;  %1603 = vmatprep.mubr.bf16.mxu1 %v2991_v13 }
 0x1d9   : > { %v1205_v47 = vsel %vm694_vm12, %v1114_v56, %v1116_v11  ;;  %v1122_v50 = vpop.permute.xlu1 %1121  ;;  %1683 = vrot.lane.b32.xlu1 %v1674_v40, %s2220_s11 }
 0x1da   : > { %1430 = vmatpush1.bf16.msra.mxu0 %v1205_v47 }
 0x1db   : > { %2013 = vmatpush3.bf16.msra.mxu1 %v2999_v5 }
 0x1dc   : > { %2014 = vmatprep.subr.bf16.mxu1 %v1118_v3  ;;  %v1124_v21 = vpop.permute.xlu0 %1123 }
 0x1dd   : > { %v1120_v48 = vpop.permute.xlu1 %1119  ;;  %v1208_v28 = vsel %vm694_vm12, %v1122_v50, %v1124_v21 }
 0x1de   : > { %v1207_v13 = vsel %vm694_vm12, %v1120_v48, %v1122_v50  ;;  %1431 = vmatprep.subr.bf16.mxu0 %v1208_v28 }
 0x1df   : > { %2015 = vmatpush3.bf16.msra.mxu1 %v3021_v57  ;;  %1432 = vmatpush1.bf16.msra.mxu0 %v1207_v13 }
 0x1e0   : > { %2016 = vmatprep.subr.bf16.mxu1 %v1124_v21  ;;  %v1128_v27 = vpop.permute.xlu0 %1127 }
 0x1e1   : > { %v1130_v60 = vpop.permute.xlu1 %1129 }
 0x1e2   : > { %v1210_v61 = vsel %vm694_vm12, %v1128_v27, %v1130_v60 }
 0x1e3   : > { %1433 = vmatprep.subr.bf16.mxu0 %v1210_v61  ;;  %2017 = vmatpush3.bf16.msra.mxu1 %v3041_v37 }
 0x1e4   : > { %2018 = vmatprep.subr.bf16.mxu1 %v1130_v60  ;;  %v1126_v5 = vpop.permute.xlu0 %1125 }
 0x1e5   : > { %v1209_v25 = vsel %vm694_vm12, %v1126_v5, %v1128_v27  ;;  %v1134_v55 = vpop.permute.xlu1 %1133 }
 0x1e6   : > { %1434 = vmatpush1.bf16.msra.mxu0 %v1209_v25 }
 0x1e7   : > { %2019 = vmatpush3.bf16.msra.mxu1 %v3052_v18 }
 0x1e8   : > { %v1136_v16 = vpop.permute.xlu0 %1135 }
 0x1e9   : > { %v1132_v30 = vpop.permute.xlu1 %1131  ;;  %2020 = vmatprep.subr.bf16.mxu1 %v1136_v16  ;;  %v1212_v57 = vsel %vm694_vm12, %v1134_v55, %v1136_v16 }
 0x1ea   : > { %v1211_v45 = vsel %vm694_vm12, %v1132_v30, %v1134_v55  ;;  %1435 = vmatprep.subr.bf16.mxu0 %v1212_v57 }
 0x1eb   : > { %2021 = vmatpush3.bf16.msra.mxu1 %v3067_v59  ;;  %1436 = vmatpush1.bf16.msra.mxu0 %v1211_v45 }
 0x1ec   : > { %v1140_v37 = vpop.permute.xlu0 %1139 }
 0x1ed   : > { %v1142_v54 = vpop.permute.xlu1 %1141 }
 0x1ee   : > { %2022 = vmatprep.subr.bf16.mxu1 %v1142_v54  ;;  %v1214_v53 = vsel %vm694_vm12, %v1140_v37, %v1142_v54 }
 0x1ef   : > { %1437 = vmatprep.subr.bf16.mxu0 %v1214_v53  ;;  %2023 = vmatpush3.bf16.msra.mxu1 %v3085_v17 }
 0x1f0   : > { %v1138_v18 = vpop.permute.xlu0 %1137 }
 0x1f1   : > { %v1213_v41 = vsel %vm694_vm12, %v1138_v18, %v1140_v37  ;;  %v1146_v7 = vpop.permute.xlu1 %1145 }
 0x1f2   : > { %1438 = vmatpush1.bf16.msra.mxu0 %v1213_v41 }
 0x1f4   : > { %v1148_v20 = vpop.permute.xlu0 %1147 }
 0x1f5   : > { %v1144_v63 = vpop.permute.xlu1 %1143  ;;  %2024 = vmatprep.subr.bf16.mxu1 %v1148_v20  ;;  %v1216_v34 = vsel %vm694_vm12, %v1146_v7, %v1148_v20 }
 0x1f6   : > { %v1215_v59 = vsel %vm694_vm12, %v1144_v63, %v1146_v7  ;;  %1439 = vmatprep.subr.bf16.mxu0 %v1216_v34  ;;  %2025 = vmatpush3.bf16.msra.mxu1 %v3103_v1 }
 0x1f7   : > { %1440 = vmatpush1.bf16.msra.mxu0 %v1215_v59 }
 0x1f9   : > { %v1152_v17 = vpop.permute.xlu0 %1151  ;;  %1604 = vmatmul.mubr.bf16.vlgmr.msra.gmra.mrb[12].mxu1 %v1941_v44 }
 0x1fa   : > { %1442 = vmatmul.mubr.bf16.vlgmr.msra.gmra.mrb[0].mxu0 %v1941_v44 }
 0x1fb   : > { %1482 = vmatprep.mubr.bf16.mxu0 %v2228_v43 }
 0x1fc   : > { %v1154_v4 = vpop.permute.xlu1 %1153 }
 0x1fd   : > { %v1150_v42 = vpop.permute.xlu0 %1149  ;;  %v1218_v24 = vsel %vm694_vm12, %v1152_v17, %v1154_v4 }
 0x1fe   : > { %v1217_v58 = vsel %vm694_vm12, %v1150_v42, %v1152_v17  ;;  %1450 = vmatprep.subr.bf16.mxu0 %v1218_v24 }
 0x1ff   : > { %1451 = vmatpush1.bf16.msra.mxu0 %v1217_v58 }
 0x20c   : > { %v1158_v6 = vpop.permute.xlu1 %1157 }
 0x20d   : > { %v1160_v9 = vpop.permute.xlu0 %1159 }
 0x20e   : > { %v1220_v1 = vsel %vm694_vm12, %v1158_v6, %v1160_v9 }
 0x20f   : > { %1452 = vmatprep.subr.bf16.mxu0 %v1220_v1 }
 0x210   : > { %v1156_v15 = vpop.permute.xlu1 %1155 }
 0x211   : > { %v1219_v2 = vsel %vm694_vm12, %v1156_v15, %v1158_v6  ;;  %v1164_v51 = vpop.permute.xlu0 %1163 }
 0x212   : > { %1453 = vmatpush1.bf16.msra.mxu0 %v1219_v2 }
 0x214   : > { %v1166_v46 = vpop.permute.xlu1 %1165 }
 0x215   : > { %v1222_v43 = vsel %vm694_vm12, %v1164_v51, %v1166_v46 }
 0x216   : > { %v1162_v0 = vpop.permute.xlu0 %1161  ;;  %1454 = vmatprep.subr.bf16.mxu0 %v1222_v43 }
 0x217   : > { %v1221_v49 = vsel %vm694_vm12, %v1162_v0, %v1164_v51 }
 0x218   : > { %v1170_v32 = vpop.permute.xlu1 %1169  ;;  %1455 = vmatpush1.bf16.msra.mxu0 %v1221_v49 }
 0x21a   : > { %v1172_v35 = vpop.permute.xlu0 %1171 }
 0x21b   : > { %v1224_v31 = vsel %vm694_vm12, %v1170_v32, %v1172_v35 }
 0x21c   : > { %v1168_v29 = vpop.permute.xlu1 %1167  ;;  %1456 = vmatprep.subr.bf16.mxu0 %v1224_v31 }
 0x21d   : > { %v1223_v39 = vsel %vm694_vm12, %v1168_v29, %v1170_v32 }
 0x21e   : > { %1457 = vmatpush1.bf16.msra.mxu0 %v1223_v39 }
 0x223   : > { %v1178_v8 = vpop.permute.xlu1 %1177 }
 0x224   : > { %v1176_v10 = vpop.permute.xlu0 %1175 }
 0x225   : > { %v1226_v33 = vsel %vm694_vm12, %v1176_v10, %v1178_v8 }
 0x226   : > { %1458 = vmatprep.subr.bf16.mxu0 %v1226_v33 }
 0x228   : > { %v1174_v26 = vpop.permute.xlu0 %1173 }
 0x229   : > { %v1225_v23 = vsel %vm694_vm12, %v1174_v26, %v1176_v10 }
 0x22a   : > { %1459 = vmatpush1.bf16.msra.mxu0 %v1225_v23 }
 0x22f   : > { %v1184_v52 = vpop.permute.xlu0 %1183 }
 0x230   : > { %v1182_v11 = vpop.permute.xlu1 %1181 }
 0x231   : > { %v1228_v22 = vsel %vm694_vm12, %v1182_v11, %v1184_v52 }
 0x232   : > { %1460 = vmatprep.subr.bf16.mxu0 %v1228_v22 }
 0x234   : > { %v1180_v3 = vpop.permute.xlu1 %1179 }
 0x235   : > { %v1227_v14 = vsel %vm694_vm12, %v1180_v3, %v1182_v11 }
 0x236   : > { %1461 = vmatpush1.bf16.msra.mxu0 %v1227_v14 }
 0x237   : > { %2039 = vmatprep.subr.bf16.mxu0 %v2229_v38 }
 0x239   : > { %1944 = vmatmul.mubr.msk.bf16.vlgmr.msra.gmra.mrb[0].mxu0 %vm1323_vm15, %v2162_v12 }
 0x23a   : > { %2040 = vmatpush3.bf16.msra.mxu0 %v1154_v4  ;;  %2051 = vmatprep.mubr.msk.bf16.mxu0 %vm2230_vm0, %v2229_v38 }
 0x23b   : > { %2041 = vmatprep.subr.bf16.mxu0 %v2229_v38 }
 0x23e   : > { %2042 = vmatpush3.bf16.msra.mxu0 %v1160_v9 }
 0x23f   : > { %2043 = vmatprep.subr.bf16.mxu0 %v2229_v38 }
 0x242   : > { %2044 = vmatpush3.bf16.msra.mxu0 %v1166_v46 }
 0x243   : > { %2045 = vmatprep.subr.bf16.mxu0 %v2229_v38 }
 0x245   : > { %v1664_v37 = vpop.permute.xlu1 %1663 }
 0x246   : > { %2046 = vmatpush3.bf16.msra.mxu0 %v1172_v35 }
 0x247   : > { %2047 = vmatprep.subr.bf16.mxu0 %v2229_v38 }
 0x249   : > { %v1686_v18 = vpop.permute.xlu1 %1685 }
 0x24a   : > { %2048 = vmatpush3.bf16.msra.mxu0 %v1178_v8 }
 0x24b   : > { %2049 = vmatprep.subr.bf16.mxu0 %v2229_v38  ;;  %v1655_v54 = vpop.permute.xlu0 %1654 }
 0x24d   : > { %v1684_v42 = vpop.permute.xlu1 %1683 }
 0x24e   : > { %2050 = vmatpush3.bf16.msra.mxu0 %v1184_v52  ;;  %v1690_v9 = vsel %vm625_vm4, %v1684_v42, %v1686_v18 }
 0x24f   : > { %v1688_v34 = vpop.permute.xlu0 %1687 }
 0x250   : > { %v1691_v4 = vsel %vm625_vm4, %v1686_v18, %v1688_v34 }
 0x251   : > { %2052 = vmatmul.mubr.msk.bf16.vlgmr.msra.gmra.mrb[4].mxu0 %vm1323_vm15, %v2162_v12 }
 0x268   : > { %v1361_v36 = vpop.f32.mrb[0].mxu1 }
 0x269   : > { %v1363_v19 = vpop.f32.mrb[1].mxu1 }
 0x26a   : > { %v1365_v62 = vpop.f32.mrb[2].mxu1 }
 0x26b   : > { %v1366_v56 = vpop.f32.mrb[3].mxu1 }
 0x289   : > { %v1982_v47 = vpop.f32.mrb[4].mxu1 }
 0x28a   : > { %v1983_v50 = vpop.f32.mrb[5].mxu1 }
 0x28b   : > { %v1984_v40 = vadd.f32 %v1983_v50, %v1982_v47  ;;  %v1985_v21 = vpop.f32.mrb[6].mxu1 }
 0x28c   : > { %v1986_v48 = vpop.f32.mrb[7].mxu1 }
 0x2a9   : > { %v2004_v28 = vpop.f32.mrb[8].mxu1 }
 0x2aa   : > { %v2005_v13 = vpop.f32.mrb[9].mxu1 }
 0x2ab   : > { %v2006_v27 = vadd.f32 %v2005_v13, %v2004_v28  ;;  %v2007_v60 = vpop.f32.mrb[10].mxu1 }
 0x2ac   : > { %v2008_v61 = vpop.f32.mrb[11].mxu1 }
 0x2ad   : > { %v1566_v5 = vadd.f32 %v2006_v27, %v1984_v40 }
 0x2cc   : > { %v2026_v25 = vpop.f32.mrb[12].mxu1 }
 0x2cd   : > { %v2027_v55 = vpop.f32.mrb[13].mxu1 }
 0x2ce   : > { %v2028_v16 = vadd.f32 %v2027_v55, %v2026_v25  ;;  %v2029_v30 = vpop.f32.mrb[14].mxu1 }
 0x2cf   : > { %v2030_v57 = vpop.f32.mrb[15].mxu1 }
 0x2d0   : > { %v1606_v45 = vadd.f32 %v2028_v16, %v1566_v5 }
 0x30c   : > { %v1484_v53 = vpop.f32.mrb[0].mxu0 }
 0x30d   : > { %v2055_v41 = vadd.f32 %v1484_v53, %v1361_v36  ;;  %v1486_v7 = vpop.f32.mrb[1].mxu0 }
 0x30e   : > { %v2056_v20 = vadd.f32 %v1486_v7, %v1363_v19  ;;  %v1488_v63 = vpop.f32.mrb[2].mxu0 }
 0x30f   : > { %v1489_v59 = vpop.f32.mrb[3].mxu0  ;;  %v1657_v44 = vmul.f32 %v2055_v41, %v1655_v54 }
 0x310   : > { %v1658_v17 = vmul.f32 %v2056_v20, %v1655_v54 }
 0x311   : > { %v1666_v58 = vadd.f32 %v1664_v37, %v1657_v44 }
 0x312   : > { %v1667_v24 = vadd.f32 %v1664_v37, %v1658_v17 }
 0x313   : > { %v1695_v1 = vmul.f32 %v1690_v9, %v1666_v58 }
 0x314   : > { %v1696_v6 = vmul.f32 %v1691_v4, %v1667_v24 }
 0x316   : > { %1703 = vrot.lane.b32.xlu0 %v1696_v6, %s2221_s22 }
 0x31a   : > { %1701 = vrot.lane.b32.xlu0 %v1695_v1, %s2221_s22 }
 0x324   : > { %v1645_v15 = vpop.f32.mrb[4].mxu0 }
 0x325   : > { %v1646_v2 = vadd.f32 %v1645_v15, %v1606_v45  ;;  %v2053_v51 = vpop.f32.mrb[5].mxu0 }
 0x326   : > { %v1648_v46 = vpop.f32.mrb[6].mxu0 }
 0x327   : > { %v1659_v43 = vmul.f32 %v1655_v54, %v1646_v2  ;;  %v2054_v0 = vpop.f32.mrb[7].mxu0 }
 0x329   : > { %v1668_v49 = vadd.f32 %v1664_v37, %v1659_v43 }
 0x32b   : > { %v1697_v32 = vmul.f32 %v1688_v34, %v1668_v49 }
 0x32d   : > { %1705 = vrot.lane.b32.xlu1 %v1697_v32, %s2221_s22 }
 0x388   : > { %v1704_v35 = vpop.permute.xlu0 %1703 }
 0x38c   : > { %v1702_v31 = vpop.permute.xlu0 %1701 }
 0x38d   : > { %v1708_v29 = vsel %vm981_vm10, %v1702_v31, %v1704_v35  ;;  %v1713_v39 = vsel %vm981_vm10, 0.0, %v1702_v31 }
 0x38e   : > { %1716 = vst [vmem:[%s2342_s21] sm:$0xff] %v1713_v39  ;;  %1717 = vst [vmem:[%s2342_s21 + $0x8] sm:$0xff] %v1708_v29 }
 0x39f   : > { %v1706_v8 = vpop.permute.xlu1 %1705 }
 0x3a0   : > { %v1709_v10 = vsel %vm981_vm10, %v1704_v35, %v1706_v8 }
 0x3a1   : > { %v1715_v33 = vsel %vm1714_vm1, %v1709_v10, 0.0 }
 0x3a2   : > { %1718 = vst [vmem:[%s2342_s21 + $0x10] sm:$0xff] %v1715_v33 }
 0x3a3 PF: > { %1721 = sbr.rel (!%p2321_p2) target bundleno = 938 (0x3aa), region = 56  ;;  %v2231_v26 = vmov (%p2321_p2), 0.0  }
 0x3a4   : > { %1722 = vst [vmem:[%s2342_s21] sm:$0xff] (%p2321_p2), %v2231_v26  ;;  %1723 = vst [vmem:[%s2342_s21 + $0x8] sm:$0xff] (%p2321_p2), %v2231_v26 }
 0x3a5   : > { %1724 = vst [vmem:[%s2342_s21 + $0x10] sm:$0xff] (%p2321_p2), %v2231_v26 }
 0x3aa PF: > { %s17_s28 = sadd.s32 1, %s2211_s28   ;;  %s3219_s25 = sld [smem:[#allocation2_spill]] }
 0x3ab   : > { %p14_p4 = scmp.ge.s32.totalorder %s17_s28, 22   ;;  %s3220_s22 = sld [smem:[#allocation3_spill]] }
 0x3ac   : > { %s3221_s27 = sld [smem:[#allocation4_spill]]  ;;  %s3222_s24 = smov %s2203_s26 }
 0x3ad   :  { %16 = sbr.rel (!%p14_p4) target bundleno = 3 (0x3), region = 92 }
 0x3b1   : > { %s3223_s26 = smov %s3220_s22 }

</bundles_post_ra>
